<compile_context>
chip_gen: v6e
topology: v6e:2x2x1
jax: 0.10.0
libtpu: 0.0.40
codegen_flags: <defaults>
</compile_context>

<pallas_src>
import functools

import jax
import jax.numpy as jnp
from jax.experimental import pallas as pl
from jax.experimental.pallas import tpu as pltpu


# ------------------------- Pallas kernel -------------------------

def _deep_crossing_kernel(n_res_units, r_ref, *refs):
    """refs = [(w1, b1, w2, b2) * n_res_units, w_out_row, b_out, out]."""
    out_ref = refs[-1]
    params = refs[:-1]

    r_bf16 = r_ref[...]                       # (TB, D_pad) bf16 (streamed input)
    r = r_bf16.astype(jnp.float32)            # f32 residual carry (VPU-safe on v5e)

    idx = 0
    for u in range(n_res_units):
        w1 = params[idx][...]                 # (D_pad, U)  bf16
        b1 = params[idx + 1][...]             # (1, U)      f32
        w2 = params[idx + 2][...]             # (U, D_pad)  bf16
        b2 = params[idx + 3][...]             # (1, D_pad)  f32
        idx += 4
        # ResidualUnit: fc2(relu(fc1(x))) + x
        # (matmuls on the bf16 MXU path; bias / relu / residual in f32 on the VPU)
        lhs = r_bf16 if u == 0 else r.astype(jnp.bfloat16)
        h = jnp.dot(lhs, w1, preferred_element_type=jnp.float32) + b1
        h = jnp.maximum(h, 0.0)
        r = jnp.dot(h.astype(jnp.bfloat16), w2,
                    preferred_element_type=jnp.float32) + b2 + r

    # dropout(p=0.0) in eval mode == identity
    # Head: N=1 matmul replaced by VPU multiply + cross-lane (XLU) reduction.
    w_out_row = params[idx][...]              # (1, D_pad) f32
    b_out = params[idx + 1][...]              # (1, 1)     f32
    logits = jnp.sum(r * w_out_row, axis=-1, keepdims=True) + b_out
    # exact sigmoid (exp on the EUP; the divide is only (TB, 1))
    probs = 1.0 / (1.0 + jnp.exp(-logits))
    out_ref[...] = probs.astype(out_ref.dtype)


def deep_crossing_forward(r, kernel_params, n_res_units, *, block_b=512):
    """r: [B, D_pad] bf16 (feature dim already padded to a multiple of 128)."""
    B, d_pad = r.shape
    assert d_pad % 128 == 0 and block_b % 8 == 0

    num_blocks = pl.cdiv(B, block_b)
    b_pad = num_blocks * block_b
    if b_pad != B:
        r = jnp.pad(r, ((0, b_pad - B), (0, 0)))

    # r streams through the grid; every weight/bias is a full-array block with a
    # constant index_map so it is copied to VMEM once and stays resident.
    in_specs = [pl.BlockSpec((block_b, d_pad), lambda i: (i, 0))]
    for p in kernel_params:
        in_specs.append(pl.BlockSpec(p.shape, lambda i: (0, 0)))
    out_spec = pl.BlockSpec((block_b, 1), lambda i: (i, 0))

    # Advisory cost hint for the XLA scheduler around the custom call.
    flops = 0
    for u in range(n_res_units):
        d_w, unit = kernel_params[4 * u].shape
        flops += 4 * d_w * unit * b_pad          # fc1 + fc2 per residual unit
    flops += 2 * d_pad * b_pad                   # head dot-product
    bytes_accessed = (b_pad * d_pad * r.dtype.itemsize      # streamed activations
                      + b_pad * 4                            # output
                      + sum(int(p.size) * p.dtype.itemsize for p in kernel_params))
    cost = pl.CostEstimate(flops=int(flops), transcendentals=int(b_pad),
                           bytes_accessed=int(bytes_accessed))

    kernel = functools.partial(_deep_crossing_kernel, n_res_units)
    out = pl.pallas_call(
        kernel,
        out_shape=jax.ShapeDtypeStruct((b_pad, 1), jnp.float32),
        grid=(num_blocks,),
        in_specs=in_specs,
        out_specs=out_spec,
        compiler_params=pltpu.CompilerParams(
            dimension_semantics=("parallel",)),
        cost_estimate=cost,
    )(r, *kernel_params)

    # torch .squeeze() on [B, 1] -> [B]
    return out[:B, 0]


# ------------------------- Parameter setup (deterministic) -------------------------

def _round_up(x, m):
    return ((x + m - 1) // m) * m


def init_params(key, n_sparse, vocab_sizes, n_dense, embed_dim, hidden_units, output_dim=1):
    dim_stack = n_dense + embed_dim * n_sparse
    n_keys = n_sparse + 4 * len(hidden_units) + 2
    keys = jax.random.split(key, n_keys)
    ki = iter(range(n_keys))

    # embedding tables ~ N(0, 0.005)
    embed_tables = [
        0.005 * jax.random.normal(keys[next(ki)], (vocab_sizes[i], embed_dim), jnp.float32)
        for i in range(n_sparse)
    ]

    def linear_params(k_w, k_b, in_dim, out_dim, weight_std=0.005):
        # weight ~ N(0, std) (as in the module, stored as [in, out]);
        # bias keeps torch default U(-1/sqrt(in), 1/sqrt(in))
        w = weight_std * jax.random.normal(k_w, (in_dim, out_dim), jnp.float32)
        bound = 1.0 / jnp.sqrt(jnp.float32(in_dim))
        b = jax.random.uniform(k_b, (out_dim,), jnp.float32, -bound, bound)
        return w, b

    res_params = []
    for unit in hidden_units:
        w1, b1 = linear_params(keys[next(ki)], keys[next(ki)], dim_stack, unit)
        w2, b2 = linear_params(keys[next(ki)], keys[next(ki)], unit, dim_stack)
        res_params.append((w1, b1, w2, b2))

    w_out, b_out = linear_params(keys[next(ki)], keys[next(ki)], dim_stack, output_dim)
    return embed_tables, res_params, w_out, b_out, dim_stack


def prepare_inference_params(embed_tables, res_params, w_out, b_out, dim_stack):
    """One-time prep: stack embeddings, zero-pad feature dim to 128-multiple,
    cast MXU weights to bf16 (biases and the VPU head weight stay f32)."""
    d_pad = _round_up(dim_stack, 128)
    pad_d = d_pad - dim_stack

    vmax = max(t.shape[0] for t in embed_tables)
    emb_stack = jnp.stack(
        [jnp.pad(t, ((0, vmax - t.shape[0]), (0, 0))) for t in embed_tables], axis=0
    )  # [n_sparse, vmax, embed_dim]

    flat = []
    for (w1, b1, w2, b2) in res_params:
        w1p = jnp.pad(w1, ((0, pad_d), (0, 0))).astype(jnp.bfloat16)   # (D_pad, U)
        w2p = jnp.pad(w2, ((0, 0), (0, pad_d))).astype(jnp.bfloat16)   # (U, D_pad)
        b2p = jnp.pad(b2, ((0, pad_d),)).astype(jnp.float32)
        flat += [w1p, b1.reshape(1, -1).astype(jnp.float32),
                 w2p, b2p.reshape(1, -1)]
    # head weight stays f32 as a lane-dense (1, D_pad) row (VPU multiply + reduce)
    w_out_row = jnp.pad(w_out, ((0, pad_d), (0, 0))).astype(jnp.float32).T  # (1, D_pad)
    flat += [w_out_row, b_out.reshape(1, 1).astype(jnp.float32)]

    return emb_stack, flat, d_pad


# ------------------------- Full model (glue in JAX, hot path in Pallas) -------------------------

def deep_crossing_apply(x, emb_stack, kernel_params, n_res_units,
                        embed_dim, dim_stack, d_pad, *, block_b=512):
    # forward() splits: first 26 columns are sparse indices, the rest are dense.
    n_sparse = emb_stack.shape[0]
    dense_inputs = x[:, n_sparse:].astype(jnp.float32)
    sparse_ids = x[:, :n_sparse].astype(jnp.int32)

    # single vectorized gather over the stacked tables: [B, n_sparse, embed_dim]
    sparse_embed = emb_stack[jnp.arange(n_sparse)[None, :], sparse_ids]
    sparse_embed = sparse_embed.reshape(x.shape[0], n_sparse * embed_dim)

    r = jnp.concatenate([sparse_embed, dense_inputs], axis=-1)       # [B, dim_stack]
    r = jnp.pad(r, ((0, 0), (0, d_pad - dim_stack)))
    # stream the activation to the kernel in bf16 (halves the dominant HBM term)
    r = r.astype(jnp.bfloat16)

    return deep_crossing_forward(r, kernel_params, n_res_units, block_b=block_b)


# ------------------------- Pure-JAX f32 reference -------------------------

def deep_crossing_reference(x, embed_tables, res_params, w_out, b_out):
    n_sparse = len(embed_tables)
    dense = x[:, n_sparse:].astype(jnp.float32)
    ids = x[:, :n_sparse].astype(jnp.int32)
    embeds = [embed_tables[i][ids[:, i]] for i in range(n_sparse)]
    r = jnp.concatenate(embeds + [dense], axis=-1)
    for (w1, b1, w2, b2) in res_params:
        h = jnp.maximum(r @ w1 + b1, 0.0)
        r = h @ w2 + b2 + r
    logits = r @ w_out + b_out
    return jax.nn.sigmoid(logits)[:, 0]


# ------------------------- Main -------------------------

if __name__ == "__main__":
    key = jax.random.PRNGKey(0)

    n_sparse = 26            # hardcoded in the PyTorch forward (x[:, :26])
    n_dense = 13
    embed_dim = 10
    hidden_units = [64, 32]
    vocab_sizes = [20] * n_sparse
    B = 1050                 # -> 3 grid steps at default block_b=512 (exercises padding
                             #    and keeps >= 2 steps for v7x megacore sharding)

    k_params, k_sparse, k_dense = jax.random.split(key, 3)
    embed_tables, res_params, w_out, b_out, dim_stack = init_params(
        k_params, n_sparse, vocab_sizes, n_dense, embed_dim, hidden_units)

    emb_stack, kernel_params, d_pad = prepare_inference_params(
        embed_tables, res_params, w_out, b_out, dim_stack)

    # input x: [B, 26 + n_dense]; first 26 cols are integer-valued (category ids), rest dense floats.
    sparse_ids = jax.random.randint(k_sparse, (B, n_sparse), 0, vocab_sizes[0]).astype(jnp.float32)
    dense_vals = jax.random.normal(k_dense, (B, n_dense), jnp.float32)
    x = jnp.concatenate([sparse_ids, dense_vals], axis=-1)

    out = deep_crossing_apply(x, emb_stack, kernel_params, len(hidden_units),
                              embed_dim, dim_stack, d_pad)   # default block_b=512
    out = jax.block_until_ready(out)

    assert out.shape == (B,), out.shape
    assert bool(jnp.all((out >= 0.0) & (out <= 1.0)))

    # numerical check vs. the f32 reference (kernel uses bf16 weights/activations)
    ref = deep_crossing_reference(x, embed_tables, res_params, w_out, b_out)
    max_err = float(jnp.max(jnp.abs(out - ref)))
    assert max_err < 5e-3, f"max abs error vs f32 reference: {max_err}"

    print("KERNEL_OK")
</pallas_src>

<mosaic_0001>
module attributes {stable_mosaic.version = 11 : i64} {
  func.func @_deep_crossing_kernel(%arg0: i32, %arg1: memref<512x384xbf16, #tpu.memory_space<vmem>>, %arg2: memref<384x64xbf16, #tpu.memory_space<vmem>>, %arg3: memref<1x64xf32, #tpu.memory_space<vmem>>, %arg4: memref<64x384xbf16, #tpu.memory_space<vmem>>, %arg5: memref<1x384xf32, #tpu.memory_space<vmem>>, %arg6: memref<384x32xbf16, #tpu.memory_space<vmem>>, %arg7: memref<1x32xf32, #tpu.memory_space<vmem>>, %arg8: memref<32x384xbf16, #tpu.memory_space<vmem>>, %arg9: memref<1x384xf32, #tpu.memory_space<vmem>>, %arg10: memref<1x384xf32, #tpu.memory_space<vmem>>, %arg11: memref<1x1xf32, #tpu.memory_space<vmem>>, %arg12: memref<512x1xf32, #tpu.memory_space<vmem>>) attributes {dimension_semantics = [#tpu.dimension_semantics<parallel>], iteration_bounds = array<i64: 3>, scalar_prefetch = 0 : i64, scratch_operands = 0 : i64, tpu.core_type = #tpu.core_type<tc>, window_params = [{transform_indices = @transform_0, window_bounds = array<i64: 512, 384>}, {pipeline_mode = #tpu.pipeline_mode<synchronous>, transform_indices = @transform_1, window_bounds = array<i64: 384, 64>}, {pipeline_mode = #tpu.pipeline_mode<synchronous>, transform_indices = @transform_2, window_bounds = array<i64: 1, 64>}, {pipeline_mode = #tpu.pipeline_mode<synchronous>, transform_indices = @transform_3, window_bounds = array<i64: 64, 384>}, {pipeline_mode = #tpu.pipeline_mode<synchronous>, transform_indices = @transform_4, window_bounds = array<i64: 1, 384>}, {pipeline_mode = #tpu.pipeline_mode<synchronous>, transform_indices = @transform_5, window_bounds = array<i64: 384, 32>}, {pipeline_mode = #tpu.pipeline_mode<synchronous>, transform_indices = @transform_6, window_bounds = array<i64: 1, 32>}, {pipeline_mode = #tpu.pipeline_mode<synchronous>, transform_indices = @transform_7, window_bounds = array<i64: 32, 384>}, {pipeline_mode = #tpu.pipeline_mode<synchronous>, transform_indices = @transform_8, window_bounds = array<i64: 1, 384>}, {pipeline_mode = #tpu.pipeline_mode<synchronous>, transform_indices = @transform_9, window_bounds = array<i64: 1, 384>}, {pipeline_mode = #tpu.pipeline_mode<synchronous>, transform_indices = @transform_10, window_bounds = array<i64: 1, 1>}, {transform_indices = @transform_11, window_bounds = array<i64: 512, 1>}]} {
    %c0 = arith.constant 0 : index
    %c0_0 = arith.constant 0 : index
    %0 = vector.load %arg1[%c0, %c0_0] : memref<512x384xbf16, #tpu.memory_space<vmem>>, vector<512x384xbf16>
    %1 = arith.extf %0 : vector<512x384xbf16> to vector<512x384xf32>
    %c0_1 = arith.constant 0 : index
    %c0_2 = arith.constant 0 : index
    %2 = vector.load %arg2[%c0_1, %c0_2] : memref<384x64xbf16, #tpu.memory_space<vmem>>, vector<384x64xbf16>
    %c0_3 = arith.constant 0 : index
    %c0_4 = arith.constant 0 : index
    %3 = vector.load %arg3[%c0_3, %c0_4] : memref<1x64xf32, #tpu.memory_space<vmem>>, vector<1x64xf32>
    %c0_5 = arith.constant 0 : index
    %c0_6 = arith.constant 0 : index
    %4 = vector.load %arg4[%c0_5, %c0_6] : memref<64x384xbf16, #tpu.memory_space<vmem>>, vector<64x384xbf16>
    %c0_7 = arith.constant 0 : index
    %c0_8 = arith.constant 0 : index
    %5 = vector.load %arg5[%c0_7, %c0_8] : memref<1x384xf32, #tpu.memory_space<vmem>>, vector<1x384xf32>
    %cst = arith.constant dense<0.000000e+00> : vector<512x64xf32>
    %6 = tpu.matmul %0, %2, %cst {dimension_numbers = #tpu.dot_dimension_numbers<[1], [0], [0], [1], [0, 0, 1, 1], [], []>} : vector<512x384xbf16>, vector<384x64xbf16>, vector<512x64xf32> -> vector<512x64xf32>
    %7 = vector.broadcast %3 : vector<1x64xf32> to vector<512x64xf32>
    %8 = arith.addf %6, %7 : vector<512x64xf32>
    %cst_9 = arith.constant 0.000000e+00 : f32
    %9 = vector.broadcast %cst_9 : f32 to vector<512x64xf32>
    %10 = arith.maximumf %8, %9 : vector<512x64xf32>
    %11 = arith.truncf %10 : vector<512x64xf32> to vector<512x64xbf16>
    %cst_10 = arith.constant dense<0.000000e+00> : vector<512x384xf32>
    %12 = tpu.matmul %11, %4, %cst_10 {dimension_numbers = #tpu.dot_dimension_numbers<[1], [0], [0], [1], [0, 0, 1, 1], [], []>} : vector<512x64xbf16>, vector<64x384xbf16>, vector<512x384xf32> -> vector<512x384xf32>
    %13 = vector.broadcast %5 : vector<1x384xf32> to vector<512x384xf32>
    %14 = arith.addf %12, %13 : vector<512x384xf32>
    %15 = arith.addf %14, %1 : vector<512x384xf32>
    %c0_11 = arith.constant 0 : index
    %c0_12 = arith.constant 0 : index
    %16 = vector.load %arg6[%c0_11, %c0_12] : memref<384x32xbf16, #tpu.memory_space<vmem>>, vector<384x32xbf16>
    %c0_13 = arith.constant 0 : index
    %c0_14 = arith.constant 0 : index
    %17 = vector.load %arg7[%c0_13, %c0_14] : memref<1x32xf32, #tpu.memory_space<vmem>>, vector<1x32xf32>
    %c0_15 = arith.constant 0 : index
    %c0_16 = arith.constant 0 : index
    %18 = vector.load %arg8[%c0_15, %c0_16] : memref<32x384xbf16, #tpu.memory_space<vmem>>, vector<32x384xbf16>
    %c0_17 = arith.constant 0 : index
    %c0_18 = arith.constant 0 : index
    %19 = vector.load %arg9[%c0_17, %c0_18] : memref<1x384xf32, #tpu.memory_space<vmem>>, vector<1x384xf32>
    %20 = arith.truncf %15 : vector<512x384xf32> to vector<512x384xbf16>
    %cst_19 = arith.constant dense<0.000000e+00> : vector<512x32xf32>
    %21 = tpu.matmul %20, %16, %cst_19 {dimension_numbers = #tpu.dot_dimension_numbers<[1], [0], [0], [1], [0, 0, 1, 1], [], []>} : vector<512x384xbf16>, vector<384x32xbf16>, vector<512x32xf32> -> vector<512x32xf32>
    %22 = vector.broadcast %17 : vector<1x32xf32> to vector<512x32xf32>
    %23 = arith.addf %21, %22 : vector<512x32xf32>
    %cst_20 = arith.constant 0.000000e+00 : f32
    %24 = vector.broadcast %cst_20 : f32 to vector<512x32xf32>
    %25 = arith.maximumf %23, %24 : vector<512x32xf32>
    %26 = arith.truncf %25 : vector<512x32xf32> to vector<512x32xbf16>
    %cst_21 = arith.constant dense<0.000000e+00> : vector<512x384xf32>
    %27 = tpu.matmul %26, %18, %cst_21 {dimension_numbers = #tpu.dot_dimension_numbers<[1], [0], [0], [1], [0, 0, 1, 1], [], []>} : vector<512x32xbf16>, vector<32x384xbf16>, vector<512x384xf32> -> vector<512x384xf32>
    %28 = vector.broadcast %19 : vector<1x384xf32> to vector<512x384xf32>
    %29 = arith.addf %27, %28 : vector<512x384xf32>
    %30 = arith.addf %29, %15 : vector<512x384xf32>
    %c0_22 = arith.constant 0 : index
    %c0_23 = arith.constant 0 : index
    %31 = vector.load %arg10[%c0_22, %c0_23] : memref<1x384xf32, #tpu.memory_space<vmem>>, vector<1x384xf32>
    %c0_24 = arith.constant 0 : index
    %c0_25 = arith.constant 0 : index
    %32 = vector.load %arg11[%c0_24, %c0_25] : memref<1x1xf32, #tpu.memory_space<vmem>>, vector<1x1xf32>
    %33 = vector.broadcast %31 : vector<1x384xf32> to vector<512x384xf32>
    %34 = arith.mulf %30, %33 : vector<512x384xf32>
    %cst_26 = arith.constant dense<0.000000e+00> : vector<512xf32>
    %35 = vector.multi_reduction <add>, %34, %cst_26 [1] : vector<512x384xf32> to vector<512xf32>
    %36 = vector.shape_cast %35 : vector<512xf32> to vector<512x1xf32>
    %37 = vector.broadcast %32 : vector<1x1xf32> to vector<512x1xf32>
    %38 = arith.addf %36, %37 : vector<512x1xf32>
    %cst_27 = arith.constant 0.000000e+00 : f32
    %39 = vector.broadcast %cst_27 : f32 to vector<512x1xf32>
    %40 = arith.subf %39, %38 : vector<512x1xf32>
    %41 = math.exp %40 : vector<512x1xf32>
    %cst_28 = arith.constant 1.000000e+00 : f32
    %42 = vector.broadcast %cst_28 : f32 to vector<512x1xf32>
    %43 = arith.addf %42, %41 : vector<512x1xf32>
    %cst_29 = arith.constant 1.000000e+00 : f32
    %44 = vector.broadcast %cst_29 : f32 to vector<512x1xf32>
    %45 = arith.divf %44, %43 : vector<512x1xf32>
    %c0_30 = arith.constant 0 : index
    %c0_31 = arith.constant 0 : index
    %46 = vector.load %arg12[%c0_30, %c0_31] : memref<512x1xf32, #tpu.memory_space<vmem>>, vector<512x1xf32>
    tpu.vector_store %arg12[%c0_30, %c0_31], %45 {strides = array<i32>} : memref<512x1xf32, #tpu.memory_space<vmem>>, vector<512x1xf32>,
    return
  }
  func.func @transform_0(%arg0: i32) -> (i32, i32) {
    %c0_i32 = arith.constant 0 : i32
    %c0_i32_0 = arith.constant 0 : i32
    return %arg0, %c0_i32 : i32, i32
  }
  func.func @transform_1(%arg0: i32) -> (i32, i32) {
    %c0_i32 = arith.constant 0 : i32
    %c0_i32_0 = arith.constant 0 : i32
    %c0_i32_1 = arith.constant 0 : i32
    return %c0_i32, %c0_i32_0 : i32, i32
  }
  func.func @transform_2(%arg0: i32) -> (i32, i32) {
    %c0_i32 = arith.constant 0 : i32
    %c0_i32_0 = arith.constant 0 : i32
    %c0_i32_1 = arith.constant 0 : i32
    return %c0_i32, %c0_i32_0 : i32, i32
  }
  func.func @transform_3(%arg0: i32) -> (i32, i32) {
    %c0_i32 = arith.constant 0 : i32
    %c0_i32_0 = arith.constant 0 : i32
    %c0_i32_1 = arith.constant 0 : i32
    return %c0_i32, %c0_i32_0 : i32, i32
  }
  func.func @transform_4(%arg0: i32) -> (i32, i32) {
    %c0_i32 = arith.constant 0 : i32
    %c0_i32_0 = arith.constant 0 : i32
    %c0_i32_1 = arith.constant 0 : i32
    return %c0_i32, %c0_i32_0 : i32, i32
  }
  func.func @transform_5(%arg0: i32) -> (i32, i32) {
    %c0_i32 = arith.constant 0 : i32
    %c0_i32_0 = arith.constant 0 : i32
    %c0_i32_1 = arith.constant 0 : i32
    return %c0_i32, %c0_i32_0 : i32, i32
  }
  func.func @transform_6(%arg0: i32) -> (i32, i32) {
    %c0_i32 = arith.constant 0 : i32
    %c0_i32_0 = arith.constant 0 : i32
    %c0_i32_1 = arith.constant 0 : i32
    return %c0_i32, %c0_i32_0 : i32, i32
  }
  func.func @transform_7(%arg0: i32) -> (i32, i32) {
    %c0_i32 = arith.constant 0 : i32
    %c0_i32_0 = arith.constant 0 : i32
    %c0_i32_1 = arith.constant 0 : i32
    return %c0_i32, %c0_i32_0 : i32, i32
  }
  func.func @transform_8(%arg0: i32) -> (i32, i32) {
    %c0_i32 = arith.constant 0 : i32
    %c0_i32_0 = arith.constant 0 : i32
    %c0_i32_1 = arith.constant 0 : i32
    return %c0_i32, %c0_i32_0 : i32, i32
  }
  func.func @transform_9(%arg0: i32) -> (i32, i32) {
    %c0_i32 = arith.constant 0 : i32
    %c0_i32_0 = arith.constant 0 : i32
    %c0_i32_1 = arith.constant 0 : i32
    return %c0_i32, %c0_i32_0 : i32, i32
  }
  func.func @transform_10(%arg0: i32) -> (i32, i32) {
    %c0_i32 = arith.constant 0 : i32
    %c0_i32_0 = arith.constant 0 : i32
    %c0_i32_1 = arith.constant 0 : i32
    return %c0_i32, %c0_i32_0 : i32, i32
  }
  func.func @transform_11(%arg0: i32) -> (i32, i32) {
    %c0_i32 = arith.constant 0 : i32
    %c0_i32_0 = arith.constant 0 : i32
    return %arg0, %c0_i32 : i32, i32
  }
}

</mosaic_0001>

<bundles_post_ra>
// kernel: tpu_custom_call.1
= control target key start
LH: loop header
LB: loop body
LE: loop exit
PB: predicated region body
PF: predicated region fallthrough
CT: control target
= control target key end

     0   :  { %s11588_s0 = inlined_call_operand.hbm [shape: bf16[1536,384], index: 0, kind: input, shape index: {}]   ;;  %s11589_s1 = inlined_call_operand.vmem [shape: bf16[384,64], index: 1, kind: input, shape index: {}]   ;;  %s11590_s2 = inlined_call_operand.hbm [shape: f32[1,64], index: 2, kind: input, shape index: {}]   ;;  %s11591_s3 = inlined_call_operand.hbm [shape: bf16[64,384], index: 3, kind: input, shape index: {}]   ;;  %s11592_s4 = inlined_call_operand.hbm [shape: f32[1,384], index: 4, kind: input, shape index: {}]   ;;  %s11593_s5 = inlined_call_operand.vmem [shape: bf16[384,32], index: 5, kind: input, shape index: {}]   ;;  %s11594_s6 = inlined_call_operand.hbm [shape: f32[1,32], index: 6, kind: input, shape index: {}]   ;;  %s11595_s7 = inlined_call_operand.hbm [shape: bf16[32,384], index: 7, kind: input, shape index: {}]   ;;  %s11596_s8 = inlined_call_operand.hbm [shape: f32[1,384], index: 8, kind: input, shape index: {}]   ;;  %s11597_s9 = inlined_call_operand.hbm [shape: f32[1,384], index: 9, kind: input, shape index: {}]   ;;  %s11598_s10 = inlined_call_operand.<no memory space> [shape: f32[1,1], index: 10, kind: input, shape index: {}]   ;;  %s11599_s11 = inlined_call_operand.vmem [shape: f32[1536,1], index: 11, kind: output, shape index: {}]  }
   0x1   :  { %11793 = sst [smem:[#allocation204_spill]] %s11590_s2  ;;  %v16_v0 = vstv %s11598_s10 }
   0x2   :  { %17 = vst [vmem:[#allocation2] sm:$0x1] %v16_v0 }
   0x3   :  { %18 = vsyncpa [#allocation4], 0 }
   0x4   :  { %20 = vsyncpa [#allocation4 + $0x1], 0 }
   0x5   :  { %21 = vsyncpa [#allocation6], 0 }
   0x6   :  { %22 = vsyncpa [#allocation9], 0 }
   0x7   :  { %23 = vsyncpa [#allocation12], 0 }
   0x8   :  { %24 = vsyncpa [#allocation15], 0  ;;  %s8109_s19 = smov 0   ;;  %s8111_s20 = smov 0  }
   0x9   :  { %s8113_s21 = smov 0   ;;  %s8115_s22 = smov 0  }
   0xa LB: > { %s8035_s10 = smov [#allocation5]   ;;  %s11603_s24 = sadd.s32 4294967295, %s8033_s22   ;;  %s8033_s22 = sphi %s8115_s22, %s12178_s22   ;;  %s8029_s21 = sphi %s8113_s21, %s12177_s21   ;;  %s8025_s20 = sphi %s8111_s20, %s12176_s20   ;;  %s8021_s19 = sphi %s8109_s19, %s12175_s19  }
   0xb   : > { %s313_s23 = sshll.u32 %s8035_s10, 4  ;;  %p6316_p0 = scmp.ge.s32.totalorder %s8033_s22, 1  ;;  %s314_s23 = int_to_ptr.vmem [resolvable:$true] %s313_s23 }
   0xc   : > { %p8133_p1 = scmp.eq.s32.totalorder %s11603_s24, 0  ;;  %p297_p2 = scmp.lt.s32.totalorder %s8033_s22, 4 }
   0xd   : > { %s8036_s27 = smov [#allocation8]   ;;  %s8037_s30 = smov [#allocation11]  }
   0xe   : > { %s11794_s25 = scalar_select %p8133_p1, 1, 0 }
   0xf   : > { %p8138_p3 = pnand %p6316_p0, %p297_p2  ;;  %s337_s28 = sshll.u32 %s8036_s27, 4  ;;  %s338_s28 = int_to_ptr.vmem [resolvable:$true] %s337_s28 }
  0x10   : > { %s361_s12 = sshll.u32 %s8037_s30, 4  ;;  %s7784_s14 = scalar_lea.vmem %s314_s23, 16  ;;  %s8150_s12 = int_to_ptr.vmem [resolvable:$true] %s361_s12 }
  0x11   : > { %s11795_s26 = scalar_select %p8138_p3, 1, 0 }
  0x12   : > { %p7132_p4 = pneg %p8138_p3  ;;  %p7785_p7 = scmp.ne.s32.totalorder %s314_s23, %s7784_s14 }
  0x13   : > { %s7791_s15 = scalar_lea.vmem %s314_s23, 32  ;;  %p7792_p10 = scmp.lt.s32.totalorder %s314_s23, %s314_s23 }
  0x14   : > { %p8146_p5 = pnand %p7132_p4, %p8133_p1  ;;  %p7793_p11 = scmp.lt.s32.totalorder %s7791_s15, %s7784_s14 }
  0x16   : > { %p8154_p6 = pneg %p8146_p5  ;;  %p7794_p12 = por %p7793_p11, %p7792_p10 }
  0x18   : > { %p7787_p8 = pnand %p7785_p7, %p8154_p6 }
  0x1a   : > { %p7788_p9 = pneg %p7787_p8 }
  0x1c   : > { %p7795_p13 = pnand %p7794_p12, %p7788_p9 }
  0x1e   : > { %7798 = shalt.err (!%p7795_p13)
}
  0x1f   : > { %s11798_s2 = sld [smem:[#allocation204_spill]]  ;;  %s7810_s18 = scalar_lea.vmem %s338_s28, 48 }
  0x20   : > { %p7811_p0 = scmp.ne.s32.totalorder %s338_s28, %s7810_s18  ;;  %s7817_s10 = scalar_lea.vmem %s338_s28, 64 }
  0x21   : > { %p7818_p7 = scmp.lt.s32.totalorder %s338_s28, %s338_s28  ;;  %p7819_p8 = scmp.lt.s32.totalorder %s7817_s10, %s7810_s18 }
  0x22   : > { %p7813_p2 = pnand %p7811_p0, %p8154_p6 }
  0x23   : > { %p7820_p3 = por %p7819_p8, %p7818_p7 }
  0x24   : > { %p7814_p4 = pneg %p7813_p2 }
  0x25   : > { %7135 = dma.hbm_to_vmem [thread:$0]  (!%p8146_p5), %s11798_s2, 16, %s314_s23, [#allocation6]  }
  0x26   : > { %p7821_p1 = pnand %p7820_p3, %p7814_p4 }
  0x28   : > { %7824 = shalt.err (!%p7821_p1)
}
  0x29   : > { %7141 = dma.hbm_to_vmem [thread:$0]  (!%p8146_p5), %s11592_s4, 48, %s338_s28, [#allocation9]  }
  0x2a   : > { %s7836_s23 = scalar_lea.vmem %s8150_s12, 768  ;;  %p7844_p12 = scmp.lt.s32.totalorder %s8150_s12, %s8150_s12 }
  0x2b   : > { %p7837_p9 = scmp.ne.s32.totalorder %s8150_s12, %s7836_s23  ;;  %p7845_p13 = scmp.lt.s32.totalorder %s7836_s23, %s7836_s23 }
  0x2d   : > { %p7839_p10 = pnand %p7837_p9, %p8154_p6  ;;  %p7846_p3 = por %p7845_p13, %p7844_p12 }
  0x2f   : > { %p7840_p11 = pneg %p7839_p10 }
  0x31   : > { %p7847_p1 = pnand %p7846_p3, %p7840_p11 }
  0x33   : > { %7850 = shalt.err (!%p7847_p1)
}
  0x34   : > { %s11604_s14 = smov 192   ;;  %s11605_s15 = smov 12  }
  0x35   : > { %7147 = dma.hbm_to_vmem [thread:$0]  (!%p8146_p5), %s11595_s7, 768, %s8150_s12, [#allocation12], %s11604_s14, %s11604_s14, %s11605_s15  }
  0x36   : > { %s8040_s17 = smov [#allocation7]   ;;  %s8041_s10 = smov [#allocation10]  }
  0x37   : > { %s323_s18 = sshll.u32 %s8040_s17, 4  ;;  %s351_s27 = sshll.u32 %s8041_s10, 4  ;;  %s324_s18 = int_to_ptr.vmem [resolvable:$true] %s323_s18  ;;  %s352_s27 = int_to_ptr.vmem [resolvable:$true] %s351_s27 }
  0x38   : > { %s7862_s30 = scalar_lea.vmem %s324_s18, 1536  ;;  %p7870_p7 = scmp.lt.s32.totalorder %s324_s18, %s324_s18 }
  0x39   : > { %p7863_p0 = scmp.ne.s32.totalorder %s324_s18, %s7862_s30  ;;  %p7871_p8 = scmp.lt.s32.totalorder %s7862_s30, %s7862_s30 }
  0x3b   : > { %p7865_p2 = pnand %p7863_p0, %p8154_p6  ;;  %p7872_p9 = por %p7871_p8, %p7870_p7 }
  0x3d   : > { %p7866_p4 = pneg %p7865_p2 }
  0x3f   : > { %p7873_p10 = pnand %p7872_p9, %p7866_p4 }
  0x41   : > { %7876 = shalt.err (!%p7873_p10)
}
  0x42   : > { %7138 = dma.hbm_to_vmem [thread:$0]  (!%p8146_p5), %s11591_s3, 1536, %s324_s18, [#allocation6], %s11604_s14, %s11604_s14, %s11605_s15  }
  0x43   : > { %s7888_s28 = scalar_lea.vmem %s352_s27, 16  ;;  %s7895_s16 = scalar_lea.vmem %s352_s27, 32 }
  0x44   : > { %p7889_p11 = scmp.ne.s32.totalorder %s352_s27, %s7888_s28  ;;  %p7896_p3 = scmp.lt.s32.totalorder %s352_s27, %s352_s27 }
  0x45   : > { %p7897_p1 = scmp.lt.s32.totalorder %s7895_s16, %s7888_s28 }
  0x46   : > { %p7891_p12 = pnand %p7889_p11, %p8154_p6 }
  0x47   : > { %p7898_p0 = por %p7897_p1, %p7896_p3 }
  0x48   : > { %p7892_p13 = pneg %p7891_p12 }
  0x4a   : > { %p7899_p2 = pnand %p7898_p0, %p7892_p13 }
  0x4c   : > { %7902 = shalt.err (!%p7899_p2)
}
  0x4d   : > { %7144 = dma.hbm_to_vmem [thread:$0]  (!%p8146_p5), %s11594_s6, 16, %s352_s27, [#allocation9]  }
  0x4e   : > { %s8042_s18 = smov [#allocation13]   ;;  %s8043_s12 = smov [#allocation14]  }
  0x4f   : > { %s375_s30 = sshll.u32 %s8042_s18, 4  ;;  %s386_s23 = sshll.u32 %s8043_s12, 4  ;;  %s376_s30 = int_to_ptr.vmem [resolvable:$true] %s375_s30  ;;  %s387_s23 = int_to_ptr.vmem [resolvable:$true] %s386_s23 }
  0x50   : > { %s7914_s24 = scalar_lea.vmem %s376_s30, 48  ;;  %s7921_s28 = scalar_lea.vmem %s376_s30, 64 }
  0x51   : > { %p7915_p4 = scmp.ne.s32.totalorder %s376_s30, %s7914_s24  ;;  %p7922_p9 = scmp.lt.s32.totalorder %s376_s30, %s376_s30 }
  0x52   : > { %p7923_p10 = scmp.lt.s32.totalorder %s7921_s28, %s7914_s24 }
  0x53   : > { %p7917_p7 = pnand %p7915_p4, %p8154_p6 }
  0x54   : > { %p7924_p11 = por %p7923_p10, %p7922_p9 }
  0x55   : > { %p7918_p8 = pneg %p7917_p7 }
  0x57   : > { %p7925_p12 = pnand %p7924_p11, %p7918_p8 }
  0x59   : > { %7928 = shalt.err (!%p7925_p12)
}
  0x5a   : > { %7150 = dma.hbm_to_vmem [thread:$0]  (!%p8146_p5), %s11596_s8, 48, %s376_s30, [#allocation12]  }
  0x5b   : > { %s7940_s17 = scalar_lea.vmem %s387_s23, 48  ;;  %s7947_s10 = scalar_lea.vmem %s387_s23, 64 }
  0x5c   : > { %p7941_p13 = scmp.ne.s32.totalorder %s387_s23, %s7940_s17  ;;  %p7948_p0 = scmp.lt.s32.totalorder %s387_s23, %s387_s23 }
  0x5d   : > { %p7949_p2 = scmp.lt.s32.totalorder %s7947_s10, %s7940_s17 }
  0x5e   : > { %p7943_p3 = pnand %p7941_p13, %p8154_p6 }
  0x5f   : > { %p7950_p4 = por %p7949_p2, %p7948_p0 }
  0x60   : > { %p7944_p1 = pneg %p7943_p3 }
  0x62   : > { %p7951_p7 = pnand %p7950_p4, %p7944_p1 }
  0x64   : > { %7954 = shalt.err (!%p7951_p7)
}
  0x65   : > { %7153 = dma.hbm_to_vmem [thread:$0]  (!%p8146_p5), %s11597_s9, 48, %s387_s23, [#allocation15]  }
  0x66   : > { %s8219_s13 = sadd.s32 1, %s8033_s22   ;;  %s37_s30 = sadd.s32 1, %s8029_s21 }
  0x67   : > { %s34_s29 = ssub.s32 %s8033_s22, %s8219_s13  ;;  %p44_p8 = scmp.ne.s32.totalorder %s8029_s21, %s8025_s20 }
  0x68   : > { %p35_p6 = scmp.eq.s32.totalorder %s34_s29, 0  ;;  %p45_p9 = scmp.eq.s32.totalorder %s8033_s22, 0 }
  0x69   : > { %p50_p10 = scmp.ne.s32.totalorder %s8025_s20, %s8021_s19  ;;  %p11799_p12 = scmp.ne.s32.totalorder %s11794_s25, 0 }
  0x6a   : > { %s8230_s12 = scalar_select %p35_p6, %s8029_s21, %s37_s30  }
  0x6b   : > { %p46_p11 = por %p45_p9, %p44_p8  ;;  %p8234_p13 = por %p11799_p12, %p50_p10 }
  0x6c   : > { %p7165_p3 = scmp.lt.s32.totalorder %s8033_s22, 3  ;;  %s400_s16 = sand.u32 1, %s8029_s21  }
  0x6d   : > { %s11800_s28 = scalar_select %p8234_p13, 1, 0 }
  0x6e   : > { %s7099_s23 = smul.u32 768, %s400_s16  ;;  %p8241_p5 = pnand %p7165_p3, %p46_p11 }
  0x6f   : > { %s7100_s27 = smul.u32 12288, %s8033_s22  ;;  %s8252_s30 = scalar_lea.sflag [#allocation4], %s400_s16 }
  0x70   : > { %s404_s18 = scalar_lea.vmem [#allocation3], %s7099_s23  ;;  %p7957_p0 = pneg %p8241_p5 }
  0x71   : > { %s8248_s19 = scalar_lea.hbm %s11588_s0, %s7100_s27  ;;  %s412_s29 = sshll.u32 %s404_s18, 4  ;;  %s8250_s29 = int_to_ptr.vmem [resolvable:$true] %s412_s29 }
  0x72   : > { %s7955_s14 = scalar_lea.hbm %s8248_s19, 12288  ;;  %s7960_s27 = scalar_lea.hbm %s11588_s0, 36864 }
  0x73   : > { %p7956_p1 = scmp.ne.s32.totalorder %s8248_s19, %s7955_s14  ;;  %p7961_p7 = scmp.lt.s32.totalorder %s8248_s19, %s11588_s0 }
  0x74   : > { %p7962_p6 = scmp.lt.s32.totalorder %s7960_s27, %s7955_s14 }
  0x75   : > { %p7958_p2 = pnand %p7957_p0, %p7956_p1 }
  0x76   : > { %p7963_p8 = por %p7962_p6, %p7961_p7 }
  0x77   : > { %p7959_p4 = pneg %p7958_p2 }
  0x79   : > { %p7964_p9 = pnand %p7963_p8, %p7959_p4 }
  0x7b   : > { %7967 = shalt.err (!%p7964_p9)
}
  0x7c   : > { %s7968_s16 = scalar_lea.vmem %s8250_s29, 12288  ;;  %s8044_s23 = smov [#allocation3]  }
  0x7d   : > { %p7969_p10 = scmp.ne.s32.totalorder %s8250_s29, %s7968_s16  ;;  %s7973_s18 = sshll.u32 %s8044_s23, 4  ;;  %s7974_s18 = int_to_ptr.vmem [resolvable:$false] %s7973_s18 }
  0x7e   : > { %s7975_s15 = scalar_lea.vmem %s7974_s18, 24576  ;;  %p7976_p3 = scmp.lt.s32.totalorder %s8250_s29, %s7974_s18 }
  0x7f   : > { %p7971_p11 = pnand %p7969_p10, %p7957_p0  ;;  %p7977_p1 = scmp.lt.s32.totalorder %s7975_s15, %s7968_s16 }
  0x81   : > { %p7972_p12 = pneg %p7971_p11  ;;  %p7978_p2 = por %p7977_p1, %p7976_p3 }
  0x83   : > { %p7979_p13 = pnand %p7978_p2, %p7972_p12 }
  0x85   : > { %7982 = shalt.err (!%p7979_p13)
}
  0x86   : > { %s11802_s2 = smov 12   ;;  %s11803_s14 = smov 192  }
  0x87   : > { %7157 = dma.hbm_to_vmem [thread:$0]  (!%p8241_p5), %s8248_s19, 12288, %s8250_s29, %s8252_s30, %s11803_s14, %s11803_s14, %s11802_s2  }
  0x88   : > { %p11804_p0 = scmp.ne.s32.totalorder %s11795_s26, 0 }
  0x8a   : > { %424 = sbr.rel (%p11804_p0) target bundleno = 1563 (0x61b), region = 64 }
  0x8f   : > { %s426_s10 = sand.u32 1, %s8025_s20   ;;  %p11805_p13 = scmp.ne.s32.totalorder %s11800_s28, 0 }
  0x90   : > { %s7101_s27 = smul.u32 768, %s426_s10  ;;  %s427_s24 = scalar_lea.sflag [#allocation4], %s426_s10 }
  0x92   : > { %s8279_s16 = scalar_lea.vmem [#allocation3], %s7101_s27 }
  0x93   : > { %8000 = dma.done.wait (%p11805_p13), %s427_s24, 12288  }
  0x94   : > { %8002 = vsyncadd (%p11805_p13), %s427_s24, 4294955008  ;;  %p11806_p4 = scmp.ne.s32.totalorder %s11794_s25, 0 }
  0x96   : > { %8004 = dma.done.wait (%p11806_p4), [#allocation6], 1552  }
  0x97   : > { %8006 = vsyncadd (%p11806_p4), [#allocation6], 4294965744 }
  0x98   : > { %8008 = dma.done.wait (%p11806_p4), [#allocation9], 64  }
  0x99   : > { %8010 = vsyncadd (%p11806_p4), [#allocation9], 4294967232 }
  0x9a   : > { %8012 = dma.done.wait (%p11806_p4), [#allocation12], 816  }
  0x9b   : > { %8014 = vsyncadd (%p11806_p4), [#allocation12], 4294966480 }
  0x9c   : > { %8016 = dma.done.wait (%p11806_p4), [#allocation15], 48  }
  0x9d   : > { %8018 = vsyncadd (%p11806_p4), [#allocation15], 4294967248  ;;  %v11607_v1 = vmov 0   ;;  %v7215_v2 = vld [vmem:[%s11589_s1 + $0x38] sm:$0xff]   ;;  %v7216_v3 = vld [vmem:[%s11589_s1 + $0x30] sm:$0xff]   ;;  %vm2307_vm0 = vcmask 523264  }
  0x9e   : > { %1553 = vmatprep.subr.bf16.mxu0 %v11607_v1  ;;  %v7217_v4 = vld [vmem:[%s11589_s1 + $0x28] sm:$0xff]   ;;  %v7222_v5 = vld [vmem:[%s11589_s1 + $0xb8] sm:$0xff]   ;;  %v7224_v6 = vld [vmem:[%s11589_s1 + $0xb0] sm:$0xff]   ;;  %vm4264_vm1 = vcmask 261120   ;;  %vm6115_vm2 = vcmask 7168  }
  0x9f   : > { %1554 = vmatpush1.bf16.msra.mxu0 %v7215_v2  ;;  %6783 = vmatprep.subr.bf16.mxu1 %v7222_v5  ;;  %v7218_v7 = vld [vmem:[%s11589_s1 + $0x20] sm:$0xff]   ;;  %v7226_v8 = vld [vmem:[%s11589_s1 + $0xa8] sm:$0xff]   ;;  %v7219_v9 = vld [vmem:[%s11589_s1 + $0x18] sm:$0xff]  }
  0xa0   : > { %1555 = vmatprep.subr.bf16.mxu0 %v11607_v1  ;;  %6784 = vmatpush3.bf16.msra.mxu1 %v7222_v5  ;;  %v7228_v10 = vld [vmem:[%s11589_s1 + $0xa0] sm:$0xff]   ;;  %v7220_v11 = vld [vmem:[%s11589_s1 + $0x10] sm:$0xff]   ;;  %v7230_v12 = vld [vmem:[%s11589_s1 + $0x98] sm:$0xff]  }
  0xa1   : > { %6785 = vmatprep.subr.bf16.mxu1 %v7224_v6  ;;  %v7221_v13 = vld [vmem:[%s11589_s1 + $0x8] sm:$0xff]   ;;  %v7232_v14 = vld [vmem:[%s11589_s1 + $0x90] sm:$0xff]   ;;  %v7223_v20 = vld [vmem:[%s11589_s1] sm:$0xff]  }
  0xa2   : > { %v506_v15 = vld [vmem:[%s8279_s16 + $0x8] sm:$0xf]  ;;  %v508_v16 = vld [vmem:[%s8279_s16 + $0x14] sm:$0xf]  ;;  %v8350_v18 = vld [vmem:[%s8279_s16] sm:$0xff] }
  0xa3   : > { %1556 = vmatpush1.bf16.msra.mxu0 %v7216_v3  ;;  %v6341_v17 = vcombine.low %v506_v15, %v508_v16  ;;  %v8353_v19 = vld [vmem:[%s8279_s16 + $0xc] sm:$0xff]  ;;  %v7225_v23 = vld [vmem:[%s11589_s1 + $0x78] sm:$0xff]   ;;  %v7236_v24 = vld [vmem:[%s11589_s1 + $0x80] sm:$0xff]  }
  0xa4   : > { %1557 = vmatprep.subr.bf16.mxu0 %v11607_v1  ;;  %6786 = vmatpush3.bf16.msra.mxu1 %v7224_v6  ;;  %v6340_v21 = vcombine.high %v8350_v18, %v8353_v19  ;;  %v7234_v22 = vld [vmem:[%s11589_s1 + $0x88] sm:$0xff]   ;;  %v7227_v25 = vld [vmem:[%s11589_s1 + $0x70] sm:$0xff]   ;;  %v510_v26 = vld [vmem:[%s8279_s16 + $0x20] sm:$0xf]  ;;  %v6339_v61 = vcombine.low %v8350_v18, %v8353_v19 }
  0xa5   : > { %6787 = vmatprep.subr.bf16.mxu1 %v7226_v8  ;;  %6799 = vmatprep.mubr.bf16.mxu1 %v6341_v17  ;;  %v512_v27 = vld [vmem:[%s8279_s16 + $0x2c] sm:$0xf]  ;;  %v514_v28 = vld [vmem:[%s8279_s16 + $0x38] sm:$0xf]  ;;  %v516_v29 = vld [vmem:[%s8279_s16 + $0x44] sm:$0xf] }
  0xa6   : > { %1585 = vmatprep.mubr.bf16.mxu0 %v6340_v21  ;;  %v6344_v30 = vcombine.low %v510_v26, %v512_v27  ;;  %v7229_v31 = vld [vmem:[%s11589_s1 + $0x68] sm:$0xff]   ;;  %v6347_v32 = vcombine.low %v514_v28, %v516_v29  ;;  %v7231_v35 = vld [vmem:[%s11589_s1 + $0x60] sm:$0xff]   ;;  %v518_v36 = vld [vmem:[%s8279_s16 + $0x50] sm:$0xf] }
  0xa7   : > { %1558 = vmatpush1.bf16.msra.mxu0 %v7217_v4  ;;  %v7272_v33 = vld [vmem:[#allocation7 + $0x48] ss:$12 sps:$4 sm:$0xff]   ;;  %v7274_v34 = vld [vmem:[#allocation7 + $0x4c] ss:$12 sps:$4 sm:$0xff]   ;;  %v526_v44 = vld [vmem:[%s8279_s16 + $0x80] sm:$0xf] }
  0xa8   : > { %1559 = vmatprep.subr.bf16.mxu0 %v11607_v1  ;;  %6788 = vmatpush3.bf16.msra.mxu1 %v7226_v8  ;;  %v520_v37 = vld [vmem:[%s8279_s16 + $0x5c] sm:$0xf]  ;;  %v522_v38 = vld [vmem:[%s8279_s16 + $0x68] sm:$0xf]  ;;  %v524_v39 = vld [vmem:[%s8279_s16 + $0x74] sm:$0xf] }
  0xa9   : > { %6789 = vmatprep.subr.bf16.mxu1 %v7228_v10  ;;  %v6350_v40 = vcombine.low %v518_v36, %v520_v37  ;;  %v7233_v41 = vld [vmem:[%s11589_s1 + $0x58] sm:$0xff]   ;;  %v6353_v42 = vcombine.low %v522_v38, %v524_v39  ;;  %v7235_v43 = vld [vmem:[%s11589_s1 + $0x50] sm:$0xff]   ;;  %v532_v49 = vld [vmem:[%s8279_s16 + $0xa4] sm:$0xf] }
  0xaa   : > { %v7288_v45 = vld [vmem:[#allocation7 + $0x30] ss:$12 sps:$4 sm:$0xff]   ;;  %v7290_v46 = vld [vmem:[#allocation7 + $0x34] ss:$12 sps:$4 sm:$0xff]   ;;  %v528_v47 = vld [vmem:[%s8279_s16 + $0x8c] sm:$0xf] }
  0xab   : > { %1560 = vmatpush1.bf16.msra.mxu0 %v7218_v7  ;;  %v530_v48 = vld [vmem:[%s8279_s16 + $0x98] sm:$0xf]  ;;  %v7237_v50 = vld [vmem:[%s11589_s1 + $0x48] sm:$0xff]   ;;  %v6356_v51 = vcombine.low %v526_v44, %v528_v47  ;;  %v7240_v53 = vld [vmem:[%s11589_s1 + $0x40] sm:$0xff]  }
  0xac   : > { %1561 = vmatprep.subr.bf16.mxu0 %v11607_v1  ;;  %6790 = vmatpush3.bf16.msra.mxu1 %v7228_v10  ;;  %v6359_v52 = vcombine.low %v530_v48, %v532_v49  ;;  %v509_v54 = vld [vmem:[%s8279_s16 + $0x18] sm:$0xff]  ;;  %v511_v55 = vld [vmem:[%s8279_s16 + $0x24] sm:$0xff]  ;;  %v534_v57 = vld [vmem:[%s8279_s16 + $0xb0] sm:$0xf] }
  0xad   : > { %6791 = vmatprep.subr.bf16.mxu1 %v7230_v12  ;;  %v7253_v56 = vld [vmem:[#allocation7 + $0x50] ss:$12 sps:$4 sm:$0xff]   ;;  %v538_v59 = vld [vmem:[%s8279_s16 + $0xc8] sm:$0xf]  ;;  %v6343_v0 = vcombine.high %v509_v54, %v511_v55  ;;  %v544_v4 = vld [vmem:[%s8279_s16 + $0xec] sm:$0xf] }
  0xae   : > { %v536_v58 = vld [vmem:[%s8279_s16 + $0xbc] sm:$0xf]  ;;  %v540_v60 = vld [vmem:[%s8279_s16 + $0xd4] sm:$0xf]  ;;  %v542_v3 = vld [vmem:[%s8279_s16 + $0xe0] sm:$0xf] }
  0xaf   : > { %1562 = vmatpush1.bf16.msra.mxu0 %v7219_v9  ;;  %v6362_v62 = vcombine.low %v534_v57, %v536_v58  ;;  %v7281_v63 = vld [vmem:[#allocation7 + $0x38] ss:$12 sps:$4 sm:$0xff]   ;;  %v6365_v2 = vcombine.low %v538_v59, %v540_v60  ;;  %v513_v5 = vld [vmem:[%s8279_s16 + $0x30] sm:$0xff]  ;;  %v6342_v9 = vcombine.low %v509_v54, %v511_v55  ;;  %v6368_v10 = vcombine.low %v542_v3, %v544_v4  ;;  %v7305_v19 = vld [vmem:[#allocation7 + $0x1c] ss:$12 sps:$4 sm:$0xff]  }
  0xb0   : > { %1563 = vmatprep.subr.bf16.mxu0 %v11607_v1  ;;  %6792 = vmatpush3.bf16.msra.mxu1 %v7230_v12  ;;  %v515_v6 = vld [vmem:[%s8279_s16 + $0x3c] sm:$0xff]  ;;  %v546_v7 = vld [vmem:[%s8279_s16 + $0xf8] sm:$0xf]  ;;  %v548_v8 = vld [vmem:[%s8279_s16 + $0x104] sm:$0xf] }
  0xb1   : > { %6793 = vmatprep.subr.bf16.mxu1 %v7232_v14  ;;  %v6371_v12 = vcombine.low %v546_v7, %v548_v8  ;;  %v517_v15 = vld [vmem:[%s8279_s16 + $0x48] sm:$0xff]  ;;  %v519_v16 = vld [vmem:[%s8279_s16 + $0x54] sm:$0xff]  ;;  %v6345_v21 = vcombine.low %v513_v5, %v515_v6  ;;  %v558_v26 = vld [vmem:[%s8279_s16 + $0x140] sm:$0xf] }
  0xb2   : > { %v554_v17 = vld [vmem:[%s8279_s16 + $0x128] sm:$0xf]  ;;  %v560_v27 = vld [vmem:[%s8279_s16 + $0x14c] sm:$0xf]  ;;  %v562_v29 = vld [vmem:[%s8279_s16 + $0x158] sm:$0xf] }
  0xb3   : > { %1564 = vmatpush1.bf16.msra.mxu0 %v7220_v11  ;;  %v6346_v11 = vcombine.high %v513_v5, %v515_v6  ;;  %v7303_v18 = vld [vmem:[#allocation7 + $0x18] ss:$12 sps:$4 sm:$0xff]   ;;  %v523_v28 = vld [vmem:[%s8279_s16 + $0x6c] sm:$0xff]  ;;  %v574_v47 = vld [vmem:[%s8279_s16 + $0x1a0] sm:$0xf] }
  0xb4   : > { %1565 = vmatprep.subr.bf16.mxu0 %v11607_v1  ;;  %6794 = vmatpush3.bf16.msra.mxu1 %v7232_v14  ;;  %v552_v14 = vld [vmem:[%s8279_s16 + $0x11c] sm:$0xf]  ;;  %v566_v37 = vld [vmem:[%s8279_s16 + $0x170] sm:$0xf]  ;;  %v527_v39 = vld [vmem:[%s8279_s16 + $0x84] sm:$0xff] }
  0xb5   : > { %6795 = vmatprep.subr.bf16.mxu1 %v7234_v22  ;;  %v525_v36 = vld [vmem:[%s8279_s16 + $0x78] sm:$0xff]  ;;  %v576_v48 = vld [vmem:[%s8279_s16 + $0x1ac] sm:$0xf]  ;;  %v7323_v57 = vld [vmem:[#allocation7 + $0x4] ss:$12 sps:$4 sm:$0xff]  }
  0xb6   : > { %v568_v38 = vld [vmem:[%s8279_s16 + $0x17c] sm:$0xf]  ;;  %v6355_v44 = vcombine.high %v525_v36, %v527_v39  ;;  %v533_v58 = vld [vmem:[%s8279_s16 + $0xa8] sm:$0xff]  ;;  %v582_v59 = vld [vmem:[%s8279_s16 + $0x1d0] sm:$0xf] }
  0xb7   : > { %1566 = vmatpush1.bf16.msra.mxu0 %v7221_v13  ;;  %v550_v13 = vld [vmem:[%s8279_s16 + $0x110] sm:$0xf]  ;;  %v531_v49 = vld [vmem:[%s8279_s16 + $0x9c] sm:$0xff]  ;;  %v592_v7 = vld [vmem:[%s8279_s16 + $0x20c] sm:$0xf] }
  0xb8   : > { %1567 = vmatprep.subr.bf16.mxu0 %v11607_v1  ;;  %6796 = vmatpush3.bf16.msra.mxu1 %v7234_v22  ;;  %v6374_v22 = vcombine.low %v550_v13, %v552_v14  ;;  %v584_v60 = vld [vmem:[%s8279_s16 + $0x1dc] sm:$0xf]  ;;  %v537_v5 = vld [vmem:[%s8279_s16 + $0xc0] sm:$0xff]  ;;  %v539_v8 = vld [vmem:[%s8279_s16 + $0xcc] sm:$0xff] }
  0xb9   : > { %6797 = vmatprep.subr.bf16.mxu1 %v7236_v24  ;;  %v590_v6 = vld [vmem:[%s8279_s16 + $0x200] sm:$0xf]  ;;  %v6364_v13 = vcombine.high %v537_v5, %v539_v8 }
  0xbb   : > { %1568 = vmatpush1.bf16.msra.mxu0 %v7223_v20  ;;  %v556_v20 = vld [vmem:[%s8279_s16 + $0x134] sm:$0xf] }
  0xbc   : > { %1569 = vmatprep.subr.bf16.mxu0 %v11607_v1  ;;  %6798 = vmatpush3.bf16.msra.mxu1 %v7236_v24  ;;  %v6377_v24 = vcombine.low %v554_v17, %v556_v20  ;;  %v600_v17 = vld [vmem:[%s8279_s16 + $0x23c] sm:$0xf]  ;;  %v604_v20 = vld [vmem:[%s8279_s16 + $0x254] sm:$0xf] }
  0xbd   : > { %2412 = vmatprep.subr.bf16.mxu1 %v7274_v34 }
  0xbf   : > { %1570 = vmatpush2.bf16.msra.mxu0 %v7225_v23  ;;  %6800 = vmatmul.mubr.bf16.vlgmr.msra.gmra.mxu1 %v6344_v30  ;;  %v6349_v23 = vcombine.high %v517_v15, %v519_v16  ;;  %v564_v30 = vld [vmem:[%s8279_s16 + $0x164] sm:$0xf] }
  0xc0   : > { %1571 = vmatprep.subr.bf16.mxu0 %v11607_v1  ;;  %6803 = vmatprep.mubr.bf16.mxu1 %v6347_v32  ;;  %v6380_v32 = vcombine.low %v558_v26, %v560_v27  ;;  %v6383_v34 = vcombine.low %v562_v29, %v564_v30  ;;  %v606_v26 = vld [vmem:[%s8279_s16 + $0x260] sm:$0xf]  ;;  %v608_v27 = vld [vmem:[%s8279_s16 + $0x26c] sm:$0xf]  ;;  %v610_v29 = vld [vmem:[%s8279_s16 + $0x278] sm:$0xf] }
  0xc1   : > { %2413 = vmatpush1.bf16.msra.mxu1 %v7272_v33  ;;  %v612_v30 = vld [vmem:[%s8279_s16 + $0x284] sm:$0xf] }
  0xc2   : > { %2414 = vmatprep.subr.bf16.mxu1 %v7290_v46  ;;  %v529_v46 = vld [vmem:[%s8279_s16 + $0x90] sm:$0xff] }
  0xc3   : > { %1572 = vmatpush2.bf16.msra.mxu0 %v7227_v25  ;;  %v521_v25 = vld [vmem:[%s8279_s16 + $0x60] sm:$0xff]  ;;  %v6358_v54 = vcombine.high %v529_v46, %v531_v49 }
  0xc4   : > { %1573 = vmatprep.subr.bf16.mxu0 %v11607_v1  ;;  %v6352_v33 = vcombine.high %v521_v25, %v523_v28 }
  0xc5   : > { %2415 = vmatpush1.bf16.msra.mxu1 %v7288_v45 }
  0xc6   : > { %2416 = vmatprep.subr.bf16.mxu1 %v7305_v19  ;;  %v602_v19 = vld [vmem:[%s8279_s16 + $0x248] sm:$0xf] }
  0xc7   : > { %1574 = vmatpush2.bf16.msra.mxu0 %v7229_v31  ;;  %6804 = vmatmul.mubr.bf16.gmra.mxu1 %v6350_v40  ;;  %v6348_v31 = vcombine.low %v517_v15, %v519_v16  ;;  %v570_v40 = vld [vmem:[%s8279_s16 + $0x188] sm:$0xf]  ;;  %v541_v15 = vld [vmem:[%s8279_s16 + $0xd8] sm:$0xff]  ;;  %v598_v16 = vld [vmem:[%s8279_s16 + $0x230] sm:$0xf] }
  0xc8   : > { %1575 = vmatprep.subr.bf16.mxu0 %v11607_v1  ;;  %6807 = vmatprep.mubr.bf16.mxu1 %v6353_v42  ;;  %v6351_v42 = vcombine.low %v521_v25, %v523_v28  ;;  %v545_v25 = vld [vmem:[%s8279_s16 + $0xf0] sm:$0xff]  ;;  %v547_v28 = vld [vmem:[%s8279_s16 + $0xfc] sm:$0xff] }
  0xc9   : > { %2417 = vmatpush1.bf16.msra.mxu1 %v7303_v18  ;;  %v543_v18 = vld [vmem:[%s8279_s16 + $0xe4] sm:$0xff] }
  0xca   : > { %2418 = vmatprep.subr.bf16.mxu1 %v7323_v57  ;;  %v557_v57 = vld [vmem:[%s8279_s16 + $0x138] sm:$0xff] }
  0xcb   : > { %1576 = vmatpush2.bf16.msra.mxu0 %v7231_v35  ;;  %v7313_v35 = vld [vmem:[#allocation7 + $0x20] ss:$12 sps:$4 sm:$0xff]  }
  0xcc   : > { %1577 = vmatprep.subr.bf16.mxu0 %v11607_v1 }
  0xcf   : > { %1578 = vmatpush2.bf16.msra.mxu0 %v7233_v41  ;;  %6808 = vmatmul.mubr.bf16.gmra.mxu1 %v6356_v51  ;;  %v572_v41 = vld [vmem:[%s8279_s16 + $0x194] sm:$0xf]  ;;  %v580_v51 = vld [vmem:[%s8279_s16 + $0x1c4] sm:$0xf] }
  0xd0   : > { %1579 = vmatprep.subr.bf16.mxu0 %v11607_v1  ;;  %6811 = vmatprep.mubr.bf16.mxu1 %v6359_v52  ;;  %v6389_v45 = vcombine.low %v570_v40, %v572_v41  ;;  %v6354_v52 = vcombine.low %v525_v36, %v527_v39  ;;  %v614_v36 = vld [vmem:[%s8279_s16 + $0x290] sm:$0xf]  ;;  %v618_v39 = vld [vmem:[%s8279_s16 + $0x2a8] sm:$0xf]  ;;  %v620_v40 = vld [vmem:[%s8279_s16 + $0x2b4] sm:$0xf]  ;;  %v6369_v41 = vcombine.low %v545_v25, %v547_v28 }
  0xd3   : > { %1580 = vmatpush2.bf16.msra.mxu0 %v7235_v43  ;;  %v6386_v43 = vcombine.low %v566_v37, %v568_v38  ;;  %v616_v37 = vld [vmem:[%s8279_s16 + $0x29c] sm:$0xf]  ;;  %v551_v38 = vld [vmem:[%s8279_s16 + $0x114] sm:$0xff] }
  0xd4   : > { %1581 = vmatprep.subr.bf16.mxu0 %v11607_v1 }
  0xd7   : > { %1582 = vmatpush2.bf16.msra.mxu0 %v7237_v50  ;;  %6812 = vmatmul.mubr.bf16.gmra.mxu1 %v6362_v62  ;;  %v578_v50 = vld [vmem:[%s8279_s16 + $0x1b8] sm:$0xf]  ;;  %v586_v62 = vld [vmem:[%s8279_s16 + $0x1e8] sm:$0xf] }
  0xd8   : > { %1583 = vmatprep.subr.bf16.mxu0 %v11607_v1  ;;  %6815 = vmatprep.mubr.bf16.mxu1 %v6365_v2  ;;  %v6395_v55 = vcombine.low %v578_v50, %v580_v51  ;;  %v6398_v2 = vcombine.low %v582_v59, %v584_v60  ;;  %v628_v50 = vld [vmem:[%s8279_s16 + $0x2e4] sm:$0xf] }
  0xdb   : > { %1584 = vmatpush2.bf16.msra.mxu0 %v7240_v53  ;;  %v6392_v53 = vcombine.low %v574_v47, %v576_v48  ;;  %v624_v47 = vld [vmem:[%s8279_s16 + $0x2cc] sm:$0xf] }
  0xdc   : > { %6863 = vmatprep.subr.bf16.mxu0 %v7253_v56  ;;  %v555_v48 = vld [vmem:[%s8279_s16 + $0x12c] sm:$0xff] }
  0xde   : > { %1586 = vmatmul.mubr.bf16.vlgmr.msra.gmra.mxu0 %v6339_v61  ;;  %v535_v61 = vld [vmem:[%s8279_s16 + $0xb4] sm:$0xff] }
  0xdf   : > { %1593 = vmatprep.mubr.bf16.mxu0 %v6343_v0  ;;  %6864 = vmatpush3.bf16.msra.mxu0 %v7253_v56  ;;  %v7321_v56 = vld [vmem:[#allocation7] ss:$12 sps:$4 sm:$0xff]   ;;  %v6357_v0 = vcombine.low %v529_v46, %v531_v49  ;;  %v6361_v3 = vcombine.high %v533_v58, %v535_v61  ;;  %v626_v49 = vld [vmem:[%s8279_s16 + $0x2d8] sm:$0xf] }
  0xe0   : > { %6865 = vmatprep.subr.bf16.mxu0 %v7281_v63  ;;  %6816 = vmatmul.mubr.bf16.gmra.mxu1 %v6368_v10  ;;  %v596_v10 = vld [vmem:[%s8279_s16 + $0x224] sm:$0xf]  ;;  %v622_v46 = vld [vmem:[%s8279_s16 + $0x2c0] sm:$0xf] }
  0xe1   : > { %6819 = vmatprep.mubr.bf16.mxu1 %v6371_v12  ;;  %2419 = vmatpush1.bf16.msra.mxu1 %v7321_v56  ;;  %v6404_v12 = vcombine.low %v590_v6, %v592_v7  ;;  %v632_v56 = vld [vmem:[%s8279_s16 + $0x2fc] sm:$0xf] }
  0xe2   : > { %3542 = vmatprep.subr.bf16.mxu1 %v11607_v1 }
  0xe3   : > { %6866 = vmatpush3.bf16.msra.mxu0 %v7281_v63  ;;  %v588_v63 = vld [vmem:[%s8279_s16 + $0x1f4] sm:$0xf] }
  0xe4   : > { %6867 = vmatprep.subr.bf16.mxu0 %v7313_v35  ;;  %v6401_v4 = vcombine.low %v586_v62, %v588_v63  ;;  %v561_v62 = vld [vmem:[%s8279_s16 + $0x150] sm:$0xff]  ;;  %v563_v63 = vld [vmem:[%s8279_s16 + $0x15c] sm:$0xff] }
  0xe5   : > { %v6381_v6 = vcombine.low %v561_v62, %v563_v63 }
  0xe6   : > { %1594 = vmatmul.mubr.bf16.gmra.mxu0 %v6342_v9  ;;  %v594_v9 = vld [vmem:[%s8279_s16 + $0x218] sm:$0xf] }
  0xe7   : > { %1601 = vmatprep.mubr.bf16.mxu0 %v6346_v11  ;;  %6868 = vmatpush3.bf16.msra.mxu0 %v7313_v35  ;;  %v6360_v11 = vcombine.low %v533_v58, %v535_v61  ;;  %v6407_v14 = vcombine.low %v594_v9, %v596_v10  ;;  %v549_v35 = vld [vmem:[%s8279_s16 + $0x108] sm:$0xff] }
  0xe8   : > { %6820 = vmatmul.mubr.bf16.gmra.mxu1 %v6374_v22  ;;  %v6410_v22 = vcombine.low %v598_v16, %v600_v17  ;;  %v6372_v51 = vcombine.low %v549_v35, %v551_v38  ;;  %v559_v58 = vld [vmem:[%s8279_s16 + $0x144] sm:$0xff]  ;;  %v571_v9 = vld [vmem:[%s8279_s16 + $0x18c] sm:$0xff]  ;;  %v579_v17 = vld [vmem:[%s8279_s16 + $0x1bc] sm:$0xff] }
  0xe9   : > { %6823 = vmatprep.mubr.bf16.mxu1 %v6377_v24  ;;  %v6413_v24 = vcombine.low %v602_v19, %v604_v20  ;;  %v6379_v61 = vcombine.high %v557_v57, %v559_v58  ;;  %v577_v16 = vld [vmem:[%s8279_s16 + $0x1b0] sm:$0xff]  ;;  %v581_v20 = vld [vmem:[%s8279_s16 + $0x1c8] sm:$0xff] }
  0xea   : > { %v6394_v19 = vcombine.high %v577_v16, %v579_v17 }
  0xee   : > { %1602 = vmatmul.mubr.bf16.gmra.mxu0 %v6345_v21  ;;  %v6363_v21 = vcombine.low %v537_v5, %v539_v8  ;;  %v567_v5 = vld [vmem:[%s8279_s16 + $0x174] sm:$0xff]  ;;  %v569_v8 = vld [vmem:[%s8279_s16 + $0x180] sm:$0xff] }
  0xef   : > { %1609 = vmatprep.mubr.bf16.mxu0 %v6349_v23  ;;  %v6367_v23 = vcombine.high %v541_v15, %v543_v18 }
  0xf0   : > { %6824 = vmatmul.mubr.bf16.gmra.mxu1 %v6380_v32  ;;  %v6416_v32 = vcombine.low %v606_v26, %v608_v27 }
  0xf1   : > { %6827 = vmatprep.mubr.bf16.mxu1 %v6383_v34  ;;  %v6419_v34 = vcombine.low %v610_v29, %v612_v30  ;;  %v591_v29 = vld [vmem:[%s8279_s16 + $0x204] sm:$0xff] }
  0xf6   : > { %1610 = vmatmul.mubr.bf16.gmra.mxu0 %v6348_v31  ;;  %v6366_v31 = vcombine.low %v541_v15, %v543_v18 }
  0xf7   : > { %1617 = vmatprep.mubr.bf16.mxu0 %v6352_v33  ;;  %v6370_v33 = vcombine.high %v545_v25, %v547_v28  ;;  %v587_v25 = vld [vmem:[%s8279_s16 + $0x1ec] sm:$0xff]  ;;  %v589_v28 = vld [vmem:[%s8279_s16 + $0x1f8] sm:$0xff] }
  0xf8   : > { %6828 = vmatmul.mubr.bf16.gmra.mxu1 %v6386_v43  ;;  %v6373_v43 = vcombine.high %v549_v35, %v551_v38  ;;  %v599_v38 = vld [vmem:[%s8279_s16 + $0x234] sm:$0xff] }
  0xf9   : > { %6831 = vmatprep.mubr.bf16.mxu1 %v6389_v45  ;;  %v553_v45 = vld [vmem:[%s8279_s16 + $0x120] sm:$0xff] }
  0xfa   : > { %v6375_v59 = vcombine.low %v553_v45, %v555_v48 }
  0xfe   : > { %1618 = vmatmul.mubr.bf16.gmra.mxu0 %v6351_v42  ;;  %v6422_v42 = vcombine.low %v614_v36, %v616_v37  ;;  %v597_v37 = vld [vmem:[%s8279_s16 + $0x228] sm:$0xff] }
  0xff   : > { %1625 = vmatprep.mubr.bf16.mxu0 %v6355_v44  ;;  %v6425_v44 = vcombine.low %v618_v39, %v620_v40 }
 0x100   : > { %6832 = vmatmul.mubr.bf16.gmra.mxu1 %v6392_v53  ;;  %v6376_v53 = vcombine.high %v553_v45, %v555_v48  ;;  %v601_v45 = vld [vmem:[%s8279_s16 + $0x240] sm:$0xff] }
 0x101   : > { %6835 = vmatprep.mubr.bf16.mxu1 %v6395_v55  ;;  %v630_v55 = vld [vmem:[%s8279_s16 + $0x2f0] sm:$0xf] }
 0x102   : > { %v6434_v60 = vcombine.low %v630_v55, %v632_v56  ;;  %v8523_v56 = vld [vmem:[#allocation5] ss:$0 sm:$0xff] }
 0x106   : > { %1626 = vmatmul.mubr.bf16.gmra.mxu0 %v6354_v52  ;;  %v6428_v52 = vcombine.low %v622_v46, %v624_v47  ;;  %v603_v46 = vld [vmem:[%s8279_s16 + $0x24c] sm:$0xff]  ;;  %v6408_v47 = vcombine.low %v597_v37, %v599_v38 }
 0x107   : > { %1633 = vmatprep.mubr.bf16.mxu0 %v6358_v54  ;;  %v6431_v54 = vcombine.low %v626_v49, %v628_v50  ;;  %v6412_v48 = vcombine.high %v601_v45, %v603_v46 }
 0x108   : > { %6836 = vmatmul.mubr.bf16.gmra.mxu1 %v6398_v2  ;;  %v6378_v2 = vcombine.low %v557_v57, %v559_v58 }
 0x109   : > { %6839 = vmatprep.mubr.bf16.mxu1 %v6401_v4  ;;  %v565_v4 = vld [vmem:[%s8279_s16 + $0x168] sm:$0xff] }
 0x10a   : > { %v6385_v7 = vcombine.high %v565_v4, %v567_v5  ;;  %v6384_v10 = vcombine.low %v565_v4, %v567_v5 }
 0x10e   : > { %1634 = vmatmul.mubr.bf16.gmra.mxu0 %v6357_v0  ;;  %v7344_v0 = vld [vmem:[#allocation7 + $0x8] ss:$12 sps:$4 sm:$0xff]  }
 0x10f   : > { %1641 = vmatprep.mubr.bf16.mxu0 %v6361_v3  ;;  %v6382_v3 = vcombine.high %v561_v62, %v563_v63  ;;  %6869 = vmatprep.subr.bf16.mxu0 %v7344_v0  ;;  %v611_v62 = vld [vmem:[%s8279_s16 + $0x27c] sm:$0xff] }
 0x110   : > { %6840 = vmatmul.mubr.bf16.gmra.mxu1 %v6404_v12  ;;  %6870 = vmatpush3.bf16.msra.mxu0 %v7344_v0  ;;  %v573_v12 = vld [vmem:[%s8279_s16 + $0x198] sm:$0xff] }
 0x111   : > { %6843 = vmatprep.mubr.bf16.mxu1 %v6407_v14  ;;  %v6387_v14 = vcombine.low %v569_v8, %v571_v9 }
 0x116   : > { %1642 = vmatmul.mubr.bf16.gmra.mxu0 %v6360_v11  ;;  %v6388_v11 = vcombine.high %v569_v8, %v571_v9 }
 0x117   : > { %1649 = vmatprep.mubr.bf16.mxu0 %v6364_v13  ;;  %v575_v13 = vld [vmem:[%s8279_s16 + $0x1a4] sm:$0xff] }
 0x118   : > { %6844 = vmatmul.mubr.bf16.gmra.mxu1 %v6410_v22  ;;  %v6391_v15 = vcombine.high %v573_v12, %v575_v13  ;;  %v6390_v18 = vcombine.low %v573_v12, %v575_v13  ;;  %v6393_v22 = vcombine.low %v577_v16, %v579_v17  ;;  %v615_v16 = vld [vmem:[%s8279_s16 + $0x294] sm:$0xff] }
 0x119   : > { %6847 = vmatprep.mubr.bf16.mxu1 %v6413_v24  ;;  %v585_v24 = vld [vmem:[%s8279_s16 + $0x1e0] sm:$0xff] }
 0x11a   : > { %v6400_v27 = vcombine.high %v585_v24, %v587_v25  ;;  %v6399_v30 = vcombine.low %v585_v24, %v587_v25 }
 0x11e   : > { %1650 = vmatmul.mubr.bf16.gmra.mxu0 %v6363_v21  ;;  %v583_v21 = vld [vmem:[%s8279_s16 + $0x1d4] sm:$0xff] }
 0x11f   : > { %1657 = vmatprep.mubr.bf16.mxu0 %v6367_v23  ;;  %v6397_v23 = vcombine.high %v581_v20, %v583_v21  ;;  %v6396_v26 = vcombine.low %v581_v20, %v583_v21 }
 0x120   : > { %6848 = vmatmul.mubr.bf16.gmra.mxu1 %v6416_v32  ;;  %v593_v32 = vld [vmem:[%s8279_s16 + $0x210] sm:$0xff] }
 0x121   : > { %6851 = vmatprep.mubr.bf16.mxu1 %v6419_v34  ;;  %v6402_v34 = vcombine.low %v589_v28, %v591_v29 }
 0x126   : > { %1658 = vmatmul.mubr.bf16.gmra.mxu0 %v6366_v31  ;;  %v6403_v31 = vcombine.high %v589_v28, %v591_v29 }
 0x127   : > { %1665 = vmatprep.mubr.bf16.mxu0 %v6370_v33  ;;  %v595_v33 = vld [vmem:[%s8279_s16 + $0x21c] sm:$0xff] }
 0x128   : > { %6852 = vmatmul.mubr.bf16.gmra.mxu1 %v6422_v42  ;;  %v6406_v35 = vcombine.high %v593_v32, %v595_v33  ;;  %v6405_v40 = vcombine.low %v593_v32, %v595_v33  ;;  %v6409_v42 = vcombine.high %v597_v37, %v599_v38 }
 0x129   : > { %6855 = vmatprep.mubr.bf16.mxu1 %v6425_v44 }
 0x12e   : > { %1666 = vmatmul.mubr.bf16.gmra.mxu0 %v6369_v41 }
 0x12f   : > { %1673 = vmatprep.mubr.bf16.mxu0 %v6373_v43 }
 0x130   : > { %6856 = vmatmul.mubr.bf16.gmra.mxu1 %v6428_v52  ;;  %v607_v52 = vld [vmem:[%s8279_s16 + $0x264] sm:$0xff] }
 0x131   : > { %6859 = vmatprep.mubr.bf16.mxu1 %v6431_v54 }
 0x136   : > { %1674 = vmatmul.mubr.bf16.gmra.mxu0 %v6372_v51  ;;  %v605_v51 = vld [vmem:[%s8279_s16 + $0x258] sm:$0xff] }
 0x137   : > { %1681 = vmatprep.mubr.bf16.mxu0 %v6376_v53  ;;  %v6411_v53 = vcombine.low %v601_v45, %v603_v46  ;;  %v6415_v54 = vcombine.high %v605_v51, %v607_v52  ;;  %v7354_v46 = vld [vmem:[%s11593_s5 + $0x20] sm:$0xff]  }
 0x138   : > { %6860 = vmatmul.mubr.bf16.gmra.mxu1 %v6434_v60 }
 0x139   : > { %2436 = vmatprep.mubr.bf16.mxu1 %v11607_v1 }
 0x13e   : > { %1682 = vmatmul.mubr.bf16.gmra.mxu0 %v6375_v59 }
 0x13f   : > { %1689 = vmatprep.mubr.bf16.mxu0 %v6379_v61  ;;  %v609_v61 = vld [vmem:[%s8279_s16 + $0x270] sm:$0xff] }
 0x140   : > { %v6418_v5 = vcombine.high %v609_v61, %v611_v62  ;;  %v6417_v20 = vcombine.low %v609_v61, %v611_v62 }
 0x146   : > { %1690 = vmatmul.mubr.bf16.gmra.mxu0 %v6378_v2  ;;  %v6414_v2 = vcombine.low %v605_v51, %v607_v52 }
 0x147   : > { %1697 = vmatprep.mubr.bf16.mxu0 %v6382_v3 }
 0x14e   : > { %1698 = vmatmul.mubr.bf16.gmra.mxu0 %v6381_v6 }
 0x14f   : > { %1705 = vmatprep.mubr.bf16.mxu0 %v6385_v7 }
 0x156   : > { %1706 = vmatmul.mubr.bf16.gmra.mxu0 %v6384_v10 }
 0x157   : > { %1713 = vmatprep.mubr.bf16.mxu0 %v6388_v11 }
 0x15e   : > { %1714 = vmatmul.mubr.bf16.gmra.mxu0 %v6387_v14  ;;  %v7338_v14 = vld [vmem:[%s11593_s5 + $0x38] sm:$0xff]  }
 0x15f   : > { %1721 = vmatprep.mubr.bf16.mxu0 %v6391_v15  ;;  %v613_v15 = vld [vmem:[%s8279_s16 + $0x288] sm:$0xff] }
 0x166   : > { %1722 = vmatmul.mubr.bf16.gmra.mxu0 %v6390_v18 }
 0x167   : > { %1729 = vmatprep.mubr.bf16.mxu0 %v6394_v19 }
 0x16e   : > { %1730 = vmatmul.mubr.bf16.gmra.mxu0 %v6393_v22 }
 0x16f   : > { %1737 = vmatprep.mubr.bf16.mxu0 %v6397_v23  ;;  %v6421_v23 = vcombine.high %v613_v15, %v615_v16 }
 0x176   : > { %1738 = vmatmul.mubr.bf16.gmra.mxu0 %v6396_v26  ;;  %v7343_v26 = vld [vmem:[%s11593_s5 + $0x30] sm:$0xff]  }
 0x177   : > { %1745 = vmatprep.mubr.bf16.mxu0 %v6400_v27 }
 0x17e   : > { %1746 = vmatmul.mubr.bf16.gmra.mxu0 %v6399_v30 }
 0x17f   : > { %1753 = vmatprep.mubr.bf16.mxu0 %v6403_v31  ;;  %v6801_v36 = vpop.f32.mrf.mxu1 }
 0x181   : > { %v1876_v39 = vpop.f32.mrf.mxu1 }
 0x183   : > { %v6802_v41 = vpop.f32.mrf.mxu1 }
 0x185   : > { %v1879_v43 = vpop.f32.mrf.mxu1 }
 0x186   : > { %1754 = vmatmul.mubr.bf16.gmra.mxu0 %v6402_v34  ;;  %v617_v34 = vld [vmem:[%s8279_s16 + $0x2a0] sm:$0xff] }
 0x187   : > { %1761 = vmatprep.mubr.bf16.mxu0 %v6406_v35  ;;  %v8511_v44 = vpop.f32.mrf.mxu1  ;;  %v619_v35 = vld [vmem:[%s8279_s16 + $0x2ac] sm:$0xff] }
 0x189   : > { %v8515_v49 = vpop.f32.mrf.mxu1 }
 0x18b   : > { %v8517_v50 = vpop.f32.mrf.mxu1 }
 0x18d   : > { %v8521_v55 = vpop.f32.mrf.mxu1 }
 0x18e   : > { %1762 = vmatmul.mubr.bf16.gmra.mxu0 %v6405_v40 }
 0x18f   : > { %1769 = vmatprep.mubr.bf16.mxu0 %v6409_v42  ;;  %v8525_v57 = vpop.f32.mrf.mxu1  ;;  %v6424_v42 = vcombine.high %v617_v34, %v619_v35 }
 0x191   : > { %v8530_v63 = vpop.f32.mrf.mxu1 }
 0x193   : > { %v8533_v8 = vpop.f32.mrf.mxu1 }
 0x195   : > { %v8543_v18 = vpop.f32.mrf.mxu1 }
 0x196   : > { %1770 = vmatmul.mubr.bf16.gmra.mxu0 %v6408_v47 }
 0x197   : > { %1777 = vmatprep.mubr.bf16.mxu0 %v6412_v48  ;;  %v8548_v24 = vpop.f32.mrf.mxu1 }
 0x199   : > { %v8556_v32 = vpop.f32.mrf.mxu1 }
 0x19e   : > { %v1587_v58 = vpop.f32.mrf.mxu0  ;;  %1778 = vmatmul.mubr.bf16.gmra.mxu0 %v6411_v53 }
 0x19f   : > { %v1588_v59 = vadd.f32 %v8523_v56, %v1587_v58  ;;  %1785 = vmatprep.mubr.bf16.mxu0 %v6415_v54  ;;  %v621_v58 = vld [vmem:[%s8279_s16 + $0x2b8] sm:$0xff] }
 0x1a0   : > { %v1589_v60 = vpop.f32.mrf.mxu0 }
 0x1a1   : > { %v1877_v3 = vadd.f32 %v1876_v39, %v1588_v59  ;;  %v6420_v39 = vcombine.low %v613_v15, %v615_v16  ;;  %v623_v59 = vld [vmem:[%s8279_s16 + $0x2c4] sm:$0xff]  ;;  %v7355_v60 = vld [vmem:[%s11593_s5 + $0x18] sm:$0xff]  }
 0x1a2   : > { %v1590_v0 = vpop.f32.mrf.mxu0  ;;  %v627_v15 = vld [vmem:[%s8279_s16 + $0x2dc] sm:$0xff]  ;;  %v7357_v16 = vld [vmem:[%s11593_s5 + $0x8] sm:$0xff]  }
 0x1a3   : > { %v1591_v4 = vadd.f32 %v8523_v56, %v1590_v0  ;;  %v2131_v10 = vmax.f32 %v1877_v3, 0.0  ;;  %v6423_v0 = vcombine.low %v617_v34, %v619_v35 }
 0x1a4   : > { %v1592_v6 = vpop.f32.mrf.mxu0 }
 0x1a5   : > { %v1880_v7 = vadd.f32 %v1879_v43, %v1591_v4  ;;  %v8570_v43 = vpop.f32.mrf.mxu1  ;;  %v6427_v4 = vcombine.high %v621_v58, %v623_v59  ;;  %v7356_v6 = vld [vmem:[%s11593_s5 + $0x10] sm:$0xff]  }
 0x1a6   : > { %v1595_v9 = vpop.f32.mrf.mxu0  ;;  %1786 = vmatmul.mubr.bf16.gmra.mxu0 %v6414_v2 }
 0x1a7   : > { %v2132_v11 = vmax.f32 %v1880_v7, 0.0  ;;  %v1596_v12 = vadd.f32 %v8523_v56, %v1595_v9  ;;  %1793 = vmatprep.mubr.bf16.mxu0 %v6418_v5  ;;  %v8579_v53 = vpop.f32.mrf.mxu1 }
 0x1a8   : > { %v1597_v13 = vpop.f32.mrf.mxu0 }
 0x1a9   : > { %v8541_v17 = vpack.c.bf16 %v2132_v11, %v2131_v10  ;;  %v1885_v21 = vadd.f32 %v6801_v36, %v1596_v12  ;;  %v7349_v36 = vld [vmem:[%s11593_s5 + $0x28] sm:$0xff]   ;;  %v8588_v61 = vpop.f32.mrf.mxu1 }
 0x1aa   : > { %v1598_v19 = vpop.f32.mrf.mxu0 }
 0x1ab   : > { %v1599_v22 = vadd.f32 %v8523_v56, %v1598_v19  ;;  %6471 = vmatmul.mubr.msk.bf16.vlgmr.msra.gmra.mxu1 %vm2307_vm0, %v8541_v17  ;;  %v2133_v29 = vmax.f32 %v1885_v21, 0.0  ;;  %v8600_v9 = vpop.f32.mrf.mxu1  ;;  %v6426_v21 = vcombine.low %v621_v58, %v623_v59 }
 0x1ac   : > { %3543 = vmatpush1.bf16.msra.mxu1 %v7338_v14  ;;  %v1600_v25 = vpop.f32.mrf.mxu0  ;;  %2446 = vmatprep.mubr.bf16.mxu1 %v11607_v1  ;;  %v625_v14 = vld [vmem:[%s8279_s16 + $0x2d0] sm:$0xff] }
 0x1ad   : > { %v1888_v27 = vadd.f32 %v6802_v41, %v1599_v22  ;;  %3544 = vmatprep.subr.bf16.mxu1 %v11607_v1  ;;  %v8611_v19 = vpop.f32.mrf.mxu1  ;;  %v6430_v25 = vcombine.high %v625_v14, %v627_v15 }
 0x1ae   : > { %v1603_v28 = vpop.f32.mrf.mxu0  ;;  %1794 = vmatmul.mubr.bf16.gmra.mxu0 %v6417_v20 }
 0x1af   : > { %v2134_v30 = vmax.f32 %v1888_v27, 0.0  ;;  %v1604_v31 = vadd.f32 %v8523_v56, %v1603_v28  ;;  %1801 = vmatprep.mubr.bf16.mxu0 %v6421_v23  ;;  %v7358_v27 = vld [vmem:[%s11593_s5] sm:$0xff]  }
 0x1b0   : > { %v1605_v33 = vpop.f32.mrf.mxu0  ;;  %3545 = vmatpush1.bf16.msra.mxu1 %v7343_v26 }
 0x1b1   : > { %v8563_v37 = vpack.c.bf16 %v2134_v30, %v2133_v29  ;;  %3546 = vmatprep.subr.bf16.mxu1 %v11607_v1  ;;  %v1893_v40 = vadd.f32 %v8515_v49, %v1604_v31  ;;  %v8623_v29 = vpop.f32.mrf.mxu1 }
 0x1b2   : > { %v1606_v38 = vpop.f32.mrf.mxu0 }
 0x1b3   : > { %v1607_v41 = vadd.f32 %v8523_v56, %v1606_v38  ;;  %6472 = vmatmul.mubr.msk.bf16.gmra.mxu1 %vm2307_vm0, %v8563_v37  ;;  %v2135_v49 = vmax.f32 %v1893_v40, 0.0  ;;  %v8627_v34 = vpop.f32.mrf.mxu1  ;;  %v631_v38 = vld [vmem:[%s8279_s16 + $0x2f4] sm:$0xff] }
 0x1b4   : > { %v1608_v45 = vpop.f32.mrf.mxu0  ;;  %2456 = vmatprep.mubr.bf16.mxu1 %v11607_v1  ;;  %3547 = vmatpush1.bf16.msra.mxu1 %v7349_v36  ;;  %v629_v36 = vld [vmem:[%s8279_s16 + $0x2e8] sm:$0xff] }
 0x1b5   : > { %v1896_v47 = vadd.f32 %v8521_v55, %v1607_v41  ;;  %3548 = vmatprep.subr.bf16.mxu1 %v11607_v1  ;;  %v6429_v41 = vcombine.low %v625_v14, %v627_v15 }
 0x1b6   : > { %v1611_v48 = vpop.f32.mrf.mxu0  ;;  %1802 = vmatmul.mubr.bf16.gmra.mxu0 %v6420_v39 }
 0x1b7   : > { %v2136_v51 = vmax.f32 %v1896_v47, 0.0  ;;  %v1612_v52 = vadd.f32 %v8523_v56, %v1611_v48  ;;  %1809 = vmatprep.mubr.bf16.mxu0 %v6424_v42  ;;  %v8641_v47 = vpop.f32.mrf.mxu1 }
 0x1b8   : > { %v1613_v54 = vpop.f32.mrf.mxu0  ;;  %3549 = vmatpush1.bf16.msra.mxu1 %v7354_v46  ;;  %v6433_v46 = vcombine.high %v629_v36, %v631_v38 }
 0x1b9   : > { %v8586_v55 = vpack.c.bf16 %v2136_v51, %v2135_v49  ;;  %3550 = vmatprep.subr.bf16.mxu1 %v11607_v1  ;;  %v1901_v2 = vadd.f32 %v8511_v44, %v1612_v52  ;;  %v7360_v49 = vld [vmem:[%s11593_s5 + $0x70] sm:$0xff]   ;;  %v8650_v59 = vpop.f32.mrf.mxu1 }
 0x1ba   : > { %v1614_v62 = vpop.f32.mrf.mxu0 }
 0x1bb   : > { %v1615_v3 = vadd.f32 %v8523_v56, %v1614_v62  ;;  %6473 = vmatmul.mubr.msk.bf16.gmra.mxu1 %vm2307_vm0, %v8586_v55  ;;  %v2137_v10 = vmax.f32 %v1901_v2, 0.0 }
 0x1bc   : > { %v1616_v5 = vpop.f32.mrf.mxu0  ;;  %2466 = vmatprep.mubr.bf16.mxu1 %v11607_v1  ;;  %3551 = vmatpush1.bf16.msra.mxu1 %v7355_v60 }
 0x1bd   : > { %v1904_v7 = vadd.f32 %v8517_v50, %v1615_v3  ;;  %3552 = vmatprep.subr.bf16.mxu1 %v11607_v1  ;;  %v6432_v3 = vcombine.low %v629_v36, %v631_v38 }
 0x1be   : > { %v1619_v44 = vpop.f32.mrf.mxu0  ;;  %1810 = vmatmul.mubr.bf16.gmra.mxu0 %v6423_v0  ;;  %v7362_v0 = vld [vmem:[%s11593_s5 + $0x68] sm:$0xff]  }
 0x1bf   : > { %v2138_v11 = vmax.f32 %v1904_v7, 0.0  ;;  %v1620_v12 = vadd.f32 %v8523_v56, %v1619_v44  ;;  %1817 = vmatprep.mubr.bf16.mxu0 %v6427_v4 }
 0x1c0   : > { %v1621_v13 = vpop.f32.mrf.mxu0  ;;  %3553 = vmatpush1.bf16.msra.mxu1 %v7356_v6  ;;  %v8667_v6 = vpop.f32.mrf.mxu1 }
 0x1c1   : > { %v8609_v50 = vpack.c.bf16 %v2138_v11, %v2137_v10  ;;  %3554 = vmatprep.subr.bf16.mxu1 %v11607_v1  ;;  %v1909_v22 = vadd.f32 %v8530_v63, %v1620_v12 }
 0x1c2   : > { %v1622_v20 = vpop.f32.mrf.mxu0  ;;  %v8672_v10 = vpop.f32.mrf.mxu1 }
 0x1c3   : > { %v1623_v23 = vadd.f32 %v8523_v56, %v1622_v20  ;;  %6474 = vmatmul.mubr.msk.bf16.gmra.mxu1 %vm2307_vm0, %v8609_v50  ;;  %v2139_v30 = vmax.f32 %v1909_v22, 0.0 }
 0x1c4   : > { %v1624_v26 = vpop.f32.mrf.mxu0  ;;  %2476 = vmatprep.mubr.bf16.mxu1 %v11607_v1  ;;  %3555 = vmatpush1.bf16.msra.mxu1 %v7357_v16  ;;  %v8678_v16 = vpop.f32.mrf.mxu1 }
 0x1c5   : > { %v1912_v28 = vadd.f32 %v8543_v18, %v1623_v23  ;;  %3556 = vmatprep.subr.bf16.mxu1 %v11607_v1  ;;  %v7359_v18 = vld [vmem:[%s11593_s5 + $0x78] sm:$0xff]  }
 0x1c6   : > { %v1627_v63 = vpop.f32.mrf.mxu0  ;;  %1818 = vmatmul.mubr.bf16.gmra.mxu0 %v6426_v21 }
 0x1c7   : > { %v2140_v31 = vmax.f32 %v1912_v28, 0.0  ;;  %v1628_v33 = vadd.f32 %v8523_v56, %v1627_v63  ;;  %1825 = vmatprep.mubr.bf16.mxu0 %v6430_v25  ;;  %v8685_v25 = vpop.f32.mrf.mxu1 }
 0x1c8   : > { %v1629_v35 = vpop.f32.mrf.mxu0  ;;  %3557 = vmatpush1.bf16.msra.mxu1 %v7358_v27 }
 0x1c9   : > { %v8634_v39 = vpack.c.bf16 %v2140_v31, %v2139_v30  ;;  %3558 = vmatprep.subr.bf16.mxu1 %v11607_v1  ;;  %v1917_v42 = vadd.f32 %v8525_v57, %v1628_v33  ;;  %v8693_v30 = vpop.f32.mrf.mxu1 }
 0x1ca   : > { %v1630_v40 = vpop.f32.mrf.mxu0 }
 0x1cb   : > { %v1631_v45 = vadd.f32 %v8523_v56, %v1630_v40  ;;  %6475 = vmatmul.mubr.msk.bf16.gmra.mxu1 %vm2307_vm0, %v8634_v39  ;;  %v2141_v52 = vmax.f32 %v1917_v42, 0.0 }
 0x1cc   : > { %v1632_v48 = vpop.f32.mrf.mxu0  ;;  %2486 = vmatprep.mubr.bf16.mxu1 %v11607_v1  ;;  %3559 = vmatpush2.bf16.msra.mxu1 %v7359_v18 }
 0x1cd   : > { %v1920_v51 = vadd.f32 %v8533_v8, %v1631_v45  ;;  %3560 = vmatprep.subr.bf16.mxu1 %v11607_v1  ;;  %v8658_v8 = vld [vmem:[%s11593_s5 + $0xb8] sm:$0xff]  }
 0x1ce   : > { %v1635_v57 = vpop.f32.mrf.mxu0  ;;  %1826 = vmatmul.mubr.bf16.gmra.mxu0 %v6429_v41  ;;  %6935 = vmatprep.subr.bf16.mxu0 %v8658_v8 }
 0x1cf   : > { %v2142_v54 = vmax.f32 %v1920_v51, 0.0  ;;  %v1636_v58 = vadd.f32 %v8523_v56, %v1635_v57  ;;  %1833 = vmatprep.mubr.bf16.mxu0 %v6433_v46 }
 0x1d0   : > { %v1637_v60 = vpop.f32.mrf.mxu0  ;;  %3561 = vmatpush2.bf16.msra.mxu1 %v7360_v49 }
 0x1d1   : > { %v8652_v62 = vpack.c.bf16 %v2142_v54, %v2141_v52  ;;  %3562 = vmatprep.subr.bf16.mxu1 %v11607_v1  ;;  %v1925_v4 = vadd.f32 %v8556_v32, %v1636_v58 }
 0x1d2   : > { %v1638_v2 = vpop.f32.mrf.mxu0 }
 0x1d3   : > { %v1639_v5 = vadd.f32 %v8523_v56, %v1638_v2  ;;  %6476 = vmatmul.mubr.msk.bf16.gmra.mxu1 %vm2307_vm0, %v8652_v62  ;;  %v2143_v11 = vmax.f32 %v1925_v4, 0.0 }
 0x1d4   : > { %v1640_v7 = vpop.f32.mrf.mxu0  ;;  %2496 = vmatprep.mubr.bf16.mxu1 %v11607_v1  ;;  %3563 = vmatpush2.bf16.msra.mxu1 %v7362_v0 }
 0x1d5   : > { %v1928_v44 = vadd.f32 %v8579_v53, %v1639_v5  ;;  %3564 = vmatprep.subr.bf16.mxu1 %v11607_v1 }
 0x1d6   : > { %v1643_v32 = vpop.f32.mrf.mxu0  ;;  %1834 = vmatmul.mubr.bf16.gmra.mxu0 %v6432_v3 }
 0x1d7   : > { %v2144_v12 = vmax.f32 %v1928_v44, 0.0  ;;  %v1644_v13 = vadd.f32 %v8523_v56, %v1643_v32  ;;  %6871 = vmatprep.mubr.msk.bf16.mxu0 %vm2307_vm0, %v8541_v17 }
 0x1d8   : > { %v1645_v14 = vpop.f32.mrf.mxu0 }
 0x1d9   : > { %v2201_v15 = vpack.c.bf16 %v2144_v12, %v2143_v11  ;;  %v1933_v53 = vadd.f32 %v8548_v24, %v1644_v13 }
 0x1da   : > { %v1646_v20 = vpop.f32.mrf.mxu0 }
 0x1db   : > { %v1647_v21 = vadd.f32 %v8523_v56, %v1646_v20  ;;  %6477 = vmatmul.mubr.msk.bf16.gmra.mxu1 %vm2307_vm0, %v2201_v15  ;;  %v2145_v17 = vmax.f32 %v1933_v53, 0.0 }
 0x1dc   : > { %v1648_v22 = vpop.f32.mrf.mxu0  ;;  %2506 = vmatprep.mubr.bf16.mxu1 %v11607_v1 }
 0x1dd   : > { %v1936_v23 = vadd.f32 %v8570_v43, %v1647_v21  ;;  %v7363_v43 = vld [vmem:[%s11593_s5 + $0xb0] sm:$0xff]  }
 0x1de   : > { %v1651_v26 = vpop.f32.mrf.mxu0  ;;  %6872 = vmatmul.mubr.msk.bf16.vlgmr.msra.gmra.mxu0 %vm2307_vm0, %v8563_v37  ;;  %v7364_v37 = vld [vmem:[%s11593_s5 + $0x60] sm:$0xff]  }
 0x1df   : > { %v2146_v27 = vmax.f32 %v1936_v23, 0.0  ;;  %v1652_v28 = vadd.f32 %v8523_v56, %v1651_v26  ;;  %6875 = vmatprep.mubr.msk.bf16.mxu0 %vm2307_vm0, %v8586_v55  ;;  %6936 = vmatpush3.bf16.msra.mxu0 %v8658_v8  ;;  %v8704_v55 = vpop.f32.mrf.mxu1 }
 0x1e0   : > { %v1653_v24 = vpop.f32.mrf.mxu0  ;;  %6937 = vmatprep.subr.bf16.mxu0 %v7363_v43  ;;  %3565 = vmatpush2.bf16.msra.mxu1 %v7364_v37  ;;  %v8769_v37 = vld [vmem:[%s11593_s5 + $0xa0] sm:$0xff]  }
 0x1e1   : > { %v2202_v63 = vpack.c.bf16 %v2146_v27, %v2145_v17  ;;  %v1941_v33 = vadd.f32 %v8600_v9, %v1652_v28  ;;  %3566 = vmatprep.subr.bf16.mxu1 %v11607_v1  ;;  %v8714_v42 = vpop.f32.mrf.mxu1 }
 0x1e2   : > { %v1654_v31 = vpop.f32.mrf.mxu0 }
 0x1e3   : > { %v1655_v35 = vadd.f32 %v8523_v56, %v1654_v31  ;;  %6478 = vmatmul.mubr.msk.bf16.gmra.mxu1 %vm2307_vm0, %v2202_v63  ;;  %6938 = vmatpush3.bf16.msra.mxu0 %v7363_v43  ;;  %v2147_v9 = vmax.f32 %v1941_v33, 0.0  ;;  %v8719_v51 = vpop.f32.mrf.mxu1 }
 0x1e4   : > { %v1656_v36 = vpop.f32.mrf.mxu0  ;;  %2516 = vmatprep.mubr.bf16.mxu1 %v11607_v1 }
 0x1e5   : > { %v1944_v38 = vadd.f32 %v8623_v29, %v1655_v35 }
 0x1e6   : > { %v1659_v18 = vpop.f32.mrf.mxu0  ;;  %6876 = vmatmul.mubr.msk.bf16.gmra.mxu0 %vm2307_vm0, %v8609_v50 }
 0x1e7   : > { %v2148_v40 = vmax.f32 %v1944_v38, 0.0  ;;  %v1660_v41 = vadd.f32 %v8523_v56, %v1659_v18  ;;  %6879 = vmatprep.mubr.msk.bf16.mxu0 %vm2307_vm0, %v8634_v39 }
 0x1e8   : > { %v1661_v45 = vpop.f32.mrf.mxu0 }
 0x1e9   : > { %v2203_v46 = vpack.c.bf16 %v2148_v40, %v2147_v9  ;;  %v1949_v29 = vadd.f32 %v8588_v61, %v1660_v41  ;;  %v8727_v61 = vpop.f32.mrf.mxu1 }
 0x1ea   : > { %v1662_v48 = vpop.f32.mrf.mxu0 }
 0x1eb   : > { %v1663_v49 = vadd.f32 %v8523_v56, %v1662_v48  ;;  %6479 = vmatmul.mubr.msk.bf16.gmra.mxu1 %vm2307_vm0, %v2203_v46  ;;  %v2149_v39 = vmax.f32 %v1949_v29, 0.0  ;;  %v8729_v2 = vpop.f32.mrf.mxu1 }
 0x1ec   : > { %v1664_v50 = vpop.f32.mrf.mxu0  ;;  %2526 = vmatprep.mubr.bf16.mxu1 %v11607_v1 }
 0x1ed   : > { %v1952_v57 = vadd.f32 %v8611_v19, %v1663_v49  ;;  %v8734_v19 = vld [vmem:[%s11593_s5 + $0xa8] sm:$0xff]   ;;  %v8745_v32 = vpop.f32.mrf.mxu1 }
 0x1ee   : > { %v1667_v52 = vpop.f32.mrf.mxu0  ;;  %6880 = vmatmul.mubr.msk.bf16.gmra.mxu0 %vm2307_vm0, %v8652_v62  ;;  %v7366_v62 = vld [vmem:[%s11593_s5 + $0x58] sm:$0xff]   ;;  %6939 = vmatprep.subr.bf16.mxu0 %v8734_v19 }
 0x1ef   : > { %v2150_v54 = vmax.f32 %v1952_v57, 0.0  ;;  %v1668_v58 = vadd.f32 %v8523_v56, %v1667_v52  ;;  %6883 = vmatprep.mubr.msk.bf16.mxu0 %vm2307_vm0, %v2201_v15  ;;  %3567 = vmatpush2.bf16.msra.mxu1 %v7366_v62  ;;  %v8752_v20 = vpop.f32.mrf.mxu1 }
 0x1f0   : > { %v1669_v60 = vpop.f32.mrf.mxu0  ;;  %6940 = vmatpush3.bf16.msra.mxu0 %v8734_v19  ;;  %3568 = vmatprep.subr.bf16.mxu1 %v11607_v1 }
 0x1f1   : > { %v2204_v0 = vpack.c.bf16 %v2150_v54, %v2149_v39  ;;  %v1957_v4 = vadd.f32 %v8641_v47, %v1668_v58  ;;  %v8759_v26 = vpop.f32.mrf.mxu1  ;;  %6941 = vmatprep.subr.bf16.mxu0 %v8769_v37 }
 0x1f2   : > { %v1670_v3 = vpop.f32.mrf.mxu0 }
 0x1f3   : > { %v1671_v5 = vadd.f32 %v8523_v56, %v1670_v3  ;;  %6480 = vmatmul.mubr.msk.bf16.gmra.mxu1 %vm2307_vm0, %v2204_v0  ;;  %v2151_v47 = vmax.f32 %v1957_v4, 0.0  ;;  %v8804_v4 = vld [vmem:[%s11593_s5 + $0x98] sm:$0xff]  }
 0x1f4   : > { %v1672_v7 = vpop.f32.mrf.mxu0  ;;  %2536 = vmatprep.mubr.bf16.mxu1 %v11607_v1  ;;  %6942 = vmatpush3.bf16.msra.mxu0 %v8769_v37 }
 0x1f5   : > { %v1960_v44 = vadd.f32 %v8667_v6, %v1671_v5  ;;  %6943 = vmatprep.subr.bf16.mxu0 %v8804_v4 }
 0x1f6   : > { %v1675_v11 = vpop.f32.mrf.mxu0  ;;  %6884 = vmatmul.mubr.msk.bf16.gmra.mxu0 %vm2307_vm0, %v2202_v63 }
 0x1f7   : > { %v2152_v12 = vmax.f32 %v1960_v44, 0.0  ;;  %v1676_v13 = vadd.f32 %v8523_v56, %v1675_v11  ;;  %6887 = vmatprep.mubr.msk.bf16.mxu0 %vm2307_vm0, %v2203_v46 }
 0x1f8   : > { %v1677_v14 = vpop.f32.mrf.mxu0  ;;  %6944 = vmatpush3.bf16.msra.mxu0 %v8804_v4 }
 0x1f9   : > { %v2205_v15 = vpack.c.bf16 %v2152_v12, %v2151_v47  ;;  %v1965_v53 = vadd.f32 %v8627_v34, %v1676_v13  ;;  %v8764_v34 = vpop.f32.mrf.mxu1 }
 0x1fa   : > { %v1678_v6 = vpop.f32.mrf.mxu0 }
 0x1fb   : > { %v1679_v21 = vadd.f32 %v8523_v56, %v1678_v6  ;;  %6481 = vmatmul.mubr.msk.bf16.gmra.mxu1 %vm2307_vm0, %v2205_v15  ;;  %v2153_v27 = vmax.f32 %v1965_v53, 0.0  ;;  %v8777_v36 = vpop.f32.mrf.mxu1 }
 0x1fc   : > { %v1680_v22 = vpop.f32.mrf.mxu0  ;;  %2546 = vmatprep.mubr.bf16.mxu1 %v11607_v1 }
 0x1fd   : > { %v1968_v23 = vadd.f32 %v8650_v59, %v1679_v21  ;;  %v7368_v59 = vld [vmem:[%s11593_s5 + $0x50] sm:$0xff]   ;;  %v8786_v45 = vpop.f32.mrf.mxu1 }
 0x1fe   : > { %v1683_v17 = vpop.f32.mrf.mxu0  ;;  %6888 = vmatmul.mubr.msk.bf16.gmra.mxu0 %vm2307_vm0, %v2204_v0  ;;  %3569 = vmatpush2.bf16.msra.mxu1 %v7368_v59 }
 0x1ff   : > { %v2154_v28 = vmax.f32 %v1968_v23, 0.0  ;;  %v1684_v24 = vadd.f32 %v8523_v56, %v1683_v17  ;;  %6891 = vmatprep.mubr.msk.bf16.mxu0 %vm2307_vm0, %v2205_v15  ;;  %3570 = vmatprep.subr.bf16.mxu1 %v11607_v1  ;;  %v8792_v50 = vpop.f32.mrf.mxu1 }
 0x200   : > { %v1685_v63 = vpop.f32.mrf.mxu0 }
 0x201   : > { %v2206_v43 = vpack.c.bf16 %v2154_v28, %v2153_v27  ;;  %v1973_v33 = vadd.f32 %v8678_v16, %v1684_v24  ;;  %v8796_v39 = vpop.f32.mrf.mxu1  ;;  %v8834_v63 = vld [vmem:[%s11593_s5 + $0x90] sm:$0xff]  }
 0x202   : > { %v1686_v31 = vpop.f32.mrf.mxu0  ;;  %6945 = vmatprep.subr.bf16.mxu0 %v8834_v63 }
 0x203   : > { %v1687_v35 = vadd.f32 %v8523_v56, %v1686_v31  ;;  %6482 = vmatmul.mubr.msk.bf16.gmra.mxu1 %vm2307_vm0, %v2206_v43  ;;  %v2155_v16 = vmax.f32 %v1973_v33, 0.0  ;;  %v8799_v3 = vpop.f32.mrf.mxu1  ;;  %6946 = vmatpush3.bf16.msra.mxu0 %v8834_v63 }
 0x204   : > { %v1688_v38 = vpop.f32.mrf.mxu0  ;;  %2556 = vmatprep.mubr.bf16.mxu1 %v11607_v1 }
 0x205   : > { %v1976_v18 = vadd.f32 %v8693_v30, %v1687_v35  ;;  %v8816_v12 = vpop.f32.mrf.mxu1 }
 0x206   : > { %v1691_v9 = vpop.f32.mrf.mxu0  ;;  %6892 = vmatmul.mubr.msk.bf16.gmra.mxu0 %vm2307_vm0, %v2206_v43 }
 0x207   : > { %v2156_v40 = vmax.f32 %v1976_v18, 0.0  ;;  %v1692_v41 = vadd.f32 %v8523_v56, %v1691_v9  ;;  %v8821_v21 = vpop.f32.mrf.mxu1  ;;  %v8847_v18 = vld [vmem:[%s11593_s5 + $0x88] sm:$0xff]  }
 0x208   : > { %v1693_v46 = vpop.f32.mrf.mxu0  ;;  %6947 = vmatprep.subr.bf16.mxu0 %v8847_v18 }
 0x209   : > { %v2207_v48 = vpack.c.bf16 %v2156_v40, %v2155_v16  ;;  %v1981_v49 = vadd.f32 %v8672_v10, %v1692_v41  ;;  %v8829_v28 = vpop.f32.mrf.mxu1  ;;  %6948 = vmatpush3.bf16.msra.mxu0 %v8847_v18 }
 0x20a   : > { %v1694_v29 = vpop.f32.mrf.mxu0 }
 0x20b   : > { %v1695_v30 = vadd.f32 %v8523_v56, %v1694_v29  ;;  %6483 = vmatmul.mubr.msk.bf16.gmra.mxu1 %vm2307_vm0, %v2207_v48  ;;  %6895 = vmatprep.mubr.msk.bf16.mxu0 %vm2307_vm0, %v2207_v48  ;;  %v2157_v58 = vmax.f32 %v1981_v49, 0.0  ;;  %v8838_v35 = vpop.f32.mrf.mxu1 }
 0x20c   : > { %v1696_v57 = vpop.f32.mrf.mxu0  ;;  %2566 = vmatprep.mubr.bf16.mxu1 %v11607_v1 }
 0x20d   : > { %v1984_v52 = vadd.f32 %v8685_v25, %v1695_v30  ;;  %v7370_v25 = vld [vmem:[%s11593_s5 + $0x48] sm:$0xff]   ;;  %v8855_v46 = vpop.f32.mrf.mxu1 }
 0x20e   : > { %v1699_v54 = vpop.f32.mrf.mxu0  ;;  %3571 = vmatpush2.bf16.msra.mxu1 %v7370_v25 }
 0x20f   : > { %v2158_v60 = vmax.f32 %v1984_v52, 0.0  ;;  %v1700_v10 = vadd.f32 %v8523_v56, %v1699_v54  ;;  %3572 = vmatprep.subr.bf16.mxu1 %v11607_v1  ;;  %v8867_v52 = vpop.f32.mrf.mxu1 }
 0x210   : > { %v1701_v0 = vpop.f32.mrf.mxu0 }
 0x211   : > { %v2208_v62 = vpack.c.bf16 %v2158_v60, %v2157_v58  ;;  %v1989_v7 = vadd.f32 %v8714_v42, %v1700_v10  ;;  %v8876_v0 = vpop.f32.mrf.mxu1 }
 0x212   : > { %v1702_v5 = vpop.f32.mrf.mxu0 }
 0x213   : > { %v1703_v44 = vadd.f32 %v8523_v56, %v1702_v5  ;;  %6484 = vmatmul.mubr.msk.bf16.gmra.mxu1 %vm2307_vm0, %v2208_v62  ;;  %6896 = vmatmul.mubr.msk.bf16.gmra.mxu0 %vm2307_vm0, %v2208_v62  ;;  %v2159_v42 = vmax.f32 %v1989_v7, 0.0 }
 0x214   : > { %v1704_v11 = vpop.f32.mrf.mxu0  ;;  %2576 = vmatprep.mubr.bf16.mxu1 %v11607_v1 }
 0x215   : > { %v1992_v47 = vadd.f32 %v8727_v61, %v1703_v44  ;;  %v8879_v11 = vpop.f32.mrf.mxu1 }
 0x216   : > { %v1707_v13 = vpop.f32.mrf.mxu0 }
 0x217   : > { %v2160_v14 = vmax.f32 %v1992_v47, 0.0  ;;  %v1708_v15 = vadd.f32 %v8523_v56, %v1707_v13 }
 0x218   : > { %v1709_v6 = vpop.f32.mrf.mxu0 }
 0x219   : > { %v2209_v53 = vpack.c.bf16 %v2160_v14, %v2159_v42  ;;  %v1997_v23 = vadd.f32 %v8704_v55, %v1708_v15  ;;  %v8887_v15 = vpop.f32.mrf.mxu1 }
 0x21a   : > { %v1710_v22 = vpop.f32.mrf.mxu0 }
 0x21b   : > { %v1711_v61 = vadd.f32 %v8523_v56, %v1710_v22  ;;  %6485 = vmatmul.mubr.msk.bf16.gmra.mxu1 %vm2307_vm0, %v2209_v53  ;;  %6899 = vmatprep.mubr.msk.bf16.mxu0 %vm2307_vm0, %v2209_v53  ;;  %v2161_v55 = vmax.f32 %v1997_v23, 0.0 }
 0x21c   : > { %v1712_v17 = vpop.f32.mrf.mxu0  ;;  %2586 = vmatprep.mubr.bf16.mxu1 %v11607_v1 }
 0x21d   : > { %v2000_v27 = vadd.f32 %v8719_v51, %v1711_v61  ;;  %v7372_v51 = vld [vmem:[%s11593_s5 + $0x40] sm:$0xff]   ;;  %v8890_v17 = vpop.f32.mrf.mxu1 }
 0x21e   : > { %v1715_v24 = vpop.f32.mrf.mxu0  ;;  %3573 = vmatpush2.bf16.msra.mxu1 %v7372_v51 }
 0x21f   : > { %v2162_v43 = vmax.f32 %v2000_v27, 0.0  ;;  %v1716_v59 = vadd.f32 %v8523_v56, %v1715_v24  ;;  %7083 = vmatprep.subr.bf16.mxu1 %v8658_v8 }
 0x220   : > { %v1717_v31 = vpop.f32.mrf.mxu0 }
 0x221   : > { %v2210_v33 = vpack.c.bf16 %v2162_v43, %v2161_v55  ;;  %v2005_v9 = vadd.f32 %v8745_v32, %v1716_v59  ;;  %v8863_v32 = vld [vmem:[%s11593_s5 + $0x80] sm:$0xff]   ;;  %v8898_v59 = vpop.f32.mrf.mxu1 }
 0x222   : > { %v1718_v38 = vpop.f32.mrf.mxu0  ;;  %6949 = vmatprep.subr.bf16.mxu0 %v8863_v32 }
 0x223   : > { %v1719_v16 = vadd.f32 %v8523_v56, %v1718_v38  ;;  %6486 = vmatmul.mubr.msk.bf16.gmra.mxu1 %vm2307_vm0, %v2210_v33  ;;  %6900 = vmatmul.mubr.msk.bf16.gmra.mxu0 %vm2307_vm0, %v2210_v33  ;;  %v2163_v29 = vmax.f32 %v2005_v9, 0.0 }
 0x224   : > { %v1720_v40 = vpop.f32.mrf.mxu0  ;;  %2596 = vmatprep.mubr.bf16.mxu1 %v11607_v1  ;;  %6950 = vmatpush3.bf16.msra.mxu0 %v8863_v32 }
 0x225   : > { %v2008_v41 = vadd.f32 %v8759_v26, %v1719_v16  ;;  %v8901_v16 = vpop.f32.mrf.mxu1 }
 0x226   : > { %v1723_v48 = vpop.f32.mrf.mxu0 }
 0x227   : > { %v2164_v49 = vmax.f32 %v2008_v41, 0.0  ;;  %v1724_v30 = vadd.f32 %v8523_v56, %v1723_v48 }
 0x228   : > { %v1725_v57 = vpop.f32.mrf.mxu0 }
 0x229   : > { %v2211_v26 = vpack.c.bf16 %v2164_v49, %v2163_v29  ;;  %v2013_v8 = vadd.f32 %v8729_v2, %v1724_v30  ;;  %v8909_v49 = vpop.f32.mrf.mxu1 }
 0x22a   : > { %v1726_v54 = vpop.f32.mrf.mxu0 }
 0x22b   : > { %v1727_v58 = vadd.f32 %v8523_v56, %v1726_v54  ;;  %6487 = vmatmul.mubr.msk.bf16.gmra.mxu1 %vm2307_vm0, %v2211_v26  ;;  %6903 = vmatprep.mubr.msk.bf16.mxu0 %vm2307_vm0, %v2211_v26  ;;  %v2165_v25 = vmax.f32 %v2013_v8, 0.0 }
 0x22c   : > { %v1728_v60 = vpop.f32.mrf.mxu0  ;;  %2606 = vmatprep.mubr.bf16.mxu1 %v11607_v1 }
 0x22d   : > { %v2016_v10 = vadd.f32 %v8752_v20, %v1727_v58  ;;  %v8912_v58 = vpop.f32.mrf.mxu1 }
 0x22e   : > { %v1731_v62 = vpop.f32.mrf.mxu0 }
 0x22f   : > { %v2166_v5 = vmax.f32 %v2016_v10, 0.0  ;;  %v1732_v7 = vadd.f32 %v8523_v56, %v1731_v62 }
 0x230   : > { %v1733_v44 = vpop.f32.mrf.mxu0 }
 0x231   : > { %v2212_v2 = vpack.c.bf16 %v2166_v5, %v2165_v25  ;;  %v2021_v13 = vadd.f32 %v8777_v36, %v1732_v7  ;;  %v8920_v5 = vpop.f32.mrf.mxu1 }
 0x232   : > { %v1734_v47 = vpop.f32.mrf.mxu0 }
 0x233   : > { %v1735_v42 = vadd.f32 %v8523_v56, %v1734_v47  ;;  %6488 = vmatmul.mubr.msk.bf16.gmra.mxu1 %vm2307_vm0, %v2212_v2  ;;  %6904 = vmatmul.mubr.msk.bf16.gmra.mxu0 %vm2307_vm0, %v2212_v2  ;;  %v2167_v53 = vmax.f32 %v2021_v13, 0.0 }
 0x234   : > { %v1736_v20 = vpop.f32.mrf.mxu0  ;;  %2616 = vmatprep.mubr.bf16.mxu1 %v11607_v1 }
 0x235   : > { %v2024_v14 = vadd.f32 %v8792_v50, %v1735_v42  ;;  %v8923_v42 = vpop.f32.mrf.mxu1 }
 0x236   : > { %v1739_v6 = vpop.f32.mrf.mxu0 }
 0x237   : > { %v2168_v22 = vmax.f32 %v2024_v14, 0.0  ;;  %v1740_v23 = vadd.f32 %v8523_v56, %v1739_v6 }
 0x238   : > { %v1741_v61 = vpop.f32.mrf.mxu0 }
 0x239   : > { %v2213_v36 = vpack.c.bf16 %v2168_v22, %v2167_v53  ;;  %v2029_v24 = vadd.f32 %v8764_v34, %v1740_v23  ;;  %v8931_v22 = vpop.f32.mrf.mxu1 }
 0x23a   : > { %v1742_v27 = vpop.f32.mrf.mxu0 }
 0x23b   : > { %v1743_v55 = vadd.f32 %v8523_v56, %v1742_v27  ;;  %6489 = vmatmul.mubr.msk.bf16.gmra.mxu1 %vm2307_vm0, %v2213_v36  ;;  %6907 = vmatprep.mubr.msk.bf16.mxu0 %vm2307_vm0, %v2213_v36  ;;  %v2169_v33 = vmax.f32 %v2029_v24, 0.0 }
 0x23c   : > { %v1744_v50 = vpop.f32.mrf.mxu0  ;;  %2626 = vmatprep.mubr.bf16.mxu1 %v11607_v1 }
 0x23d   : > { %v2032_v43 = vadd.f32 %v8786_v45, %v1743_v55  ;;  %v8934_v55 = vpop.f32.mrf.mxu1 }
 0x23e   : > { %v1747_v31 = vpop.f32.mrf.mxu0 }
 0x23f   : > { %v2170_v51 = vmax.f32 %v2032_v43, 0.0  ;;  %v1748_v38 = vadd.f32 %v8523_v56, %v1747_v31 }
 0x240   : > { %v1749_v9 = vpop.f32.mrf.mxu0 }
 0x241   : > { %v2214_v34 = vpack.c.bf16 %v2170_v51, %v2169_v33  ;;  %v2037_v41 = vadd.f32 %v8799_v3, %v1748_v38  ;;  %v8942_v51 = vpop.f32.mrf.mxu1 }
 0x242   : > { %v1750_v40 = vpop.f32.mrf.mxu0 }
 0x243   : > { %v1751_v48 = vadd.f32 %v8523_v56, %v1750_v40  ;;  %6490 = vmatmul.mubr.msk.bf16.gmra.mxu1 %vm2307_vm0, %v2214_v34  ;;  %6908 = vmatmul.mubr.msk.bf16.gmra.mxu0 %vm2307_vm0, %v2214_v34  ;;  %v2171_v57 = vmax.f32 %v2037_v41, 0.0 }
 0x244   : > { %v1752_v45 = vpop.f32.mrf.mxu0  ;;  %2636 = vmatprep.mubr.bf16.mxu1 %v11607_v1 }
 0x245   : > { %v2040_v29 = vadd.f32 %v8821_v21, %v1751_v48  ;;  %v8945_v48 = vpop.f32.mrf.mxu1 }
 0x246   : > { %v1755_v30 = vpop.f32.mrf.mxu0 }
 0x247   : > { %v2172_v26 = vmax.f32 %v2040_v29, 0.0  ;;  %v1756_v54 = vadd.f32 %v8523_v56, %v1755_v30 }
 0x248   : > { %v1757_v8 = vpop.f32.mrf.mxu0 }
 0x249   : > { %v2215_v3 = vpack.c.bf16 %v2172_v26, %v2171_v57  ;;  %v2045_v10 = vadd.f32 %v8796_v39, %v1756_v54  ;;  %v8952_v57 = vpop.f32.mrf.mxu1 }
 0x24a   : > { %v1758_v60 = vpop.f32.mrf.mxu0 }
 0x24b   : > { %v1759_v62 = vadd.f32 %v8523_v56, %v1758_v60  ;;  %6491 = vmatmul.mubr.msk.bf16.gmra.mxu1 %vm2307_vm0, %v2215_v3  ;;  %6911 = vmatprep.mubr.msk.bf16.mxu0 %vm2307_vm0, %v2215_v3  ;;  %v2173_v44 = vmax.f32 %v2045_v10, 0.0  ;;  %v8955_v60 = vld [vmem:[#allocation5] ss:$0 sm:$0xff] }
 0x24c   : > { %v1760_v21 = vpop.f32.mrf.mxu0  ;;  %2646 = vmatprep.mubr.bf16.mxu1 %v11607_v1 }
 0x24d   : > { %v2048_v25 = vadd.f32 %v8816_v12, %v1759_v62  ;;  %v8958_v62 = vpop.f32.mrf.mxu1 }
 0x24e   : > { %v1763_v7 = vpop.f32.mrf.mxu0 }
 0x24f   : > { %v2174_v2 = vmax.f32 %v2048_v25, 0.0  ;;  %v1764_v47 = vadd.f32 %v8523_v56, %v1763_v7 }
 0x250   : > { %v1765_v13 = vpop.f32.mrf.mxu0 }
 0x251   : > { %v2216_v39 = vpack.c.bf16 %v2174_v2, %v2173_v44  ;;  %v2053_v14 = vadd.f32 %v8838_v35, %v1764_v47 }
 0x252   : > { %v1766_v20 = vpop.f32.mrf.mxu0 }
 0x253   : > { %v1767_v6 = vadd.f32 %v8523_v56, %v1766_v20  ;;  %6492 = vmatmul.mubr.msk.bf16.gmra.mxu1 %vm2307_vm0, %v2216_v39  ;;  %6912 = vmatmul.mubr.msk.bf16.gmra.mxu0 %vm2307_vm0, %v2216_v39  ;;  %v2175_v61 = vmax.f32 %v2053_v14, 0.0 }
 0x254   : > { %v1768_v12 = vpop.f32.mrf.mxu0  ;;  %2656 = vmatprep.mubr.bf16.mxu1 %v11607_v1 }
 0x255   : > { %v2056_v53 = vadd.f32 %v8867_v52, %v1767_v6 }
 0x256   : > { %v1771_v23 = vpop.f32.mrf.mxu0 }
 0x257   : > { %v2176_v36 = vmax.f32 %v2056_v53, 0.0  ;;  %v1772_v27 = vadd.f32 %v8523_v56, %v1771_v23 }
 0x258   : > { %v1773_v24 = vpop.f32.mrf.mxu0 }
 0x259   : > { %v2217_v35 = vpack.c.bf16 %v2176_v36, %v2175_v61  ;;  %v2061_v43 = vadd.f32 %v8829_v28, %v1772_v27 }
 0x25a   : > { %v1774_v50 = vpop.f32.mrf.mxu0 }
 0x25b   : > { %v1775_v31 = vadd.f32 %v8523_v56, %v1774_v50  ;;  %6493 = vmatmul.mubr.msk.bf16.gmra.mxu1 %vm2307_vm0, %v2217_v35  ;;  %6915 = vmatprep.mubr.msk.bf16.mxu0 %vm2307_vm0, %v2217_v35  ;;  %v2177_v9 = vmax.f32 %v2061_v43, 0.0 }
 0x25c   : > { %v1776_v52 = vpop.f32.mrf.mxu0  ;;  %2666 = vmatprep.mubr.bf16.mxu1 %v11607_v1 }
 0x25d   : > { %v2064_v33 = vadd.f32 %v8855_v46, %v1775_v31 }
 0x25e   : > { %v1779_v38 = vpop.f32.mrf.mxu0 }
 0x25f   : > { %v2178_v34 = vmax.f32 %v2064_v33, 0.0  ;;  %v1780_v40 = vadd.f32 %v8523_v56, %v1779_v38 }
 0x260   : > { %v1781_v41 = vpop.f32.mrf.mxu0 }
 0x261   : > { %v2218_v28 = vpack.c.bf16 %v2178_v34, %v2177_v9  ;;  %v2069_v29 = vadd.f32 %v8879_v11, %v1780_v40 }
 0x262   : > { %v1782_v45 = vpop.f32.mrf.mxu0 }
 0x263   : > { %v1783_v30 = vadd.f32 %v8523_v56, %v1782_v45  ;;  %6494 = vmatmul.mubr.msk.bf16.gmra.mxu1 %vm2307_vm0, %v2218_v28  ;;  %6916 = vmatmul.mubr.msk.bf16.gmra.mxu0 %vm2307_vm0, %v2218_v28  ;;  %v2179_v8 = vmax.f32 %v2069_v29, 0.0 }
 0x264   : > { %v1784_v46 = vpop.f32.mrf.mxu0  ;;  %2676 = vmatprep.mubr.bf16.mxu1 %v11607_v1 }
 0x265   : > { %v2072_v26 = vadd.f32 %v8890_v17, %v1783_v30 }
 0x266   : > { %v1787_v54 = vpop.f32.mrf.mxu0 }
 0x267   : > { %v2180_v3 = vmax.f32 %v2072_v26, 0.0  ;;  %v1788_v11 = vadd.f32 %v8955_v60, %v1787_v54 }
 0x268   : > { %v1789_v10 = vpop.f32.mrf.mxu0 }
 0x269   : > { %v2219_v56 = vpack.c.bf16 %v2180_v3, %v2179_v8  ;;  %v2077_v25 = vadd.f32 %v8876_v0, %v1788_v11 }
 0x26a   : > { %v1790_v21 = vpop.f32.mrf.mxu0 }
 0x26b   : > { %v1791_v7 = vadd.f32 %v8955_v60, %v1790_v21  ;;  %v8962_v44 = vpop.f32.mrf.mxu1  ;;  %6495 = vmatmul.mubr.msk.bf16.gmra.mxu1 %vm2307_vm0, %v2219_v56  ;;  %6919 = vmatprep.mubr.msk.bf16.mxu0 %vm2307_vm0, %v2219_v56  ;;  %v2181_v39 = vmax.f32 %v2077_v25, 0.0 }
 0x26c   : > { %v1792_v17 = vpop.f32.mrf.mxu0  ;;  %2686 = vmatprep.mubr.bf16.mxu1 %v11607_v1 }
 0x26d   : > { %v2080_v2 = vadd.f32 %v8887_v15, %v1791_v7  ;;  %v8968_v47 = vpop.f32.mrf.mxu1 }
 0x26e   : > { %v1795_v13 = vpop.f32.mrf.mxu0 }
 0x26f   : > { %v2182_v20 = vmax.f32 %v2080_v2, 0.0  ;;  %v1796_v0 = vadd.f32 %v8955_v60, %v1795_v13  ;;  %v8971_v14 = vpop.f32.mrf.mxu1 }
 0x270   : > { %v1797_v6 = vpop.f32.mrf.mxu0 }
 0x271   : > { %v2220_v12 = vpack.c.bf16 %v2182_v20, %v2181_v39  ;;  %v8973_v53 = vpop.f32.mrf.mxu1  ;;  %v2085_v61 = vadd.f32 %v8901_v16, %v1796_v0 }
 0x272   : > { %v1798_v23 = vpop.f32.mrf.mxu0 }
 0x273   : > { %v1799_v36 = vadd.f32 %v8955_v60, %v1798_v23  ;;  %v8977_v27 = vpop.f32.mrf.mxu1  ;;  %6496 = vmatmul.mubr.msk.bf16.gmra.mxu1 %vm2307_vm0, %v2220_v12  ;;  %6920 = vmatmul.mubr.msk.bf16.gmra.mxu0 %vm2307_vm0, %v2220_v12  ;;  %v2183_v43 = vmax.f32 %v2085_v61, 0.0 }
 0x274   : > { %v1800_v15 = vpop.f32.mrf.mxu0  ;;  %2696 = vmatprep.mubr.bf16.mxu1 %v11607_v1 }
 0x275   : > { %v2088_v24 = vadd.f32 %v8912_v58, %v1799_v36  ;;  %v8983_v35 = vpop.f32.mrf.mxu1 }
 0x276   : > { %v1803_v50 = vpop.f32.mrf.mxu0 }
 0x277   : > { %v2184_v31 = vmax.f32 %v2088_v24, 0.0  ;;  %v1804_v16 = vadd.f32 %v8955_v60, %v1803_v50  ;;  %v8986_v52 = vpop.f32.mrf.mxu1 }
 0x278   : > { %v1805_v33 = vpop.f32.mrf.mxu0 }
 0x279   : > { %v2221_v38 = vpack.c.bf16 %v2184_v31, %v2183_v43  ;;  %v8988_v9 = vpop.f32.mrf.mxu1  ;;  %v2093_v40 = vadd.f32 %v8898_v59, %v1804_v16  ;;  %v2228_v43 = vlaneseq }
 0x27a   : > { %v1806_v34 = vpop.f32.mrf.mxu0 }
 0x27b   : > { %v1807_v41 = vadd.f32 %v8955_v60, %v1806_v34  ;;  %v8992_v28 = vpop.f32.mrf.mxu1  ;;  %6497 = vmatmul.mubr.msk.bf16.gmra.mxu1 %vm2307_vm0, %v2221_v38  ;;  %6923 = vmatprep.mubr.msk.bf16.mxu0 %vm2307_vm0, %v2221_v38  ;;  %v2185_v46 = vmax.f32 %v2093_v40, 0.0 }
 0x27c   : > { %v1808_v58 = vpop.f32.mrf.mxu0  ;;  %2706 = vmatprep.mubr.bf16.mxu1 %v11607_v1 }
 0x27d   : > { %v2096_v45 = vadd.f32 %v8909_v49, %v1807_v41  ;;  %v8998_v29 = vpop.f32.mrf.mxu1  ;;  %v2229_v58 = vshrl.u32 %v2228_v43, 7  ;;  %v7641_v43 = vld [vmem:[%s8279_s16] sm:$0xff] }
 0x27e   : > { %v1811_v30 = vpop.f32.mrf.mxu0 }
 0x27f   : > { %v2186_v26 = vmax.f32 %v2096_v45, 0.0  ;;  %v1812_v59 = vadd.f32 %v8955_v60, %v1811_v30  ;;  %v9001_v54 = vpop.f32.mrf.mxu1 }
 0x280   : > { %v1813_v8 = vpop.f32.mrf.mxu0 }
 0x281   : > { %v2222_v3 = vpack.c.bf16 %v2186_v26, %v2185_v46  ;;  %v9003_v11 = vpop.f32.mrf.mxu1  ;;  %v2101_v56 = vadd.f32 %v8923_v42, %v1812_v59  ;;  %v9041_v26 = vsub.s32 1, %v2229_v58 }
 0x282   : > { %v1814_v10 = vpop.f32.mrf.mxu0 }
 0x283   : > { %v1815_v21 = vadd.f32 %v8955_v60, %v1814_v10  ;;  %v9007_v25 = vpop.f32.mrf.mxu1  ;;  %6498 = vmatmul.mubr.msk.bf16.gmra.mxu1 %vm2307_vm0, %v2222_v3  ;;  %6924 = vmatmul.mubr.msk.bf16.gmra.mxu0 %vm2307_vm0, %v2222_v3  ;;  %v2187_v13 = vmax.f32 %v2101_v56, 0.0 }
 0x284   : > { %v1816_v49 = vpop.f32.mrf.mxu0  ;;  %2716 = vmatprep.mubr.bf16.mxu1 %v11607_v1 }
 0x285   : > { %v2104_v7 = vadd.f32 %v8934_v55, %v1815_v21  ;;  %v9013_v17 = vpop.f32.mrf.mxu1 }
 0x286   : > { %v1819_v2 = vpop.f32.mrf.mxu0 }
 0x287   : > { %v2188_v39 = vmax.f32 %v2104_v7, 0.0  ;;  %v1820_v42 = vadd.f32 %v8955_v60, %v1819_v2  ;;  %v9016_v20 = vpop.f32.mrf.mxu1 }
 0x288   : > { %v1821_v0 = vpop.f32.mrf.mxu0 }
 0x289   : > { %v2223_v6 = vpack.c.bf16 %v2188_v39, %v2187_v13  ;;  %v9018_v12 = vpop.f32.mrf.mxu1  ;;  %v2109_v61 = vadd.f32 %v8920_v5, %v1820_v42  ;;  %v7640_v0 = vld [vmem:[%s8279_s16 + $0xc] sm:$0xff] }
 0x28a   : > { %v1822_v23 = vpop.f32.mrf.mxu0 }
 0x28b   : > { %v1823_v36 = vadd.f32 %v8955_v60, %v1822_v23  ;;  %v9022_v15 = vpop.f32.mrf.mxu1  ;;  %6499 = vmatmul.mubr.msk.bf16.gmra.mxu1 %vm2307_vm0, %v2223_v6  ;;  %6927 = vmatprep.mubr.msk.bf16.mxu0 %vm2307_vm0, %v2223_v6  ;;  %v2189_v16 = vmax.f32 %v2109_v61, 0.0  ;;  %v9058_v61 = vsub.s32 0, %v2229_v58 }
 0x28c   : > { %v1824_v55 = vpop.f32.mrf.mxu0  ;;  %2726 = vmatprep.mubr.bf16.mxu1 %v11607_v1 }
 0x28d   : > { %v2112_v24 = vadd.f32 %v8931_v22, %v1823_v36  ;;  %v9028_v50 = vpop.f32.mrf.mxu1 }
 0x28e   : > { %v1827_v31 = vpop.f32.mrf.mxu0 }
 0x28f   : > { %v2190_v33 = vmax.f32 %v2112_v24, 0.0  ;;  %v1828_v5 = vadd.f32 %v8955_v60, %v1827_v31  ;;  %v9031_v38 = vpop.f32.mrf.mxu1  ;;  %v634_v31 = vunpack.c.h.bf16 %v7641_v43 }
 0x290   : > { %v1829_v34 = vpop.f32.mrf.mxu0 }
 0x291   : > { %v2224_v40 = vpack.c.bf16 %v2190_v33, %v2189_v16  ;;  %v9033_v41 = vpop.f32.mrf.mxu1  ;;  %v2117_v30 = vadd.f32 %v8945_v48, %v1828_v5  ;;  %v890_v48 = vld [vmem:[#allocation8] sm:$0x7] }
 0x292   : > { %v1830_v45 = vpop.f32.mrf.mxu0  ;;  %v9051_v2 = vrot.slane %v890_v48, %v9041_v26 }
 0x293   : > { %v1831_v22 = vadd.f32 %v8955_v60, %v1830_v45  ;;  %v9037_v46 = vpop.f32.mrf.mxu1  ;;  %6500 = vmatmul.mubr.msk.bf16.gmra.mxu1 %vm2307_vm0, %v2224_v40  ;;  %6928 = vmatmul.mubr.msk.bf16.gmra.mxu0 %vm2307_vm0, %v2224_v40  ;;  %v2191_v56 = vmax.f32 %v2117_v30, 0.0  ;;  %v9078_v40 = vrot.slane %v890_v48, %v9058_v61 }
 0x294   : > { %v1832_v59 = vpop.f32.mrf.mxu0  ;;  %2736 = vmatprep.mubr.bf16.mxu1 %v11607_v1  ;;  %v2445_v6 = vadd.f32 %v8973_v53, %v9051_v2  ;;  %v2441_v53 = vadd.f32 %v8968_v47, %v9051_v2  ;;  %v7642_v47 = vld [vmem:[%s8279_s16 + $0x8] sm:$0xf] }
 0x295   : > { %v2120_v8 = vadd.f32 %v8958_v62, %v1831_v22  ;;  %v9045_v3 = vpop.f32.mrf.mxu1  ;;  %v637_v62 = vunpack.c.h.bf16 %v7640_v0  ;;  %v635_v59 = vunpack.c.l.bf16 %v7642_v47  ;;  %v7647_v47 = vld [vmem:[%s8279_s16 + $0x20] sm:$0xf] }
 0x296   : > { %v1835_v10 = vpop.f32.mrf.mxu0 }
 0x297   : > { %v2192_v21 = vmax.f32 %v2120_v8, 0.0  ;;  %v1836_v49 = vadd.f32 %v8955_v60, %v1835_v10  ;;  %v9048_v7 = vpop.f32.mrf.mxu1  ;;  %v9075_v5 = vadd.f32 %v2445_v6, %v637_v62  ;;  %v7643_v8 = vld [vmem:[%s8279_s16 + $0x14] sm:$0xf]  ;;  %v633_v62 = vunpack.c.l.bf16 %v7641_v43  ;;  %v9094_v6 = vld [vmem:[%s8279_s16 + $0x24] sm:$0xff] }
 0x298   : > { %v1837_v13 = vpop.f32.mrf.mxu0  ;;  %v638_v10 = vunpack.c.l.bf16 %v7643_v8  ;;  %v641_v8 = vunpack.c.l.bf16 %v7647_v47 }
 0x299   : > { %v2225_v39 = vpack.c.bf16 %v2192_v21, %v2191_v56  ;;  %v9053_v42 = vpop.f32.mrf.mxu1  ;;  %v2125_v36 = vadd.f32 %v8942_v51, %v1836_v49  ;;  %11808 = vst [vmem:[#allocation22_spill] sm:$0xff] %v9075_v5  ;;  %v636_v56 = vunpack.c.l.bf16 %v7640_v0  ;;  %v2443_v21 = vadd.f32 %v8971_v14, %v9078_v40 }
 0x29a   : > { %v1838_v23 = vpop.f32.mrf.mxu0 }
 0x29b   : > { %v1839_v55 = vadd.f32 %v8955_v60, %v1838_v23  ;;  %v9062_v24 = vpop.f32.mrf.mxu1  ;;  %6501 = vmatmul.mubr.msk.bf16.gmra.mxu1 %vm2307_vm0, %v2225_v39  ;;  %6931 = vmatprep.mubr.msk.bf16.mxu0 %vm2307_vm0, %v2225_v39  ;;  %v9073_v60 = vsub.s32 2, %v2229_v58  ;;  %v2193_v45 = vmax.f32 %v2125_v36, 0.0  ;;  %v643_v23 = vunpack.c.h.bf16 %v9094_v6 }
 0x29c   : > { %v1840_v16 = vpop.f32.mrf.mxu0  ;;  %2746 = vmatprep.mubr.bf16.mxu1 %v11607_v1  ;;  %v2455_v36 = vadd.f32 %v8988_v9, %v9051_v2  ;;  %v9111_v9 = vld [vmem:[%s8279_s16 + $0x18] sm:$0xff] }
 0x29d   : > { %v2128_v51 = vadd.f32 %v8952_v57, %v1839_v55  ;;  %v9071_v33 = vpop.f32.mrf.mxu1  ;;  %11807 = vst [vmem:[#allocation21_spill] sm:$0xff] %v9073_v60  ;;  %v9084_v57 = vadd.f32 %v2441_v53, %v634_v31  ;;  %v9089_v13 = vrot.slane %v890_v48, %v9073_v60  ;;  %v2439_v48 = vadd.f32 %v8962_v44, %v9078_v40  ;;  %v7645_v31 = vld [vmem:[%s8279_s16 + $0x2c] sm:$0xf] }
 0x29e   : > { %v6873_v34 = vpop.f32.mrf.mxu0  ;;  %v644_v53 = vunpack.c.l.bf16 %v7645_v31  ;;  %v639_v31 = vunpack.c.l.bf16 %v9111_v9  ;;  %v9124_v1 = vadd.f32 %v2455_v36, %v643_v23  ;;  %v7649_v36 = vld [vmem:[%s8279_s16 + $0x38] sm:$0xf] }
 0x29f   : > { %v2194_v30 = vmax.f32 %v2128_v51, 0.0  ;;  %v9080_v22 = vpop.f32.mrf.mxu1  ;;  %11809 = vst [vmem:[#allocation23_spill] sm:$0xff] %v9084_v57  ;;  %v3297_v14 = vpack.c.bf16 %v9075_v5, %v9084_v57  ;;  %v640_v51 = vunpack.c.h.bf16 %v9111_v9  ;;  %v9140_v5 = vld [vmem:[%s8279_s16 + $0x3c] sm:$0xff]  ;;  %v2465_v9 = vadd.f32 %v9003_v11, %v9051_v2 }
 0x2a0   : > { %v2791_v58 = vpop.f32.mrf.mxu0  ;;  %11811 = vst [vmem:[#allocation25_spill] sm:$0xff] %v9124_v1  ;;  %v649_v23 = vunpack.c.h.bf16 %v9140_v5 }
 0x2a1   : > { %v2226_v49 = vpack.c.bf16 %v2194_v30, %v2193_v45  ;;  %v9091_v39 = vpop.f32.mrf.mxu1  ;;  %v2792_v0 = vadd.f32 %v2791_v58, %v9089_v13  ;;  %v2451_v45 = vadd.f32 %v8983_v35, %v9051_v2  ;;  %v9116_v30 = vadd.f32 %v2443_v21, %v636_v56 }
 0x2a2   : > { %v6874_v55 = vpop.f32.mrf.mxu0  ;;  %v2800_v58 = vadd.f32 %v6873_v34, %v9089_v13  ;;  %v9126_v35 = vadd.f32 %v2439_v48, %v633_v62  ;;  %v647_v62 = vunpack.c.l.bf16 %v7649_v36 }
 0x2a3   : > { %v2803_v43 = vadd.f32 %v6874_v55, %v9089_v13  ;;  %v9106_v16 = vpop.f32.mrf.mxu1  ;;  %6502 = vmatmul.mubr.msk.bf16.gmra.mxu1 %vm2307_vm0, %v2226_v49  ;;  %6932 = vmatmul.mubr.msk.bf16.gmra.mxu0 %vm2307_vm0, %v2226_v49  ;;  %11810 = vst [vmem:[#allocation24_spill] sm:$0xff] %v9116_v30  ;;  %v9136_v34 = vadd.f32 %v2451_v45, %v640_v51  ;;  %v7650_v51 = vld [vmem:[%s8279_s16 + $0x5c] sm:$0xf] }
 0x2a4   : > { %v2794_v44 = vpop.f32.mrf.mxu0  ;;  %3574 = vmatprep.mubr.bf16.mxu1 %v3297_v14  ;;  %11812 = vst [vmem:[#allocation26_spill] sm:$0xff] %v9126_v35  ;;  %v9128_v14 = vadd.f32 %v2792_v0, %v635_v59  ;;  %v3296_v59 = vpack.c.bf16 %v9116_v30, %v9126_v35  ;;  %v9148_v0 = vadd.f32 %v2800_v58, %v641_v8  ;;  %v656_v45 = vunpack.c.l.bf16 %v7650_v51 }
 0x2a5   : > { %v2795_v55 = vadd.f32 %v2794_v44, %v9089_v13  ;;  %v9121_v49 = vpop.f32.mrf.mxu1  ;;  %v9130_v56 = vadd.f32 %v2803_v43, %v644_v53  ;;  %11816 = vst [vmem:[#allocation30_spill] sm:$0xff] %v9136_v34  ;;  %v642_v44 = vunpack.c.l.bf16 %v9094_v6  ;;  %v2449_v43 = vadd.f32 %v8977_v27, %v9078_v40  ;;  %v7651_v27 = vld [vmem:[%s8279_s16 + $0x44] sm:$0xf] }
 0x2a6   : > { %v6877_v60 = vpop.f32.mrf.mxu0  ;;  %11813 = vst [vmem:[#allocation27_spill] sm:$0xff] %v9128_v14  ;;  %11817 = vst [vmem:[#allocation31_spill] sm:$0xff] %v9148_v0  ;;  %v650_v11 = vunpack.c.l.bf16 %v7651_v27 }
 0x2a7   : > { %11814 = vst [vmem:[#allocation28_spill] sm:$0xff] %v9130_v56  ;;  %v9132_v21 = vadd.f32 %v2795_v55, %v638_v10  ;;  %v9134_v47 = vpop.f32.mrf.mxu1  ;;  %v2453_v10 = vadd.f32 %v8986_v52, %v9078_v40  ;;  %v3300_v52 = vpack.c.bf16 %v9124_v1, %v9136_v34  ;;  %v3301_v8 = vpack.c.bf16 %v9130_v56, %v9148_v0  ;;  %v7375_v56 = vld [vmem:[#allocation11 + $0x18] ss:$12 sps:$4 sm:$0xff]   ;;  %v7377_v0 = vld [vmem:[#allocation11 + $0x1c] ss:$12 sps:$4 sm:$0xff]  }
 0x2a8   : > { %v2807_v48 = vpop.f32.mrf.mxu0  ;;  %v2461_v1 = vadd.f32 %v8998_v29, %v9051_v2  ;;  %v2816_v34 = vadd.f32 %v6877_v60, %v9089_v13  ;;  %4373 = vmatprep.subr.bf16.mxu0 %v7377_v0 }
 0x2a9   : > { %11815 = vst [vmem:[#allocation29_spill] sm:$0xff] %v9132_v21  ;;  %v9150_v53 = vpop.f32.mrf.mxu1  ;;  %v3298_v6 = vpack.c.bf16 %v9132_v21, %v9128_v14  ;;  %v2808_v58 = vadd.f32 %v2807_v48, %v9089_v13  ;;  %v9169_v14 = vld [vmem:[%s8279_s16 + $0x30] sm:$0xff] }
 0x2aa   : > { %v6878_v55 = vpop.f32.mrf.mxu0  ;;  %v646_v51 = vunpack.c.h.bf16 %v9169_v14  ;;  %v7653_v48 = vld [vmem:[%s11593_s5 + $0xb8] sm:$0xff]  }
 0x2ab   : > { %v2819_v36 = vadd.f32 %v6878_v55, %v9089_v13  ;;  %v9165_v21 = vpop.f32.mrf.mxu1  ;;  %3575 = vmatmul.mubr.bf16.vlgmr.msra.gmra.mxu1 %v3296_v59  ;;  %6951 = vmatprep.mubr.bf16.mxu0 %v3298_v6  ;;  %v9177_v59 = vadd.f32 %v2453_v10, %v642_v44  ;;  %v7654_v6 = vld [vmem:[%s8279_s16 + $0x50] sm:$0xf]  ;;  %v9188_v44 = vadd.f32 %v2465_v9, %v649_v23  ;;  %v9204_v23 = vld [vmem:[%s8279_s16 + $0x54] sm:$0xff] }
 0x2ac   : > { %7091 = vmatpush3.bf16.msra.mxu1 %v7653_v48  ;;  %v2810_v55 = vpop.f32.mrf.mxu0  ;;  %3582 = vmatprep.mubr.bf16.mxu1 %v3300_v52  ;;  %v653_v27 = vunpack.c.l.bf16 %v7654_v6  ;;  %v7655_v48 = vld [vmem:[%s11593_s5 + $0xb0] sm:$0xff]   ;;  %v645_v52 = vunpack.c.l.bf16 %v9169_v14  ;;  %v9190_v6 = vadd.f32 %v2449_v43, %v639_v31  ;;  %v9192_v60 = vadd.f32 %v2808_v58, %v647_v62  ;;  %v7657_v31 = vld [vmem:[%s8279_s16 + $0x68] sm:$0xf] }
 0x2ad   : > { %11818 = vst [vmem:[#allocation32_spill] sm:$0xff] %v9177_v59  ;;  %v2811_v30 = vadd.f32 %v2810_v55, %v9089_v13  ;;  %6952 = vmatmul.mubr.bf16.vlgmr.msra.gmra.mxu0 %v3301_v8  ;;  %v9182_v29 = vpop.f32.mrf.mxu1  ;;  %7084 = vmatprep.subr.bf16.mxu1 %v7655_v48  ;;  %11819 = vst [vmem:[#allocation33_spill] sm:$0xff] %v9188_v44  ;;  %v9194_v8 = vadd.f32 %v2819_v36, %v656_v45  ;;  %v648_v14 = vunpack.c.l.bf16 %v9140_v5  ;;  %v7658_v36 = vld [vmem:[%s8279_s16 + $0x8c] sm:$0xf] }
 0x2ae   : > { %v6881_v10 = vpop.f32.mrf.mxu0  ;;  %11820 = vst [vmem:[#allocation34_spill] sm:$0xff] %v9192_v60  ;;  %4374 = vmatpush1.bf16.msra.mxu0 %v7375_v56  ;;  %v9200_v57 = vadd.f32 %v2461_v1, %v646_v51  ;;  %v655_v0 = vunpack.c.h.bf16 %v9204_v23  ;;  %v659_v43 = vunpack.c.l.bf16 %v7657_v31  ;;  %v2463_v9 = vadd.f32 %v9001_v54, %v9078_v40  ;;  %v9234_v31 = vld [vmem:[%s8279_s16 + $0x48] sm:$0xff] }
 0x2af   : > { %11821 = vst [vmem:[#allocation35_spill] sm:$0xff] %v9194_v8  ;;  %v9196_v55 = vadd.f32 %v2811_v30, %v650_v11  ;;  %v9198_v35 = vpop.f32.mrf.mxu1  ;;  %v3299_v30 = vpack.c.bf16 %v9177_v59, %v9190_v6  ;;  %v9212_v56 = vadd.f32 %v2816_v34, %v653_v27  ;;  %v2459_v45 = vadd.f32 %v8992_v28, %v9078_v40  ;;  %v7659_v28 = vld [vmem:[%s8279_s16 + $0x74] sm:$0xf] }
 0x2b0   : > { %11823 = vst [vmem:[#allocation37_spill] sm:$0xff] %v9200_v57  ;;  %v2823_v62 = vpop.f32.mrf.mxu0  ;;  %7092 = vmatpush3.bf16.msra.mxu1 %v7655_v48  ;;  %v2475_v58 = vadd.f32 %v9018_v12, %v9051_v2  ;;  %v668_v11 = vunpack.c.l.bf16 %v7658_v36  ;;  %v3303_v34 = vpack.c.bf16 %v9188_v44, %v9200_v57  ;;  %v662_v12 = vunpack.c.l.bf16 %v7659_v28  ;;  %v9267_v57 = vld [vmem:[%s8279_s16 + $0x6c] sm:$0xff] }
 0x2b1   : > { %11822 = vst [vmem:[#allocation36_spill] sm:$0xff] %v9196_v55  ;;  %11824 = vst [vmem:[#allocation38_spill] sm:$0xff] %v9212_v56  ;;  %v9214_v1 = vpop.f32.mrf.mxu1  ;;  %v3304_v5 = vpack.c.bf16 %v9196_v55, %v9192_v60  ;;  %7085 = vmatprep.subr.bf16.mxu1 %v8734_v19  ;;  %v3307_v51 = vpack.c.bf16 %v9194_v8, %v9212_v56  ;;  %v2824_v27 = vadd.f32 %v2823_v62, %v9089_v13  ;;  %v7661_v62 = vld [vmem:[%s11593_s5 + $0xa8] sm:$0xff]  }
 0x2b2   : > { %v6882_v54 = vpop.f32.mrf.mxu0  ;;  %v652_v36 = vunpack.c.h.bf16 %v9234_v31  ;;  %v2471_v55 = vadd.f32 %v9013_v17, %v9051_v2  ;;  %v2832_v28 = vadd.f32 %v6881_v10, %v9089_v13  ;;  %v651_v17 = vunpack.c.l.bf16 %v9234_v31 }
 0x2b3   : > { %v2835_v19 = vadd.f32 %v6882_v54, %v9089_v13  ;;  %v9230_v48 = vpop.f32.mrf.mxu1  ;;  %3583 = vmatmul.mubr.bf16.gmra.mxu1 %v3299_v30  ;;  %6955 = vmatprep.mubr.bf16.mxu0 %v3304_v5  ;;  %v9242_v54 = vadd.f32 %v2463_v9, %v648_v14  ;;  %v7662_v30 = vld [vmem:[%s8279_s16 + $0x80] sm:$0xf]  ;;  %v9253_v14 = vadd.f32 %v2459_v45, %v645_v52  ;;  %v654_v44 = vunpack.c.l.bf16 %v9204_v23 }
 0x2b4   : > { %v2826_v60 = vpop.f32.mrf.mxu0  ;;  %3590 = vmatprep.mubr.bf16.mxu1 %v3303_v34  ;;  %7093 = vmatpush3.bf16.msra.mxu1 %v7661_v62  ;;  %v665_v5 = vunpack.c.l.bf16 %v7662_v30  ;;  %v9251_v34 = vadd.f32 %v2475_v58, %v655_v0  ;;  %v9255_v9 = vadd.f32 %v2824_v27, %v659_v43  ;;  %v661_v0 = vunpack.c.h.bf16 %v9267_v57  ;;  %v7664_v58 = vld [vmem:[%s8279_s16 + $0x98] sm:$0xf] }
 0x2b5   : > { %11825 = vst [vmem:[#allocation39_spill] sm:$0xff] %v9242_v54  ;;  %v2827_v8 = vadd.f32 %v2826_v60, %v9089_v13  ;;  %6956 = vmatmul.mubr.bf16.gmra.mxu0 %v3307_v51  ;;  %v9247_v56 = vpop.f32.mrf.mxu1  ;;  %7086 = vmatprep.subr.bf16.mxu1 %v8769_v37  ;;  %11827 = vst [vmem:[#allocation41_spill] sm:$0xff] %v9253_v14  ;;  %v9257_v30 = vadd.f32 %v2835_v19, %v668_v11  ;;  %v671_v52 = vunpack.c.l.bf16 %v7664_v58  ;;  %v7665_v19 = vld [vmem:[%s8279_s16 + $0xbc] sm:$0xf] }
 0x2b6   : > { %11826 = vst [vmem:[#allocation40_spill] sm:$0xff] %v9251_v34  ;;  %v6885_v62 = vpop.f32.mrf.mxu0  ;;  %11828 = vst [vmem:[#allocation42_spill] sm:$0xff] %v9255_v9  ;;  %v9263_v51 = vadd.f32 %v2471_v55, %v652_v36  ;;  %v2473_v43 = vadd.f32 %v9016_v20, %v9078_v40  ;;  %v9276_v55 = vadd.f32 %v2832_v28, %v665_v5 }
 0x2b7   : > { %11829 = vst [vmem:[#allocation43_spill] sm:$0xff] %v9257_v30  ;;  %v9259_v10 = vadd.f32 %v2827_v8, %v662_v12  ;;  %v9261_v60 = vpop.f32.mrf.mxu1  ;;  %v3302_v8 = vpack.c.bf16 %v9242_v54, %v9253_v14  ;;  %v2485_v27 = vadd.f32 %v9033_v41, %v9051_v2  ;;  %v680_v12 = vunpack.c.l.bf16 %v7665_v19 }
 0x2b8   : > { %11831 = vst [vmem:[#allocation45_spill] sm:$0xff] %v9263_v51  ;;  %v2839_v45 = vpop.f32.mrf.mxu0  ;;  %7094 = vmatpush3.bf16.msra.mxu1 %v8769_v37  ;;  %11832 = vst [vmem:[#allocation46_spill] sm:$0xff] %v9276_v55  ;;  %v2469_v37 = vadd.f32 %v9007_v25, %v9078_v40  ;;  %v3306_v31 = vpack.c.bf16 %v9251_v34, %v9263_v51  ;;  %v3313_v36 = vpack.c.bf16 %v9257_v30, %v9276_v55  ;;  %v7666_v25 = vld [vmem:[%s8279_s16 + $0xa4] sm:$0xf] }
 0x2b9   : > { %11830 = vst [vmem:[#allocation44_spill] sm:$0xff] %v9259_v10  ;;  %v9278_v11 = vpop.f32.mrf.mxu1  ;;  %v3310_v23 = vpack.c.bf16 %v9259_v10, %v9255_v9  ;;  %7087 = vmatprep.subr.bf16.mxu1 %v8804_v4  ;;  %v2840_v5 = vadd.f32 %v2839_v45, %v9089_v13  ;;  %v674_v41 = vunpack.c.l.bf16 %v7666_v25  ;;  %v9298_v10 = vld [vmem:[%s8279_s16 + $0x60] sm:$0xff]  ;;  %v2481_v9 = vadd.f32 %v9028_v50, %v9051_v2 }
 0x2ba   : > { %v6886_v20 = vpop.f32.mrf.mxu0  ;;  %v658_v19 = vunpack.c.h.bf16 %v9298_v10  ;;  %v9304_v45 = vadd.f32 %v2473_v43, %v654_v44  ;;  %v657_v50 = vunpack.c.l.bf16 %v9298_v10  ;;  %v9315_v44 = vadd.f32 %v2469_v37, %v651_v17  ;;  %v9329_v51 = vld [vmem:[%s8279_s16 + $0x84] sm:$0xff] }
 0x2bb   : > { %v2851_v28 = vadd.f32 %v6886_v20, %v9089_v13  ;;  %v9294_v58 = vpop.f32.mrf.mxu1  ;;  %3591 = vmatmul.mubr.bf16.gmra.mxu1 %v3302_v8  ;;  %6959 = vmatprep.mubr.bf16.mxu0 %v3310_v23  ;;  %v7668_v20 = vld [vmem:[%s8279_s16 + $0xb0] sm:$0xf]  ;;  %v2848_v8 = vadd.f32 %v6885_v62, %v9089_v13  ;;  %v9317_v43 = vadd.f32 %v2840_v5, %v671_v52  ;;  %v660_v55 = vunpack.c.l.bf16 %v9267_v57 }
 0x2bc   : > { %v2842_v34 = vpop.f32.mrf.mxu0  ;;  %3598 = vmatprep.mubr.bf16.mxu1 %v3306_v31  ;;  %7095 = vmatpush3.bf16.msra.mxu1 %v8804_v4  ;;  %11833 = vst [vmem:[#allocation47_spill] sm:$0xff] %v9304_v45  ;;  %v677_v30 = vunpack.c.l.bf16 %v7668_v20  ;;  %v9313_v31 = vadd.f32 %v2485_v27, %v661_v0  ;;  %11835 = vst [vmem:[#allocation49_spill] sm:$0xff] %v9315_v44  ;;  %v667_v10 = vunpack.c.h.bf16 %v9329_v51  ;;  %v7670_v0 = vld [vmem:[%s8279_s16 + $0xc8] sm:$0xf] }
 0x2bd   : > { %v2843_v23 = vadd.f32 %v2842_v34, %v9089_v13  ;;  %6960 = vmatmul.mubr.bf16.gmra.mxu0 %v3313_v36  ;;  %v9309_v25 = vpop.f32.mrf.mxu1  ;;  %7088 = vmatprep.subr.bf16.mxu1 %v8834_v63  ;;  %11836 = vst [vmem:[#allocation50_spill] sm:$0xff] %v9317_v43  ;;  %v9319_v20 = vadd.f32 %v2851_v28, %v680_v12  ;;  %v683_v17 = vunpack.c.l.bf16 %v7670_v0  ;;  %v7671_v28 = vld [vmem:[%s8279_s16 + $0xec] sm:$0xf] }
 0x2be   : > { %11834 = vst [vmem:[#allocation48_spill] sm:$0xff] %v9313_v31  ;;  %v6889_v4 = vpop.f32.mrf.mxu0  ;;  %v9325_v36 = vadd.f32 %v2481_v9, %v658_v19  ;;  %v3305_v52 = vpack.c.bf16 %v9304_v45, %v9315_v44  ;;  %v2483_v27 = vadd.f32 %v9031_v38, %v9078_v40  ;;  %v9338_v9 = vadd.f32 %v2848_v8, %v677_v30 }
 0x2bf   : > { %11837 = vst [vmem:[#allocation51_spill] sm:$0xff] %v9319_v20  ;;  %v9321_v62 = vadd.f32 %v2843_v23, %v674_v41  ;;  %v9323_v34 = vpop.f32.mrf.mxu1  ;;  %v2495_v5 = vadd.f32 %v9053_v42, %v9051_v2  ;;  %v692_v41 = vunpack.c.l.bf16 %v7671_v28 }
 0x2c0   : > { %11839 = vst [vmem:[#allocation53_spill] sm:$0xff] %v9325_v36  ;;  %v2855_v37 = vpop.f32.mrf.mxu0  ;;  %7096 = vmatpush3.bf16.msra.mxu1 %v8834_v63  ;;  %11840 = vst [vmem:[#allocation54_spill] sm:$0xff] %v9338_v9  ;;  %v2479_v63 = vadd.f32 %v9022_v15, %v9078_v40  ;;  %v3309_v30 = vpack.c.bf16 %v9313_v31, %v9325_v36  ;;  %v3319_v19 = vpack.c.bf16 %v9319_v20, %v9338_v9  ;;  %v7672_v15 = vld [vmem:[%s8279_s16 + $0xd4] sm:$0xf]  ;;  %v9391_v36 = vld [vmem:[%s8279_s16 + $0x9c] sm:$0xff] }
 0x2c1   : > { %11838 = vst [vmem:[#allocation52_spill] sm:$0xff] %v9321_v62  ;;  %v9340_v12 = vpop.f32.mrf.mxu1  ;;  %v3316_v57 = vpack.c.bf16 %v9321_v62, %v9317_v43  ;;  %7089 = vmatprep.subr.bf16.mxu1 %v8847_v18  ;;  %v2856_v8 = vadd.f32 %v2855_v37, %v9089_v13  ;;  %v686_v42 = vunpack.c.l.bf16 %v7672_v15  ;;  %v9360_v62 = vld [vmem:[%s8279_s16 + $0x78] sm:$0xff]  ;;  %v2491_v43 = vadd.f32 %v9045_v3, %v9051_v2 }
 0x2c2   : > { %v6890_v38 = vpop.f32.mrf.mxu0  ;;  %v664_v28 = vunpack.c.h.bf16 %v9360_v62  ;;  %v9366_v37 = vadd.f32 %v2483_v27, %v660_v55  ;;  %v663_v3 = vunpack.c.l.bf16 %v9360_v62  ;;  %v9377_v55 = vadd.f32 %v2479_v63, %v657_v50 }
 0x2c3   : > { %v2867_v23 = vadd.f32 %v6890_v38, %v9089_v13  ;;  %v9356_v0 = vpop.f32.mrf.mxu1  ;;  %3599 = vmatmul.mubr.bf16.gmra.mxu1 %v3305_v52  ;;  %6963 = vmatprep.mubr.bf16.mxu0 %v3316_v57  ;;  %v7674_v38 = vld [vmem:[%s8279_s16 + $0xe0] sm:$0xf]  ;;  %v2864_v52 = vadd.f32 %v6889_v4, %v9089_v13  ;;  %v9379_v27 = vadd.f32 %v2856_v8, %v683_v17  ;;  %v666_v9 = vunpack.c.l.bf16 %v9329_v51 }
 0x2c4   : > { %v2858_v31 = vpop.f32.mrf.mxu0  ;;  %3606 = vmatprep.mubr.bf16.mxu1 %v3309_v30  ;;  %7097 = vmatpush3.bf16.msra.mxu1 %v8847_v18  ;;  %11841 = vst [vmem:[#allocation55_spill] sm:$0xff] %v9366_v37  ;;  %v689_v20 = vunpack.c.l.bf16 %v7674_v38  ;;  %v9375_v30 = vadd.f32 %v2495_v5, %v667_v10  ;;  %11843 = vst [vmem:[#allocation57_spill] sm:$0xff] %v9377_v55  ;;  %v673_v62 = vunpack.c.h.bf16 %v9391_v36  ;;  %v7676_v10 = vld [vmem:[%s8279_s16 + $0xf8] sm:$0xf] }
 0x2c5   : > { %v2859_v57 = vadd.f32 %v2858_v31, %v9089_v13  ;;  %6964 = vmatmul.mubr.bf16.gmra.mxu0 %v3319_v19  ;;  %v9371_v15 = vpop.f32.mrf.mxu1  ;;  %7090 = vmatprep.subr.bf16.mxu1 %v8863_v32  ;;  %11844 = vst [vmem:[#allocation58_spill] sm:$0xff] %v9379_v27  ;;  %v9381_v38 = vadd.f32 %v2867_v23, %v692_v41  ;;  %v695_v50 = vunpack.c.l.bf16 %v7676_v10  ;;  %v7677_v23 = vld [vmem:[%s8279_s16 + $0x11c] sm:$0xf] }
 0x2c6   : > { %11842 = vst [vmem:[#allocation56_spill] sm:$0xff] %v9375_v30  ;;  %v6893_v18 = vpop.f32.mrf.mxu0  ;;  %v9387_v19 = vadd.f32 %v2491_v43, %v664_v28  ;;  %v3308_v17 = vpack.c.bf16 %v9366_v37, %v9377_v55  ;;  %v2493_v5 = vadd.f32 %v9048_v7, %v9078_v40  ;;  %v9400_v43 = vadd.f32 %v2864_v52, %v689_v20 }
 0x2c7   : > { %11845 = vst [vmem:[#allocation59_spill] sm:$0xff] %v9381_v38  ;;  %v9383_v4 = vadd.f32 %v2859_v57, %v686_v42  ;;  %v9385_v31 = vpop.f32.mrf.mxu1  ;;  %v2489_v8 = vadd.f32 %v9037_v46, %v9078_v40  ;;  %v704_v42 = vunpack.c.l.bf16 %v7677_v23  ;;  %v7678_v46 = vld [vmem:[%s8279_s16 + $0x104] sm:$0xf] }
 0x2c8   : > { %11847 = vst [vmem:[#allocation61_spill] sm:$0xff] %v9387_v19  ;;  %v2871_v63 = vpop.f32.mrf.mxu0  ;;  %7098 = vmatpush3.bf16.msra.mxu1 %v8863_v32  ;;  %11848 = vst [vmem:[#allocation62_spill] sm:$0xff] %v9400_v43  ;;  %v2505_v32 = vadd.f32 %v9091_v39, %v9051_v2  ;;  %v3312_v7 = vpack.c.bf16 %v9375_v30, %v9387_v19  ;;  %v3325_v20 = vpack.c.bf16 %v9381_v38, %v9400_v43  ;;  %v7680_v38 = vld [vmem:[%s8279_s16 + $0x110] sm:$0xf] }
 0x2c9   : > { %11846 = vst [vmem:[#allocation60_spill] sm:$0xff] %v9383_v4  ;;  %v9402_v41 = vpop.f32.mrf.mxu1  ;;  %v3322_v51 = vpack.c.bf16 %v9383_v4, %v9379_v27  ;;  %v2872_v52 = vadd.f32 %v2871_v63, %v9089_v13  ;;  %v698_v39 = vunpack.c.l.bf16 %v7678_v46  ;;  %v7679_v4 = vld [vmem:[%s8279_s16 + $0x90] sm:$0xff]  ;;  %v2501_v27 = vadd.f32 %v9071_v33, %v9051_v2 }
 0x2ca   : > { %v6894_v28 = vpop.f32.mrf.mxu0  ;;  %v670_v23 = vunpack.c.h.bf16 %v7679_v4  ;;  %v9423_v30 = vadd.f32 %v2493_v5, %v666_v9  ;;  %v701_v43 = vunpack.c.l.bf16 %v7680_v38  ;;  %v2880_v63 = vadd.f32 %v6893_v18, %v9089_v13 }
 0x2cb   : > { %v2883_v57 = vadd.f32 %v6894_v28, %v9089_v13  ;;  %v9417_v10 = vpop.f32.mrf.mxu1  ;;  %3607 = vmatmul.mubr.bf16.gmra.mxu1 %v3308_v17  ;;  %6967 = vmatprep.mubr.bf16.mxu0 %v3322_v51  ;;  %v9430_v51 = vadd.f32 %v2505_v32, %v673_v62  ;;  %v9432_v46 = vadd.f32 %v2489_v8, %v663_v3  ;;  %v7681_v32 = vld [vmem:[%s8279_s16 + $0xb4] sm:$0xff] }
 0x2cc   : > { %v2874_v37 = vpop.f32.mrf.mxu0  ;;  %3614 = vmatprep.mubr.bf16.mxu1 %v3312_v7  ;;  %11849 = vst [vmem:[#allocation63_spill] sm:$0xff] %v9423_v30  ;;  %v9434_v19 = vadd.f32 %v2872_v52, %v695_v50  ;;  %v9442_v38 = vadd.f32 %v2501_v27, %v670_v23  ;;  %v2503_v3 = vadd.f32 %v9080_v22, %v9078_v40  ;;  %v669_v7 = vunpack.c.l.bf16 %v7679_v4 }
 0x2cd   : > { %v2875_v28 = vadd.f32 %v2874_v37, %v9089_v13  ;;  %6968 = vmatmul.mubr.bf16.gmra.mxu0 %v3325_v20  ;;  %v9428_v17 = vpop.f32.mrf.mxu1  ;;  %11850 = vst [vmem:[#allocation64_spill] sm:$0xff] %v9430_v51  ;;  %11851 = vst [vmem:[#allocation65_spill] sm:$0xff] %v9432_v46  ;;  %v9436_v33 = vadd.f32 %v2883_v57, %v704_v42  ;;  %v672_v37 = vunpack.c.l.bf16 %v9391_v36  ;;  %v679_v42 = vunpack.c.h.bf16 %v7681_v32  ;;  %v7682_v57 = vld [vmem:[%s8279_s16 + $0xa8] sm:$0xff] }
 0x2ce   : > { %11852 = vst [vmem:[#allocation66_spill] sm:$0xff] %v9434_v19  ;;  %11855 = vst [vmem:[#allocation69_spill] sm:$0xff] %v9442_v38  ;;  %v3311_v18 = vpack.c.bf16 %v9423_v30, %v9432_v46  ;;  %v9449_v62 = vadd.f32 %v2880_v63, %v701_v43  ;;  %v2515_v27 = vadd.f32 %v9150_v53, %v9051_v2 }
 0x2cf   : > { %11853 = vst [vmem:[#allocation67_spill] sm:$0xff] %v9436_v33  ;;  %v9438_v9 = vadd.f32 %v2875_v28, %v698_v39  ;;  %v9440_v5 = vpop.f32.mrf.mxu1  ;;  %v3315_v36 = vpack.c.bf16 %v9430_v51, %v9442_v38  ;;  %v2499_v20 = vadd.f32 %v9062_v24, %v9078_v40  ;;  %v676_v39 = vunpack.c.h.bf16 %v7682_v57  ;;  %v7688_v38 = vld [vmem:[%s8279_s16 + $0xc0] sm:$0xff] }
 0x2d0   : > { %11856 = vst [vmem:[#allocation70_spill] sm:$0xff] %v9449_v62  ;;  %v3331_v22 = vpack.c.bf16 %v9436_v33, %v9449_v62  ;;  %v2511_v53 = vadd.f32 %v9121_v49, %v9051_v2  ;;  %v9469_v4 = vadd.f32 %v2503_v3, %v672_v37  ;;  %v9473_v63 = vadd.f32 %v2515_v27, %v679_v42  ;;  %v7684_v49 = vld [vmem:[%s8279_s16 + $0x14c] sm:$0xf]  ;;  %v7685_v42 = vld [vmem:[%s8279_s16 + $0x134] sm:$0xf] }
 0x2d1   : > { %11854 = vst [vmem:[#allocation68_spill] sm:$0xff] %v9438_v9  ;;  %v9451_v50 = vpop.f32.mrf.mxu1  ;;  %v3328_v8 = vpack.c.bf16 %v9438_v9, %v9434_v19  ;;  %v9475_v28 = vadd.f32 %v2499_v20, %v669_v7  ;;  %v710_v27 = vunpack.c.l.bf16 %v7685_v42  ;;  %v7686_v20 = vld [vmem:[%s8279_s16 + $0x140] sm:$0xf]  ;;  %v2521_v30 = vadd.f32 %v9182_v29, %v9051_v2 }
 0x2d2   : > { %11857 = vst [vmem:[#allocation71_spill] sm:$0xff] %v9469_v4  ;;  %11858 = vst [vmem:[#allocation72_spill] sm:$0xff] %v9473_v63  ;;  %v9481_v3 = vadd.f32 %v2511_v53, %v676_v39  ;;  %v7687_v53 = vld [vmem:[%s8279_s16 + $0xcc] sm:$0xff] }
 0x2d3   : > { %v9464_v43 = vpop.f32.mrf.mxu1  ;;  %v6897_v52 = vpop.f32.mrf.mxu0  ;;  %3615 = vmatmul.mubr.bf16.gmra.mxu1 %v3311_v18  ;;  %6971 = vmatprep.mubr.bf16.mxu0 %v3328_v8  ;;  %11859 = vst [vmem:[#allocation73_spill] sm:$0xff] %v9475_v28  ;;  %v678_v18 = vunpack.c.l.bf16 %v7681_v32  ;;  %v7683_v8 = vld [vmem:[%s8279_s16 + $0x128] sm:$0xf]  ;;  %v3314_v7 = vpack.c.bf16 %v9469_v4, %v9475_v28  ;;  %v2513_v32 = vadd.f32 %v9134_v47, %v9078_v40  ;;  %v675_v4 = vunpack.c.l.bf16 %v7682_v57 }
 0x2d4   : > { %3622 = vmatprep.mubr.bf16.mxu1 %v3315_v36  ;;  %v707_v9 = vunpack.c.l.bf16 %v7683_v8  ;;  %v716_v36 = vunpack.c.l.bf16 %v7684_v49  ;;  %11860 = vst [vmem:[#allocation74_spill] sm:$0xff] %v9481_v3  ;;  %v713_v8 = vunpack.c.l.bf16 %v7686_v20  ;;  %v2896_v49 = vadd.f32 %v6897_v52, %v9089_v13 }
 0x2d5   : > { %6972 = vmatmul.mubr.bf16.gmra.mxu0 %v3331_v22  ;;  %v9471_v24 = vpop.f32.mrf.mxu1  ;;  %v2887_v23 = vpop.f32.mrf.mxu0  ;;  %v3318_v51 = vpack.c.bf16 %v9473_v63, %v9481_v3  ;;  %v2509_v47 = vadd.f32 %v9106_v16, %v9078_v40  ;;  %v682_v28 = vunpack.c.h.bf16 %v7688_v38  ;;  %v9513_v57 = vadd.f32 %v2513_v32, %v678_v18 }
 0x2d6   : > { %v2888_v22 = vadd.f32 %v2887_v23, %v9089_v13  ;;  %v685_v23 = vunpack.c.h.bf16 %v7687_v53  ;;  %v9515_v63 = vadd.f32 %v2896_v49, %v713_v8  ;;  %v2535_v49 = vadd.f32 %v9278_v11, %v9051_v2  ;;  %v7378_v11 = vld [vmem:[#allocation11] ss:$12 sps:$4 sm:$0xff]  }
 0x2d7   : > { %v9478_v33 = vpop.f32.mrf.mxu1  ;;  %v6898_v37 = vpop.f32.mrf.mxu0  ;;  %11864 = vst [vmem:[#allocation78_spill] sm:$0xff] %v9513_v57 }
 0x2d8   : > { %v2899_v19 = vadd.f32 %v6898_v37, %v9089_v13  ;;  %v2525_v37 = vadd.f32 %v9214_v1, %v9051_v2  ;;  %v9509_v1 = vadd.f32 %v2888_v22, %v707_v9  ;;  %11865 = vst [vmem:[#allocation79_spill] sm:$0xff] %v9515_v63  ;;  %v684_v22 = vunpack.c.l.bf16 %v7687_v53 }
 0x2d9   : > { %v9492_v62 = vpop.f32.mrf.mxu1  ;;  %v2890_v39 = vpop.f32.mrf.mxu0 }
 0x2da   : > { %v2891_v42 = vadd.f32 %v2890_v39, %v9089_v13  ;;  %v9502_v20 = vadd.f32 %v2899_v19, %v716_v36  ;;  %11862 = vst [vmem:[#allocation76_spill] sm:$0xff] %v9509_v1  ;;  %v9519_v19 = vadd.f32 %v2525_v37, %v685_v23  ;;  %v2519_v23 = vadd.f32 %v9165_v21, %v9078_v40 }
 0x2db   : > { %v9504_v52 = vpop.f32.mrf.mxu1  ;;  %3623 = vmatmul.mubr.bf16.gmra.mxu1 %v3314_v7  ;;  %v9523_v7 = vadd.f32 %v2509_v47, %v675_v4  ;;  %v7689_v4 = vld [vmem:[%s8279_s16 + $0xe4] sm:$0xff]  ;;  %v2531_v47 = vadd.f32 %v9247_v56, %v9051_v2  ;;  %v7692_v56 = vld [vmem:[%s8279_s16 + $0x17c] sm:$0xf] }
 0x2dc   : > { %11861 = vst [vmem:[#allocation75_spill] sm:$0xff] %v9502_v20  ;;  %v9511_v39 = vadd.f32 %v2891_v42, %v710_v27  ;;  %3630 = vmatprep.mubr.bf16.mxu1 %v3318_v51  ;;  %11866 = vst [vmem:[#allocation80_spill] sm:$0xff] %v9519_v19  ;;  %v3337_v29 = vpack.c.bf16 %v9502_v20, %v9515_v63  ;;  %v9529_v51 = vadd.f32 %v2521_v30, %v682_v28 }
 0x2dd   : > { %v9517_v16 = vpop.f32.mrf.mxu1  ;;  %11867 = vst [vmem:[#allocation81_spill] sm:$0xff] %v9523_v7  ;;  %v3317_v18 = vpack.c.bf16 %v9513_v57, %v9523_v7  ;;  %v2523_v27 = vadd.f32 %v9198_v35, %v9078_v40  ;;  %v691_v8 = vunpack.c.h.bf16 %v7689_v4  ;;  %v681_v28 = vunpack.c.l.bf16 %v7688_v38  ;;  %v7690_v35 = vld [vmem:[%s8279_s16 + $0xd8] sm:$0xff]  ;;  %v7696_v57 = vld [vmem:[%s8279_s16 + $0xf0] sm:$0xff] }
 0x2de   : > { %11863 = vst [vmem:[#allocation77_spill] sm:$0xff] %v9511_v39  ;;  %v3334_v36 = vpack.c.bf16 %v9511_v39, %v9509_v1  ;;  %11868 = vst [vmem:[#allocation82_spill] sm:$0xff] %v9529_v51  ;;  %v3321_v30 = vpack.c.bf16 %v9519_v19, %v9529_v51  ;;  %v688_v42 = vunpack.c.h.bf16 %v7690_v35  ;;  %v7691_v1 = vld [vmem:[%s8279_s16 + $0x158] sm:$0xf]  ;;  %v694_v3 = vunpack.c.h.bf16 %v7696_v57 }
 0x2df   : > { %v9527_v9 = vpop.f32.mrf.mxu1  ;;  %v9553_v39 = vadd.f32 %v2535_v49, %v691_v8  ;;  %v9555_v20 = vadd.f32 %v2519_v23, %v681_v28  ;;  %v719_v63 = vunpack.c.l.bf16 %v7691_v1  ;;  %v7693_v49 = vld [vmem:[%s8279_s16 + $0x164] sm:$0xf]  ;;  %v2533_v1 = vadd.f32 %v9261_v60, %v9078_v40  ;;  %v7694_v23 = vld [vmem:[%s8279_s16 + $0x170] sm:$0xf] }
 0x2e0   : > { %6975 = vmatprep.mubr.bf16.mxu0 %v3334_v36  ;;  %v7380_v36 = vld [vmem:[#allocation11 + $0x4] ss:$12 sps:$4 sm:$0xff]   ;;  %v722_v28 = vunpack.c.l.bf16 %v7693_v49  ;;  %v2529_v60 = vadd.f32 %v9230_v48, %v9078_v40  ;;  %v2541_v7 = vadd.f32 %v9309_v25, %v9051_v2 }
 0x2e1   : > { %v9535_v32 = vpop.f32.mrf.mxu1  ;;  %6976 = vmatmul.mubr.bf16.gmra.mxu0 %v3337_v29  ;;  %v9549_v29 = vadd.f32 %v2523_v27, %v684_v22  ;;  %11870 = vst [vmem:[#allocation84_spill] sm:$0xff] %v9553_v39  ;;  %4375 = vmatprep.subr.bf16.mxu0 %v7380_v36  ;;  %11871 = vst [vmem:[#allocation85_spill] sm:$0xff] %v9555_v20  ;;  %v9561_v27 = vadd.f32 %v2531_v47, %v688_v42  ;;  %v725_v36 = vunpack.c.l.bf16 %v7694_v23  ;;  %v7695_v47 = vld [vmem:[%s8279_s16 + $0xfc] sm:$0xff] }
 0x2e2   : > { %4376 = vmatpush1.bf16.msra.mxu0 %v7378_v11 }
 0x2e3   : > { %v9544_v37 = vpop.f32.mrf.mxu1  ;;  %v6901_v53 = vpop.f32.mrf.mxu0  ;;  %3631 = vmatmul.mubr.bf16.gmra.mxu1 %v3317_v18  ;;  %11869 = vst [vmem:[#allocation83_spill] sm:$0xff] %v9549_v29  ;;  %v690_v18 = vunpack.c.l.bf16 %v7689_v4  ;;  %11872 = vst [vmem:[#allocation86_spill] sm:$0xff] %v9561_v27  ;;  %v3320_v4 = vpack.c.bf16 %v9549_v29, %v9555_v20  ;;  %v3324_v29 = vpack.c.bf16 %v9553_v39, %v9561_v27  ;;  %v687_v20 = vunpack.c.l.bf16 %v7690_v35 }
 0x2e4   : > { %3638 = vmatprep.mubr.bf16.mxu1 %v3321_v30  ;;  %v728_v30 = vunpack.c.l.bf16 %v7692_v56  ;;  %v2912_v56 = vadd.f32 %v6901_v53, %v9089_v13 }
 0x2e5   : > { %v9551_v38 = vpop.f32.mrf.mxu1  ;;  %v2903_v21 = vpop.f32.mrf.mxu0  ;;  %v9593_v35 = vadd.f32 %v2533_v1, %v690_v18  ;;  %v696_v18 = vunpack.c.l.bf16 %v7695_v47 }
 0x2e6   : > { %v2904_v51 = vadd.f32 %v2903_v21, %v9089_v13  ;;  %v697_v21 = vunpack.c.h.bf16 %v7695_v47  ;;  %v9595_v39 = vadd.f32 %v2912_v56, %v725_v36  ;;  %v2555_v56 = vadd.f32 %v9402_v41, %v9051_v2 }
 0x2e7   : > { %v9558_v19 = vpop.f32.mrf.mxu1  ;;  %v6902_v22 = vpop.f32.mrf.mxu0  ;;  %11876 = vst [vmem:[#allocation90_spill] sm:$0xff] %v9593_v35 }
 0x2e8   : > { %v2915_v8 = vadd.f32 %v6902_v22, %v9089_v13  ;;  %v2545_v22 = vadd.f32 %v9340_v12, %v9051_v2  ;;  %v9589_v12 = vadd.f32 %v2904_v51, %v719_v63  ;;  %11877 = vst [vmem:[#allocation91_spill] sm:$0xff] %v9595_v39  ;;  %v9609_v51 = vadd.f32 %v2541_v7, %v694_v3 }
 0x2e9   : > { %v9572_v11 = vpop.f32.mrf.mxu1  ;;  %v2906_v42 = vpop.f32.mrf.mxu0  ;;  %v693_v7 = vunpack.c.l.bf16 %v7696_v57 }
 0x2ea   : > { %v2907_v49 = vadd.f32 %v2906_v42, %v9089_v13  ;;  %v9582_v23 = vadd.f32 %v2915_v8, %v728_v30  ;;  %11874 = vst [vmem:[#allocation88_spill] sm:$0xff] %v9589_v12  ;;  %v9599_v30 = vadd.f32 %v2545_v22, %v697_v21  ;;  %11880 = vst [vmem:[#allocation94_spill] sm:$0xff] %v9609_v51  ;;  %v7698_v22 = vld [vmem:[%s8279_s16 + $0x108] sm:$0xff] }
 0x2eb   : > { %v9584_v53 = vpop.f32.mrf.mxu1  ;;  %3639 = vmatmul.mubr.bf16.gmra.mxu1 %v3320_v4  ;;  %v9603_v4 = vadd.f32 %v2529_v60, %v687_v20  ;;  %v7697_v20 = vld [vmem:[%s8279_s16 + $0x114] sm:$0xff]  ;;  %v2539_v21 = vadd.f32 %v9294_v58, %v9078_v40  ;;  %v2551_v60 = vadd.f32 %v9371_v15, %v9051_v2 }
 0x2ec   : > { %11873 = vst [vmem:[#allocation87_spill] sm:$0xff] %v9582_v23  ;;  %v9591_v42 = vadd.f32 %v2907_v49, %v722_v28  ;;  %3646 = vmatprep.mubr.bf16.mxu1 %v3324_v29  ;;  %11878 = vst [vmem:[#allocation92_spill] sm:$0xff] %v9599_v30  ;;  %v3343_v25 = vpack.c.bf16 %v9582_v23, %v9595_v39  ;;  %v2543_v28 = vadd.f32 %v9323_v34, %v9078_v40  ;;  %v7700_v39 = vld [vmem:[%s8279_s16 + $0x1ac] sm:$0xf] }
 0x2ed   : > { %v9597_v48 = vpop.f32.mrf.mxu1  ;;  %11879 = vst [vmem:[#allocation93_spill] sm:$0xff] %v9603_v4  ;;  %v3323_v29 = vpack.c.bf16 %v9593_v35, %v9603_v4  ;;  %v703_v36 = vunpack.c.h.bf16 %v7697_v20  ;;  %v3327_v3 = vpack.c.bf16 %v9599_v30, %v9609_v51  ;;  %v700_v49 = vunpack.c.h.bf16 %v7698_v22  ;;  %v7704_v35 = vld [vmem:[%s8279_s16 + $0x120] sm:$0xff] }
 0x2ee   : > { %11875 = vst [vmem:[#allocation89_spill] sm:$0xff] %v9591_v42  ;;  %v3340_v8 = vpack.c.bf16 %v9591_v42, %v9589_v12  ;;  %v9629_v41 = vadd.f32 %v2543_v28, %v696_v18  ;;  %v9635_v58 = vadd.f32 %v2539_v21, %v693_v7  ;;  %v702_v23 = vunpack.c.l.bf16 %v7697_v20  ;;  %v7699_v42 = vld [vmem:[%s8279_s16 + $0x188] sm:$0xf]  ;;  %v7702_v20 = vld [vmem:[%s8279_s16 + $0x1a0] sm:$0xf] }
 0x2ef   : > { %v9607_v63 = vpop.f32.mrf.mxu1  ;;  %v740_v15 = vunpack.c.l.bf16 %v7700_v39  ;;  %v9641_v30 = vadd.f32 %v2551_v60, %v700_v49  ;;  %v737_v21 = vunpack.c.l.bf16 %v7702_v20  ;;  %v7703_v60 = vld [vmem:[%s8279_s16 + $0x12c] sm:$0xff]  ;;  %v706_v27 = vunpack.c.h.bf16 %v7704_v35 }
 0x2f0   : > { %6979 = vmatprep.mubr.bf16.mxu0 %v3340_v8  ;;  %11881 = vst [vmem:[#allocation95_spill] sm:$0xff] %v9629_v41  ;;  %11883 = vst [vmem:[#allocation97_spill] sm:$0xff] %v9635_v58  ;;  %v3326_v7 = vpack.c.bf16 %v9629_v41, %v9635_v58  ;;  %v699_v58 = vunpack.c.l.bf16 %v7698_v22  ;;  %v2561_v4 = vadd.f32 %v9428_v17, %v9051_v2 }
 0x2f1   : > { %v9615_v1 = vpop.f32.mrf.mxu1  ;;  %6980 = vmatmul.mubr.bf16.gmra.mxu0 %v3343_v25  ;;  %v9633_v25 = vadd.f32 %v2555_v56, %v703_v36  ;;  %11884 = vst [vmem:[#allocation98_spill] sm:$0xff] %v9641_v30  ;;  %v7701_v36 = vld [vmem:[%s8279_s16 + $0x194] sm:$0xf] }
 0x2f2   : > { %v734_v56 = vunpack.c.l.bf16 %v7701_v36 }
 0x2f3   : > { %v9624_v47 = vpop.f32.mrf.mxu1  ;;  %v6905_v34 = vpop.f32.mrf.mxu0  ;;  %3647 = vmatmul.mubr.bf16.gmra.mxu1 %v3323_v29  ;;  %11882 = vst [vmem:[#allocation96_spill] sm:$0xff] %v9633_v25  ;;  %v731_v29 = vunpack.c.l.bf16 %v7699_v42  ;;  %v2553_v42 = vadd.f32 %v9385_v31, %v9078_v40  ;;  %v3330_v41 = vpack.c.bf16 %v9633_v25, %v9641_v30  ;;  %v2549_v31 = vadd.f32 %v9356_v0, %v9078_v40 }
 0x2f4   : > { %3654 = vmatprep.mubr.bf16.mxu1 %v3327_v3  ;;  %v2928_v39 = vadd.f32 %v6905_v34, %v9089_v13  ;;  %v2581_v30 = vadd.f32 %v9517_v16, %v9051_v2 }
 0x2f5   : > { %v9631_v8 = vpop.f32.mrf.mxu1  ;;  %v2919_v57 = vpop.f32.mrf.mxu0  ;;  %v9673_v22 = vadd.f32 %v2553_v42, %v702_v23 }
 0x2f6   : > { %v2920_v18 = vadd.f32 %v2919_v57, %v9089_v13  ;;  %v709_v57 = vunpack.c.h.bf16 %v7703_v60  ;;  %v9675_v25 = vadd.f32 %v2928_v39, %v737_v21  ;;  %v2575_v39 = vadd.f32 %v9492_v62, %v9051_v2 }
 0x2f7   : > { %v9638_v12 = vpop.f32.mrf.mxu1  ;;  %v6906_v3 = vpop.f32.mrf.mxu0  ;;  %11888 = vst [vmem:[#allocation102_spill] sm:$0xff] %v9673_v22 }
 0x2f8   : > { %v2931_v28 = vadd.f32 %v6906_v3, %v9089_v13  ;;  %v2565_v3 = vadd.f32 %v9451_v50, %v9051_v2  ;;  %v9669_v50 = vadd.f32 %v2920_v18, %v731_v29  ;;  %11889 = vst [vmem:[#allocation103_spill] sm:$0xff] %v9675_v25  ;;  %v708_v18 = vunpack.c.l.bf16 %v7703_v60 }
 0x2f9   : > { %v9652_v51 = vpop.f32.mrf.mxu1  ;;  %v2922_v49 = vpop.f32.mrf.mxu0 }
 0x2fa   : > { %v2923_v36 = vadd.f32 %v2922_v49, %v9089_v13  ;;  %v9662_v20 = vadd.f32 %v2931_v28, %v740_v15  ;;  %11886 = vst [vmem:[#allocation100_spill] sm:$0xff] %v9669_v50  ;;  %v9679_v15 = vadd.f32 %v2565_v3, %v709_v57  ;;  %v2559_v57 = vadd.f32 %v9417_v10, %v9078_v40  ;;  %v7706_v3 = vld [vmem:[%s8279_s16 + $0x138] sm:$0xff] }
 0x2fb   : > { %v9664_v34 = vpop.f32.mrf.mxu1  ;;  %3655 = vmatmul.mubr.bf16.gmra.mxu1 %v3326_v7  ;;  %v9683_v7 = vadd.f32 %v2549_v31, %v699_v58  ;;  %v7705_v58 = vld [vmem:[%s8279_s16 + $0x144] sm:$0xff]  ;;  %v2571_v31 = vadd.f32 %v9471_v24, %v9051_v2 }
 0x2fc   : > { %11885 = vst [vmem:[#allocation99_spill] sm:$0xff] %v9662_v20  ;;  %v9671_v49 = vadd.f32 %v2923_v36, %v734_v56  ;;  %3662 = vmatprep.mubr.bf16.mxu1 %v3330_v41  ;;  %11890 = vst [vmem:[#allocation104_spill] sm:$0xff] %v9679_v15  ;;  %v3349_v17 = vpack.c.bf16 %v9662_v20, %v9675_v25  ;;  %v9689_v41 = vadd.f32 %v2561_v4, %v706_v27 }
 0x2fd   : > { %v9677_v0 = vpop.f32.mrf.mxu1  ;;  %11891 = vst [vmem:[#allocation105_spill] sm:$0xff] %v9683_v7  ;;  %v3329_v23 = vpack.c.bf16 %v9673_v22, %v9683_v7  ;;  %v2563_v56 = vadd.f32 %v9440_v5, %v9078_v40  ;;  %v715_v21 = vunpack.c.h.bf16 %v7705_v58  ;;  %v705_v4 = vunpack.c.l.bf16 %v7704_v35  ;;  %v7712_v22 = vld [vmem:[%s8279_s16 + $0x150] sm:$0xff] }
 0x2fe   : > { %11887 = vst [vmem:[#allocation101_spill] sm:$0xff] %v9671_v49  ;;  %v3346_v28 = vpack.c.bf16 %v9671_v49, %v9669_v50  ;;  %11892 = vst [vmem:[#allocation106_spill] sm:$0xff] %v9689_v41  ;;  %v3333_v27 = vpack.c.bf16 %v9679_v15, %v9689_v41  ;;  %v712_v36 = vunpack.c.h.bf16 %v7706_v3  ;;  %v714_v20 = vunpack.c.l.bf16 %v7705_v58  ;;  %v7707_v49 = vld [vmem:[%s8279_s16 + $0x1b8] sm:$0xf]  ;;  %v7708_v50 = vld [vmem:[%s8279_s16 + $0x1dc] sm:$0xf] }
 0x2ff   : > { %v9687_v29 = vpop.f32.mrf.mxu1  ;;  %v9709_v62 = vadd.f32 %v2563_v56, %v708_v18  ;;  %v9715_v10 = vadd.f32 %v2559_v57, %v705_v4  ;;  %v752_v24 = vunpack.c.l.bf16 %v7708_v50  ;;  %v7710_v58 = vld [vmem:[%s8279_s16 + $0x1d0] sm:$0xf]  ;;  %v718_v7 = vunpack.c.h.bf16 %v7712_v22 }
 0x300   : > { %6983 = vmatprep.mubr.bf16.mxu0 %v3346_v28  ;;  %v9721_v15 = vadd.f32 %v2571_v31, %v712_v36  ;;  %v749_v57 = vunpack.c.l.bf16 %v7710_v58  ;;  %v7711_v31 = vld [vmem:[%s8279_s16 + $0x15c] sm:$0xff] }
 0x301   : > { %v9695_v42 = vpop.f32.mrf.mxu1  ;;  %6984 = vmatmul.mubr.bf16.gmra.mxu0 %v3349_v17  ;;  %11893 = vst [vmem:[#allocation107_spill] sm:$0xff] %v9709_v62  ;;  %v9713_v17 = vadd.f32 %v2575_v39, %v715_v21  ;;  %11895 = vst [vmem:[#allocation109_spill] sm:$0xff] %v9715_v10  ;;  %v7709_v21 = vld [vmem:[%s8279_s16 + $0x1c4] sm:$0xf]  ;;  %v3332_v4 = vpack.c.bf16 %v9709_v62, %v9715_v10  ;;  %v711_v10 = vunpack.c.l.bf16 %v7706_v3 }
 0x302   : > { %11896 = vst [vmem:[#allocation110_spill] sm:$0xff] %v9721_v15  ;;  %v746_v39 = vunpack.c.l.bf16 %v7709_v21 }
 0x303   : > { %v9704_v60 = vpop.f32.mrf.mxu1  ;;  %v6909_v5 = vpop.f32.mrf.mxu0  ;;  %3663 = vmatmul.mubr.bf16.gmra.mxu1 %v3329_v23  ;;  %11894 = vst [vmem:[#allocation108_spill] sm:$0xff] %v9713_v17  ;;  %v743_v23 = vunpack.c.l.bf16 %v7707_v49  ;;  %v2573_v49 = vadd.f32 %v9478_v33, %v9078_v40  ;;  %v3336_v62 = vpack.c.bf16 %v9713_v17, %v9721_v15  ;;  %v2569_v33 = vadd.f32 %v9464_v43, %v9078_v40 }
 0x304   : > { %3670 = vmatprep.mubr.bf16.mxu1 %v3333_v27  ;;  %v2944_v50 = vadd.f32 %v6909_v5, %v9089_v13  ;;  %v2601_v15 = vadd.f32 %v9597_v48, %v9051_v2 }
 0x305   : > { %v9711_v28 = vpop.f32.mrf.mxu1  ;;  %v2935_v35 = vpop.f32.mrf.mxu0  ;;  %v9753_v3 = vadd.f32 %v2573_v49, %v714_v20 }
 0x306   : > { %v2936_v18 = vadd.f32 %v2935_v35, %v9089_v13  ;;  %v721_v35 = vunpack.c.h.bf16 %v7711_v31  ;;  %v9755_v17 = vadd.f32 %v2944_v50, %v749_v57  ;;  %v2595_v50 = vadd.f32 %v9572_v11, %v9051_v2 }
 0x307   : > { %v9718_v25 = vpop.f32.mrf.mxu1  ;;  %v6910_v27 = vpop.f32.mrf.mxu0  ;;  %11900 = vst [vmem:[#allocation114_spill] sm:$0xff] %v9753_v3 }
 0x308   : > { %v2947_v56 = vadd.f32 %v6910_v27, %v9089_v13  ;;  %v2585_v27 = vadd.f32 %v9535_v32, %v9051_v2  ;;  %v9749_v32 = vadd.f32 %v2936_v18, %v743_v23  ;;  %11901 = vst [vmem:[#allocation115_spill] sm:$0xff] %v9755_v17  ;;  %v720_v18 = vunpack.c.l.bf16 %v7711_v31 }
 0x309   : > { %v9732_v41 = vpop.f32.mrf.mxu1  ;;  %v2938_v36 = vpop.f32.mrf.mxu0 }
 0x30a   : > { %v2939_v21 = vadd.f32 %v2938_v36, %v9089_v13  ;;  %v9742_v58 = vadd.f32 %v2947_v56, %v752_v24  ;;  %11898 = vst [vmem:[#allocation112_spill] sm:$0xff] %v9749_v32  ;;  %v9759_v24 = vadd.f32 %v2585_v27, %v721_v35  ;;  %v2579_v35 = vadd.f32 %v9504_v52, %v9078_v40  ;;  %v7714_v27 = vld [vmem:[%s8279_s16 + $0x168] sm:$0xff] }
 0x30b   : > { %v9744_v5 = vpop.f32.mrf.mxu1  ;;  %3671 = vmatmul.mubr.bf16.gmra.mxu1 %v3332_v4  ;;  %v9763_v4 = vadd.f32 %v2569_v33, %v711_v10  ;;  %v7713_v10 = vld [vmem:[%s8279_s16 + $0x174] sm:$0xff]  ;;  %v2591_v33 = vadd.f32 %v9551_v38, %v9051_v2 }
 0x30c   : > { %11897 = vst [vmem:[#allocation111_spill] sm:$0xff] %v9742_v58  ;;  %v9751_v36 = vadd.f32 %v2939_v21, %v746_v39  ;;  %3678 = vmatprep.mubr.bf16.mxu1 %v3336_v62  ;;  %11902 = vst [vmem:[#allocation116_spill] sm:$0xff] %v9759_v24  ;;  %v3355_v16 = vpack.c.bf16 %v9742_v58, %v9755_v17  ;;  %v9769_v62 = vadd.f32 %v2581_v30, %v718_v7 }
 0x30d   : > { %v9757_v43 = vpop.f32.mrf.mxu1  ;;  %11903 = vst [vmem:[#allocation117_spill] sm:$0xff] %v9763_v4  ;;  %v3335_v20 = vpack.c.bf16 %v9753_v3, %v9763_v4  ;;  %v2583_v39 = vadd.f32 %v9527_v9, %v9078_v40  ;;  %v727_v57 = vunpack.c.h.bf16 %v7713_v10  ;;  %v717_v7 = vunpack.c.l.bf16 %v7712_v22  ;;  %v7720_v3 = vld [vmem:[%s8279_s16 + $0x180] sm:$0xff] }
 0x30e   : > { %11899 = vst [vmem:[#allocation113_spill] sm:$0xff] %v9751_v36  ;;  %v3352_v56 = vpack.c.bf16 %v9751_v36, %v9749_v32  ;;  %11904 = vst [vmem:[#allocation118_spill] sm:$0xff] %v9769_v62  ;;  %v3339_v30 = vpack.c.bf16 %v9759_v24, %v9769_v62  ;;  %v724_v21 = vunpack.c.h.bf16 %v7714_v27  ;;  %v726_v58 = vunpack.c.l.bf16 %v7713_v10  ;;  %v7715_v36 = vld [vmem:[%s8279_s16 + $0x1e8] sm:$0xf]  ;;  %v7716_v32 = vld [vmem:[%s8279_s16 + $0x20c] sm:$0xf] }
 0x30f   : > { %v9767_v23 = vpop.f32.mrf.mxu1  ;;  %v9789_v11 = vadd.f32 %v2583_v39, %v720_v18  ;;  %v9795_v52 = vadd.f32 %v2579_v35, %v717_v7  ;;  %v764_v38 = vunpack.c.l.bf16 %v7716_v32  ;;  %v7718_v10 = vld [vmem:[%s8279_s16 + $0x200] sm:$0xf]  ;;  %v730_v4 = vunpack.c.h.bf16 %v7720_v3 }
 0x310   : > { %6987 = vmatprep.mubr.bf16.mxu0 %v3352_v56  ;;  %v9801_v24 = vadd.f32 %v2591_v33, %v724_v21  ;;  %v761_v35 = vunpack.c.l.bf16 %v7718_v10  ;;  %v7719_v33 = vld [vmem:[%s8279_s16 + $0x18c] sm:$0xff]  ;;  %v2641_v46 = vadd.f32 %v9757_v43, %v9051_v2 }
 0x311   : > { %v9775_v49 = vpop.f32.mrf.mxu1  ;;  %6988 = vmatmul.mubr.bf16.gmra.mxu0 %v3355_v16  ;;  %11905 = vst [vmem:[#allocation119_spill] sm:$0xff] %v9789_v11  ;;  %v9793_v16 = vadd.f32 %v2595_v50, %v727_v57  ;;  %11907 = vst [vmem:[#allocation121_spill] sm:$0xff] %v9795_v52  ;;  %v7717_v57 = vld [vmem:[%s8279_s16 + $0x1f4] sm:$0xf]  ;;  %v3338_v7 = vpack.c.bf16 %v9789_v11, %v9795_v52  ;;  %v723_v52 = vunpack.c.l.bf16 %v7714_v27 }
 0x312   : > { %11908 = vst [vmem:[#allocation122_spill] sm:$0xff] %v9801_v24  ;;  %v758_v50 = vunpack.c.l.bf16 %v7717_v57 }
 0x313   : > { %v9784_v31 = vpop.f32.mrf.mxu1  ;;  %v6913_v9 = vpop.f32.mrf.mxu0  ;;  %3679 = vmatmul.mubr.bf16.gmra.mxu1 %v3335_v20  ;;  %11906 = vst [vmem:[#allocation120_spill] sm:$0xff] %v9793_v16  ;;  %v755_v20 = vunpack.c.l.bf16 %v7715_v36  ;;  %v2593_v36 = vadd.f32 %v9558_v19, %v9078_v40  ;;  %v3342_v11 = vpack.c.bf16 %v9793_v16, %v9801_v24  ;;  %v2589_v19 = vadd.f32 %v9544_v37, %v9078_v40 }
 0x314   : > { %3686 = vmatprep.mubr.bf16.mxu1 %v3339_v30  ;;  %v2960_v32 = vadd.f32 %v6913_v9, %v9089_v13 }
 0x315   : > { %v9791_v56 = vpop.f32.mrf.mxu1  ;;  %v2951_v22 = vpop.f32.mrf.mxu0  ;;  %v9833_v27 = vadd.f32 %v2593_v36, %v726_v58 }
 0x316   : > { %v2952_v18 = vadd.f32 %v2951_v22, %v9089_v13  ;;  %v733_v22 = vunpack.c.h.bf16 %v7719_v33  ;;  %v9835_v16 = vadd.f32 %v2960_v32, %v761_v35  ;;  %v2615_v32 = vadd.f32 %v9652_v51, %v9051_v2 }
 0x317   : > { %v9798_v17 = vpop.f32.mrf.mxu1  ;;  %v6914_v30 = vpop.f32.mrf.mxu0  ;;  %11912 = vst [vmem:[#allocation126_spill] sm:$0xff] %v9833_v27 }
 0x318   : > { %v2963_v39 = vadd.f32 %v6914_v30, %v9089_v13  ;;  %v2605_v30 = vadd.f32 %v9615_v1, %v9051_v2  ;;  %v9829_v1 = vadd.f32 %v2952_v18, %v755_v20  ;;  %11913 = vst [vmem:[#allocation127_spill] sm:$0xff] %v9835_v16  ;;  %v732_v18 = vunpack.c.l.bf16 %v7719_v33 }
 0x319   : > { %v9812_v62 = vpop.f32.mrf.mxu1  ;;  %v2954_v21 = vpop.f32.mrf.mxu0 }
 0x31a   : > { %v2955_v57 = vadd.f32 %v2954_v21, %v9089_v13  ;;  %v9822_v10 = vadd.f32 %v2963_v39, %v764_v38  ;;  %11910 = vst [vmem:[#allocation124_spill] sm:$0xff] %v9829_v1  ;;  %v9839_v38 = vadd.f32 %v2605_v30, %v733_v22  ;;  %v2599_v22 = vadd.f32 %v9584_v53, %v9078_v40  ;;  %v7722_v30 = vld [vmem:[%s8279_s16 + $0x198] sm:$0xff] }
 0x31b   : > { %v9824_v9 = vpop.f32.mrf.mxu1  ;;  %3687 = vmatmul.mubr.bf16.gmra.mxu1 %v3338_v7  ;;  %v9843_v7 = vadd.f32 %v2589_v19, %v723_v52  ;;  %v7721_v52 = vld [vmem:[%s8279_s16 + $0x1a4] sm:$0xff]  ;;  %v2611_v19 = vadd.f32 %v9631_v8, %v9051_v2 }
 0x31c   : > { %11909 = vst [vmem:[#allocation123_spill] sm:$0xff] %v9822_v10  ;;  %v9831_v21 = vadd.f32 %v2955_v57, %v758_v50  ;;  %3694 = vmatprep.mubr.bf16.mxu1 %v3342_v11  ;;  %11914 = vst [vmem:[#allocation128_spill] sm:$0xff] %v9839_v38  ;;  %v3361_v48 = vpack.c.bf16 %v9822_v10, %v9835_v16  ;;  %v9849_v11 = vadd.f32 %v2601_v15, %v730_v4 }
 0x31d   : > { %v9837_v37 = vpop.f32.mrf.mxu1  ;;  %11915 = vst [vmem:[#allocation129_spill] sm:$0xff] %v9843_v7  ;;  %v3341_v58 = vpack.c.bf16 %v9833_v27, %v9843_v7  ;;  %v2603_v50 = vadd.f32 %v9607_v63, %v9078_v40  ;;  %v739_v35 = vunpack.c.h.bf16 %v7721_v52  ;;  %v729_v4 = vunpack.c.l.bf16 %v7720_v3  ;;  %v7728_v27 = vld [vmem:[%s8279_s16 + $0x1b0] sm:$0xff] }
 0x31e   : > { %11911 = vst [vmem:[#allocation125_spill] sm:$0xff] %v9831_v21  ;;  %v3358_v39 = vpack.c.bf16 %v9831_v21, %v9829_v1  ;;  %11916 = vst [vmem:[#allocation130_spill] sm:$0xff] %v9849_v11  ;;  %v3345_v15 = vpack.c.bf16 %v9839_v38, %v9849_v11  ;;  %v736_v57 = vunpack.c.h.bf16 %v7722_v30  ;;  %v738_v10 = vunpack.c.l.bf16 %v7721_v52  ;;  %v7723_v21 = vld [vmem:[%s8279_s16 + $0x218] sm:$0xf]  ;;  %v7724_v1 = vld [vmem:[%s8279_s16 + $0x23c] sm:$0xf] }
 0x31f   : > { %v9847_v20 = vpop.f32.mrf.mxu1  ;;  %v9869_v51 = vadd.f32 %v2603_v50, %v732_v18  ;;  %v9875_v53 = vadd.f32 %v2599_v22, %v729_v4  ;;  %v776_v8 = vunpack.c.l.bf16 %v7724_v1  ;;  %v7726_v52 = vld [vmem:[%s8279_s16 + $0x230] sm:$0xf]  ;;  %v742_v24 = vunpack.c.h.bf16 %v7728_v27 }
 0x320   : > { %6991 = vmatprep.mubr.bf16.mxu0 %v3358_v39  ;;  %v9881_v38 = vadd.f32 %v2611_v19, %v736_v57  ;;  %v773_v22 = vunpack.c.l.bf16 %v7726_v52  ;;  %v7727_v19 = vld [vmem:[%s8279_s16 + $0x1bc] sm:$0xff]  ;;  %v2621_v7 = vadd.f32 %v9677_v0, %v9051_v2 }
 0x321   : > { %v9855_v36 = vpop.f32.mrf.mxu1  ;;  %6992 = vmatmul.mubr.bf16.gmra.mxu0 %v3361_v48  ;;  %11917 = vst [vmem:[#allocation131_spill] sm:$0xff] %v9869_v51  ;;  %v9873_v48 = vadd.f32 %v2615_v32, %v739_v35  ;;  %11919 = vst [vmem:[#allocation133_spill] sm:$0xff] %v9875_v53  ;;  %v7725_v35 = vld [vmem:[%s8279_s16 + $0x224] sm:$0xf]  ;;  %v3344_v4 = vpack.c.bf16 %v9869_v51, %v9875_v53  ;;  %v735_v53 = vunpack.c.l.bf16 %v7722_v30 }
 0x322   : > { %11920 = vst [vmem:[#allocation134_spill] sm:$0xff] %v9881_v38  ;;  %v770_v32 = vunpack.c.l.bf16 %v7725_v35 }
 0x323   : > { %v9864_v33 = vpop.f32.mrf.mxu1  ;;  %v6917_v63 = vpop.f32.mrf.mxu0  ;;  %3695 = vmatmul.mubr.bf16.gmra.mxu1 %v3341_v58  ;;  %11918 = vst [vmem:[#allocation132_spill] sm:$0xff] %v9873_v48  ;;  %v767_v58 = vunpack.c.l.bf16 %v7723_v21  ;;  %v2613_v21 = vadd.f32 %v9638_v12, %v9078_v40  ;;  %v3348_v51 = vpack.c.bf16 %v9873_v48, %v9881_v38  ;;  %v2609_v12 = vadd.f32 %v9624_v47, %v9078_v40  ;;  %v7736_v38 = vld [vmem:[%s8279_s16 + $0x1e0] sm:$0xff] }
 0x324   : > { %3702 = vmatprep.mubr.bf16.mxu1 %v3345_v15  ;;  %v2976_v1 = vadd.f32 %v6917_v63, %v9089_v13 }
 0x325   : > { %v9871_v39 = vpop.f32.mrf.mxu1  ;;  %v2967_v3 = vpop.f32.mrf.mxu0  ;;  %v9913_v30 = vadd.f32 %v2613_v21, %v738_v10 }
 0x326   : > { %v2968_v18 = vadd.f32 %v2967_v3, %v9089_v13  ;;  %v745_v3 = vunpack.c.h.bf16 %v7727_v19  ;;  %v9915_v48 = vadd.f32 %v2976_v1, %v773_v22  ;;  %v2635_v1 = vadd.f32 %v9732_v41, %v9051_v2 }
 0x327   : > { %v9878_v16 = vpop.f32.mrf.mxu1  ;;  %v6918_v15 = vpop.f32.mrf.mxu0  ;;  %11924 = vst [vmem:[#allocation138_spill] sm:$0xff] %v9913_v30  ;;  %v2631_v41 = vadd.f32 %v9711_v28, %v9051_v2  ;;  %v7732_v28 = vld [vmem:[%s8279_s16 + $0x26c] sm:$0xf] }
 0x328   : > { %v2979_v50 = vadd.f32 %v6918_v15, %v9089_v13  ;;  %v2625_v15 = vadd.f32 %v9695_v42, %v9051_v2  ;;  %v9909_v42 = vadd.f32 %v2968_v18, %v767_v58  ;;  %11925 = vst [vmem:[#allocation139_spill] sm:$0xff] %v9915_v48  ;;  %v744_v18 = vunpack.c.l.bf16 %v7727_v19 }
 0x329   : > { %v9892_v11 = vpop.f32.mrf.mxu1  ;;  %v2970_v57 = vpop.f32.mrf.mxu0  ;;  %v2619_v19 = vadd.f32 %v9664_v34, %v9078_v40 }
 0x32a   : > { %v2971_v35 = vadd.f32 %v2970_v57, %v9089_v13  ;;  %v9902_v52 = vadd.f32 %v2979_v50, %v776_v8  ;;  %11922 = vst [vmem:[#allocation136_spill] sm:$0xff] %v9909_v42  ;;  %v9919_v8 = vadd.f32 %v2625_v15, %v745_v3  ;;  %v741_v3 = vunpack.c.l.bf16 %v7728_v27 }
 0x32b   : > { %v9904_v63 = vpop.f32.mrf.mxu1  ;;  %3703 = vmatmul.mubr.bf16.gmra.mxu1 %v3344_v4  ;;  %v9923_v4 = vadd.f32 %v2609_v12, %v735_v53  ;;  %v7729_v53 = vld [vmem:[%s8279_s16 + $0x1d4] sm:$0xff] }
 0x32c   : > { %11921 = vst [vmem:[#allocation135_spill] sm:$0xff] %v9902_v52  ;;  %v9911_v57 = vadd.f32 %v2971_v35, %v770_v32  ;;  %3710 = vmatprep.mubr.bf16.mxu1 %v3348_v51  ;;  %11926 = vst [vmem:[#allocation140_spill] sm:$0xff] %v9919_v8  ;;  %v3367_v0 = vpack.c.bf16 %v9902_v52, %v9915_v48  ;;  %v9929_v51 = vadd.f32 %v2621_v7, %v742_v24  ;;  %v9942_v7 = vld [vmem:[#allocation11 + $0x20] ss:$12 sps:$4 sm:$0xff]  }
 0x32d   : > { %v9917_v47 = vpop.f32.mrf.mxu1  ;;  %11927 = vst [vmem:[#allocation141_spill] sm:$0xff] %v9923_v4  ;;  %v3347_v10 = vpack.c.bf16 %v9913_v30, %v9923_v4  ;;  %v2623_v32 = vadd.f32 %v9687_v29, %v9078_v40  ;;  %v751_v22 = vunpack.c.h.bf16 %v7729_v53  ;;  %v7730_v35 = vld [vmem:[%s8279_s16 + $0x1c8] sm:$0xff]  ;;  %7015 = vmatprep.subr.bf16.mxu1 %v9942_v7  ;;  %v9958_v52 = vadd.f32 %v2619_v19, %v741_v3 }
 0x32e   : > { %11923 = vst [vmem:[#allocation137_spill] sm:$0xff] %v9911_v57  ;;  %v3364_v50 = vpack.c.bf16 %v9911_v57, %v9909_v42  ;;  %11928 = vst [vmem:[#allocation142_spill] sm:$0xff] %v9929_v51  ;;  %v3351_v24 = vpack.c.bf16 %v9919_v8, %v9929_v51  ;;  %v748_v12 = vunpack.c.h.bf16 %v7730_v35  ;;  %v7731_v57 = vld [vmem:[%s8279_s16 + $0x248] sm:$0xf]  ;;  %v754_v4 = vunpack.c.h.bf16 %v7736_v38 }
 0x32f   : > { %v9927_v58 = vpop.f32.mrf.mxu1  ;;  %v9956_v34 = vadd.f32 %v2635_v1, %v751_v22  ;;  %11931 = vst [vmem:[#allocation145_spill] sm:$0xff] %v9958_v52  ;;  %v779_v48 = vunpack.c.l.bf16 %v7731_v57  ;;  %v7733_v22 = vld [vmem:[%s8279_s16 + $0x254] sm:$0xf]  ;;  %v2633_v57 = vadd.f32 %v9718_v25, %v9078_v40  ;;  %v2629_v25 = vadd.f32 %v9704_v60, %v9078_v40 }
 0x330   : > { %6995 = vmatprep.mubr.bf16.mxu0 %v3364_v50  ;;  %v9951_v50 = vadd.f32 %v2623_v32, %v744_v18  ;;  %v788_v18 = vunpack.c.l.bf16 %v7732_v28  ;;  %v782_v1 = vunpack.c.l.bf16 %v7733_v22 }
 0x331   : > { %v9935_v21 = vpop.f32.mrf.mxu1  ;;  %6996 = vmatmul.mubr.bf16.gmra.mxu0 %v3367_v0  ;;  %11930 = vst [vmem:[#allocation144_spill] sm:$0xff] %v9956_v34 }
 0x332   : > { %11929 = vst [vmem:[#allocation143_spill] sm:$0xff] %v9951_v50  ;;  %v3350_v3 = vpack.c.bf16 %v9951_v50, %v9958_v52  ;;  %v747_v52 = vunpack.c.l.bf16 %v7730_v35 }
 0x333   : > { %v9946_v15 = vpop.f32.mrf.mxu1  ;;  %v6921_v29 = vpop.f32.mrf.mxu0  ;;  %3711 = vmatmul.mubr.bf16.gmra.mxu1 %v3347_v10  ;;  %v750_v10 = vunpack.c.l.bf16 %v7729_v53  ;;  %v7734_v53 = vld [vmem:[%s8279_s16 + $0x260] sm:$0xf] }
 0x334   : > { %3718 = vmatprep.mubr.bf16.mxu1 %v3351_v24  ;;  %v9964_v24 = vadd.f32 %v2631_v41, %v748_v12  ;;  %v785_v19 = vunpack.c.l.bf16 %v7734_v53  ;;  %v2992_v28 = vadd.f32 %v6921_v29, %v9089_v13  ;;  %v7735_v41 = vld [vmem:[%s8279_s16 + $0x1ec] sm:$0xff] }
 0x335   : > { %v9953_v0 = vpop.f32.mrf.mxu1  ;;  %v2983_v27 = vpop.f32.mrf.mxu0  ;;  %v9996_v35 = vadd.f32 %v2633_v57, %v750_v10  ;;  %v756_v10 = vunpack.c.l.bf16 %v7735_v41 }
 0x336   : > { %11932 = vst [vmem:[#allocation146_spill] sm:$0xff] %v9964_v24  ;;  %v2984_v8 = vadd.f32 %v2983_v27, %v9089_v13  ;;  %v757_v27 = vunpack.c.h.bf16 %v7735_v41  ;;  %v3354_v50 = vpack.c.bf16 %v9956_v34, %v9964_v24  ;;  %v9998_v34 = vadd.f32 %v2992_v28, %v785_v19 }
 0x337   : > { %v9961_v42 = vpop.f32.mrf.mxu1  ;;  %v6922_v32 = vpop.f32.mrf.mxu0  ;;  %11936 = vst [vmem:[#allocation150_spill] sm:$0xff] %v9996_v35  ;;  %v2655_v28 = vadd.f32 %v9812_v62, %v9051_v2 }
 0x338   : > { %v2995_v51 = vadd.f32 %v6922_v32, %v9089_v13  ;;  %v2645_v32 = vadd.f32 %v9775_v49, %v9051_v2  ;;  %v9992_v49 = vadd.f32 %v2984_v8, %v779_v48  ;;  %11937 = vst [vmem:[#allocation151_spill] sm:$0xff] %v9998_v34  ;;  %v10012_v8 = vadd.f32 %v2641_v46, %v754_v4 }
 0x339   : > { %v9975_v30 = vpop.f32.mrf.mxu1  ;;  %v2986_v12 = vpop.f32.mrf.mxu0  ;;  %v753_v4 = vunpack.c.l.bf16 %v7736_v38 }
 0x33a   : > { %v2987_v22 = vadd.f32 %v2986_v12, %v9089_v13  ;;  %v9985_v53 = vadd.f32 %v2995_v51, %v788_v18  ;;  %11934 = vst [vmem:[#allocation148_spill] sm:$0xff] %v9992_v49  ;;  %v10002_v51 = vadd.f32 %v2645_v32, %v757_v27  ;;  %11940 = vst [vmem:[#allocation154_spill] sm:$0xff] %v10012_v8  ;;  %v7738_v32 = vld [vmem:[%s8279_s16 + $0x1f8] sm:$0xff] }
 0x33b   : > { %v9987_v29 = vpop.f32.mrf.mxu1  ;;  %3719 = vmatmul.mubr.bf16.gmra.mxu1 %v3350_v3  ;;  %v10006_v3 = vadd.f32 %v2629_v25, %v747_v52  ;;  %v7737_v52 = vld [vmem:[%s8279_s16 + $0x204] sm:$0xff]  ;;  %v2639_v27 = vadd.f32 %v9744_v5, %v9078_v40  ;;  %v2651_v25 = vadd.f32 %v9791_v56, %v9051_v2 }
 0x33c   : > { %11933 = vst [vmem:[#allocation147_spill] sm:$0xff] %v9985_v53  ;;  %v9994_v12 = vadd.f32 %v2987_v22, %v782_v1  ;;  %3726 = vmatprep.mubr.bf16.mxu1 %v3354_v50  ;;  %11938 = vst [vmem:[#allocation152_spill] sm:$0xff] %v10002_v51  ;;  %v3373_v43 = vpack.c.bf16 %v9985_v53, %v9998_v34  ;;  %v2643_v1 = vadd.f32 %v9767_v23, %v9078_v40 }
 0x33d   : > { %v10000_v60 = vpop.f32.mrf.mxu1  ;;  %11939 = vst [vmem:[#allocation153_spill] sm:$0xff] %v10006_v3  ;;  %v3353_v50 = vpack.c.bf16 %v9996_v35, %v10006_v3  ;;  %v763_v19 = vunpack.c.h.bf16 %v7737_v52  ;;  %v3357_v46 = vpack.c.bf16 %v10002_v51, %v10012_v8  ;;  %v760_v22 = vunpack.c.h.bf16 %v7738_v32  ;;  %v7744_v35 = vld [vmem:[%s8279_s16 + $0x210] sm:$0xff] }
 0x33e   : > { %11935 = vst [vmem:[#allocation149_spill] sm:$0xff] %v9994_v12  ;;  %v3370_v18 = vpack.c.bf16 %v9994_v12, %v9992_v49  ;;  %v10032_v62 = vadd.f32 %v2643_v1, %v756_v10  ;;  %v10038_v5 = vadd.f32 %v2639_v27, %v753_v4  ;;  %v762_v53 = vunpack.c.l.bf16 %v7737_v52  ;;  %v7739_v12 = vld [vmem:[%s8279_s16 + $0x278] sm:$0xf]  ;;  %v7740_v49 = vld [vmem:[%s8279_s16 + $0x29c] sm:$0xf] }
 0x33f   : > { %v10010_v48 = vpop.f32.mrf.mxu1  ;;  %v800_v56 = vunpack.c.l.bf16 %v7740_v49  ;;  %v10044_v51 = vadd.f32 %v2651_v25, %v760_v22  ;;  %v7742_v52 = vld [vmem:[%s8279_s16 + $0x290] sm:$0xf]  ;;  %v7743_v25 = vld [vmem:[%s8279_s16 + $0x21c] sm:$0xff]  ;;  %v766_v24 = vunpack.c.h.bf16 %v7744_v35  ;;  %v2661_v3 = vadd.f32 %v9837_v37, %v9051_v2 }
 0x340   : > { %6999 = vmatprep.mubr.bf16.mxu0 %v3370_v18  ;;  %11941 = vst [vmem:[#allocation155_spill] sm:$0xff] %v10032_v62  ;;  %11943 = vst [vmem:[#allocation157_spill] sm:$0xff] %v10038_v5  ;;  %v3356_v4 = vpack.c.bf16 %v10032_v62, %v10038_v5  ;;  %v797_v27 = vunpack.c.l.bf16 %v7742_v52  ;;  %v759_v5 = vunpack.c.l.bf16 %v7738_v32 }
 0x341   : > { %v10018_v57 = vpop.f32.mrf.mxu1  ;;  %7000 = vmatmul.mubr.bf16.gmra.mxu0 %v3373_v43  ;;  %v10036_v43 = vadd.f32 %v2655_v28, %v763_v19  ;;  %11944 = vst [vmem:[#allocation158_spill] sm:$0xff] %v10044_v51  ;;  %v7741_v19 = vld [vmem:[%s8279_s16 + $0x284] sm:$0xf] }
 0x342   : > { %v794_v28 = vunpack.c.l.bf16 %v7741_v19 }
 0x343   : > { %v10027_v41 = vpop.f32.mrf.mxu1  ;;  %v6925_v23 = vpop.f32.mrf.mxu0  ;;  %3727 = vmatmul.mubr.bf16.gmra.mxu1 %v3353_v50  ;;  %11942 = vst [vmem:[#allocation156_spill] sm:$0xff] %v10036_v43  ;;  %v791_v50 = vunpack.c.l.bf16 %v7739_v12  ;;  %v2653_v12 = vadd.f32 %v9798_v17, %v9078_v40  ;;  %v3360_v62 = vpack.c.bf16 %v10036_v43, %v10044_v51  ;;  %v2649_v17 = vadd.f32 %v9784_v31, %v9078_v40 }
 0x344   : > { %3734 = vmatprep.mubr.bf16.mxu1 %v3357_v46  ;;  %v3008_v49 = vadd.f32 %v6925_v23, %v9089_v13 }
 0x345   : > { %v10034_v18 = vpop.f32.mrf.mxu1  ;;  %v2999_v38 = vpop.f32.mrf.mxu0  ;;  %v10076_v32 = vadd.f32 %v2653_v12, %v762_v53 }
 0x346   : > { %v3000_v10 = vadd.f32 %v2999_v38, %v9089_v13  ;;  %v769_v38 = vunpack.c.h.bf16 %v7743_v25  ;;  %v10078_v43 = vadd.f32 %v3008_v49, %v797_v27  ;;  %v2675_v49 = vadd.f32 %v9892_v11, %v9051_v2 }
 0x347   : > { %v10041_v34 = vpop.f32.mrf.mxu1  ;;  %v6926_v46 = vpop.f32.mrf.mxu0  ;;  %11948 = vst [vmem:[#allocation162_spill] sm:$0xff] %v10076_v32 }
 0x348   : > { %v3011_v1 = vadd.f32 %v6926_v46, %v9089_v13  ;;  %v2665_v46 = vadd.f32 %v9855_v36, %v9051_v2  ;;  %v10072_v36 = vadd.f32 %v3000_v10, %v791_v50  ;;  %11949 = vst [vmem:[#allocation163_spill] sm:$0xff] %v10078_v43  ;;  %v768_v10 = vunpack.c.l.bf16 %v7743_v25 }
 0x349   : > { %v10055_v8 = vpop.f32.mrf.mxu1  ;;  %v3002_v22 = vpop.f32.mrf.mxu0  ;;  %v2659_v25 = vadd.f32 %v9824_v9, %v9078_v40 }
 0x34a   : > { %v3003_v19 = vadd.f32 %v3002_v22, %v9089_v13  ;;  %v10065_v52 = vadd.f32 %v3011_v1, %v800_v56  ;;  %11946 = vst [vmem:[#allocation160_spill] sm:$0xff] %v10072_v36  ;;  %v10082_v56 = vadd.f32 %v2665_v46, %v769_v38  ;;  %v765_v38 = vunpack.c.l.bf16 %v7744_v35 }
 0x34b   : > { %v10067_v23 = vpop.f32.mrf.mxu1  ;;  %3735 = vmatmul.mubr.bf16.gmra.mxu1 %v3356_v4  ;;  %v10086_v4 = vadd.f32 %v2649_v17, %v759_v5  ;;  %v7745_v5 = vld [vmem:[%s8279_s16 + $0x234] sm:$0xff]  ;;  %v2671_v17 = vadd.f32 %v9871_v39, %v9051_v2 }
 0x34c   : > { %11945 = vst [vmem:[#allocation159_spill] sm:$0xff] %v10065_v52  ;;  %v10074_v22 = vadd.f32 %v3003_v19, %v794_v28  ;;  %3742 = vmatprep.mubr.bf16.mxu1 %v3360_v62  ;;  %11950 = vst [vmem:[#allocation164_spill] sm:$0xff] %v10082_v56  ;;  %v3379_v37 = vpack.c.bf16 %v10065_v52, %v10078_v43  ;;  %v10092_v62 = vadd.f32 %v2661_v3, %v766_v24  ;;  %v11953_v3 = vmov 0  }
 0x34d   : > { %v10080_v31 = vpop.f32.mrf.mxu1  ;;  %11951 = vst [vmem:[#allocation165_spill] sm:$0xff] %v10086_v4  ;;  %v3359_v53 = vpack.c.bf16 %v10076_v32, %v10086_v4  ;;  %v2663_v28 = vadd.f32 %v9847_v20, %v9078_v40  ;;  %v775_v27 = vunpack.c.h.bf16 %v7745_v5  ;;  %v7746_v20 = vld [vmem:[%s8279_s16 + $0x228] sm:$0xff]  ;;  %v774_v39 = vunpack.c.l.bf16 %v7745_v5 }
 0x34e   : > { %11947 = vst [vmem:[#allocation161_spill] sm:$0xff] %v10074_v22  ;;  %v3376_v1 = vpack.c.bf16 %v10074_v22, %v10072_v36  ;;  %11952 = vst [vmem:[#allocation166_spill] sm:$0xff] %v10092_v62  ;;  %v3363_v24 = vpack.c.bf16 %v10082_v56, %v10092_v62  ;;  %v772_v19 = vunpack.c.h.bf16 %v7746_v20  ;;  %v10121_v22 = vadd.f32 %v2659_v25, %v765_v38 }
 0x34f   : > { %v10090_v50 = vpop.f32.mrf.mxu1  ;;  %v10113_v11 = vadd.f32 %v2663_v28, %v768_v10  ;;  %v10119_v35 = vadd.f32 %v2675_v49, %v775_v27  ;;  %v2673_v10 = vadd.f32 %v9878_v16, %v9078_v40  ;;  %v7747_v27 = vld [vmem:[%s8279_s16 + $0x24c] sm:$0xff]  ;;  %v2685_v38 = vadd.f32 %v9935_v21, %v9051_v2  ;;  %v7748_v16 = vld [vmem:[%s8279_s16 + $0x240] sm:$0xff] }
 0x350   : > { %7003 = vmatprep.mubr.bf16.mxu0 %v3376_v1  ;;  %11956 = vst [vmem:[#allocation169_spill] sm:$0xff] %v10121_v22  ;;  %v781_v49 = vunpack.c.h.bf16 %v7747_v27  ;;  %v778_v36 = vunpack.c.h.bf16 %v7748_v16  ;;  %v2681_v43 = vadd.f32 %v9917_v47, %v9051_v2  ;;  %v780_v47 = vunpack.c.l.bf16 %v7747_v27 }
 0x351   : > { %v10098_v12 = vpop.f32.mrf.mxu1  ;;  %7004 = vmatmul.mubr.bf16.gmra.mxu0 %v3379_v37  ;;  %11954 = vst [vmem:[#allocation167_spill] sm:$0xff] %v10113_v11  ;;  %11955 = vst [vmem:[#allocation168_spill] sm:$0xff] %v10119_v35  ;;  %v3362_v52 = vpack.c.bf16 %v10113_v11, %v10121_v22  ;;  %v10147_v11 = vadd.f32 %v2673_v10, %v774_v39  ;;  %v2683_v39 = vadd.f32 %v9927_v58, %v9078_v40  ;;  %v7750_v58 = vld [vmem:[%s8279_s16 + $0x258] sm:$0xff] }
 0x352   : > { %4393 = vmatprep.mubr.bf16.mxu0 %v11953_v3  ;;  %v2691_v22 = vadd.f32 %v9953_v0, %v9051_v2  ;;  %v2701_v4 = vadd.f32 %v10000_v60, %v9051_v2 }
 0x353   : > { %v10108_v46 = vpop.f32.mrf.mxu1  ;;  %3743 = vmatmul.mubr.bf16.gmra.mxu1 %v3359_v53  ;;  %v10115_v1 = vpop.f32.mrf.mxu0  ;;  %v10125_v53 = vadd.f32 %v2671_v17, %v772_v19  ;;  %v771_v19 = vunpack.c.l.bf16 %v7746_v20  ;;  %v2669_v17 = vadd.f32 %v9864_v33, %v9078_v40  ;;  %11958 = vst [vmem:[#allocation171_spill] sm:$0xff] %v10147_v11  ;;  %v10153_v20 = vadd.f32 %v2685_v38, %v781_v49  ;;  %v7749_v49 = vld [vmem:[%s8279_s16 + $0x264] sm:$0xff] }
 0x354   : > { %3750 = vmatprep.mubr.bf16.mxu1 %v3363_v24  ;;  %v787_v38 = vunpack.c.h.bf16 %v7749_v49 }
 0x355   : > { %v10117_v37 = vpop.f32.mrf.mxu1  ;;  %11957 = vst [vmem:[#allocation170_spill] sm:$0xff] %v10125_v53  ;;  %v10131_v28 = vpop.f32.mrf.mxu0  ;;  %v3366_v25 = vpack.c.bf16 %v10119_v35, %v10125_v53  ;;  %11959 = vst [vmem:[#allocation172_spill] sm:$0xff] %v10153_v20  ;;  %v10155_v35 = vadd.f32 %v2669_v17, %v771_v19  ;;  %v2695_v19 = vadd.f32 %v9975_v30, %v9051_v2 }
 0x356   : > { %v2679_v17 = vadd.f32 %v9904_v63, %v9078_v40  ;;  %v10183_v30 = vadd.f32 %v2683_v39, %v780_v47  ;;  %v786_v47 = vunpack.c.l.bf16 %v7749_v49  ;;  %v2693_v39 = vadd.f32 %v9961_v42, %v9078_v40  ;;  %v10214_v49 = vld [vmem:[#allocation10] ss:$0 sm:$0xff]  ;;  %v7752_v42 = vld [vmem:[%s8279_s16 + $0x270] sm:$0xff] }
 0x357   : > { %v10123_v9 = vpop.f32.mrf.mxu1  ;;  %v10149_v21 = vpop.f32.mrf.mxu0  ;;  %11960 = vst [vmem:[#allocation173_spill] sm:$0xff] %v10155_v35  ;;  %v3365_v53 = vpack.c.bf16 %v10147_v11, %v10155_v35  ;;  %v784_v35 = vunpack.c.h.bf16 %v7750_v58  ;;  %v790_v51 = vunpack.c.h.bf16 %v7752_v42 }
 0x358   : > { %11962 = vst [vmem:[#allocation175_spill] sm:$0xff] %v10183_v30  ;;  %v10219_v55 = vadd.f32 %v2693_v39, %v786_v47 }
 0x359   : > { %v10133_v24 = vpop.f32.mrf.mxu1  ;;  %v10165_v10 = vpop.f32.mrf.mxu0  ;;  %v10197_v32 = vadd.f32 %v2691_v22, %v784_v35  ;;  %v783_v35 = vunpack.c.l.bf16 %v7750_v58 }
 0x35a   : > { %11966 = vst [vmem:[#allocation179_spill] sm:$0xff] %v10219_v55 }
 0x35b   : > { %v10142_v5 = vpop.f32.mrf.mxu1  ;;  %3751 = vmatmul.mubr.bf16.gmra.mxu1 %v3362_v52  ;;  %v10159_v52 = vadd.f32 %v2681_v43, %v778_v36  ;;  %v777_v36 = vunpack.c.l.bf16 %v7748_v16  ;;  %11965 = vst [vmem:[#allocation178_spill] sm:$0xff] %v10197_v32 }
 0x35c   : > { %3758 = vmatprep.mubr.bf16.mxu1 %v3366_v25 }
 0x35d   : > { %v10151_v56 = vpop.f32.mrf.mxu1  ;;  %11961 = vst [vmem:[#allocation174_spill] sm:$0xff] %v10159_v52  ;;  %v3369_v43 = vpack.c.bf16 %v10153_v20, %v10159_v52  ;;  %v10189_v20 = vadd.f32 %v2695_v19, %v787_v38  ;;  %v10191_v63 = vadd.f32 %v2679_v17, %v777_v36  ;;  %v7751_v19 = vld [vmem:[%s8279_s16 + $0x27c] sm:$0xff]  ;;  %v2705_v17 = vadd.f32 %v10018_v57, %v9051_v2 }
 0x35e   : > { %v793_v36 = vunpack.c.h.bf16 %v7751_v19  ;;  %v792_v47 = vunpack.c.l.bf16 %v7751_v19 }
 0x35f   : > { %v10157_v33 = vpop.f32.mrf.mxu1  ;;  %11963 = vst [vmem:[#allocation176_spill] sm:$0xff] %v10189_v20  ;;  %11964 = vst [vmem:[#allocation177_spill] sm:$0xff] %v10191_v63  ;;  %v3368_v0 = vpack.c.bf16 %v10183_v30, %v10191_v63  ;;  %v3372_v22 = vpack.c.bf16 %v10189_v20, %v10197_v32  ;;  %v2689_v30 = vadd.f32 %v9946_v15, %v9078_v40 }
 0x360   : > { %v10221_v20 = vadd.f32 %v2705_v17, %v793_v36  ;;  %v7753_v17 = vld [vmem:[%s8279_s16 + $0x294] sm:$0xff] }
 0x361   : > { %v10167_v25 = vpop.f32.mrf.mxu1  ;;  %v10224_v15 = vadd.f32 %v2689_v30, %v783_v35  ;;  %v2715_v30 = vadd.f32 %v10055_v8, %v9051_v2 }
 0x362   : > { %11967 = vst [vmem:[#allocation180_spill] sm:$0xff] %v10221_v20 }
 0x363   : > { %v10176_v27 = vpop.f32.mrf.mxu1  ;;  %v10178_v11 = vpop.f32.mrf.mxu0  ;;  %3759 = vmatmul.mubr.bf16.gmra.mxu1 %v3365_v53  ;;  %11968 = vst [vmem:[#allocation181_spill] sm:$0xff] %v10224_v15  ;;  %v3371_v60 = vpack.c.bf16 %v10219_v55, %v10224_v15  ;;  %v7754_v55 = vld [vmem:[%s8279_s16 + $0x288] sm:$0xff] }
 0x364   : > { %3766 = vmatprep.mubr.bf16.mxu1 %v3369_v43 }
 0x365   : > { %v10185_v62 = vpop.f32.mrf.mxu1  ;;  %v10187_v16 = vpop.f32.mrf.mxu0 }
 0x367   : > { %v10193_v52 = vpop.f32.mrf.mxu1  ;;  %v10195_v53 = vpop.f32.mrf.mxu0 }
 0x369   : > { %v10203_v43 = vpop.f32.mrf.mxu1  ;;  %v10205_v38 = vpop.f32.mrf.mxu0 }
 0x36b   : > { %v3576_v63 = vpop.f32.mrf.mxu1  ;;  %3767 = vmatmul.mubr.bf16.gmra.mxu1 %v3368_v0  ;;  %v10226_v0 = vadd.f32 %v2701_v4, %v790_v51  ;;  %v2699_v4 = vadd.f32 %v9987_v29, %v9078_v40 }
 0x36c   : > { %3774 = vmatprep.mubr.bf16.mxu1 %v3372_v22  ;;  %v3577_v58 = vadd.f32 %v10214_v49, %v3576_v63  ;;  %v799_v63 = vunpack.c.h.bf16 %v7753_v17 }
 0x36d   : > { %v6953_v57 = vpop.f32.mrf.mxu0  ;;  %v3578_v45 = vpop.f32.mrf.mxu1  ;;  %11969 = vst [vmem:[#allocation182_spill] sm:$0xff] %v10226_v0  ;;  %v3375_v51 = vpack.c.bf16 %v10221_v20, %v10226_v0 }
 0x36e   : > { %v2703_v45 = vadd.f32 %v10010_v48, %v9078_v40  ;;  %v796_v48 = vunpack.c.h.bf16 %v7754_v55 }
 0x36f   : > { %v3865_v32 = vpop.f32.mrf.mxu0  ;;  %v3579_v44 = vpop.f32.mrf.mxu1 }
 0x370   : > { %v3580_v54 = vadd.f32 %v10214_v49, %v3579_v44  ;;  %v3866_v22 = vadd.f32 %v3865_v32, %v3577_v58  ;;  %v789_v44 = vunpack.c.l.bf16 %v7752_v42  ;;  %v10244_v8 = vadd.f32 %v2703_v45, %v792_v47 }
 0x371   : > { %v6954_v39 = vpop.f32.mrf.mxu0  ;;  %v3581_v36 = vpop.f32.mrf.mxu1  ;;  %v10248_v58 = vadd.f32 %v2715_v30, %v799_v63  ;;  %v2713_v63 = vadd.f32 %v10041_v34, %v9078_v40 }
 0x372   : > { %v2711_v36 = vadd.f32 %v10034_v18, %v9051_v2  ;;  %v4120_v29 = vmax.f32 %v3866_v22, 0.0  ;;  %v7755_v22 = vld [vmem:[%s8279_s16 + $0x2ac] sm:$0xff] }
 0x373   : > { %v3868_v35 = vpop.f32.mrf.mxu0  ;;  %v3584_v19 = vpop.f32.mrf.mxu1  ;;  %3775 = vmatmul.mubr.bf16.gmra.mxu1 %v3371_v60  ;;  %v10250_v60 = vadd.f32 %v2699_v4, %v789_v44  ;;  %v805_v44 = vunpack.c.h.bf16 %v7755_v22  ;;  %v2725_v4 = vadd.f32 %v10098_v12, %v9051_v2  ;;  %v2721_v12 = vadd.f32 %v10080_v31, %v9051_v2 }
 0x374   : > { %v3869_v15 = vadd.f32 %v3868_v35, %v3580_v54  ;;  %v3585_v14 = vadd.f32 %v10214_v49, %v3584_v19  ;;  %3782 = vmatprep.mubr.bf16.mxu1 %v3375_v51  ;;  %v10252_v59 = vadd.f32 %v2711_v36, %v796_v48  ;;  %v798_v51 = vunpack.c.l.bf16 %v7753_v17  ;;  %v7756_v17 = vld [vmem:[%s8279_s16 + $0x2a0] sm:$0xff] }
 0x375   : > { %v10246_v32 = vpop.f32.mrf.mxu0  ;;  %v3586_v42 = vpop.f32.mrf.mxu1  ;;  %v3374_v45 = vpack.c.bf16 %v10244_v8, %v10250_v60  ;;  %v802_v34 = vunpack.c.h.bf16 %v7756_v17 }
 0x376   : > { %v4121_v20 = vmax.f32 %v3869_v15, 0.0  ;;  %v3874_v18 = vadd.f32 %v6953_v57, %v3585_v14  ;;  %v3378_v14 = vpack.c.bf16 %v10248_v58, %v10252_v59  ;;  %v795_v57 = vunpack.c.l.bf16 %v7754_v55 }
 0x377   : > { %v3587_v0 = vpop.f32.mrf.mxu1  ;;  %v3881_v15 = vpop.f32.mrf.mxu0  ;;  %v10275_v36 = vadd.f32 %v2713_v63, %v798_v51  ;;  %v804_v51 = vunpack.c.l.bf16 %v7755_v22  ;;  %v2723_v63 = vadd.f32 %v10090_v50, %v9078_v40  ;;  %v2719_v22 = vadd.f32 %v10067_v23, %v9078_v40 }
 0x378   : > { %v10254_v54 = vpack.c.bf16 %v4121_v20, %v4120_v29  ;;  %v3588_v47 = vadd.f32 %v10214_v49, %v3587_v0  ;;  %v2709_v0 = vadd.f32 %v10027_v41, %v9078_v40  ;;  %v10277_v41 = vadd.f32 %v2725_v4, %v805_v44 }
 0x379   : > { %v3589_v30 = vpop.f32.mrf.mxu1  ;;  %v6958_v55 = vpop.f32.mrf.mxu0 }
 0x37a   : > { %v3877_v20 = vadd.f32 %v6954_v39, %v3588_v47  ;;  %6566 = vmatmul.mubr.msk.bf16.vlgmr.msra.gmra.mxu0 %vm4264_vm1, %v10254_v54  ;;  %v4122_v39 = vmax.f32 %v3874_v18, 0.0  ;;  %11970 = vst [vmem:[#allocation183_spill] sm:$0xff] %v10277_v41  ;;  %v10281_v47 = vadd.f32 %v2709_v0, %v795_v57  ;;  %v10283_v30 = vadd.f32 %v2721_v12, %v802_v34  ;;  %v7758_v12 = vld [vmem:[%s8279_s16 + $0x2b8] sm:$0xff] }
 0x37b   : > { %v3592_v35 = vpop.f32.mrf.mxu1  ;;  %3783 = vmatmul.mubr.bf16.gmra.mxu1 %v3374_v45  ;;  %4403 = vmatprep.mubr.bf16.mxu0 %v11953_v3  ;;  %v3884_v44 = vpop.f32.mrf.mxu0  ;;  %v2735_v57 = vadd.f32 %v10133_v24, %v9051_v2  ;;  %v801_v34 = vunpack.c.l.bf16 %v7756_v17  ;;  %v808_v50 = vunpack.c.h.bf16 %v7758_v12  ;;  %v2731_v24 = vadd.f32 %v10117_v37, %v9051_v2 }
 0x37c   : > { %v4123_v19 = vmax.f32 %v3877_v20, 0.0  ;;  %v3593_v48 = vadd.f32 %v10214_v49, %v3592_v35  ;;  %3790 = vmatprep.mubr.bf16.mxu1 %v3378_v14  ;;  %v3377_v20 = vpack.c.bf16 %v10275_v36, %v10281_v47  ;;  %v7757_v14 = vld [vmem:[%s8279_s16 + $0x2c4] sm:$0xff] }
 0x37d   : > { %v3594_v42 = vpop.f32.mrf.mxu1  ;;  %v811_v35 = vunpack.c.h.bf16 %v7757_v14  ;;  %v10306_v17 = vpop.f32.mrf.mxu0 }
 0x37e   : > { %v10279_v29 = vpack.c.bf16 %v4123_v19, %v4122_v39  ;;  %v3882_v31 = vadd.f32 %v3881_v15, %v3593_v48  ;;  %v3381_v15 = vpack.c.bf16 %v10277_v41, %v10283_v30  ;;  %v10314_v41 = vadd.f32 %v2731_v24, %v808_v50  ;;  %v7760_v24 = vld [vmem:[%s8279_s16 + $0x2d0] sm:$0xff] }
 0x37f   : > { %v3595_v45 = vpop.f32.mrf.mxu1 }
 0x380   : > { %v3596_v18 = vadd.f32 %v10214_v49, %v3595_v45  ;;  %v4124_v19 = vmax.f32 %v3882_v31, 0.0  ;;  %v10304_v45 = vadd.f32 %v2723_v63, %v804_v51  ;;  %11973 = vst [vmem:[#allocation186_spill] sm:$0xff] %v10314_v41  ;;  %v810_v63 = vunpack.c.l.bf16 %v7757_v14 }
 0x381   : > { %v3597_v4 = vpop.f32.mrf.mxu1  ;;  %v2729_v14 = vadd.f32 %v10108_v46, %v9078_v40 }
 0x382   : > { %v3885_v0 = vadd.f32 %v3884_v44, %v3596_v18  ;;  %6567 = vmatmul.mubr.msk.bf16.gmra.mxu0 %vm4264_vm1, %v10279_v29  ;;  %11971 = vst [vmem:[#allocation184_spill] sm:$0xff] %v10304_v45  ;;  %v10308_v18 = vadd.f32 %v2735_v57, %v811_v35  ;;  %v2733_v35 = vadd.f32 %v10123_v9, %v9078_v40  ;;  %v3897_v57 = vpop.f32.mrf.mxu0  ;;  %v814_v9 = vunpack.c.h.bf16 %v7760_v24 }
 0x383   : > { %v3600_v39 = vpop.f32.mrf.mxu1  ;;  %3791 = vmatmul.mubr.bf16.gmra.mxu1 %v3377_v20  ;;  %4413 = vmatprep.mubr.bf16.mxu0 %v11953_v3  ;;  %v10312_v20 = vadd.f32 %v2719_v22, %v801_v34  ;;  %v2745_v22 = vadd.f32 %v10167_v25, %v9051_v2  ;;  %v2741_v25 = vadd.f32 %v10151_v56, %v9051_v2 }
 0x384   : > { %v4125_v48 = vmax.f32 %v3885_v0, 0.0  ;;  %v3601_v42 = vadd.f32 %v10214_v49, %v3600_v39  ;;  %3798 = vmatprep.mubr.bf16.mxu1 %v3381_v15  ;;  %11972 = vst [vmem:[#allocation185_spill] sm:$0xff] %v10308_v18  ;;  %v7759_v15 = vld [vmem:[%s8279_s16 + $0x2dc] sm:$0xff]  ;;  %v807_v39 = vunpack.c.l.bf16 %v7758_v12  ;;  %v6962_v12 = vpop.f32.mrf.mxu0 }
 0x385   : > { %v3602_v23 = vpop.f32.mrf.mxu1  ;;  %v3380_v51 = vpack.c.bf16 %v10304_v45, %v10312_v20  ;;  %v817_v34 = vunpack.c.h.bf16 %v7759_v15 }
 0x386   : > { %v10310_v44 = vpack.c.bf16 %v4125_v48, %v4124_v19  ;;  %v3890_v37 = vadd.f32 %v10246_v32, %v3601_v42  ;;  %v3384_v32 = vpack.c.bf16 %v10308_v18, %v10314_v41  ;;  %v10336_v23 = vadd.f32 %v2733_v35, %v810_v63 }
 0x387   : > { %v3603_v4 = vpop.f32.mrf.mxu1  ;;  %v10338_v46 = vadd.f32 %v2745_v22, %v817_v34  ;;  %v10344_v18 = vadd.f32 %v2741_v25, %v814_v9  ;;  %v816_v63 = vunpack.c.l.bf16 %v7759_v15  ;;  %v2743_v35 = vadd.f32 %v10157_v33, %v9078_v40  ;;  %v3900_v34 = vpop.f32.mrf.mxu0  ;;  %v7762_v25 = vld [vmem:[%s8279_s16 + $0x2e8] sm:$0xff] }
 0x388   : > { %v3604_v31 = vadd.f32 %v10214_v49, %v3603_v4  ;;  %11974 = vst [vmem:[#allocation187_spill] sm:$0xff] %v10336_v23  ;;  %v813_v9 = vunpack.c.l.bf16 %v7760_v24  ;;  %v2739_v15 = vadd.f32 %v10142_v5, %v9078_v40  ;;  %v820_v33 = vunpack.c.h.bf16 %v7762_v25 }
 0x389   : > { %v3605_v0 = vpop.f32.mrf.mxu1  ;;  %11975 = vst [vmem:[#allocation188_spill] sm:$0xff] %v10338_v46  ;;  %11977 = vst [vmem:[#allocation190_spill] sm:$0xff] %v10344_v18  ;;  %v10367_v24 = vpop.f32.mrf.mxu0 }
 0x38a   : > { %v3893_v50 = vadd.f32 %v6958_v55, %v3604_v31  ;;  %6568 = vmatmul.mubr.msk.bf16.gmra.mxu0 %vm4264_vm1, %v10310_v44  ;;  %v4126_v55 = vmax.f32 %v3890_v37, 0.0 }
 0x38b   : > { %v3608_v19 = vpop.f32.mrf.mxu1  ;;  %3799 = vmatmul.mubr.bf16.gmra.mxu1 %v3380_v51  ;;  %4423 = vmatprep.mubr.bf16.mxu0 %v11953_v3  ;;  %v10342_v51 = vadd.f32 %v2729_v14, %v807_v39  ;;  %v2755_v39 = vadd.f32 %v10203_v43, %v9051_v2  ;;  %v2751_v43 = vadd.f32 %v10185_v62, %v9051_v2 }
 0x38c   : > { %v4127_v48 = vmax.f32 %v3893_v50, 0.0  ;;  %v3609_v42 = vadd.f32 %v10214_v49, %v3608_v19  ;;  %3806 = vmatprep.mubr.bf16.mxu1 %v3384_v32  ;;  %v7761_v32 = vld [vmem:[%s8279_s16 + $0x2f4] sm:$0xff] }
 0x38d   : > { %v3610_v4 = vpop.f32.mrf.mxu1  ;;  %11976 = vst [vmem:[#allocation189_spill] sm:$0xff] %v10342_v51  ;;  %v3383_v50 = vpack.c.bf16 %v10336_v23, %v10342_v51  ;;  %v823_v19 = vunpack.c.h.bf16 %v7761_v32  ;;  %v10375_v2 = vadd.f32 %v2751_v43, %v820_v33  ;;  %v12001_v51 = vld [vmem:[#allocation41_spill] sm:$0xff] }
 0x38e   : > { %v10340_v31 = vpack.c.bf16 %v4127_v48, %v4126_v55  ;;  %v3898_v56 = vadd.f32 %v3897_v57, %v3609_v42  ;;  %v3387_v57 = vpack.c.bf16 %v10338_v46, %v10344_v18 }
 0x38f   : > { %v3611_v0 = vpop.f32.mrf.mxu1  ;;  %11981 = vst [vmem:[#allocation194_spill] sm:$0xff] %v10375_v2 }
 0x390   : > { %v3612_v37 = vadd.f32 %v10214_v49, %v3611_v0  ;;  %v4128_v48 = vmax.f32 %v3898_v56, 0.0  ;;  %v10365_v0 = vadd.f32 %v2743_v35, %v816_v63  ;;  %v822_v35 = vunpack.c.l.bf16 %v7761_v32 }
 0x391   : > { %v3613_v22 = vpop.f32.mrf.mxu1  ;;  %v819_v32 = vunpack.c.l.bf16 %v7762_v25 }
 0x392   : > { %v3901_v14 = vadd.f32 %v3900_v34, %v3612_v37  ;;  %6569 = vmatmul.mubr.msk.bf16.gmra.mxu0 %vm4264_vm1, %v10340_v31  ;;  %11978 = vst [vmem:[#allocation191_spill] sm:$0xff] %v10365_v0  ;;  %v10369_v37 = vadd.f32 %v2755_v39, %v823_v19  ;;  %v2753_v19 = vadd.f32 %v10193_v52, %v9078_v40  ;;  %v3913_v39 = vpop.f32.mrf.mxu0 }
 0x393   : > { %v3616_v55 = vpop.f32.mrf.mxu1  ;;  %3807 = vmatmul.mubr.bf16.gmra.mxu1 %v3383_v50  ;;  %4433 = vmatprep.mubr.bf16.mxu0 %v11953_v3  ;;  %v10373_v50 = vadd.f32 %v2739_v15, %v813_v9  ;;  %v3019_v15 = vadd.f32 %v10165_v10, %v9089_v13  ;;  %v2749_v52 = vadd.f32 %v10176_v27, %v9078_v40 }
 0x394   : > { %v4129_v42 = vmax.f32 %v3901_v14, 0.0  ;;  %v3617_v4 = vadd.f32 %v10214_v49, %v3616_v55  ;;  %3814 = vmatprep.mubr.bf16.mxu1 %v3387_v57  ;;  %11979 = vst [vmem:[#allocation192_spill] sm:$0xff] %v10369_v37  ;;  %v7763_v57 = vld [vmem:[%s8279_s16 + $0x2b4] sm:$0xf]  ;;  %v7764_v55 = vld [vmem:[%s8279_s16 + $0x2a8] sm:$0xf]  ;;  %v3016_v10 = vadd.f32 %v10131_v28, %v9089_v13  ;;  %v6966_v25 = vpop.f32.mrf.mxu0 }
 0x395   : > { %v3618_v5 = vpop.f32.mrf.mxu1  ;;  %11980 = vst [vmem:[#allocation193_spill] sm:$0xff] %v10373_v50  ;;  %v3386_v63 = vpack.c.bf16 %v10365_v0, %v10373_v50  ;;  %v806_v9 = vunpack.c.l.bf16 %v7763_v57  ;;  %v803_v43 = vunpack.c.l.bf16 %v7764_v55  ;;  %v10403_v27 = vadd.f32 %v2749_v52, %v819_v32  ;;  %v7765_v57 = vld [vmem:[%s8279_s16 + $0x2cc] sm:$0xf]  ;;  %v7767_v52 = vld [vmem:[%s8279_s16 + $0x2c0] sm:$0xf] }
 0x396   : > { %v10371_v34 = vpack.c.bf16 %v4129_v42, %v4128_v48  ;;  %v3906_v62 = vadd.f32 %v10306_v17, %v3617_v4  ;;  %v3390_v17 = vpack.c.bf16 %v10369_v37, %v10375_v2  ;;  %v10397_v5 = vadd.f32 %v2753_v19, %v822_v35 }
 0x397   : > { %v3619_v22 = vpop.f32.mrf.mxu1  ;;  %11984 = vst [vmem:[#allocation197_spill] sm:$0xff] %v10403_v27  ;;  %v812_v35 = vunpack.c.l.bf16 %v7765_v57  ;;  %v3027_v19 = vadd.f32 %v10149_v21, %v9089_v13  ;;  %v3024_v21 = vadd.f32 %v10115_v1, %v9089_v13 }
 0x398   : > { %v3620_v56 = vadd.f32 %v10214_v49, %v3619_v22  ;;  %11982 = vst [vmem:[#allocation195_spill] sm:$0xff] %v10397_v5 }
 0x399   : > { %v3621_v14 = vpop.f32.mrf.mxu1 }
 0x39a   : > { %v3909_v33 = vadd.f32 %v6962_v12, %v3620_v56  ;;  %6570 = vmatmul.mubr.msk.bf16.gmra.mxu0 %vm4264_vm1, %v10371_v34  ;;  %v4130_v12 = vmax.f32 %v3906_v62, 0.0  ;;  %v10399_v56 = vadd.f32 %v3019_v15, %v806_v9  ;;  %v10405_v14 = vadd.f32 %v3016_v10, %v803_v43  ;;  %v3916_v15 = vpop.f32.mrf.mxu0  ;;  %v7768_v10 = vld [vmem:[%s8279_s16 + $0x2d8] sm:$0xf] }
 0x39b   : > { %v3624_v48 = vpop.f32.mrf.mxu1  ;;  %3815 = vmatmul.mubr.bf16.gmra.mxu1 %v3386_v63  ;;  %4443 = vmatprep.mubr.bf16.mxu0 %v11953_v3  ;;  %v3389_v9 = vpack.c.bf16 %v10397_v5, %v10403_v27  ;;  %v3035_v43 = vadd.f32 %v10205_v38, %v9089_v13  ;;  %v3032_v38 = vadd.f32 %v10187_v16, %v9089_v13  ;;  %v11991_v27 = vld [vmem:[#allocation23_spill] sm:$0xff] }
 0x39c   : > { %v4131_v42 = vmax.f32 %v3909_v33, 0.0  ;;  %v3625_v4 = vadd.f32 %v10214_v49, %v3624_v48  ;;  %3822 = vmatprep.mubr.bf16.mxu1 %v3390_v17  ;;  %11983 = vst [vmem:[#allocation196_spill] sm:$0xff] %v10399_v56  ;;  %11985 = vst [vmem:[#allocation198_spill] sm:$0xff] %v10405_v14  ;;  %v7766_v17 = vld [vmem:[%s8279_s16 + $0x2e4] sm:$0xf]  ;;  %v809_v48 = vunpack.c.l.bf16 %v7767_v52  ;;  %v6969_v57 = vpop.f32.mrf.mxu0 }
 0x39d   : > { %v3626_v22 = vpop.f32.mrf.mxu1  ;;  %v818_v55 = vunpack.c.l.bf16 %v7766_v17 }
 0x39e   : > { %v10401_v40 = vpack.c.bf16 %v4131_v42, %v4130_v12  ;;  %v3914_v28 = vadd.f32 %v3913_v39, %v3625_v4  ;;  %v3382_v39 = vpack.c.bf16 %v10399_v56, %v10405_v14  ;;  %v815_v12 = vunpack.c.l.bf16 %v7768_v10  ;;  %v7382_v10 = vld [vmem:[#allocation11 + $0x8] ss:$12 sps:$4 sm:$0xff]  }
 0x39f   : > { %v3627_v63 = vpop.f32.mrf.mxu1  ;;  %v10430_v1 = vadd.f32 %v3035_v43, %v818_v55  ;;  %v3043_v55 = vadd.f32 %v10195_v53, %v9089_v13  ;;  %v3929_v43 = vpop.f32.mrf.mxu0 }
 0x3a0   : > { %v3628_v62 = vadd.f32 %v10214_v49, %v3627_v63  ;;  %v4132_v4 = vmax.f32 %v3914_v28, 0.0  ;;  %v10436_v52 = vadd.f32 %v3032_v38, %v815_v12 }
 0x3a1   : > { %v3629_v33 = vpop.f32.mrf.mxu1  ;;  %11987 = vst [vmem:[#allocation200_spill] sm:$0xff] %v10430_v1 }
 0x3a2   : > { %v3917_v32 = vadd.f32 %v3916_v15, %v3628_v62  ;;  %6571 = vmatmul.mubr.msk.bf16.gmra.mxu0 %vm4264_vm1, %v10401_v40  ;;  %v10428_v62 = vadd.f32 %v3027_v19, %v812_v35  ;;  %11988 = vst [vmem:[#allocation201_spill] sm:$0xff] %v10436_v52  ;;  %v7769_v19 = vld [vmem:[%s8279_s16 + $0x2fc] sm:$0xf] }
 0x3a3   : > { %v3632_v42 = vpop.f32.mrf.mxu1  ;;  %3823 = vmatmul.mubr.bf16.gmra.mxu1 %v3389_v9  ;;  %4453 = vmatprep.mubr.bf16.mxu0 %v11953_v3  ;;  %v10434_v9 = vadd.f32 %v3024_v21, %v809_v48  ;;  %v7770_v21 = vld [vmem:[%s8279_s16 + $0x2f0] sm:$0xf]  ;;  %s12153_s16 = sadd.s32 4294967295, %s8033_s22  }
 0x3a4   : > { %v4133_v22 = vmax.f32 %v3917_v32, 0.0  ;;  %v3633_v63 = vadd.f32 %v10214_v49, %v3632_v42  ;;  %7007 = vmatprep.mubr.bf16.mxu1 %v3382_v39  ;;  %11986 = vst [vmem:[#allocation199_spill] sm:$0xff] %v10428_v62  ;;  %v824_v32 = vunpack.c.l.bf16 %v7769_v19  ;;  %v821_v12 = vunpack.c.l.bf16 %v7770_v21  ;;  %s11253_s10 = sshll.u32 %s12153_s16, 6 }
 0x3a5   : > { %v3634_v15 = vpop.f32.mrf.mxu1  ;;  %v3385_v35 = vpack.c.bf16 %v10428_v62, %v10434_v9  ;;  %v3040_v42 = vadd.f32 %v10178_v11, %v9089_v13  ;;  %p499_p5 = scmp.lt.s32.totalorder %s11253_s10, 191 }
 0x3a6   : > { %v10432_v33 = vpack.c.bf16 %v4133_v22, %v4132_v4  ;;  %v3922_v16 = vadd.f32 %v10367_v24, %v3633_v63  ;;  %v3388_v24 = vpack.c.bf16 %v10430_v1, %v10436_v52  ;;  %v6970_v63 = vpop.f32.mrf.mxu0  ;;  %v11993_v1 = vld [vmem:[#allocation24_spill] sm:$0xff] }
 0x3a7   : > { %v3635_v17 = vpop.f32.mrf.mxu1  ;;  %s12180_s10 = smov (!%p499_p5, %s11253_s10), 191 }
 0x3a8   : > { %v3636_v28 = vadd.f32 %v10214_v49, %v3635_v17  ;;  %v4134_v53 = vmax.f32 %v3922_v16, 0.0  ;;  %v3932_v19 = vpop.f32.mrf.mxu0  ;;  %s6337_s22 = sshll.u32 %s12180_s10, 3 }
 0x3a9   : > { %v3637_v39 = vpop.f32.mrf.mxu1  ;;  %s11272_s26 = scalar_lea.vmem %s11599_s11, %s6337_s22 }
 0x3aa   : > { %v3925_v48 = vadd.f32 %v6966_v25, %v3636_v28  ;;  %6572 = vmatmul.mubr.msk.bf16.gmra.mxu0 %vm4264_vm1, %v10432_v33  ;;  %v10455_v25 = vadd.f32 %v3043_v55, %v824_v32  ;;  %v10459_v28 = vadd.f32 %v3040_v42, %v821_v12 }
 0x3ab   : > { %v3640_v38 = vpop.f32.mrf.mxu1  ;;  %7008 = vmatmul.mubr.bf16.vlgmr.msra.gmra.mxu1 %v3385_v35  ;;  %4463 = vmatprep.mubr.bf16.mxu0 %v11953_v3 }
 0x3ac   : > { %v4135_v4 = vmax.f32 %v3925_v48, 0.0  ;;  %v3641_v22 = vadd.f32 %v10214_v49, %v3640_v38  ;;  %7011 = vmatprep.mubr.bf16.mxu1 %v3388_v24  ;;  %7016 = vmatpush3.bf16.msra.mxu1 %v9942_v7  ;;  %11989 = vst [vmem:[#allocation202_spill] sm:$0xff] %v10455_v25  ;;  %11990 = vst [vmem:[#allocation203_spill] sm:$0xff] %v10459_v28  ;;  %v3391_v16 = vpack.c.bf16 %v10455_v25, %v10459_v28 }
 0x3ad   : > { %v3642_v15 = vpop.f32.mrf.mxu1  ;;  %7017 = vmatprep.subr.bf16.mxu1 %v7382_v10 }
 0x3ae   : > { %v10457_v17 = vpack.c.bf16 %v4135_v4, %v4134_v53  ;;  %v3930_v11 = vadd.f32 %v3929_v43, %v3641_v22 }
 0x3af   : > { %v3643_v13 = vpop.f32.mrf.mxu1 }
 0x3b0   : > { %v3644_v35 = vadd.f32 %v10214_v49, %v3643_v13  ;;  %7018 = vmatpush3.bf16.msra.mxu1 %v7382_v10  ;;  %v4136_v55 = vmax.f32 %v3930_v11, 0.0  ;;  %v6973_v10 = vpop.f32.mrf.mxu0 }
 0x3b1   : > { %v3645_v39 = vpop.f32.mrf.mxu1 }
 0x3b2   : > { %v3933_v7 = vadd.f32 %v3932_v19, %v3644_v35  ;;  %6573 = vmatmul.mubr.msk.bf16.gmra.mxu0 %vm4264_vm1, %v10457_v17  ;;  %v3945_v53 = vpop.f32.mrf.mxu0 }
 0x3b3   : > { %v3648_v32 = vpop.f32.mrf.mxu1  ;;  %7012 = vmatmul.mubr.bf16.gmra.mxu1 %v3391_v16  ;;  %4473 = vmatprep.mubr.bf16.mxu0 %v11953_v3 }
 0x3b4   : > { %v4137_v48 = vmax.f32 %v3933_v7, 0.0  ;;  %v3649_v43 = vadd.f32 %v10214_v49, %v3648_v32  ;;  %7019 = vmatprep.mubr.msk.bf16.mxu1 %vm4264_vm1, %v10254_v54 }
 0x3b5   : > { %v3650_v24 = vpop.f32.mrf.mxu1 }
 0x3b6   : > { %v10470_v21 = vpack.c.bf16 %v4137_v48, %v4136_v55  ;;  %v3938_v42 = vadd.f32 %v6969_v57, %v3649_v43  ;;  %v6974_v57 = vpop.f32.mrf.mxu0 }
 0x3b7   : > { %v3651_v12 = vpop.f32.mrf.mxu1 }
 0x3b8   : > { %v3652_v38 = vadd.f32 %v10214_v49, %v3651_v12  ;;  %v4138_v54 = vmax.f32 %v3938_v42, 0.0  ;;  %v3948_v7 = vpop.f32.mrf.mxu0 }
 0x3b9   : > { %v3653_v4 = vpop.f32.mrf.mxu1 }
 0x3ba   : > { %v3941_v22 = vadd.f32 %v6970_v63, %v3652_v38  ;;  %6574 = vmatmul.mubr.msk.bf16.gmra.mxu0 %vm4264_vm1, %v10470_v21  ;;  %v6977_v24 = vpop.f32.mrf.mxu0 }
 0x3bb   : > { %v3656_v15 = vpop.f32.mrf.mxu1  ;;  %7020 = vmatmul.mubr.msk.bf16.vlgmr.msra.gmra.mxu1 %vm4264_vm1, %v10279_v29  ;;  %4483 = vmatprep.mubr.bf16.mxu0 %v11953_v3 }
 0x3bc   : > { %v4139_v13 = vmax.f32 %v3941_v22, 0.0  ;;  %v3657_v11 = vadd.f32 %v10214_v49, %v3656_v15  ;;  %7023 = vmatprep.mubr.msk.bf16.mxu1 %vm4264_vm1, %v10310_v44  ;;  %v3961_v22 = vpop.f32.mrf.mxu0 }
 0x3bd   : > { %v3658_v35 = vpop.f32.mrf.mxu1 }
 0x3be   : > { %v4193_v16 = vpack.c.bf16 %v4139_v13, %v4138_v54  ;;  %v3946_v19 = vadd.f32 %v3945_v53, %v3657_v11 }
 0x3bf   : > { %v3659_v63 = vpop.f32.mrf.mxu1 }
 0x3c0   : > { %v3660_v39 = vadd.f32 %v10214_v49, %v3659_v63  ;;  %v4140_v48 = vmax.f32 %v3946_v19, 0.0 }
 0x3c1   : > { %v3661_v32 = vpop.f32.mrf.mxu1 }
 0x3c2   : > { %v3949_v55 = vadd.f32 %v3948_v7, %v3660_v39  ;;  %6575 = vmatmul.mubr.msk.bf16.gmra.mxu0 %vm4264_vm1, %v4193_v16 }
 0x3c3   : > { %v3664_v29 = vpop.f32.mrf.mxu1  ;;  %7024 = vmatmul.mubr.msk.bf16.gmra.mxu1 %vm4264_vm1, %v10340_v31  ;;  %4493 = vmatprep.mubr.bf16.mxu0 %v11953_v3 }
 0x3c4   : > { %v4141_v44 = vmax.f32 %v3949_v55, 0.0  ;;  %v3665_v43 = vadd.f32 %v10214_v49, %v3664_v29  ;;  %7027 = vmatprep.mubr.msk.bf16.mxu1 %vm4264_vm1, %v10371_v34 }
 0x3c5   : > { %v3666_v12 = vpop.f32.mrf.mxu1 }
 0x3c6   : > { %v4194_v42 = vpack.c.bf16 %v4141_v44, %v4140_v48  ;;  %v3954_v53 = vadd.f32 %v6973_v10, %v3665_v43  ;;  %v6978_v10 = vpop.f32.mrf.mxu0 }
 0x3c7   : > { %v3667_v38 = vpop.f32.mrf.mxu1 }
 0x3c8   : > { %v3668_v4 = vadd.f32 %v10214_v49, %v3667_v38  ;;  %v4142_v13 = vmax.f32 %v3954_v53, 0.0  ;;  %v3964_v7 = vpop.f32.mrf.mxu0 }
 0x3c9   : > { %v3669_v15 = vpop.f32.mrf.mxu1 }
 0x3ca   : > { %v3957_v54 = vadd.f32 %v6974_v57, %v3668_v4  ;;  %6576 = vmatmul.mubr.msk.bf16.gmra.mxu0 %vm4264_vm1, %v4194_v42  ;;  %v6981_v44 = vpop.f32.mrf.mxu0 }
 0x3cb   : > { %v3672_v31 = vpop.f32.mrf.mxu1  ;;  %7028 = vmatmul.mubr.msk.bf16.gmra.mxu1 %vm4264_vm1, %v10401_v40  ;;  %4503 = vmatprep.mubr.bf16.mxu0 %v11953_v3 }
 0x3cc   : > { %v4143_v34 = vmax.f32 %v3957_v54, 0.0  ;;  %v3673_v11 = vadd.f32 %v10214_v49, %v3672_v31  ;;  %7031 = vmatprep.mubr.msk.bf16.mxu1 %vm4264_vm1, %v10432_v33 }
 0x3cd   : > { %v3674_v35 = vpop.f32.mrf.mxu1 }
 0x3ce   : > { %v4195_v63 = vpack.c.bf16 %v4143_v34, %v4142_v13  ;;  %v3962_v57 = vadd.f32 %v3961_v22, %v3673_v11  ;;  %v3977_v22 = vpop.f32.mrf.mxu0 }
 0x3cf   : > { %v3675_v19 = vpop.f32.mrf.mxu1 }
 0x3d0   : > { %v3676_v39 = vadd.f32 %v10214_v49, %v3675_v19  ;;  %v4144_v29 = vmax.f32 %v3962_v57, 0.0  ;;  %v6982_v34 = vpop.f32.mrf.mxu0 }
 0x3d1   : > { %v3677_v32 = vpop.f32.mrf.mxu1 }
 0x3d2   : > { %v3965_v55 = vadd.f32 %v3964_v7, %v3676_v39  ;;  %6577 = vmatmul.mubr.msk.bf16.gmra.mxu0 %vm4264_vm1, %v4195_v63  ;;  %v3980_v57 = vpop.f32.mrf.mxu0 }
 0x3d3   : > { %v3680_v40 = vpop.f32.mrf.mxu1  ;;  %7032 = vmatmul.mubr.msk.bf16.gmra.mxu1 %vm4264_vm1, %v10457_v17  ;;  %4513 = vmatprep.mubr.bf16.mxu0 %v11953_v3 }
 0x3d4   : > { %v4145_v33 = vmax.f32 %v3965_v55, 0.0  ;;  %v3681_v48 = vadd.f32 %v10214_v49, %v3680_v40  ;;  %7035 = vmatprep.mubr.msk.bf16.mxu1 %vm4264_vm1, %v10470_v21  ;;  %v6985_v40 = vpop.f32.mrf.mxu0 }
 0x3d5   : > { %v3682_v43 = vpop.f32.mrf.mxu1 }
 0x3d6   : > { %v4196_v12 = vpack.c.bf16 %v4145_v33, %v4144_v29  ;;  %v3970_v53 = vadd.f32 %v6977_v24, %v3681_v48 }
 0x3d7   : > { %v3683_v38 = vpop.f32.mrf.mxu1 }
 0x3d8   : > { %v3684_v4 = vadd.f32 %v10214_v49, %v3683_v38  ;;  %v4146_v31 = vmax.f32 %v3970_v53, 0.0  ;;  %v3993_v53 = vpop.f32.mrf.mxu0 }
 0x3d9   : > { %v3685_v15 = vpop.f32.mrf.mxu1 }
 0x3da   : > { %v3973_v54 = vadd.f32 %v6978_v10, %v3684_v4  ;;  %6578 = vmatmul.mubr.msk.bf16.gmra.mxu0 %vm4264_vm1, %v4196_v12 }
 0x3db   : > { %v3688_v17 = vpop.f32.mrf.mxu1  ;;  %7036 = vmatmul.mubr.msk.bf16.gmra.mxu1 %vm4264_vm1, %v4193_v16  ;;  %4523 = vmatprep.mubr.bf16.mxu0 %v11953_v3 }
 0x3dc   : > { %v4147_v13 = vmax.f32 %v3973_v54, 0.0  ;;  %v3689_v21 = vadd.f32 %v10214_v49, %v3688_v17  ;;  %7039 = vmatprep.mubr.msk.bf16.mxu1 %vm4264_vm1, %v4194_v42  ;;  %v6986_v17 = vpop.f32.mrf.mxu0 }
 0x3dd   : > { %v3690_v24 = vpop.f32.mrf.mxu1 }
 0x3de   : > { %v4197_v11 = vpack.c.bf16 %v4147_v13, %v4146_v31  ;;  %v3978_v19 = vadd.f32 %v3977_v22, %v3689_v21  ;;  %v3996_v24 = vpop.f32.mrf.mxu0 }
 0x3df   : > { %v3691_v35 = vpop.f32.mrf.mxu1 }
 0x3e0   : > { %v3692_v10 = vadd.f32 %v10214_v49, %v3691_v35  ;;  %v4148_v32 = vmax.f32 %v3978_v19, 0.0 }
 0x3e1   : > { %v3693_v39 = vpop.f32.mrf.mxu1 }
 0x3e2   : > { %v3981_v7 = vadd.f32 %v3980_v57, %v3692_v10  ;;  %6579 = vmatmul.mubr.msk.bf16.gmra.mxu0 %vm4264_vm1, %v4197_v11  ;;  %v6989_v10 = vpop.f32.mrf.mxu0 }
 0x3e3   : > { %v3696_v16 = vpop.f32.mrf.mxu1  ;;  %7040 = vmatmul.mubr.msk.bf16.gmra.mxu1 %vm4264_vm1, %v4195_v63  ;;  %4533 = vmatprep.mubr.bf16.mxu0 %v11953_v3 }
 0x3e4   : > { %v4149_v55 = vmax.f32 %v3981_v7, 0.0  ;;  %v3697_v42 = vadd.f32 %v10214_v49, %v3696_v16  ;;  %7043 = vmatprep.mubr.msk.bf16.mxu1 %vm4264_vm1, %v4196_v12 }
 0x3e5   : > { %v3698_v29 = vpop.f32.mrf.mxu1 }
 0x3e6   : > { %v4198_v33 = vpack.c.bf16 %v4149_v55, %v4148_v32  ;;  %v3986_v43 = vadd.f32 %v6981_v44, %v3697_v42  ;;  %v4009_v42 = vpop.f32.mrf.mxu0 }
 0x3e7   : > { %v3699_v48 = vpop.f32.mrf.mxu1 }
 0x3e8   : > { %v3700_v38 = vadd.f32 %v10214_v49, %v3699_v48  ;;  %v4150_v15 = vmax.f32 %v3986_v43, 0.0 }
 0x3e9   : > { %v3701_v4 = vpop.f32.mrf.mxu1 }
 0x3ea   : > { %v3989_v22 = vadd.f32 %v6982_v34, %v3700_v38  ;;  %6580 = vmatmul.mubr.msk.bf16.gmra.mxu0 %vm4264_vm1, %v4198_v33 }
 0x3eb   : > { %v3704_v63 = vpop.f32.mrf.mxu1  ;;  %7044 = vmatmul.mubr.msk.bf16.gmra.mxu1 %vm4264_vm1, %v4197_v11  ;;  %4543 = vmatprep.mubr.bf16.mxu0 %v11953_v3 }
 0x3ec   : > { %v4151_v54 = vmax.f32 %v3989_v22, 0.0  ;;  %v3705_v12 = vadd.f32 %v10214_v49, %v3704_v63  ;;  %7047 = vmatprep.mubr.msk.bf16.mxu1 %vm4264_vm1, %v4198_v33 }
 0x3ed   : > { %v3706_v44 = vpop.f32.mrf.mxu1 }
 0x3ee   : > { %v4199_v31 = vpack.c.bf16 %v4151_v54, %v4150_v15  ;;  %v3994_v21 = vadd.f32 %v3993_v53, %v3705_v12  ;;  %v6990_v53 = vpop.f32.mrf.mxu0 }
 0x3ef   : > { %v3707_v13 = vpop.f32.mrf.mxu1 }
 0x3f0   : > { %v3708_v34 = vadd.f32 %v10214_v49, %v3707_v13  ;;  %v4152_v57 = vmax.f32 %v3994_v21, 0.0 }
 0x3f1   : > { %v3709_v35 = vpop.f32.mrf.mxu1 }
 0x3f2   : > { %v3997_v19 = vadd.f32 %v3996_v24, %v3708_v34  ;;  %6581 = vmatmul.mubr.msk.bf16.gmra.mxu0 %vm4264_vm1, %v4199_v31 }
 0x3f3   : > { %v3712_v11 = vpop.f32.mrf.mxu1  ;;  %7048 = vmatmul.mubr.msk.bf16.gmra.mxu1 %vm4264_vm1, %v4199_v31  ;;  %4553 = vmatprep.mubr.bf16.mxu0 %v11953_v3 }
 0x3f4   : > { %v4153_v39 = vmax.f32 %v3997_v19, 0.0  ;;  %v3713_v7 = vadd.f32 %v10214_v49, %v3712_v11 }
 0x3f5   : > { %v3714_v16 = vpop.f32.mrf.mxu1 }
 0x3f6   : > { %v4200_v32 = vpack.c.bf16 %v4153_v39, %v4152_v57  ;;  %v4002_v29 = vadd.f32 %v6985_v40, %v3713_v7  ;;  %v4012_v40 = vpop.f32.mrf.mxu0 }
 0x3f7   : > { %v3715_v55 = vpop.f32.mrf.mxu1 }
 0x3f8   : > { %v3716_v33 = vadd.f32 %v10214_v49, %v3715_v55  ;;  %7051 = vmatprep.mubr.msk.bf16.mxu1 %vm4264_vm1, %v4200_v32  ;;  %v4154_v4 = vmax.f32 %v4002_v29, 0.0  ;;  %v6993_v13 = vpop.f32.mrf.mxu0 }
 0x3f9   : > { %v3717_v48 = vpop.f32.mrf.mxu1 }
 0x3fa   : > { %v4005_v43 = vadd.f32 %v6986_v17, %v3716_v33  ;;  %6582 = vmatmul.mubr.msk.bf16.gmra.mxu0 %vm4264_vm1, %v4200_v32  ;;  %v4025_v57 = vpop.f32.mrf.mxu0 }
 0x3fb   : > { %v3720_v38 = vpop.f32.mrf.mxu1  ;;  %4563 = vmatprep.mubr.bf16.mxu0 %v11953_v3 }
 0x3fc   : > { %v4155_v22 = vmax.f32 %v4005_v43, 0.0  ;;  %v3721_v63 = vadd.f32 %v10214_v49, %v3720_v38 }
 0x3fd   : > { %v3722_v15 = vpop.f32.mrf.mxu1 }
 0x3fe   : > { %v4201_v54 = vpack.c.bf16 %v4155_v22, %v4154_v4  ;;  %v4010_v44 = vadd.f32 %v4009_v42, %v3721_v63  ;;  %v6994_v42 = vpop.f32.mrf.mxu0 }
 0x3ff   : > { %v3723_v12 = vpop.f32.mrf.mxu1 }
 0x400   : > { %v3724_v31 = vadd.f32 %v10214_v49, %v3723_v12  ;;  %7052 = vmatmul.mubr.msk.bf16.gmra.mxu1 %vm4264_vm1, %v4201_v54  ;;  %v4156_v24 = vmax.f32 %v4010_v44, 0.0  ;;  %v4028_v22 = vpop.f32.mrf.mxu0 }
 0x401   : > { %v3725_v17 = vpop.f32.mrf.mxu1 }
 0x402   : > { %v4013_v21 = vadd.f32 %v4012_v40, %v3724_v31  ;;  %6583 = vmatmul.mubr.msk.bf16.gmra.mxu0 %vm4264_vm1, %v4201_v54  ;;  %v6997_v15 = vpop.f32.mrf.mxu0 }
 0x403   : > { %v3728_v34 = vpop.f32.mrf.mxu1  ;;  %4573 = vmatprep.mubr.bf16.mxu0 %v11953_v3 }
 0x404   : > { %v4157_v35 = vmax.f32 %v4013_v21, 0.0  ;;  %v3729_v19 = vadd.f32 %v10214_v49, %v3728_v34  ;;  %v4041_v31 = vpop.f32.mrf.mxu0 }
 0x405   : > { %v3730_v11 = vpop.f32.mrf.mxu1 }
 0x406   : > { %v4202_v39 = vpack.c.bf16 %v4157_v35, %v4156_v24  ;;  %v4018_v16 = vadd.f32 %v6989_v10, %v3729_v19  ;;  %v6998_v11 = vpop.f32.mrf.mxu0 }
 0x407   : > { %v3731_v7 = vpop.f32.mrf.mxu1 }
 0x408   : > { %v3732_v32 = vadd.f32 %v10214_v49, %v3731_v7  ;;  %7055 = vmatprep.mubr.msk.bf16.mxu1 %vm4264_vm1, %v4202_v39  ;;  %v4158_v48 = vmax.f32 %v4018_v16, 0.0 }
 0x409   : > { %v3733_v55 = vpop.f32.mrf.mxu1 }
 0x40a   : > { %v4021_v29 = vadd.f32 %v6990_v53, %v3732_v32  ;;  %6584 = vmatmul.mubr.msk.bf16.gmra.mxu0 %vm4264_vm1, %v4202_v39  ;;  %v4044_v55 = vpop.f32.mrf.mxu0 }
 0x40b   : > { %v3736_v33 = vpop.f32.mrf.mxu1  ;;  %4583 = vmatprep.mubr.bf16.mxu0 %v11953_v3 }
 0x40c   : > { %v4159_v43 = vmax.f32 %v4021_v29, 0.0  ;;  %v3737_v38 = vadd.f32 %v10214_v49, %v3736_v33 }
 0x40d   : > { %v3738_v4 = vpop.f32.mrf.mxu1 }
 0x40e   : > { %v4203_v63 = vpack.c.bf16 %v4159_v43, %v4158_v48  ;;  %v4026_v54 = vadd.f32 %v4025_v57, %v3737_v38  ;;  %v7001_v38 = vpop.f32.mrf.mxu0 }
 0x40f   : > { %v3739_v10 = vpop.f32.mrf.mxu1 }
 0x410   : > { %v3740_v12 = vadd.f32 %v10214_v49, %v3739_v10  ;;  %7056 = vmatmul.mubr.msk.bf16.gmra.mxu1 %vm4264_vm1, %v4203_v63  ;;  %v4160_v17 = vmax.f32 %v4026_v54, 0.0  ;;  %v4057_v10 = vpop.f32.mrf.mxu0 }
 0x411   : > { %v3741_v53 = vpop.f32.mrf.mxu1 }
 0x412   : > { %v4029_v40 = vadd.f32 %v4028_v22, %v3740_v12  ;;  %6585 = vmatmul.mubr.msk.bf16.gmra.mxu0 %vm4264_vm1, %v4203_v63 }
 0x413   : > { %v3744_v44 = vpop.f32.mrf.mxu1  ;;  %4593 = vmatprep.mubr.bf16.mxu0 %v11953_v3 }
 0x414   : > { %v4161_v21 = vmax.f32 %v4029_v40, 0.0  ;;  %v3745_v34 = vadd.f32 %v10214_v49, %v3744_v44 }
 0x415   : > { %v3746_v24 = vpop.f32.mrf.mxu1 }
 0x416   : > { %v4204_v35 = vpack.c.bf16 %v4161_v21, %v4160_v17  ;;  %v4034_v57 = vadd.f32 %v6993_v13, %v3745_v34  ;;  %v7002_v21 = vpop.f32.mrf.mxu0 }
 0x417   : > { %v3747_v19 = vpop.f32.mrf.mxu1 }
 0x418   : > { %v3748_v39 = vadd.f32 %v10214_v49, %v3747_v19  ;;  %7059 = vmatprep.mubr.msk.bf16.mxu1 %vm4264_vm1, %v4204_v35  ;;  %v4162_v29 = vmax.f32 %v4034_v57, 0.0 }
 0x419   : > { %v3749_v7 = vpop.f32.mrf.mxu1 }
 0x41a   : > { %v4037_v16 = vadd.f32 %v6994_v42, %v3748_v39  ;;  %6586 = vmatmul.mubr.msk.bf16.gmra.mxu0 %vm4264_vm1, %v4204_v35  ;;  %v10558_v35 = vld [vmem:[#allocation10] ss:$0 sm:$0xff]  ;;  %v4060_v39 = vpop.f32.mrf.mxu0 }
 0x41b   : > { %v3752_v32 = vpop.f32.mrf.mxu1  ;;  %4603 = vmatprep.mubr.bf16.mxu0 %v11953_v3 }
 0x41c   : > { %v4163_v33 = vmax.f32 %v4037_v16, 0.0  ;;  %v3753_v48 = vadd.f32 %v10214_v49, %v3752_v32 }
 0x41d   : > { %v3754_v43 = vpop.f32.mrf.mxu1 }
 0x41e   : > { %v4205_v4 = vpack.c.bf16 %v4163_v33, %v4162_v29  ;;  %v4042_v22 = vadd.f32 %v4041_v31, %v3753_v48 }
 0x41f   : > { %v3755_v13 = vpop.f32.mrf.mxu1 }
 0x420   : > { %v3756_v63 = vadd.f32 %v10214_v49, %v3755_v13  ;;  %7060 = vmatmul.mubr.msk.bf16.gmra.mxu1 %vm4264_vm1, %v4205_v4  ;;  %v4164_v53 = vmax.f32 %v4042_v22, 0.0 }
 0x421   : > { %v3757_v42 = vpop.f32.mrf.mxu1 }
 0x422   : > { %v4045_v54 = vadd.f32 %v4044_v55, %v3756_v63  ;;  %6587 = vmatmul.mubr.msk.bf16.gmra.mxu0 %vm4264_vm1, %v4205_v4 }
 0x423   : > { %v3760_v12 = vpop.f32.mrf.mxu1  ;;  %4613 = vmatprep.mubr.bf16.mxu0 %v11953_v3 }
 0x424   : > { %v4165_v40 = vmax.f32 %v4045_v54, 0.0  ;;  %v3761_v44 = vadd.f32 %v10214_v49, %v3760_v12  ;;  %v7005_v49 = vpop.f32.mrf.mxu0 }
 0x425   : > { %v3762_v17 = vpop.f32.mrf.mxu1 }
 0x426   : > { %v4206_v34 = vpack.c.bf16 %v4165_v40, %v4164_v53  ;;  %v4050_v24 = vadd.f32 %v6997_v15, %v3761_v44  ;;  %v4073_v43 = vpop.f32.mrf.mxu0 }
 0x427   : > { %v3763_v31 = vpop.f32.mrf.mxu1 }
 0x428   : > { %v3764_v19 = vadd.f32 %v10558_v35, %v3763_v31  ;;  %7063 = vmatprep.mubr.msk.bf16.mxu1 %vm4264_vm1, %v4206_v34  ;;  %v4166_v32 = vmax.f32 %v4050_v24, 0.0  ;;  %v7006_v42 = vpop.f32.mrf.mxu0 }
 0x429   : > { %v3765_v57 = vpop.f32.mrf.mxu1 }
 0x42a   : > { %v4053_v7 = vadd.f32 %v6998_v11, %v3764_v19  ;;  %6588 = vmatmul.mubr.msk.bf16.gmra.mxu0 %vm4264_vm1, %v4206_v34 }
 0x42b   : > { %v3768_v16 = vpop.f32.mrf.mxu1  ;;  %4623 = vmatprep.mubr.bf16.mxu0 %v11953_v3 }
 0x42c   : > { %v4167_v55 = vmax.f32 %v4053_v7, 0.0  ;;  %v3769_v29 = vadd.f32 %v10558_v35, %v3768_v16 }
 0x42d   : > { %v3770_v15 = vpop.f32.mrf.mxu1 }
 0x42e   : > { %v4207_v33 = vpack.c.bf16 %v4167_v55, %v4166_v32  ;;  %v4058_v4 = vadd.f32 %v4057_v10, %v3769_v29  ;;  %v4076_v10 = vpop.f32.mrf.mxu0 }
 0x42f   : > { %v3771_v48 = vpop.f32.mrf.mxu1 }
 0x430   : > { %v3772_v13 = vadd.f32 %v10558_v35, %v3771_v48  ;;  %7064 = vmatmul.mubr.msk.bf16.gmra.mxu1 %vm4264_vm1, %v4207_v33  ;;  %v4168_v54 = vmax.f32 %v4058_v4, 0.0 }
 0x431   : > { %v3773_v11 = vpop.f32.mrf.mxu1 }
 0x432   : > { %v4061_v22 = vadd.f32 %v4060_v39, %v3772_v13  ;;  %6589 = vmatmul.mubr.msk.bf16.gmra.mxu0 %vm4264_vm1, %v4207_v33 }
 0x433   : > { %v3776_v63 = vpop.f32.mrf.mxu1  ;;  %4633 = vmatprep.mubr.bf16.mxu0 %v11953_v3 }
 0x434   : > { %v4169_v12 = vmax.f32 %v4061_v22, 0.0  ;;  %v3777_v53 = vadd.f32 %v10558_v35, %v3776_v63 }
 0x435   : > { %v3778_v40 = vpop.f32.mrf.mxu1 }
 0x436   : > { %v4208_v44 = vpack.c.bf16 %v4169_v12, %v4168_v54  ;;  %v4066_v34 = vadd.f32 %v7001_v38, %v3777_v53 }
 0x437   : > { %v3779_v17 = vpop.f32.mrf.mxu1 }
 0x438   : > { %v3780_v31 = vadd.f32 %v10558_v35, %v3779_v17  ;;  %7067 = vmatprep.mubr.msk.bf16.mxu1 %vm4264_vm1, %v4208_v44  ;;  %v4170_v7 = vmax.f32 %v4066_v34, 0.0 }
 0x439   : > { %v3781_v24 = vpop.f32.mrf.mxu1 }
 0x43a   : > { %v4069_v19 = vadd.f32 %v7002_v21, %v3780_v31  ;;  %v10572_v57 = vpop.f32.mrf.mxu0  ;;  %6590 = vmatmul.mubr.msk.bf16.gmra.mxu0 %vm4264_vm1, %v4208_v44 }
 0x43b   : > { %v3784_v39 = vpop.f32.mrf.mxu1  ;;  %4643 = vmatprep.mubr.bf16.mxu0 %v11953_v3 }
 0x43c   : > { %v4171_v16 = vmax.f32 %v4069_v19, 0.0  ;;  %v3785_v32 = vadd.f32 %v10558_v35, %v3784_v39  ;;  %v4397_v55 = vpop.f32.mrf.mxu0 }
 0x43d   : > { %v3786_v29 = vpop.f32.mrf.mxu1 }
 0x43e   : > { %v4209_v38 = vpack.c.bf16 %v4171_v16, %v4170_v7  ;;  %v4399_v15 = vpop.f32.mrf.mxu0  ;;  %v4074_v48 = vadd.f32 %v4073_v43, %v3785_v32 }
 0x43f   : > { %v3787_v33 = vpop.f32.mrf.mxu1 }
 0x440   : > { %v3788_v4 = vadd.f32 %v10558_v35, %v3787_v33  ;;  %v4401_v21 = vpop.f32.mrf.mxu0  ;;  %7068 = vmatmul.mubr.msk.bf16.gmra.mxu1 %vm4264_vm1, %v4209_v38  ;;  %v4172_v54 = vmax.f32 %v4074_v48, 0.0 }
 0x441   : > { %v3789_v13 = vpop.f32.mrf.mxu1 }
 0x442   : > { %v4077_v11 = vadd.f32 %v4076_v10, %v3788_v4  ;;  %v4405_v22 = vpop.f32.mrf.mxu0  ;;  %6591 = vmatmul.mubr.msk.bf16.gmra.mxu0 %vm4264_vm1, %v4209_v38 }
 0x443   : > { %v3792_v63 = vpop.f32.mrf.mxu1  ;;  %4653 = vmatprep.mubr.bf16.mxu0 %v11953_v3 }
 0x444   : > { %v4173_v12 = vmax.f32 %v4077_v11, 0.0  ;;  %v3793_v53 = vadd.f32 %v10558_v35, %v3792_v63  ;;  %v4407_v40 = vpop.f32.mrf.mxu0 }
 0x445   : > { %v3794_v44 = vpop.f32.mrf.mxu1 }
 0x446   : > { %v4210_v43 = vpack.c.bf16 %v4173_v12, %v4172_v54  ;;  %v4409_v17 = vpop.f32.mrf.mxu0  ;;  %v4082_v31 = vadd.f32 %v7005_v49, %v3793_v53  ;;  %v3295_v54 = vld [vmem:[#allocation13] sm:$0x7] }
 0x447   : > { %v3795_v34 = vpop.f32.mrf.mxu1  ;;  %v10596_v44 = vrot.slane %v3295_v54, %v9041_v26 }
 0x448   : > { %v3796_v24 = vadd.f32 %v10558_v35, %v3795_v34  ;;  %v4411_v19 = vpop.f32.mrf.mxu0  ;;  %7071 = vmatprep.mubr.msk.bf16.mxu1 %vm4264_vm1, %v4210_v43  ;;  %v4174_v32 = vmax.f32 %v4082_v31, 0.0  ;;  %v10599_v34 = vrot.slane %v3295_v54, %v9058_v61 }
 0x449   : > { %v3797_v10 = vpop.f32.mrf.mxu1  ;;  %v4408_v5 = vadd.f32 %v4407_v40, %v10596_v44 }
 0x44a   : > { %v4085_v39 = vadd.f32 %v7006_v42, %v3796_v24  ;;  %v4415_v7 = vpop.f32.mrf.mxu0  ;;  %6592 = vmatmul.mubr.msk.bf16.gmra.mxu0 %vm4264_vm1, %v4210_v43 }
 0x44b   : > { %v10585_v16 = vpop.f32.mrf.mxu1  ;;  %4663 = vmatprep.mubr.bf16.mxu0 %v11953_v3  ;;  %v4416_v41 = vadd.f32 %v4415_v7, %v10599_v34  ;;  %v11998_v7 = vld [vmem:[#allocation32_spill] sm:$0xff] }
 0x44c   : > { %v4175_v29 = vmax.f32 %v4085_v39, 0.0  ;;  %v4417_v38 = vpop.f32.mrf.mxu0  ;;  %v4398_v39 = vadd.f32 %v4397_v55, %v10596_v44 }
 0x44d   : > { %v3802_v33 = vpop.f32.mrf.mxu1 }
 0x44e   : > { %v4211_v48 = vpack.c.bf16 %v4175_v29, %v4174_v32  ;;  %v4419_v49 = vpop.f32.mrf.mxu0  ;;  %v4396_v29 = vadd.f32 %v10572_v57, %v10599_v34  ;;  %v5004_v46 = vadd.f32 %v4398_v39, %v11991_v27  ;;  %v11992_v57 = vld [vmem:[#allocation26_spill] sm:$0xff]  ;;  %v4410_v27 = vadd.f32 %v4409_v17, %v10599_v34 }
 0x44f   : > { %v10588_v4 = vpop.f32.mrf.mxu1  ;;  %v11995_v39 = vld [vmem:[#allocation30_spill] sm:$0xff] }
 0x450   : > { %v4421_v13 = vpop.f32.mrf.mxu0  ;;  %7072 = vmatmul.mubr.msk.bf16.gmra.mxu1 %vm4264_vm1, %v4211_v48  ;;  %v5003_v18 = vadd.f32 %v4396_v29, %v11992_v57  ;;  %v5010_v23 = vadd.f32 %v4408_v5, %v11995_v39  ;;  %v4420_v5 = vadd.f32 %v4419_v49, %v10599_v34  ;;  %v11999_v39 = vld [vmem:[#allocation37_spill] sm:$0xff] }
 0x451   : > { %v3805_v11 = vpop.f32.mrf.mxu1  ;;  %v4422_v29 = vadd.f32 %v4421_v13, %v10596_v44 }
 0x452   : > { %v4425_v42 = vpop.f32.mrf.mxu0  ;;  %6593 = vmatmul.mubr.msk.bf16.gmra.mxu0 %vm4264_vm1, %v4211_v48  ;;  %v4400_v48 = vadd.f32 %v4399_v15, %v10599_v34  ;;  %v5195_v11 = vld [vmem:[#allocation14] sm:$0x7]  ;;  %v4412_v15 = vadd.f32 %v4411_v19, %v10596_v44 }
 0x453   : > { %v10592_v63 = vpop.f32.mrf.mxu1  ;;  %4673 = vmatprep.mubr.bf16.mxu0 %v11953_v3  ;;  %v10614_v55 = vrot.slane %v5195_v11, %v9041_v26  ;;  %v10618_v50 = vrot.slane %v5195_v11, %v9058_v61  ;;  %v11996_v61 = vld [vmem:[#allocation21_spill] sm:$0xff] }
 0x454   : > { %v4427_v12 = vpop.f32.mrf.mxu0  ;;  %v5006_v40 = vadd.f32 %v4400_v48, %v11993_v1  ;;  %v10630_v52 = vrot.slane %v3295_v54, %v11996_v61  ;;  %v10637_v48 = vrot.slane %v5195_v11, %v11996_v61 }
 0x455   : > { %v3810_v53 = vpop.f32.mrf.mxu1  ;;  %v5214_v17 = vmul.f32 %v10614_v55, %v5004_v46  ;;  %v4428_v13 = vadd.f32 %v4427_v12, %v10596_v44  ;;  %v5213_v54 = vmul.f32 %v10618_v50, %v5003_v18  ;;  %v12000_v46 = vld [vmem:[#allocation33_spill] sm:$0xff]  ;;  %v5015_v18 = vadd.f32 %v4416_v41, %v12001_v51 }
 0x456   : > { %v4429_v43 = vpop.f32.mrf.mxu0  ;;  %v4402_v53 = vadd.f32 %v4401_v21, %v10596_v44  ;;  %v5019_v28 = vadd.f32 %v4422_v29, %v12000_v46 }
 0x457   : > { %v10601_v31 = vpop.f32.mrf.mxu1 }
 0x458   : > { %v4431_v24 = vpop.f32.mrf.mxu0 }
 0x459   : > { %v3813_v10 = vpop.f32.mrf.mxu1  ;;  %v4432_v49 = vadd.f32 %v4431_v24, %v10596_v44 }
 0x45a   : > { %v4435_v32 = vpop.f32.mrf.mxu0  ;;  %v4406_v10 = vadd.f32 %v4405_v22, %v10599_v34  ;;  %v4418_v22 = vadd.f32 %v4417_v38, %v10596_v44  ;;  %v11997_v38 = vld [vmem:[#allocation25_spill] sm:$0xff] }
 0x45b   : > { %v10606_v33 = vpop.f32.mrf.mxu1 }
 0x45c   : > { %v4437_v37 = vpop.f32.mrf.mxu0  ;;  %v5009_v19 = vadd.f32 %v4406_v10, %v9190_v6  ;;  %v5216_v6 = vmul.f32 %v10618_v50, %v5006_v40  ;;  %v5012_v10 = vadd.f32 %v4410_v27, %v11998_v7  ;;  %v4430_v40 = vadd.f32 %v4429_v43, %v10599_v34  ;;  %v12002_v7 = vld [vmem:[#allocation39_spill] sm:$0xff] }
 0x45d   : > { %v3818_v2 = vpop.f32.mrf.mxu1  ;;  %v4438_v51 = vadd.f32 %v4437_v37, %v10596_v44 }
 0x45e   : > { %v4439_v0 = vpop.f32.mrf.mxu0  ;;  %v11994_v2 = vld [vmem:[#allocation22_spill] sm:$0xff]  ;;  %v5219_v27 = vmul.f32 %v10618_v50, %v5009_v19 }
 0x45f   : > { %v10621_v21 = vpop.f32.mrf.mxu1  ;;  %v5007_v25 = vadd.f32 %v4402_v53, %v11994_v2  ;;  %v5013_v53 = vadd.f32 %v4412_v15, %v11997_v38  ;;  %v4426_v15 = vadd.f32 %v4425_v42, %v10599_v34  ;;  %v5220_v38 = vmul.f32 %v10614_v55, %v5010_v23 }
 0x460   : > { %v4441_v26 = vpop.f32.mrf.mxu0  ;;  %v4436_v42 = vadd.f32 %v4435_v32, %v10599_v34  ;;  %v5222_v23 = vmul.f32 %v10618_v50, %v5012_v10  ;;  %v5229_v32 = vmul.f32 %v10614_v55, %v5019_v28  ;;  %v3801_v10 = vadd.f32 %v10558_v35, %v10585_v16 }
 0x461   : > { %v3821_v57 = vpop.f32.mrf.mxu1  ;;  %v5217_v61 = vmul.f32 %v10614_v55, %v5007_v25  ;;  %v5018_v25 = vadd.f32 %v4420_v5, %v12002_v7  ;;  %v5223_v24 = vmul.f32 %v10614_v55, %v5013_v53  ;;  %v12005_v5 = vld [vmem:[#allocation40_spill] sm:$0xff]  ;;  %v10672_v7 = vadd.f32 %v5220_v38, %v5219_v27 }
 0x462   : > { %v10634_v1 = vpop.f32.mrf.mxu0  ;;  %v5016_v57 = vadd.f32 %v4418_v22, %v11999_v39  ;;  %v10657_v22 = vadd.f32 %v5214_v17, %v5213_v54  ;;  %v12003_v39 = vld [vmem:[#allocation45_spill] sm:$0xff]  ;;  %v5225_v53 = vmul.f32 %v10618_v50, %v5015_v18  ;;  %v4440_v37 = vadd.f32 %v4439_v0, %v10599_v34 }
 0x463   : > { %v10643_v2 = vpop.f32.mrf.mxu1  ;;  %v5022_v29 = vadd.f32 %v4428_v13, %v12003_v39  ;;  %v10668_v19 = vadd.f32 %v5217_v61, %v5216_v6  ;;  %v12004_v17 = vld [vmem:[#allocation49_spill] sm:$0xff]  ;;  %v5228_v61 = vmul.f32 %v10618_v50, %v5018_v25  ;;  %v10683_v27 = vadd.f32 %v5223_v24, %v5222_v23 }
 0x464   : > { %v4447_v11 = vpop.f32.mrf.mxu0  ;;  %v5226_v41 = vmul.f32 %v10614_v55, %v5016_v57  ;;  %v5021_v54 = vadd.f32 %v4426_v15, %v12004_v17  ;;  %v12006_v57 = vld [vmem:[#allocation47_spill] sm:$0xff]  ;;  %v3804_v28 = vadd.f32 %v10558_v35, %v10588_v4  ;;  %v3809_v16 = vadd.f32 %v10558_v35, %v10592_v63  ;;  %v12008_v18 = vld [vmem:[#allocation53_spill] sm:$0xff] }
 0x465   : > { %v3826_v12 = vpop.f32.mrf.mxu1  ;;  %v5024_v39 = vadd.f32 %v4430_v40, %v12006_v57  ;;  %v5232_v15 = vmul.f32 %v10614_v55, %v5022_v29  ;;  %v5028_v40 = vadd.f32 %v4438_v51, %v12008_v18  ;;  %v4442_v29 = vadd.f32 %v4441_v26, %v10596_v44  ;;  %v12009_v63 = vld [vmem:[#allocation55_spill] sm:$0xff] }
 0x466   : > { %v4449_v56 = vpop.f32.mrf.mxu0  ;;  %v5025_v12 = vadd.f32 %v4432_v49, %v12005_v5  ;;  %v12007_v49 = vld [vmem:[#allocation57_spill] sm:$0xff]  ;;  %v10690_v0 = vadd.f32 %v5226_v41, %v5225_v53  ;;  %v5231_v25 = vmul.f32 %v10618_v50, %v5021_v54  ;;  %v10695_v24 = vadd.f32 %v5229_v32, %v5228_v61 }
 0x467   : > { %v10662_v46 = vpop.f32.mrf.mxu1  ;;  %v5027_v17 = vadd.f32 %v4436_v42, %v12007_v49  ;;  %v5234_v23 = vmul.f32 %v10618_v50, %v5024_v39  ;;  %v3812_v4 = vadd.f32 %v10558_v35, %v10601_v31  ;;  %v5030_v57 = vadd.f32 %v4440_v37, %v12009_v63 }
 0x468   : > { %v4451_v43 = vpop.f32.mrf.mxu0  ;;  %v5235_v42 = vmul.f32 %v10614_v55, %v5025_v12  ;;  %v4448_v51 = vadd.f32 %v4447_v11, %v10596_v44  ;;  %v3817_v26 = vadd.f32 %v10558_v35, %v10606_v33  ;;  %v4446_v54 = vadd.f32 %v10634_v1, %v10599_v34 }
 0x469   : > { %v3829_v13 = vpop.f32.mrf.mxu1  ;;  %v5237_v53 = vmul.f32 %v10618_v50, %v5027_v17  ;;  %v10707_v32 = vadd.f32 %v5232_v15, %v5231_v25  ;;  %v5238_v39 = vmul.f32 %v10614_v55, %v5028_v40  ;;  %v4452_v31 = vadd.f32 %v4451_v43, %v10596_v44  ;;  %v12010_v17 = vld [vmem:[#allocation48_spill] sm:$0xff]  ;;  %v12011_v15 = vld [vmem:[#allocation61_spill] sm:$0xff] }
 0x46a   : > { %v4455_v6 = vpop.f32.mrf.mxu0  ;;  %v3820_v11 = vadd.f32 %v10558_v35, %v10621_v21  ;;  %v5031_v18 = vadd.f32 %v4442_v29, %v12010_v17  ;;  %v10714_v62 = vadd.f32 %v5235_v42, %v5234_v23  ;;  %v5240_v1 = vmul.f32 %v10618_v50, %v5030_v57 }
 0x46b   : > { %v7009_v38 = vpop.f32.mrf.mxu1  ;;  %v5034_v25 = vadd.f32 %v4448_v51, %v12011_v15  ;;  %v4450_v40 = vadd.f32 %v4449_v56, %v10599_v34  ;;  %v10723_v57 = vadd.f32 %v5238_v39, %v5237_v53  ;;  %v3825_v56 = vadd.f32 %v10558_v35, %v10643_v2  ;;  %v12015_v39 = vld [vmem:[#allocation73_spill] sm:$0xff] }
 0x46c   : > { %v4457_v5 = vpop.f32.mrf.mxu0  ;;  %v4098_v63 = vadd.f32 %v7009_v38, %v3809_v16  ;;  %v12013_v38 = vld [vmem:[#allocation56_spill] sm:$0xff]  ;;  %v5241_v51 = vmul.f32 %v10614_v55, %v5031_v18  ;;  %v12016_v15 = vld [vmem:[#allocation69_spill] sm:$0xff] }
 0x46d   : > { %v4089_v13 = vpop.f32.mrf.mxu1  ;;  %v4458_v21 = vadd.f32 %v4457_v5, %v10596_v44  ;;  %v5037_v16 = vadd.f32 %v4452_v31, %v12013_v38  ;;  %v5244_v5 = vmul.f32 %v10614_v55, %v5034_v25  ;;  %v3828_v31 = vadd.f32 %v10558_v35, %v10662_v46  ;;  %v12017_v35 = vld [vmem:[#allocation71_spill] sm:$0xff] }
 0x46e   : > { %v4459_v41 = vpop.f32.mrf.mxu0  ;;  %v4090_v61 = vadd.f32 %v4089_v13, %v3801_v10  ;;  %v12012_v10 = vld [vmem:[#allocation65_spill] sm:$0xff] }
 0x46f   : > { %v7010_v12 = vpop.f32.mrf.mxu1  ;;  %v5033_v13 = vadd.f32 %v4446_v54, %v12012_v10  ;;  %v4460_v54 = vadd.f32 %v4459_v41, %v10599_v34  ;;  %v5040_v10 = vadd.f32 %v4458_v21, %v12016_v15  ;;  %v5247_v41 = vmul.f32 %v10614_v55, %v5037_v16 }
 0x470   : > { %v4101_v37 = vadd.f32 %v7010_v12, %v3812_v4  ;;  %v4461_v49 = vpop.f32.mrf.mxu0  ;;  %v4456_v4 = vadd.f32 %v4455_v6, %v10599_v34  ;;  %v4176_v42 = vmax.f32 %v4090_v61, 0.0 }
 0x471   : > { %v4092_v33 = vpop.f32.mrf.mxu1  ;;  %v5243_v53 = vmul.f32 %v10618_v50, %v5033_v13  ;;  %v5042_v46 = vadd.f32 %v4460_v54, %v12017_v35  ;;  %v10742_v13 = vadd.f32 %v5241_v51, %v5240_v1 }
 0x472   : > { %v4093_v45 = vadd.f32 %v4092_v33, %v3804_v28  ;;  %v4465_v43 = vpop.f32.mrf.mxu0  ;;  %v4179_v12 = vmax.f32 %v4101_v37, 0.0  ;;  %v4178_v28 = vmax.f32 %v4098_v63, 0.0  ;;  %v12014_v37 = vld [vmem:[#allocation63_spill] sm:$0xff]  ;;  %v5039_v18 = vadd.f32 %v4456_v4, %v12015_v39 }
 0x473   : > { %v7013_v29 = vpop.f32.mrf.mxu1  ;;  %v5036_v33 = vadd.f32 %v4450_v40, %v12014_v37  ;;  %v10746_v16 = vadd.f32 %v5244_v5, %v5243_v53  ;;  %v12018_v53 = vld [vmem:[#allocation64_spill] sm:$0xff] }
 0x474   : > { %v4177_v23 = vmax.f32 %v4093_v45, 0.0  ;;  %v4467_v17 = vpop.f32.mrf.mxu0  ;;  %v4213_v2 = vpack.c.bf16 %v4179_v12, %v4178_v28  ;;  %v4114_v40 = vadd.f32 %v7013_v29, %v3825_v56  ;;  %v5250_v28 = vmul.f32 %v10614_v55, %v5040_v10 }
 0x475   : > { %v4105_v6 = vpop.f32.mrf.mxu1  ;;  %v5246_v4 = vmul.f32 %v10618_v50, %v5036_v33  ;;  %v4466_v29 = vadd.f32 %v4465_v43, %v10599_v34  ;;  %v4468_v5 = vadd.f32 %v4467_v17, %v10596_v44  ;;  %v12021_v17 = vld [vmem:[#allocation27_spill] sm:$0xff] }
 0x476   : > { %v4212_v45 = vpack.c.bf16 %v4177_v23, %v4176_v42  ;;  %v4469_v61 = vpop.f32.mrf.mxu0  ;;  %v4106_v38 = vadd.f32 %v4105_v6, %v3817_v26  ;;  %v4462_v26 = vadd.f32 %v4461_v49, %v10596_v44  ;;  %v5249_v23 = vmul.f32 %v10618_v50, %v5039_v18 }
 0x477   : > { %v7014_v63 = vpop.f32.mrf.mxu1  ;;  %v10752_v33 = vadd.f32 %v5247_v41, %v5246_v4  ;;  %v5252_v49 = vmul.f32 %v10618_v50, %v5042_v46  ;;  %v4470_v41 = vadd.f32 %v4469_v61, %v10599_v34 }
 0x478   : > { %v4117_v14 = vadd.f32 %v7014_v63, %v3828_v31  ;;  %v4471_v25 = vpop.f32.mrf.mxu0  ;;  %6594 = vmatmul.mubr.msk.bf16.gmra.mxu0 %vm4264_vm1, %v4212_v45  ;;  %7075 = vmatprep.mubr.msk.bf16.mxu1 %vm4264_vm1, %v4212_v45  ;;  %v4180_v6 = vmax.f32 %v4106_v38, 0.0  ;;  %v5043_v39 = vadd.f32 %v4462_v26, %v12018_v53  ;;  %v12020_v63 = vld [vmem:[#allocation81_spill] sm:$0xff] }
 0x479   : > { %v4108_v42 = vpop.f32.mrf.mxu1  ;;  %7076 = vmatmul.mubr.msk.bf16.gmra.mxu1 %vm4264_vm1, %v4213_v2  ;;  %4683 = vmatprep.mubr.bf16.mxu0 %v11953_v3  ;;  %v4472_v31 = vadd.f32 %v4471_v25, %v10596_v44  ;;  %v5045_v38 = vadd.f32 %v4466_v29, %v12020_v63 }
 0x47a   : > { %v4109_v21 = vadd.f32 %v4108_v42, %v3820_v11  ;;  %v4475_v12 = vpop.f32.mrf.mxu0  ;;  %v4183_v56 = vmax.f32 %v4117_v14, 0.0  ;;  %v4182_v11 = vmax.f32 %v4114_v40, 0.0  ;;  %v12019_v14 = vld [vmem:[#allocation31_spill] sm:$0xff]  ;;  %v10764_v40 = vadd.f32 %v5250_v28, %v5249_v23  ;;  %v12024_v23 = vld [vmem:[#allocation28_spill] sm:$0xff] }
 0x47b   : > { %v7021_v54 = vpop.f32.mrf.mxu1 }
 0x47c   : > { %v4181_v37 = vmax.f32 %v4109_v21, 0.0  ;;  %v4477_v1 = vpop.f32.mrf.mxu0  ;;  %v4757_v51 = vadd.f32 %v7021_v54, %v10630_v52  ;;  %v10762_v35 = vpack.c.bf16 %v4183_v56, %v4182_v11  ;;  %v12022_v21 = vld [vmem:[#allocation74_spill] sm:$0xff]  ;;  %v12023_v54 = vld [vmem:[#allocation72_spill] sm:$0xff]  ;;  %v4476_v56 = vadd.f32 %v4475_v12, %v10599_v34 }
 0x47d   : > { %v4748_v45 = vpop.f32.mrf.mxu1  ;;  %v5046_v29 = vadd.f32 %v4468_v5, %v12022_v21  ;;  %v5049_v61 = vadd.f32 %v4472_v31, %v12023_v54  ;;  %v5253_v5 = vmul.f32 %v10614_v55, %v5043_v39  ;;  %v5255_v31 = vmul.f32 %v10618_v50, %v5045_v38  ;;  %v12025_v12 = vld [vmem:[#allocation78_spill] sm:$0xff]  ;;  %v12027_v38 = vld [vmem:[#allocation85_spill] sm:$0xff] }
 0x47e   : > { %v4214_v43 = vpack.c.bf16 %v4181_v37, %v4180_v6  ;;  %v5011_v18 = vadd.f32 %v4757_v51, %v12019_v14  ;;  %v4479_v15 = vpop.f32.mrf.mxu0  ;;  %v4749_v10 = vadd.f32 %v4748_v45, %v10630_v52  ;;  %v5048_v45 = vadd.f32 %v4470_v41, %v12025_v12 }
 0x47f   : > { %v7022_v46 = vpop.f32.mrf.mxu1  ;;  %v4478_v53 = vadd.f32 %v4477_v1, %v10596_v44  ;;  %v5259_v39 = vmul.f32 %v10614_v55, %v5049_v61  ;;  %v4480_v61 = vadd.f32 %v4479_v15, %v10599_v34 }
 0x480   : > { %v5005_v25 = vadd.f32 %v4749_v10, %v12021_v17  ;;  %v4481_v42 = vpop.f32.mrf.mxu0  ;;  %v4760_v4 = vadd.f32 %v7022_v46, %v10630_v52  ;;  %6595 = vmatmul.mubr.msk.bf16.gmra.mxu0 %vm4264_vm1, %v4213_v2  ;;  %7079 = vmatprep.mubr.msk.bf16.mxu1 %vm4264_vm1, %v4214_v43  ;;  %v5221_v26 = vmul.f32 %v10637_v48, %v5011_v18  ;;  %v12026_v18 = vld [vmem:[#allocation29_spill] sm:$0xff] }
 0x481   : > { %v4751_v6 = vpop.f32.mrf.mxu1  ;;  %7080 = vmatmul.mubr.msk.bf16.gmra.mxu1 %vm4264_vm1, %v10762_v35  ;;  %4693 = vmatprep.mubr.bf16.mxu0 %v11953_v3  ;;  %v4482_v41 = vadd.f32 %v4481_v42, %v10596_v44  ;;  %v12030_v42 = vld [vmem:[#allocation34_spill] sm:$0xff] }
 0x482   : > { %v5014_v28 = vadd.f32 %v4760_v4, %v12024_v23  ;;  %v4485_v37 = vpop.f32.mrf.mxu0  ;;  %v4752_v2 = vadd.f32 %v4751_v6, %v10630_v52  ;;  %v5414_v51 = vadd.f32 %v10672_v7, %v5221_v26  ;;  %v5215_v11 = vmul.f32 %v10637_v48, %v5005_v25  ;;  %v12028_v26 = vld [vmem:[#allocation38_spill] sm:$0xff] }
 0x483   : > { %v7025_v14 = vpop.f32.mrf.mxu1  ;;  %v5256_v25 = vmul.f32 %v10614_v55, %v5046_v29  ;;  %v5051_v4 = vadd.f32 %v4476_v56, %v12027_v38  ;;  %v12029_v29 = vld [vmem:[#allocation82_spill] sm:$0xff] }
 0x484   : > { %v5008_v10 = vadd.f32 %v4752_v2, %v12026_v18  ;;  %v4487_v63 = vpop.f32.mrf.mxu0  ;;  %v4773_v46 = vadd.f32 %v7025_v14, %v10630_v52  ;;  %5415 = vadd.xlane.f32.xlu1 %v5414_v51  ;;  %v5406_v17 = vadd.f32 %v10657_v22, %v5215_v11  ;;  %v5224_v7 = vmul.f32 %v10637_v48, %v5014_v28  ;;  %v12031_v18 = vld [vmem:[#allocation80_spill] sm:$0xff] }
 0x485   : > { %v4764_v1 = vpop.f32.mrf.mxu1  ;;  %v5258_v28 = vmul.f32 %v10618_v50, %v5048_v45  ;;  %v5052_v2 = vadd.f32 %v4478_v53, %v12029_v29  ;;  %v10800_v51 = vadd.f32 %v5253_v5, %v5252_v49  ;;  %v4486_v45 = vadd.f32 %v4485_v37, %v10599_v34  ;;  %v12033_v37 = vld [vmem:[#allocation83_spill] sm:$0xff] }
 0x486   : > { %v5023_v21 = vadd.f32 %v4773_v46, %v12028_v26  ;;  %v4489_v54 = vpop.f32.mrf.mxu0  ;;  %v4765_v6 = vadd.f32 %v4764_v1, %v10630_v52  ;;  %5407 = vadd.xlane.f32.xlu0 %v5406_v17  ;;  %v5418_v23 = vadd.f32 %v10683_v27, %v5224_v7  ;;  %v5218_v22 = vmul.f32 %v10637_v48, %v5008_v10  ;;  %v12032_v46 = vld [vmem:[#allocation35_spill] sm:$0xff] }
 0x487   : > { %v7026_v56 = vpop.f32.mrf.mxu1  ;;  %v5055_v10 = vadd.f32 %v4482_v41, %v12031_v18  ;;  %v10810_v49 = vadd.f32 %v5256_v25, %v5255_v31  ;;  %v5261_v5 = vmul.f32 %v10618_v50, %v5051_v4  ;;  %v5262_v38 = vmul.f32 %v10614_v55, %v5052_v2  ;;  %v12034_v31 = vld [vmem:[#allocation36_spill] sm:$0xff]  ;;  %v12037_v18 = vld [vmem:[#allocation86_spill] sm:$0xff] }
 0x488   : > { %v5017_v11 = vadd.f32 %v4765_v6, %v12030_v42  ;;  %v4491_v12 = vpop.f32.mrf.mxu0  ;;  %v4776_v14 = vadd.f32 %v7026_v56, %v10630_v52  ;;  %6596 = vmatmul.mubr.msk.bf16.gmra.mxu0 %vm4264_vm1, %v4214_v43  ;;  %5419 = vadd.xlane.f32.xlu1 %v5418_v23  ;;  %v5410_v27 = vadd.f32 %v10668_v19, %v5218_v22  ;;  %v12035_v22 = vld [vmem:[#allocation93_spill] sm:$0xff] }
 0x489   : > { %v4767_v53 = vpop.f32.mrf.mxu1  ;;  %v5233_v15 = vmul.f32 %v10637_v48, %v5023_v21  ;;  %4703 = vmatprep.mubr.bf16.mxu0 %v11953_v3  ;;  %v10815_v19 = vadd.f32 %v5259_v39, %v5258_v28  ;;  %v5054_v41 = vadd.f32 %v4480_v61, %v12033_v37  ;;  %v4488_v1 = vadd.f32 %v4487_v63, %v10596_v44  ;;  %v12036_v61 = vld [vmem:[#allocation46_spill] sm:$0xff] }
 0x48a   : > { %v5026_v17 = vadd.f32 %v4776_v14, %v12032_v46  ;;  %v4495_v7 = vpop.f32.mrf.mxu0  ;;  %v4768_v43 = vadd.f32 %v4767_v53, %v10630_v52  ;;  %5411 = vadd.xlane.f32.xlu0 %v5410_v27  ;;  %v5227_v3 = vmul.f32 %v10637_v48, %v5017_v11  ;;  %v5265_v39 = vmul.f32 %v10614_v55, %v5055_v10  ;;  %v12039_v37 = vld [vmem:[#allocation90_spill] sm:$0xff] }
 0x48b   : > { %v7029_v26 = vpop.f32.mrf.mxu1  ;;  %v5430_v6 = vadd.f32 %v10707_v32, %v5233_v15  ;;  %v5057_v28 = vadd.f32 %v4486_v45, %v12035_v22  ;;  %v4490_v29 = vadd.f32 %v4489_v54, %v10599_v34  ;;  %v4492_v63 = vadd.f32 %v4491_v12, %v10596_v44  ;;  %v12038_v12 = vld [vmem:[#allocation42_spill] sm:$0xff] }
 0x48c   : > { %v5020_v25 = vadd.f32 %v4768_v43, %v12034_v31  ;;  %v4497_v4 = vpop.f32.mrf.mxu0  ;;  %v4789_v21 = vadd.f32 %v7029_v26, %v10630_v52  ;;  %v5236_v23 = vmul.f32 %v10637_v48, %v5026_v17  ;;  %v5264_v27 = vmul.f32 %v10618_v50, %v5054_v41 }
 0x48d   : > { %v4780_v2 = vpop.f32.mrf.mxu1  ;;  %v5058_v10 = vadd.f32 %v4488_v1, %v12037_v18  ;;  %v4496_v45 = vadd.f32 %v4495_v7, %v10599_v34  ;;  %v10836_v53 = vadd.f32 %v5262_v38, %v5261_v5  ;;  %v5267_v43 = vmul.f32 %v10618_v50, %v5057_v28  ;;  %v12040_v1 = vld [vmem:[#allocation84_spill] sm:$0xff]  ;;  %v12041_v38 = vld [vmem:[#allocation43_spill] sm:$0xff]  ;;  %v12044_v18 = vld [vmem:[#allocation54_spill] sm:$0xff] }
 0x48e   : > { %v5035_v56 = vadd.f32 %v4789_v21, %v12036_v61  ;;  %v4499_v42 = vpop.f32.mrf.mxu0  ;;  %v4781_v11 = vadd.f32 %v4780_v2, %v10630_v52  ;;  %5431 = vadd.xlane.f32.xlu0 %v5430_v6  ;;  %v5434_v14 = vadd.f32 %v10714_v62, %v5236_v23  ;;  %v5230_v32 = vmul.f32 %v10637_v48, %v5020_v25 }
 0x48f   : > { %v7030_v54 = vpop.f32.mrf.mxu1  ;;  %v5422_v62 = vadd.f32 %v10690_v0, %v5227_v3  ;;  %v5060_v41 = vadd.f32 %v4490_v29, %v12039_v37  ;;  %v5061_v7 = vadd.f32 %v4492_v63, %v12040_v1  ;;  %v10850_v6 = vadd.f32 %v5265_v39, %v5264_v27  ;;  %v12042_v3 = vld [vmem:[#allocation97_spill] sm:$0xff]  ;;  %v12043_v63 = vld [vmem:[#allocation44_spill] sm:$0xff] }
 0x490   : > { %v5029_v15 = vadd.f32 %v4781_v11, %v12038_v12  ;;  %v4501_v46 = vpop.f32.mrf.mxu0  ;;  %v4792_v17 = vadd.f32 %v7030_v54, %v10630_v52  ;;  %6597 = vmatmul.mubr.msk.bf16.gmra.mxu0 %vm4264_vm1, %v10762_v35  ;;  %5435 = vadd.xlane.f32.xlu1 %v5434_v14  ;;  %v5245_v5 = vmul.f32 %v10637_v48, %v5035_v56 }
 0x491   : > { %v4783_v26 = vpop.f32.mrf.mxu1  ;;  %v5426_v35 = vadd.f32 %v10695_v24, %v5230_v32  ;;  %v5268_v0 = vmul.f32 %v10614_v55, %v5058_v10  ;;  %v5063_v23 = vadd.f32 %v4496_v45, %v12042_v3  ;;  %v4498_v22 = vadd.f32 %v4497_v4, %v10596_v44 }
 0x492   : > { %v5038_v31 = vadd.f32 %v4792_v17, %v12041_v38  ;;  %v4505_v25 = vpop.f32.mrf.mxu0  ;;  %v4784_v21 = vadd.f32 %v4783_v26, %v10630_v52  ;;  %5423 = vadd.xlane.f32.xlu0 %v5422_v62  ;;  %v5239_v29 = vmul.f32 %v10637_v48, %v5029_v15  ;;  %v5446_v11 = vadd.f32 %v10746_v16, %v5245_v5  ;;  %v12045_v17 = vld [vmem:[#allocation94_spill] sm:$0xff]  ;;  %v12047_v38 = vld [vmem:[#allocation95_spill] sm:$0xff] }
 0x493   : > { %v7033_v28 = vpop.f32.mrf.mxu1  ;;  %v5270_v39 = vmul.f32 %v10618_v50, %v5060_v41  ;;  %v5271_v14 = vmul.f32 %v10614_v55, %v5061_v7  ;;  %v4500_v32 = vadd.f32 %v4499_v42, %v10599_v34  ;;  %v4502_v4 = vadd.f32 %v4501_v46, %v10596_v44  ;;  %v12046_v46 = vld [vmem:[#allocation50_spill] sm:$0xff] }
 0x494   : > { %v5032_v2 = vadd.f32 %v4784_v21, %v12043_v63  ;;  %v4507_v61 = vpop.f32.mrf.mxu0  ;;  %v4805_v56 = vadd.f32 %v7033_v28, %v10630_v52  ;;  %5427 = vadd.xlane.f32.xlu1 %v5426_v35  ;;  %v5248_v24 = vmul.f32 %v10637_v48, %v5038_v31  ;;  %v5273_v15 = vmul.f32 %v10618_v50, %v5063_v23  ;;  %v12048_v21 = vld [vmem:[#allocation92_spill] sm:$0xff] }
 0x495   : > { %v4796_v27 = vpop.f32.mrf.mxu1  ;;  %v5064_v62 = vadd.f32 %v4498_v22, %v12045_v17  ;;  %v4508_v37 = vadd.f32 %v4507_v61, %v10596_v44  ;;  %v10871_v41 = vadd.f32 %v5268_v0, %v5267_v43  ;;  %v5438_v5 = vadd.f32 %v10723_v57, %v5239_v29  ;;  %v12049_v0 = vld [vmem:[#allocation51_spill] sm:$0xff]  ;;  %v12050_v61 = vld [vmem:[#allocation98_spill] sm:$0xff] }
 0x496   : > { %v5047_v10 = vadd.f32 %v4805_v56, %v12044_v18  ;;  %v4509_v45 = vpop.f32.mrf.mxu0  ;;  %v4797_v54 = vadd.f32 %v4796_v27, %v10630_v52  ;;  %5447 = vadd.xlane.f32.xlu0 %v5446_v11  ;;  %v5450_v12 = vadd.f32 %v10752_v33, %v5248_v24  ;;  %v5242_v16 = vmul.f32 %v10637_v48, %v5032_v2 }
 0x497   : > { %v7034_v42 = vpop.f32.mrf.mxu1  ;;  %v5066_v31 = vadd.f32 %v4500_v32, %v12047_v38  ;;  %v5067_v35 = vadd.f32 %v4502_v4, %v12048_v21  ;;  %v4506_v3 = vadd.f32 %v4505_v25, %v10599_v34  ;;  %v4510_v23 = vadd.f32 %v4509_v45, %v10599_v34  ;;  %v12051_v32 = vld [vmem:[#allocation52_spill] sm:$0xff]  ;;  %v12052_v45 = vld [vmem:[#allocation105_spill] sm:$0xff]  ;;  %v12056_v21 = vld [vmem:[#allocation58_spill] sm:$0xff] }
 0x498   : > { %v5041_v1 = vadd.f32 %v4797_v54, %v12046_v46  ;;  %v4511_v7 = vpop.f32.mrf.mxu0  ;;  %v4808_v26 = vadd.f32 %v7034_v42, %v10630_v52  ;;  %5451 = vadd.xlane.f32.xlu1 %v5450_v12  ;;  %v5257_v33 = vmul.f32 %v10637_v48, %v5047_v10  ;;  %v5442_v2 = vadd.f32 %v10742_v13, %v5242_v16  ;;  %v12053_v12 = vld [vmem:[#allocation102_spill] sm:$0xff] }
 0x499   : > { %v4799_v43 = vpop.f32.mrf.mxu1  ;;  %v10884_v57 = vadd.f32 %v5271_v14, %v5270_v39  ;;  %v5274_v29 = vmul.f32 %v10614_v55, %v5064_v62  ;;  %v5070_v56 = vadd.f32 %v4508_v37, %v12050_v61  ;;  %v4512_v11 = vadd.f32 %v4511_v7, %v10596_v44 }
 0x49a   : > { %v5050_v22 = vadd.f32 %v4808_v26, %v12049_v0  ;;  %v4515_v28 = vpop.f32.mrf.mxu0  ;;  %v4800_v63 = vadd.f32 %v4799_v43, %v10630_v52  ;;  %5439 = vadd.xlane.f32.xlu0 %v5438_v5  ;;  %v5462_v24 = vadd.f32 %v10810_v49, %v5257_v33  ;;  %v5251_v13 = vmul.f32 %v10637_v48, %v5041_v1  ;;  %v12054_v49 = vld [vmem:[#allocation62_spill] sm:$0xff]  ;;  %v12055_v26 = vld [vmem:[#allocation96_spill] sm:$0xff] }
 0x49b   : > { %v7037_v25 = vpop.f32.mrf.mxu1  ;;  %v5276_v39 = vmul.f32 %v10618_v50, %v5066_v31  ;;  %v5277_v14 = vmul.f32 %v10614_v55, %v5067_v35  ;;  %v5069_v54 = vadd.f32 %v4506_v3, %v12052_v45  ;;  %v5072_v16 = vadd.f32 %v4510_v23, %v12053_v12  ;;  %v12060_v12 = vld [vmem:[#allocation106_spill] sm:$0xff] }
 0x49c   : > { %v5044_v4 = vadd.f32 %v4800_v63, %v12051_v32  ;;  %v4517_v27 = vpop.f32.mrf.mxu0  ;;  %v4821_v18 = vadd.f32 %v7037_v25, %v10630_v52  ;;  %5443 = vadd.xlane.f32.xlu1 %v5442_v2  ;;  %v5260_v10 = vmul.f32 %v10637_v48, %v5050_v22  ;;  %v5280_v1 = vmul.f32 %v10614_v55, %v5070_v56 }
 0x49d   : > { %v4812_v17 = vpop.f32.mrf.mxu1  ;;  %v5073_v5 = vadd.f32 %v4512_v11, %v12055_v26  ;;  %v4516_v33 = vadd.f32 %v4515_v28, %v10599_v34  ;;  %v10905_v31 = vadd.f32 %v5274_v29, %v5273_v15  ;;  %v5454_v43 = vadd.f32 %v10764_v40, %v5251_v13  ;;  %v12057_v29 = vld [vmem:[#allocation59_spill] sm:$0xff] }
 0x49e   : > { %v5059_v62 = vadd.f32 %v4821_v18, %v12054_v49  ;;  %v4519_v37 = vpop.f32.mrf.mxu0  ;;  %v4813_v42 = vadd.f32 %v4812_v17, %v10630_v52  ;;  %5463 = vadd.xlane.f32.xlu0 %v5462_v24  ;;  %v5466_v46 = vadd.f32 %v10815_v19, %v5260_v10  ;;  %v5254_v7 = vmul.f32 %v10637_v48, %v5044_v4  ;;  %v12058_v24 = vld [vmem:[#allocation109_spill] sm:$0xff]  ;;  %v12059_v10 = vld [vmem:[#allocation60_spill] sm:$0xff] }
 0x49f   : > { %v7038_v38 = vpop.f32.mrf.mxu1  ;;  %v5279_v0 = vmul.f32 %v10618_v50, %v5069_v54  ;;  %v4518_v22 = vadd.f32 %v4517_v27, %v10596_v44  ;;  %v4520_v63 = vadd.f32 %v4519_v37, %v10599_v34  ;;  %v10914_v2 = vadd.f32 %v5277_v14, %v5276_v39  ;;  %v12062_v37 = vld [vmem:[#allocation70_spill] sm:$0xff] }
 0x4a0   : > { %v5053_v35 = vadd.f32 %v4813_v42, %v12056_v21  ;;  %v4521_v3 = vpop.f32.mrf.mxu0  ;;  %v4824_v23 = vadd.f32 %v7038_v38, %v10630_v52  ;;  %5467 = vadd.xlane.f32.xlu1 %v5466_v46  ;;  %v5269_v19 = vmul.f32 %v10637_v48, %v5059_v62  ;;  %v5282_v15 = vmul.f32 %v10618_v50, %v5072_v16  ;;  %v12061_v16 = vld [vmem:[#allocation107_spill] sm:$0xff] }
 0x4a1   : > { %v4815_v28 = vpop.f32.mrf.mxu1  ;;  %v5458_v40 = vadd.f32 %v10800_v51, %v5254_v7  ;;  %v5283_v25 = vmul.f32 %v10614_v55, %v5073_v5  ;;  %v5075_v32 = vadd.f32 %v4516_v33, %v12058_v24  ;;  %v5493_v18 = vadd.f32 %v5280_v1, %v5279_v0 }
 0x4a2   : > { %v5062_v61 = vadd.f32 %v4824_v23, %v12057_v29  ;;  %v4525_v56 = vpop.f32.mrf.mxu0  ;;  %v4816_v11 = vadd.f32 %v4815_v28, %v10630_v52  ;;  %5455 = vadd.xlane.f32.xlu0 %v5454_v43  ;;  %v5478_v27 = vadd.f32 %v10871_v41, %v5269_v19  ;;  %v5263_v54 = vmul.f32 %v10637_v48, %v5053_v35  ;;  %v12064_v28 = vld [vmem:[#allocation110_spill] sm:$0xff] }
 0x4a3   : > { %v7041_v4 = vpop.f32.mrf.mxu1  ;;  %v5076_v51 = vadd.f32 %v4518_v22, %v12060_v12  ;;  %v5078_v17 = vadd.f32 %v4520_v63, %v12061_v16  ;;  %v4522_v49 = vadd.f32 %v4521_v3, %v10596_v44  ;;  %v10936_v5 = vmul.f32 %v10618_v50, %v5075_v32  ;;  %v12063_v3 = vld [vmem:[#allocation66_spill] sm:$0xff]  ;;  %v12070_v12 = vld [vmem:[#allocation68_spill] sm:$0xff] }
 0x4a4   : > { %v5056_v13 = vadd.f32 %v4816_v11, %v12059_v10  ;;  %v4527_v39 = vpop.f32.mrf.mxu0  ;;  %v4837_v14 = vadd.f32 %v7041_v4, %v10630_v52  ;;  %5459 = vadd.xlane.f32.xlu1 %v5458_v40  ;;  %v5272_v45 = vmul.f32 %v10637_v48, %v5062_v61  ;;  %v4526_v33 = vadd.f32 %v4525_v56, %v10599_v34  ;;  %v12065_v56 = vld [vmem:[#allocation104_spill] sm:$0xff]  ;;  %v12066_v40 = vld [vmem:[#allocation67_spill] sm:$0xff]  ;;  %v12067_v4 = vld [vmem:[#allocation117_spill] sm:$0xff] }
 0x4a5   : > { %v4528_v62 = vadd.f32 %v4527_v39, %v10596_v44  ;;  %v4828_v41 = vpop.f32.mrf.mxu1  ;;  %v5497_v35 = vadd.f32 %v5283_v25, %v5282_v15  ;;  %v5470_v0 = vadd.f32 %v10836_v53, %v5263_v54  ;;  %v10945_v22 = vmul.f32 %v10614_v55, %v5076_v51  ;;  %v12068_v10 = vld [vmem:[#allocation114_spill] sm:$0xff]  ;;  %v12069_v39 = vld [vmem:[#allocation108_spill] sm:$0xff] }
 0x4a6   : > { %v5071_v42 = vadd.f32 %v4837_v14, %v12062_v37  ;;  %v4529_v46 = vpop.f32.mrf.mxu0  ;;  %v4829_v7 = vadd.f32 %v4828_v41, %v10630_v52  ;;  %5479 = vadd.xlane.f32.xlu0 %v5478_v27  ;;  %v5482_v1 = vadd.f32 %v10884_v57, %v5272_v45  ;;  %v5266_v26 = vmul.f32 %v10637_v48, %v5056_v13 }
 0x4a7   : > { %v4530_v38 = vadd.f32 %v4529_v46, %v10599_v34  ;;  %v7042_v21 = vpop.f32.mrf.mxu1  ;;  %v10948_v63 = vmul.f32 %v10618_v50, %v5078_v17  ;;  %v5082_v29 = vadd.f32 %v4528_v62, %v12064_v28  ;;  %v5079_v11 = vadd.f32 %v4522_v49, %v12065_v56  ;;  %v12074_v56 = vld [vmem:[#allocation121_spill] sm:$0xff] }
 0x4a8   : > { %v5065_v23 = vadd.f32 %v4829_v7, %v12063_v3  ;;  %v4531_v43 = vpop.f32.mrf.mxu0  ;;  %v4840_v19 = vadd.f32 %v7042_v21, %v10630_v52  ;;  %5483 = vadd.xlane.f32.xlu1 %v5482_v1  ;;  %v5281_v57 = vmul.f32 %v10637_v48, %v5071_v42  ;;  %v5474_v32 = vadd.f32 %v10850_v6, %v5266_v26 }
 0x4a9   : > { %v4532_v15 = vadd.f32 %v4531_v43, %v10596_v44  ;;  %v4831_v61 = vpop.f32.mrf.mxu1  ;;  %v5081_v27 = vadd.f32 %v4526_v33, %v12067_v4  ;;  %v5084_v13 = vadd.f32 %v4530_v38, %v12068_v10  ;;  %v5292_v6 = vmul.f32 %v10614_v55, %v5082_v29  ;;  %v12072_v43 = vld [vmem:[#allocation118_spill] sm:$0xff] }
 0x4aa   : > { %v5074_v25 = vadd.f32 %v4840_v19, %v12066_v40  ;;  %v4535_v24 = vpop.f32.mrf.mxu0  ;;  %v4832_v53 = vadd.f32 %v4831_v61, %v10630_v52  ;;  %5471 = vadd.xlane.f32.xlu0 %v5470_v0  ;;  %v5494_v54 = vadd.f32 %v5493_v18, %v5281_v57  ;;  %v5275_v62 = vmul.f32 %v10637_v48, %v5065_v23  ;;  %v12071_v18 = vld [vmem:[#allocation79_spill] sm:$0xff]  ;;  %v12073_v57 = vld [vmem:[#allocation76_spill] sm:$0xff] }
 0x4ab   : > { %v5085_v14 = vadd.f32 %v4532_v15, %v12069_v39  ;;  %v7045_v45 = vpop.f32.mrf.mxu1  ;;  %v4536_v37 = vadd.f32 %v4535_v24, %v10599_v34  ;;  %v5289_v21 = vmul.f32 %v10614_v55, %v5079_v11  ;;  %v5291_v3 = vmul.f32 %v10618_v50, %v5081_v27 }
 0x4ac   : > { %v5068_v51 = vadd.f32 %v4832_v53, %v12070_v12  ;;  %v4537_v16 = vpop.f32.mrf.mxu0  ;;  %v4853_v17 = vadd.f32 %v7045_v45, %v10630_v52  ;;  %5475 = vadd.xlane.f32.xlu1 %v5474_v32  ;;  %v5284_v49 = vmul.f32 %v10637_v48, %v5074_v25  ;;  %v5294_v23 = vmul.f32 %v10618_v50, %v5084_v13  ;;  %v12075_v32 = vld [vmem:[#allocation75_spill] sm:$0xff] }
 0x4ad   : > { %v5295_v41 = vmul.f32 %v10614_v55, %v5085_v14  ;;  %v4538_v42 = vadd.f32 %v4537_v16, %v10596_v44  ;;  %v4844_v46 = vpop.f32.mrf.mxu1  ;;  %v5486_v61 = vadd.f32 %v10905_v31, %v5275_v62  ;;  %v5087_v40 = vadd.f32 %v4536_v37, %v12074_v56 }
 0x4ae   : > { %v5083_v7 = vadd.f32 %v4853_v17, %v12071_v18  ;;  %v4539_v1 = vpop.f32.mrf.mxu0  ;;  %v4845_v26 = vadd.f32 %v4844_v46, %v10630_v52  ;;  %5495 = vadd.xlane.f32.xlu0 %v5494_v54  ;;  %v5498_v33 = vadd.f32 %v5497_v35, %v5284_v49  ;;  %v5278_v38 = vmul.f32 %v10637_v48, %v5068_v51  ;;  %v12076_v51 = vld [vmem:[#allocation116_spill] sm:$0xff]  ;;  %v12077_v17 = vld [vmem:[#allocation77_spill] sm:$0xff] }
 0x4af   : > { %v5088_v19 = vadd.f32 %v4538_v42, %v12072_v43  ;;  %v7046_v0 = vpop.f32.mrf.mxu1  ;;  %v4540_v11 = vadd.f32 %v4539_v1, %v10599_v34  ;;  %v5509_v53 = vadd.f32 %v5292_v6, %v5291_v3  ;;  %v5513_v39 = vadd.f32 %v5295_v41, %v5294_v23  ;;  %v12078_v41 = vld [vmem:[#allocation129_spill] sm:$0xff]  ;;  %v12079_v23 = vld [vmem:[#allocation119_spill] sm:$0xff] }
 0x4b0   : > { %v5077_v28 = vadd.f32 %v4845_v26, %v12073_v57  ;;  %v4541_v29 = vpop.f32.mrf.mxu0  ;;  %v4856_v15 = vadd.f32 %v7046_v0, %v10630_v52  ;;  %5499 = vadd.xlane.f32.xlu1 %v5498_v33  ;;  %v5293_v35 = vmul.f32 %v10637_v48, %v5083_v7  ;;  %v5490_v13 = vadd.f32 %v10914_v2, %v5278_v38 }
 0x4b1   : > { %v4542_v25 = vadd.f32 %v4541_v29, %v10596_v44  ;;  %v4847_v24 = vpop.f32.mrf.mxu1  ;;  %v5298_v31 = vmul.f32 %v10614_v55, %v5088_v19  ;;  %v5297_v2 = vmul.f32 %v10618_v50, %v5087_v40  ;;  %v5501_v7 = vadd.f32 %v10945_v22, %v10936_v5  ;;  %v12080_v19 = vld [vmem:[#allocation122_spill] sm:$0xff]  ;;  %v12081_v5 = vld [vmem:[#allocation91_spill] sm:$0xff] }
 0x4b2   : > { %v5086_v4 = vadd.f32 %v4856_v15, %v12075_v32  ;;  %v4545_v27 = vpop.f32.mrf.mxu0  ;;  %v4848_v10 = vadd.f32 %v4847_v24, %v10630_v52  ;;  %5487 = vadd.xlane.f32.xlu0 %v5486_v61  ;;  %v5510_v54 = vadd.f32 %v5509_v53, %v5293_v35  ;;  %v5287_v12 = vmul.f32 %v10637_v48, %v5077_v28  ;;  %v12082_v61 = vld [vmem:[#allocation88_spill] sm:$0xff]  ;;  %v12083_v53 = vld [vmem:[#allocation126_spill] sm:$0xff] }
 0x4b3   : > { %v4546_v14 = vadd.f32 %v4545_v27, %v10599_v34  ;;  %v7049_v45 = vpop.f32.mrf.mxu1  ;;  %v5091_v16 = vadd.f32 %v4542_v25, %v12076_v51  ;;  %v5505_v3 = vadd.f32 %v5289_v21, %v10948_v63  ;;  %v5090_v43 = vadd.f32 %v4540_v11, %v12079_v23 }
 0x4b4   : > { %v5080_v49 = vadd.f32 %v4848_v10, %v12077_v17  ;;  %v4547_v62 = vpop.f32.mrf.mxu0  ;;  %v4869_v6 = vadd.f32 %v7049_v45, %v10630_v52  ;;  %5491 = vadd.xlane.f32.xlu1 %v5490_v13  ;;  %v5296_v37 = vmul.f32 %v10637_v48, %v5086_v4  ;;  %v5517_v29 = vadd.f32 %v5298_v31, %v5297_v2  ;;  %v12084_v31 = vld [vmem:[#allocation120_spill] sm:$0xff]  ;;  %v12085_v45 = vld [vmem:[#allocation89_spill] sm:$0xff]  ;;  %v12086_v2 = vld [vmem:[#allocation87_spill] sm:$0xff] }
 0x4b5   : > { %v5093_v42 = vadd.f32 %v4546_v14, %v12078_v41  ;;  %v4548_v46 = vadd.f32 %v4547_v62, %v10596_v44  ;;  %v4860_v18 = vpop.f32.mrf.mxu1  ;;  %v5301_v15 = vmul.f32 %v10614_v55, %v5091_v16  ;;  %v5502_v40 = vadd.f32 %v5501_v7, %v5287_v12  ;;  %v12087_v7 = vld [vmem:[#allocation130_spill] sm:$0xff] }
 0x4b6   : > { %v4549_v1 = vpop.f32.mrf.mxu0  ;;  %v4861_v26 = vadd.f32 %v4860_v18, %v10630_v52  ;;  %5511 = vadd.xlane.f32.xlu0 %v5510_v54  ;;  %v5514_v33 = vadd.f32 %v5513_v39, %v5296_v37  ;;  %v5290_v38 = vmul.f32 %v10637_v48, %v5080_v49  ;;  %v5095_v22 = vadd.f32 %v4869_v6, %v12081_v5 }
 0x4b7   : > { %v5094_v0 = vadd.f32 %v4548_v46, %v12080_v19  ;;  %v4550_v57 = vadd.f32 %v4549_v1, %v10599_v34  ;;  %v7050_v28 = vpop.f32.mrf.mxu1  ;;  %v5303_v25 = vmul.f32 %v10618_v50, %v5093_v42  ;;  %v5300_v39 = vmul.f32 %v10618_v50, %v5090_v43  ;;  %v12088_v43 = vld [vmem:[#allocation133_spill] sm:$0xff] }
 0x4b8   : > { %v5089_v35 = vadd.f32 %v4861_v26, %v12082_v61  ;;  %v4551_v56 = vpop.f32.mrf.mxu0  ;;  %5515 = vadd.xlane.f32.xlu1 %v5514_v33  ;;  %v4872_v11 = vadd.f32 %v7050_v28, %v10630_v52  ;;  %v5506_v10 = vadd.f32 %v5505_v3, %v5290_v38  ;;  %v5305_v18 = vmul.f32 %v10637_v48, %v5095_v22 }
 0x4b9   : > { %v5304_v63 = vmul.f32 %v10614_v55, %v5094_v0  ;;  %v4552_v21 = vadd.f32 %v4551_v56, %v10596_v44  ;;  %v4863_v24 = vpop.f32.mrf.mxu1  ;;  %v5096_v32 = vadd.f32 %v4550_v57, %v12083_v53  ;;  %v5521_v6 = vadd.f32 %v5301_v15, %v5300_v39 }
 0x4ba   : > { %v4555_v4 = vpop.f32.mrf.mxu0  ;;  %v4864_v27 = vadd.f32 %v4863_v24, %v10630_v52  ;;  %5503 = vadd.xlane.f32.xlu0 %v5502_v40  ;;  %v5299_v13 = vmul.f32 %v10637_v48, %v5089_v35  ;;  %v5098_v41 = vadd.f32 %v4872_v11, %v12086_v2  ;;  %v12089_v35 = vld [vmem:[#allocation128_spill] sm:$0xff]  ;;  %v12090_v24 = vld [vmem:[#allocation141_spill] sm:$0xff] }
 0x4bb   : > { %v5097_v14 = vadd.f32 %v4552_v21, %v12084_v31  ;;  %v5525_v16 = vadd.f32 %v5304_v63, %v5303_v25  ;;  %v4556_v49 = vadd.f32 %v4555_v4, %v10599_v34  ;;  %v5306_v37 = vmul.f32 %v10618_v50, %v5096_v32  ;;  %v12091_v4 = vld [vmem:[#allocation131_spill] sm:$0xff] }
 0x4bc   : > { %v5092_v54 = vadd.f32 %v4864_v27, %v12085_v45  ;;  %v4557_v12 = vpop.f32.mrf.mxu0  ;;  %5507 = vadd.xlane.f32.xlu1 %v5506_v10  ;;  %v5518_v51 = vadd.f32 %v5517_v29, %v5299_v13  ;;  %v5308_v15 = vmul.f32 %v10637_v48, %v5098_v41  ;;  %v12092_v10 = vld [vmem:[#allocation100_spill] sm:$0xff] }
 0x4bd   : > { %v5307_v17 = vmul.f32 %v10614_v55, %v5097_v14  ;;  %v4558_v62 = vadd.f32 %v4557_v12, %v10596_v44  ;;  %v5526_v3 = vadd.f32 %v5525_v16, %v5305_v18  ;;  %v5099_v19 = vadd.f32 %v4556_v49, %v12088_v43  ;;  %v12093_v14 = vld [vmem:[#allocation103_spill] sm:$0xff] }
 0x4be   : > { %v4559_v42 = vpop.f32.mrf.mxu0  ;;  %5519 = vadd.xlane.f32.xlu0 %v5518_v51  ;;  %v5302_v46 = vmul.f32 %v10637_v48, %v5092_v54  ;;  %v12094_v54 = vld [vmem:[#allocation134_spill] sm:$0xff] }
 0x4bf   : > { %v5100_v1 = vadd.f32 %v4558_v62, %v12087_v7  ;;  %v5529_v23 = vadd.f32 %v5307_v17, %v5306_v37  ;;  %v4560_v57 = vadd.f32 %v4559_v42, %v10599_v34  ;;  %v5309_v11 = vmul.f32 %v10618_v50, %v5099_v19  ;;  %v12095_v42 = vld [vmem:[#allocation138_spill] sm:$0xff] }
 0x4c0   : > { %v4561_v26 = vpop.f32.mrf.mxu0  ;;  %v7053_v33 = vpop.f32.mrf.mxu1  ;;  %v5522_v38 = vadd.f32 %v5521_v6, %v5302_v46 }
 0x4c1   : > { %v4562_v0 = vadd.f32 %v4561_v26, %v10596_v44  ;;  %v5310_v5 = vmul.f32 %v10614_v55, %v5100_v1  ;;  %v4885_v22 = vadd.f32 %v7053_v33, %v10630_v52  ;;  %v5530_v21 = vadd.f32 %v5529_v23, %v5308_v15  ;;  %v12096_v1 = vld [vmem:[#allocation101_spill] sm:$0xff] }
 0x4c2   : > { %v4565_v28 = vpop.f32.mrf.mxu0  ;;  %v4876_v29 = vpop.f32.mrf.mxu1  ;;  %5523 = vadd.xlane.f32.xlu1 %v5522_v38  ;;  %5527 = vadd.xlane.f32.xlu0 %v5526_v3  ;;  %v5102_v27 = vadd.f32 %v4560_v57, %v12091_v4  ;;  %v12097_v3 = vld [vmem:[#allocation132_spill] sm:$0xff]  ;;  %v12100_v4 = vld [vmem:[#allocation145_spill] sm:$0xff] }
 0x4c3   : > { %v4566_v61 = vadd.f32 %v4565_v28, %v10599_v34  ;;  %v5103_v56 = vadd.f32 %v4562_v0, %v12089_v35  ;;  %v4877_v40 = vadd.f32 %v4876_v29, %v10630_v52  ;;  %v5107_v45 = vadd.f32 %v4885_v22, %v12093_v14  ;;  %v12098_v0 = vld [vmem:[#allocation99_spill] sm:$0xff] }
 0x4c4   : > { %v4567_v25 = vpop.f32.mrf.mxu0  ;;  %v7054_v63 = vpop.f32.mrf.mxu1  ;;  %v5533_v16 = vadd.f32 %v5310_v5, %v5309_v11  ;;  %v5312_v7 = vmul.f32 %v10618_v50, %v5102_v27 }
 0x4c5   : > { %v5105_v53 = vadd.f32 %v4566_v61, %v12090_v24  ;;  %v4568_v32 = vadd.f32 %v4567_v25, %v10596_v44  ;;  %v5101_v13 = vadd.f32 %v4877_v40, %v12092_v10  ;;  %v5313_v17 = vmul.f32 %v10614_v55, %v5103_v56 }
 0x4c6   : > { %v4569_v39 = vpop.f32.mrf.mxu0  ;;  %v4879_v31 = vpop.f32.mrf.mxu1  ;;  %5531 = vadd.xlane.f32.xlu1 %v5530_v21  ;;  %v4888_v49 = vadd.f32 %v7054_v63, %v10630_v52  ;;  %v5317_v43 = vmul.f32 %v10637_v48, %v5107_v45  ;;  %v12099_v63 = vld [vmem:[#allocation142_spill] sm:$0xff] }
 0x4c7   : > { %v5106_v12 = vadd.f32 %v4568_v32, %v12094_v54  ;;  %v4570_v51 = vadd.f32 %v4569_v39, %v10599_v34  ;;  %v4880_v62 = vadd.f32 %v4879_v31, %v10630_v52  ;;  %v5311_v37 = vmul.f32 %v10637_v48, %v5101_v13 }
 0x4c8   : > { %v4571_v6 = vpop.f32.mrf.mxu0  ;;  %v5315_v2 = vmul.f32 %v10618_v50, %v5105_v53  ;;  %v5110_v57 = vadd.f32 %v4888_v49, %v12098_v0  ;;  %v5537_v5 = vadd.f32 %v5313_v17, %v5312_v7 }
 0x4c9   : > { %v5316_v41 = vmul.f32 %v10614_v55, %v5106_v12  ;;  %v5108_v46 = vadd.f32 %v4570_v51, %v12095_v42  ;;  %v4572_v18 = vadd.f32 %v4571_v6, %v10596_v44  ;;  %v5104_v26 = vadd.f32 %v4880_v62, %v12096_v1  ;;  %v12101_v51 = vld [vmem:[#allocation140_spill] sm:$0xff]  ;;  %v12103_v42 = vld [vmem:[#allocation143_spill] sm:$0xff] }
 0x4ca   : > { %v4575_v33 = vpop.f32.mrf.mxu0  ;;  %v5534_v38 = vadd.f32 %v5533_v16, %v5311_v37  ;;  %v5320_v32 = vmul.f32 %v10637_v48, %v5110_v57  ;;  %v12102_v37 = vld [vmem:[#allocation153_spill] sm:$0xff] }
 0x4cb   : > { %v5109_v23 = vadd.f32 %v4572_v18, %v12097_v3  ;;  %v5541_v19 = vadd.f32 %v5316_v41, %v5315_v2  ;;  %v5318_v28 = vmul.f32 %v10618_v50, %v5108_v46  ;;  %v5314_v15 = vmul.f32 %v10637_v48, %v5104_v26  ;;  %v12104_v18 = vld [vmem:[#allocation112_spill] sm:$0xff]  ;;  %v12106_v3 = vld [vmem:[#allocation146_spill] sm:$0xff] }
 0x4cc   : > { %v4577_v29 = vpop.f32.mrf.mxu0  ;;  %5535 = vadd.xlane.f32.xlu0 %v5534_v38  ;;  %v4576_v61 = vadd.f32 %v4575_v33, %v10599_v34  ;;  %v12105_v33 = vld [vmem:[#allocation115_spill] sm:$0xff] }
 0x4cd   : > { %v5319_v22 = vmul.f32 %v10614_v55, %v5109_v23  ;;  %v4578_v35 = vadd.f32 %v4577_v29, %v10596_v44  ;;  %v5542_v56 = vadd.f32 %v5541_v19, %v5317_v43  ;;  %v5538_v25 = vadd.f32 %v5537_v5, %v5314_v15 }
 0x4ce   : > { %v4579_v40 = vpop.f32.mrf.mxu0  ;;  %v5111_v27 = vadd.f32 %v4576_v61, %v12100_v4  ;;  %v12107_v61 = vld [vmem:[#allocation150_spill] sm:$0xff] }
 0x4cf   : > { %v5112_v21 = vadd.f32 %v4578_v35, %v12099_v63  ;;  %v5545_v11 = vadd.f32 %v5319_v22, %v5318_v28  ;;  %5539 = vadd.xlane.f32.xlu1 %v5538_v25  ;;  %v4580_v13 = vadd.f32 %v4579_v40, %v10599_v34  ;;  %v12108_v25 = vld [vmem:[#allocation113_spill] sm:$0xff] }
 0x4d0   : > { %v4581_v24 = vpop.f32.mrf.mxu0  ;;  %5543 = vadd.xlane.f32.xlu0 %v5542_v56  ;;  %v7057_v53 = vpop.f32.mrf.mxu1  ;;  %v5321_v6 = vmul.f32 %v10618_v50, %v5111_v27  ;;  %v12110_v27 = vld [vmem:[#allocation111_spill] sm:$0xff] }
 0x4d1   : > { %v4582_v10 = vadd.f32 %v4581_v24, %v10596_v44  ;;  %v5546_v14 = vadd.f32 %v5545_v11, %v5320_v32  ;;  %v5322_v45 = vmul.f32 %v10614_v55, %v5112_v21  ;;  %v4901_v54 = vadd.f32 %v7057_v53, %v10630_v52  ;;  %v12109_v24 = vld [vmem:[#allocation144_spill] sm:$0xff] }
 0x4d2   : > { %v4585_v39 = vpop.f32.mrf.mxu0  ;;  %v4892_v31 = vpop.f32.mrf.mxu1  ;;  %v5114_v46 = vadd.f32 %v4580_v13, %v12103_v42  ;;  %v12112_v42 = vld [vmem:[#allocation157_spill] sm:$0xff] }
 0x4d3   : > { %v4586_v12 = vadd.f32 %v4585_v39, %v10599_v34  ;;  %v5115_v16 = vadd.f32 %v4582_v10, %v12101_v51  ;;  %v4893_v17 = vadd.f32 %v4892_v31, %v10630_v52  ;;  %5547 = vadd.xlane.f32.xlu1 %v5546_v14  ;;  %v5119_v38 = vadd.f32 %v4901_v54, %v12105_v33 }
 0x4d4   : > { %v4587_v49 = vpop.f32.mrf.mxu0  ;;  %v7058_v62 = vpop.f32.mrf.mxu1  ;;  %v5549_v19 = vadd.f32 %v5322_v45, %v5321_v6  ;;  %v5324_v40 = vmul.f32 %v10618_v50, %v5114_v46 }
 0x4d5   : > { %v5117_v2 = vadd.f32 %v4586_v12, %v12102_v37  ;;  %v4588_v41 = vadd.f32 %v4587_v49, %v10596_v44  ;;  %v5113_v7 = vadd.f32 %v4893_v17, %v12104_v18  ;;  %v5325_v0 = vmul.f32 %v10614_v55, %v5115_v16  ;;  %v12111_v49 = vld [vmem:[#allocation154_spill] sm:$0xff] }
 0x4d6   : > { %v4589_v1 = vpop.f32.mrf.mxu0  ;;  %v4895_v26 = vpop.f32.mrf.mxu1  ;;  %v4904_v57 = vadd.f32 %v7058_v62, %v10630_v52  ;;  %v5329_v32 = vmul.f32 %v10637_v48, %v5119_v38 }
 0x4d7   : > { %v5118_v23 = vadd.f32 %v4588_v41, %v12106_v3  ;;  %v4590_v43 = vadd.f32 %v4589_v1, %v10599_v34  ;;  %v4896_v28 = vadd.f32 %v4895_v26, %v10630_v52  ;;  %v5323_v15 = vmul.f32 %v10637_v48, %v5113_v7 }
 0x4d8   : > { %v4591_v29 = vpop.f32.mrf.mxu0  ;;  %v5327_v5 = vmul.f32 %v10618_v50, %v5117_v2  ;;  %v5122_v10 = vadd.f32 %v4904_v57, %v12110_v27  ;;  %v5553_v14 = vadd.f32 %v5325_v0, %v5324_v40 }
 0x4d9   : > { %v5328_v22 = vmul.f32 %v10614_v55, %v5118_v23  ;;  %v5120_v35 = vadd.f32 %v4590_v43, %v12107_v61  ;;  %v4592_v56 = vadd.f32 %v4591_v29, %v10596_v44  ;;  %v5116_v63 = vadd.f32 %v4896_v28, %v12108_v25  ;;  %v12113_v43 = vld [vmem:[#allocation152_spill] sm:$0xff]  ;;  %v12115_v61 = vld [vmem:[#allocation155_spill] sm:$0xff] }
 0x4da   : > { %v4595_v21 = vpop.f32.mrf.mxu0  ;;  %v5550_v11 = vadd.f32 %v5549_v19, %v5323_v15  ;;  %v5332_v41 = vmul.f32 %v10637_v48, %v5122_v10  ;;  %v12114_v15 = vld [vmem:[#allocation165_spill] sm:$0xff] }
 0x4db   : > { %v5121_v53 = vadd.f32 %v4592_v56, %v12109_v24  ;;  %v5557_v4 = vadd.f32 %v5328_v22, %v5327_v5  ;;  %v5330_v13 = vmul.f32 %v10618_v50, %v5120_v35  ;;  %v5326_v31 = vmul.f32 %v10637_v48, %v5116_v63  ;;  %v12116_v56 = vld [vmem:[#allocation124_spill] sm:$0xff]  ;;  %v12118_v24 = vld [vmem:[#allocation158_spill] sm:$0xff] }
 0x4dc   : > { %v4597_v39 = vpop.f32.mrf.mxu0  ;;  %5551 = vadd.xlane.f32.xlu0 %v5550_v11  ;;  %v4596_v54 = vadd.f32 %v4595_v21, %v10599_v34  ;;  %v12117_v21 = vld [vmem:[#allocation127_spill] sm:$0xff] }
 0x4dd   : > { %v5331_v45 = vmul.f32 %v10614_v55, %v5121_v53  ;;  %v4598_v12 = vadd.f32 %v4597_v39, %v10596_v44  ;;  %v5558_v51 = vadd.f32 %v5557_v4, %v5329_v32  ;;  %v5554_v17 = vadd.f32 %v5553_v14, %v5326_v31 }
 0x4de   : > { %v4599_v16 = vpop.f32.mrf.mxu0  ;;  %v5123_v46 = vadd.f32 %v4596_v54, %v12112_v42  ;;  %v12119_v54 = vld [vmem:[#allocation162_spill] sm:$0xff] }
 0x4df   : > { %v5124_v62 = vadd.f32 %v4598_v12, %v12111_v49  ;;  %v5561_v6 = vadd.f32 %v5331_v45, %v5330_v13  ;;  %5555 = vadd.xlane.f32.xlu1 %v5554_v17  ;;  %v4600_v7 = vadd.f32 %v4599_v16, %v10599_v34  ;;  %v12120_v17 = vld [vmem:[#allocation125_spill] sm:$0xff] }
 0x4e0   : > { %v4601_v37 = vpop.f32.mrf.mxu0  ;;  %5559 = vadd.xlane.f32.xlu0 %v5558_v51  ;;  %v7061_v2 = vpop.f32.mrf.mxu1  ;;  %v5333_v29 = vmul.f32 %v10618_v50, %v5123_v46  ;;  %v12122_v46 = vld [vmem:[#allocation123_spill] sm:$0xff] }
 0x4e1   : > { %v4602_v18 = vadd.f32 %v4601_v37, %v10596_v44  ;;  %v5562_v33 = vadd.f32 %v5561_v6, %v5332_v41  ;;  %v5334_v38 = vmul.f32 %v10614_v55, %v5124_v62  ;;  %v4917_v3 = vadd.f32 %v7061_v2, %v10630_v52  ;;  %v12121_v37 = vld [vmem:[#allocation156_spill] sm:$0xff] }
 0x4e2   : > { %v4605_v1 = vpop.f32.mrf.mxu0  ;;  %v4908_v26 = vpop.f32.mrf.mxu1  ;;  %v5126_v35 = vadd.f32 %v4600_v7, %v12115_v61  ;;  %v12124_v61 = vld [vmem:[#allocation169_spill] sm:$0xff] }
 0x4e3   : > { %v4606_v23 = vadd.f32 %v4605_v1, %v10599_v34  ;;  %v5127_v19 = vadd.f32 %v4602_v18, %v12113_v43  ;;  %v4909_v0 = vadd.f32 %v4908_v26, %v10630_v52  ;;  %5563 = vadd.xlane.f32.xlu1 %v5562_v33  ;;  %v5131_v11 = vadd.f32 %v4917_v3, %v12117_v21 }
 0x4e4   : > { %v4607_v57 = vpop.f32.mrf.mxu0  ;;  %v7062_v28 = vpop.f32.mrf.mxu1  ;;  %v5565_v4 = vadd.f32 %v5334_v38, %v5333_v29  ;;  %v5336_v16 = vmul.f32 %v10618_v50, %v5126_v35 }
 0x4e5   : > { %v5129_v5 = vadd.f32 %v4606_v23, %v12114_v15  ;;  %v4608_v22 = vadd.f32 %v4607_v57, %v10596_v44  ;;  %v5125_v40 = vadd.f32 %v4909_v0, %v12116_v56  ;;  %v5337_v27 = vmul.f32 %v10614_v55, %v5127_v19  ;;  %v12123_v57 = vld [vmem:[#allocation166_spill] sm:$0xff] }
 0x4e6   : > { %v4609_v25 = vpop.f32.mrf.mxu0  ;;  %v4911_v63 = vpop.f32.mrf.mxu1  ;;  %v4920_v10 = vadd.f32 %v7062_v28, %v10630_v52  ;;  %v5341_v41 = vmul.f32 %v10637_v48, %v5131_v11 }
 0x4e7   : > { %v5130_v53 = vadd.f32 %v4608_v22, %v12118_v24  ;;  %v4610_v32 = vadd.f32 %v4609_v25, %v10599_v34  ;;  %v4912_v13 = vadd.f32 %v4911_v63, %v10630_v52  ;;  %v5335_v31 = vmul.f32 %v10637_v48, %v5125_v40 }
 0x4e8   : > { %v4611_v39 = vpop.f32.mrf.mxu0  ;;  %v5339_v14 = vmul.f32 %v10618_v50, %v5129_v5  ;;  %v5134_v18 = vadd.f32 %v4920_v10, %v12122_v46  ;;  %v5569_v33 = vadd.f32 %v5337_v27, %v5336_v16 }
 0x4e9   : > { %v5340_v45 = vmul.f32 %v10614_v55, %v5130_v53  ;;  %v5132_v12 = vadd.f32 %v4610_v32, %v12119_v54  ;;  %v4612_v51 = vadd.f32 %v4611_v39, %v10596_v44  ;;  %v5128_v49 = vadd.f32 %v4912_v13, %v12120_v17  ;;  %v12125_v32 = vld [vmem:[#allocation164_spill] sm:$0xff]  ;;  %v12127_v54 = vld [vmem:[#allocation167_spill] sm:$0xff] }
 0x4ea   : > { %v4615_v62 = vpop.f32.mrf.mxu0  ;;  %v5566_v6 = vadd.f32 %v5565_v4, %v5335_v31  ;;  %v5344_v22 = vmul.f32 %v10637_v48, %v5134_v18  ;;  %v12126_v31 = vld [vmem:[#allocation173_spill] sm:$0xff] }
 0x4eb   : > { %v5133_v2 = vadd.f32 %v4612_v51, %v12121_v37  ;;  %v5573_v42 = vadd.f32 %v5340_v45, %v5339_v14  ;;  %v5342_v7 = vmul.f32 %v10618_v50, %v5132_v12  ;;  %v5338_v26 = vmul.f32 %v10637_v48, %v5128_v49  ;;  %v12128_v51 = vld [vmem:[#allocation136_spill] sm:$0xff]  ;;  %v12130_v37 = vld [vmem:[#allocation170_spill] sm:$0xff] }
 0x4ec   : > { %v4617_v1 = vpop.f32.mrf.mxu0  ;;  %5567 = vadd.xlane.f32.xlu0 %v5566_v6  ;;  %v4616_v3 = vadd.f32 %v4615_v62, %v10599_v34  ;;  %v12129_v62 = vld [vmem:[#allocation139_spill] sm:$0xff] }
 0x4ed   : > { %v5343_v38 = vmul.f32 %v10614_v55, %v5133_v2  ;;  %v4618_v23 = vadd.f32 %v4617_v1, %v10596_v44  ;;  %v5574_v43 = vadd.f32 %v5573_v42, %v5341_v41  ;;  %v5570_v0 = vadd.f32 %v5569_v33, %v5338_v26 }
 0x4ee   : > { %v4619_v19 = vpop.f32.mrf.mxu0  ;;  %v5135_v35 = vadd.f32 %v4616_v3, %v12124_v61  ;;  %v12131_v3 = vld [vmem:[#allocation171_spill] sm:$0xff] }
 0x4ef   : > { %v5136_v28 = vadd.f32 %v4618_v23, %v12123_v57  ;;  %v5577_v29 = vadd.f32 %v5343_v38, %v5342_v7  ;;  %5571 = vadd.xlane.f32.xlu1 %v5570_v0  ;;  %v4620_v40 = vadd.f32 %v4619_v19, %v10599_v34  ;;  %v12132_v0 = vld [vmem:[#allocation137_spill] sm:$0xff] }
 0x4f0   : > { %v4621_v15 = vpop.f32.mrf.mxu0  ;;  %5575 = vadd.xlane.f32.xlu0 %v5574_v43  ;;  %v7065_v5 = vpop.f32.mrf.mxu1  ;;  %v5345_v39 = vmul.f32 %v10618_v50, %v5135_v35  ;;  %v12134_v35 = vld [vmem:[#allocation135_spill] sm:$0xff] }
 0x4f1   : > { %v4622_v56 = vadd.f32 %v4621_v15, %v10596_v44  ;;  %v5578_v21 = vadd.f32 %v5577_v29, %v5344_v22  ;;  %v5346_v11 = vmul.f32 %v10614_v55, %v5136_v28  ;;  %v4933_v24 = vadd.f32 %v7065_v5, %v10630_v52  ;;  %v12133_v15 = vld [vmem:[#allocation168_spill] sm:$0xff] }
 0x4f2   : > { %v4625_v25 = vpop.f32.mrf.mxu0  ;;  %v4924_v63 = vpop.f32.mrf.mxu1  ;;  %v5138_v12 = vadd.f32 %v4620_v40, %v12127_v54  ;;  %v12136_v54 = vld [vmem:[#allocation177_spill] sm:$0xff] }
 0x4f3   : > { %v4626_v53 = vadd.f32 %v4625_v25, %v10599_v34  ;;  %v5139_v4 = vadd.f32 %v4622_v56, %v12125_v32  ;;  %v4925_v27 = vadd.f32 %v4924_v63, %v10630_v52  ;;  %5579 = vadd.xlane.f32.xlu1 %v5578_v21  ;;  %v5143_v6 = vadd.f32 %v4933_v24, %v12129_v62 }
 0x4f4   : > { %v4627_v10 = vpop.f32.mrf.mxu0  ;;  %v7066_v13 = vpop.f32.mrf.mxu1  ;;  %v5581_v42 = vadd.f32 %v5346_v11, %v5345_v39  ;;  %v5348_v19 = vmul.f32 %v10618_v50, %v5138_v12 }
 0x4f5   : > { %v5141_v14 = vadd.f32 %v4626_v53, %v12126_v31  ;;  %v4628_v45 = vadd.f32 %v4627_v10, %v10596_v44  ;;  %v5137_v16 = vadd.f32 %v4925_v27, %v12128_v51  ;;  %v5349_v46 = vmul.f32 %v10614_v55, %v5139_v4  ;;  %v12135_v10 = vld [vmem:[#allocation174_spill] sm:$0xff] }
 0x4f6   : > { %v4629_v17 = vpop.f32.mrf.mxu0  ;;  %v4927_v49 = vpop.f32.mrf.mxu1  ;;  %v4936_v18 = vadd.f32 %v7066_v13, %v10630_v52  ;;  %v5353_v22 = vmul.f32 %v10637_v48, %v5143_v6 }
 0x4f7   : > { %v5142_v2 = vadd.f32 %v4628_v45, %v12130_v37  ;;  %v4630_v41 = vadd.f32 %v4629_v17, %v10599_v34  ;;  %v4928_v7 = vadd.f32 %v4927_v49, %v10630_v52  ;;  %v5347_v26 = vmul.f32 %v10637_v48, %v5137_v16 }
 0x4f8   : > { %v4631_v1 = vpop.f32.mrf.mxu0  ;;  %v5351_v33 = vmul.f32 %v10618_v50, %v5141_v14  ;;  %v5146_v56 = vadd.f32 %v4936_v18, %v12134_v35  ;;  %v5585_v21 = vadd.f32 %v5349_v46, %v5348_v19 }
 0x4f9   : > { %v5352_v38 = vmul.f32 %v10614_v55, %v5142_v2  ;;  %v5144_v23 = vadd.f32 %v4630_v41, %v12131_v3  ;;  %v4632_v43 = vadd.f32 %v4631_v1, %v10596_v44  ;;  %v5140_v57 = vadd.f32 %v4928_v7, %v12132_v0  ;;  %v12137_v41 = vld [vmem:[#allocation172_spill] sm:$0xff]  ;;  %v12139_v3 = vld [vmem:[#allocation175_spill] sm:$0xff] }
 0x4fa   : > { %v4635_v28 = vpop.f32.mrf.mxu0  ;;  %v5582_v29 = vadd.f32 %v5581_v42, %v5347_v26  ;;  %v5356_v45 = vmul.f32 %v10637_v48, %v5146_v56  ;;  %v12138_v26 = vld [vmem:[#allocation181_spill] sm:$0xff] }
 0x4fb   : > { %v5145_v5 = vadd.f32 %v4632_v43, %v12133_v15  ;;  %v5589_v61 = vadd.f32 %v5352_v38, %v5351_v33  ;;  %v5354_v40 = vmul.f32 %v10618_v50, %v5144_v23  ;;  %v5350_v63 = vmul.f32 %v10637_v48, %v5140_v57  ;;  %v12140_v43 = vld [vmem:[#allocation148_spill] sm:$0xff]  ;;  %v12142_v15 = vld [vmem:[#allocation178_spill] sm:$0xff] }
 0x4fc   : > { %v4637_v25 = vpop.f32.mrf.mxu0  ;;  %5583 = vadd.xlane.f32.xlu0 %v5582_v29  ;;  %v4636_v24 = vadd.f32 %v4635_v28, %v10599_v34  ;;  %v12141_v28 = vld [vmem:[#allocation151_spill] sm:$0xff] }
 0x4fd   : > { %v5355_v11 = vmul.f32 %v10614_v55, %v5145_v5  ;;  %v4638_v53 = vadd.f32 %v4637_v25, %v10596_v44  ;;  %v5590_v32 = vadd.f32 %v5589_v61, %v5353_v22  ;;  %v5586_v27 = vadd.f32 %v5585_v21, %v5350_v63 }
 0x4fe   : > { %v4639_v4 = vpop.f32.mrf.mxu0  ;;  %v5147_v12 = vadd.f32 %v4636_v24, %v12136_v54  ;;  %v12143_v24 = vld [vmem:[#allocation179_spill] sm:$0xff]  ;;  %v11196_v54 = vld [vmem:[#allocation2] ss:$0 sm:$0xff] }
 0x4ff   : > { %v5148_v13 = vadd.f32 %v4638_v53, %v12135_v10  ;;  %v5593_v39 = vadd.f32 %v5355_v11, %v5354_v40  ;;  %5587 = vadd.xlane.f32.xlu1 %v5586_v27  ;;  %v4640_v16 = vadd.f32 %v4639_v4, %v10599_v34  ;;  %v12144_v27 = vld [vmem:[#allocation149_spill] sm:$0xff] }
 0x500   : > { %v4641_v31 = vpop.f32.mrf.mxu0  ;;  %5591 = vadd.xlane.f32.xlu0 %v5590_v32  ;;  %v7069_v14 = vpop.f32.mrf.mxu1  ;;  %v5357_v1 = vmul.f32 %v10618_v50, %v5147_v12 }
 0x501   : > { %v4642_v51 = vadd.f32 %v4641_v31, %v10596_v44  ;;  %v5594_v62 = vadd.f32 %v5593_v39, %v5356_v45  ;;  %v5358_v6 = vmul.f32 %v10614_v55, %v5148_v13  ;;  %v4949_v37 = vadd.f32 %v7069_v14, %v10630_v52  ;;  %v12145_v31 = vld [vmem:[#allocation176_spill] sm:$0xff] }
 0x502   : > { %v4645_v17 = vpop.f32.mrf.mxu0  ;;  %v4940_v49 = vpop.f32.mrf.mxu1  ;;  %v5150_v23 = vadd.f32 %v4640_v16, %v12139_v3  ;;  %v12146_v16 = vld [vmem:[#allocation147_spill] sm:$0xff] }
 0x503   : > { %v4646_v2 = vadd.f32 %v4645_v17, %v10599_v34  ;;  %v5151_v42 = vadd.f32 %v4642_v51, %v12137_v41  ;;  %v4941_v46 = vadd.f32 %v4940_v49, %v10630_v52  ;;  %5595 = vadd.xlane.f32.xlu1 %v5594_v62  ;;  %v5155_v29 = vadd.f32 %v4949_v37, %v12141_v28 }
 0x504   : > { %v4647_v18 = vpop.f32.mrf.mxu0  ;;  %v7070_v7 = vpop.f32.mrf.mxu1  ;;  %v5597_v61 = vadd.f32 %v5358_v6, %v5357_v1  ;;  %v5360_v4 = vmul.f32 %v10618_v50, %v5150_v23 }
 0x505   : > { %v5153_v33 = vadd.f32 %v4646_v2, %v12138_v26  ;;  %v4648_v38 = vadd.f32 %v4647_v18, %v10596_v44  ;;  %v5149_v19 = vadd.f32 %v4941_v46, %v12140_v43  ;;  %v5361_v35 = vmul.f32 %v10614_v55, %v5151_v42 }
 0x506   : > { %v4649_v0 = vpop.f32.mrf.mxu0  ;;  %v4943_v57 = vpop.f32.mrf.mxu1  ;;  %v4952_v56 = vadd.f32 %v7070_v7, %v10630_v52  ;;  %v5365_v12 = vmul.f32 %v10637_v48, %v5155_v29 }
 0x507   : > { %v5154_v5 = vadd.f32 %v4648_v38, %v12142_v15  ;;  %v4650_v22 = vadd.f32 %v4649_v0, %v10599_v34  ;;  %v4944_v40 = vadd.f32 %v4943_v57, %v10630_v52  ;;  %v5359_v63 = vmul.f32 %v10637_v48, %v5149_v19 }
 0x508   : > { %v4651_v25 = vpop.f32.mrf.mxu0  ;;  %v5363_v21 = vmul.f32 %v10618_v50, %v5153_v33  ;;  %v5158_v17 = vadd.f32 %v4952_v56, %v12146_v16  ;;  %v5601_v37 = vadd.f32 %v5361_v35, %v5360_v4  ;;  %v12147_v33 = vld [vmem:[#allocation182_spill] sm:$0xff]  ;;  %v12149_v4 = vld [vmem:[#allocation163_spill] sm:$0xff] }
 0x509   : > { %v5364_v11 = vmul.f32 %v10614_v55, %v5154_v5  ;;  %v5156_v53 = vadd.f32 %v4650_v22, %v12143_v24  ;;  %v4652_v32 = vadd.f32 %v4651_v25, %v10596_v44  ;;  %v5152_v10 = vadd.f32 %v4944_v40, %v12144_v27 }
 0x50a   : > { %v4655_v13 = vpop.f32.mrf.mxu0  ;;  %v5598_v39 = vadd.f32 %v5597_v61, %v5359_v63  ;;  %v5368_v29 = vmul.f32 %v10637_v48, %v5158_v17 }
 0x50b   : > { %v5157_v14 = vadd.f32 %v4652_v32, %v12145_v31  ;;  %v4656_v45 = vadd.f32 %v4655_v13, %v10599_v34  ;;  %v5605_v51 = vadd.f32 %v5364_v11, %v5363_v21  ;;  %v5366_v49 = vmul.f32 %v10618_v50, %v5156_v53  ;;  %v12148_v53 = vld [vmem:[#allocation180_spill] sm:$0xff] }
 0x50c   : > { %v4657_v62 = vpop.f32.mrf.mxu0  ;;  %5599 = vadd.xlane.f32.xlu0 %v5598_v39  ;;  %v5362_v6 = vmul.f32 %v10637_v48, %v5152_v10 }
 0x50d   : > { %v5367_v2 = vmul.f32 %v10614_v55, %v5157_v14  ;;  %v5159_v41 = vadd.f32 %v4656_v45, %v10250_v60  ;;  %v4658_v42 = vadd.f32 %v4657_v62, %v10596_v44  ;;  %v5416_v46 = vpop.xlane.xlu1 %5415  ;;  %v5606_v18 = vadd.f32 %v5605_v51, %v5365_v12  ;;  %v12150_v62 = vld [vmem:[#allocation160_spill] sm:$0xff] }
 0x50e   : > { %v4659_v7 = vpop.f32.mrf.mxu0  ;;  %v5669_v1 = vadd.f32 %v11196_v54, %v5416_v46  ;;  %v5602_v26 = vadd.f32 %v5601_v37, %v5362_v6 }
 0x50f   : > { %v5160_v38 = vadd.f32 %v4658_v42, %v12147_v33  ;;  %v4660_v3 = vadd.f32 %v4659_v7, %v10599_v34  ;;  %v5408_v23 = vpop.xlane.xlu0 %5407  ;;  %v5609_v43 = vadd.f32 %v5367_v2, %v5366_v49  ;;  %v11209_v19 = vmul.f32 %v10618_v50, %v5159_v41 }
 0x510   : > { %v5733_v0 = vsub.f32 0.0, %v5669_v1  ;;  %v4661_v57 = vpop.f32.mrf.mxu0  ;;  %5603 = vadd.xlane.f32.xlu1 %v5602_v26  ;;  %5607 = vadd.xlane.f32.xlu0 %v5606_v18  ;;  %v5667_v60 = vadd.f32 %v11196_v54, %v5408_v23  ;;  %v7073_v28 = vpop.f32.mrf.mxu1  ;;  %v12151_v1 = vld [vmem:[#allocation159_spill] sm:$0xff] }
 0x511   : > { %v5370_v15 = vmul.f32 %v10614_v55, %v5160_v38  ;;  %v5162_v5 = vadd.f32 %v4660_v3, %v10244_v8  ;;  %v4662_v22 = vadd.f32 %v4661_v57, %v10596_v44  ;;  %v4965_v61 = vadd.f32 %v7073_v28, %v10630_v52  ;;  %v5420_v35 = vpop.xlane.xlu1 %5419 }
 0x512   : > { %v5799_v56 = vmul.f32 1.442695, %v5733_v0  ;;  %v5731_v40 = vsub.f32 0.0, %v5667_v60  ;;  %v4665_v25 = vpop.f32.mrf.mxu0  ;;  %v5670_v63 = vadd.f32 %v11196_v54, %v5420_v35  ;;  %v4956_v21 = vpop.f32.mrf.mxu1  ;;  %v5610_v11 = vadd.f32 %v5609_v43, %v5368_v29  ;;  %v12152_v60 = vld [vmem:[#allocation161_spill] sm:$0xff] }
 0x513   : > { %v5372_v24 = vmul.f32 %v10618_v50, %v5162_v5  ;;  %v5163_v32 = vadd.f32 %v4662_v22, %v12148_v53  ;;  %v5167_v27 = vadd.f32 %v4965_v61, %v12149_v4  ;;  %v4666_v8 = vadd.f32 %v4665_v25, %v10599_v34  ;;  %v5412_v10 = vpop.xlane.xlu0 %5411 }
 0x514   : > { %7383 = vpow2.f32 %v5799_v56  ;;  %v5795_v13 = vmul.f32 1.442695, %v5731_v40  ;;  %v5734_v39 = vsub.f32 0.0, %v5670_v63  ;;  %v4957_v31 = vadd.f32 %v4956_v21, %v10630_v52  ;;  %v4667_v14 = vpop.f32.mrf.mxu0  ;;  %5611 = vadd.xlane.f32.xlu1 %v5610_v11  ;;  %v7074_v45 = vpop.f32.mrf.mxu1 }
 0x515   : > { %v5373_v12 = vmul.f32 %v10614_v55, %v5163_v32  ;;  %v5165_v51 = vadd.f32 %v4666_v8, %v10281_v47  ;;  %v4668_v16 = vadd.f32 %v4667_v14, %v10596_v44  ;;  %v5668_v17 = vadd.f32 %v11196_v54, %v5412_v10 }
 0x516   : > { %7385 = vpow2.f32 %v5795_v13  ;;  %v5801_v49 = vmul.f32 1.442695, %v5734_v39  ;;  %v5161_v6 = vadd.f32 %v4957_v31, %v12150_v62  ;;  %v4968_v37 = vadd.f32 %v7074_v45, %v10630_v52  ;;  %v4669_v2 = vpop.f32.mrf.mxu0  ;;  %v4959_v41 = vpop.f32.mrf.mxu1 }
 0x517   : > { %v5375_v42 = vmul.f32 %v10618_v50, %v5165_v51  ;;  %v5166_v46 = vadd.f32 %v4668_v16, %v10252_v59  ;;  %v5732_v18 = vsub.f32 0.0, %v5668_v17  ;;  %v4670_v7 = vadd.f32 %v4669_v2, %v10599_v34  ;;  %v5432_v47 = vpop.xlane.xlu0 %5431 }
 0x518   : > { %7387 = vpow2.f32 %v5801_v49  ;;  %v5170_v26 = vadd.f32 %v4968_v37, %v12151_v1  ;;  %v4960_v33 = vadd.f32 %v4959_v41, %v10630_v52  ;;  %v4671_v38 = vpop.f32.mrf.mxu0  ;;  %v5673_v3 = vadd.f32 %v11196_v54, %v5432_v47 }
 0x519   : > { %v5376_v23 = vmul.f32 %v10614_v55, %v5166_v46  ;;  %v5797_v43 = vmul.f32 1.442695, %v5732_v18  ;;  %v5168_v0 = vadd.f32 %v4670_v7, %v10275_v36  ;;  %v4672_v57 = vadd.f32 %v4671_v38, %v10596_v44  ;;  %v5436_v59 = vpop.xlane.xlu1 %5435 }
 0x51a   : > { %v5164_v28 = vadd.f32 %v4960_v33, %v12152_v60  ;;  %v5737_v29 = vsub.f32 0.0, %v5673_v3  ;;  %v5674_v5 = vadd.f32 %v11196_v54, %v5436_v59  ;;  %v5371_v22 = vmul.f32 %v10637_v48, %v5161_v6 }
 0x51b   : > { %7389 = vpow2.f32 %v5797_v43  ;;  %v5378_v61 = vmul.f32 %v10618_v50, %v5168_v0  ;;  %v5169_v35 = vadd.f32 %v4672_v57, %v10248_v58  ;;  %v5613_v56 = vadd.f32 %v5370_v15, %v11209_v19  ;;  %v5424_v40 = vpop.xlane.xlu0 %5423 }
 0x51c   : > { %v5807_v25 = vmul.f32 1.442695, %v5737_v29  ;;  %v5738_v36 = vsub.f32 0.0, %v5674_v5  ;;  %v5671_v63 = vadd.f32 %v11196_v54, %v5424_v40  ;;  %v5374_v21 = vmul.f32 %v10637_v48, %v5164_v28 }
 0x51d   : > { %v5379_v11 = vmul.f32 %v10614_v55, %v5169_v35  ;;  %v5614_v53 = vadd.f32 %v5613_v56, %v5371_v22  ;;  %v5428_v32 = vpop.xlane.xlu1 %5427  ;;  %v5617_v4 = vadd.f32 %v5373_v12, %v5372_v24  ;;  %v5377_v8 = vmul.f32 %v10637_v48, %v5167_v27 }
 0x51e   : > { %7391 = vpow2.f32 %v5807_v25  ;;  %v5809_v10 = vmul.f32 1.442695, %v5738_v36  ;;  %v5735_v58 = vsub.f32 0.0, %v5671_v63  ;;  %v5672_v19 = vadd.f32 %v11196_v54, %v5428_v32 }
 0x51f   : > { %5615 = vadd.xlane.f32.xlu0 %v5614_v53  ;;  %v5618_v15 = vadd.f32 %v5617_v4, %v5374_v21  ;;  %v5621_v13 = vadd.f32 %v5376_v23, %v5375_v42  ;;  %v5448_v39 = vpop.xlane.xlu0 %5447  ;;  %v5380_v31 = vmul.f32 %v10637_v48, %v5170_v26  ;;  %v5625_v14 = vadd.f32 %v5379_v11, %v5378_v61 }
 0x520   : > { %7393 = vpow2.f32 %v5809_v10  ;;  %v5803_v45 = vmul.f32 1.442695, %v5735_v58  ;;  %v5736_v51 = vsub.f32 0.0, %v5672_v19  ;;  %v5677_v24 = vadd.f32 %v11196_v54, %v5448_v39 }
 0x521   : > { %v7384_v12 = vpop.eup %7383  ;;  %5619 = vadd.xlane.f32.xlu1 %v5618_v15  ;;  %v5622_v27 = vadd.f32 %v5621_v13, %v5377_v8  ;;  %v5452_v16 = vpop.xlane.xlu1 %5451  ;;  %v5626_v17 = vadd.f32 %v5625_v14, %v5380_v31 }
 0x522   : > { %v5925_v49 = vadd.f32 1.0, %v7384_v12  ;;  %7395 = vpow2.f32 %v5803_v45  ;;  %v5805_v62 = vmul.f32 1.442695, %v5736_v51  ;;  %v5741_v6 = vsub.f32 0.0, %v5677_v24 }
 0x523   : > { %v7386_v37 = vpop.eup %7385  ;;  %5623 = vadd.xlane.f32.xlu0 %v5622_v27  ;;  %v5678_v2 = vadd.f32 %v11196_v54, %v5452_v16  ;;  %v5440_v41 = vpop.xlane.xlu0 %5439 }
 0x524   : > { %7397 = vrcp.f32 %v5925_v49  ;;  %v5923_v42 = vadd.f32 1.0, %v7386_v37  ;;  %v5815_v46 = vmul.f32 1.442695, %v5741_v6  ;;  %v5675_v18 = vadd.f32 %v11196_v54, %v5440_v41 }
 0x525   : > { %v7388_v7 = vpop.eup %7387  ;;  %7399 = vpow2.f32 %v5805_v62  ;;  %v5742_v47 = vsub.f32 0.0, %v5678_v2  ;;  %5627 = vadd.xlane.f32.xlu1 %v5626_v17  ;;  %v5444_v1 = vpop.xlane.xlu1 %5443 }
 0x526   : > { %7401 = vrcp.f32 %v5923_v42  ;;  %v5926_v26 = vadd.f32 1.0, %v7388_v7  ;;  %v5739_v33 = vsub.f32 0.0, %v5675_v18  ;;  %v5676_v38 = vadd.f32 %v11196_v54, %v5444_v1 }
 0x527   : > { %7403 = vpow2.f32 %v5815_v46  ;;  %v5817_v3 = vmul.f32 1.442695, %v5742_v47  ;;  %v5464_v23 = vpop.xlane.xlu0 %5463 }
 0x528   : > { %v7390_v43 = vpop.eup %7389  ;;  %7405 = vrcp.f32 %v5926_v26  ;;  %v5811_v0 = vmul.f32 1.442695, %v5739_v33  ;;  %v5740_v57 = vsub.f32 0.0, %v5676_v38  ;;  %v5681_v59 = vadd.f32 %v11196_v54, %v5464_v23 }
 0x529   : > { %v5924_v60 = vadd.f32 1.0, %v7390_v43  ;;  %7407 = vpow2.f32 %v5817_v3  ;;  %v5468_v28 = vpop.xlane.xlu1 %5467 }
 0x52a   : > { %7409 = vpow2.f32 %v5811_v0  ;;  %v5813_v29 = vmul.f32 1.442695, %v5740_v57  ;;  %v5745_v5 = vsub.f32 0.0, %v5681_v59  ;;  %v5682_v22 = vadd.f32 %v11196_v54, %v5468_v28 }
 0x52b   : > { %v7392_v61 = vpop.eup %7391  ;;  %7411 = vrcp.f32 %v5924_v60  ;;  %v5456_v35 = vpop.xlane.xlu0 %5455 }
 0x52c   : > { %v5929_v56 = vadd.f32 1.0, %v7392_v61  ;;  %7413 = vpow2.f32 %v5813_v29  ;;  %v5823_v40 = vmul.f32 1.442695, %v5745_v5  ;;  %v5746_v25 = vsub.f32 0.0, %v5682_v22 }
 0x52d   : > { %v7394_v36 = vpop.eup %7393  ;;  %v5679_v63 = vadd.f32 %v11196_v54, %v5456_v35  ;;  %v5460_v21 = vpop.xlane.xlu1 %5459 }
 0x52e   : > { %7415 = vrcp.f32 %v5929_v56  ;;  %v5930_v11 = vadd.f32 1.0, %v7394_v36  ;;  %v5825_v53 = vmul.f32 1.442695, %v5746_v25  ;;  %v5680_v32 = vadd.f32 %v11196_v54, %v5460_v21 }
 0x52f   : > { %v7396_v4 = vpop.eup %7395  ;;  %7417 = vpow2.f32 %v5823_v40  ;;  %v5743_v8 = vsub.f32 0.0, %v5679_v63  ;;  %v5480_v10 = vpop.xlane.xlu0 %5479 }
 0x530   : > { %7419 = vrcp.f32 %v5930_v11  ;;  %v5927_v58 = vadd.f32 1.0, %v7396_v4  ;;  %v5744_v19 = vsub.f32 0.0, %v5680_v32  ;;  %v5685_v15 = vadd.f32 %v11196_v54, %v5480_v10 }
 0x531   : > { %v7398_v13 = vpop.eup %7397  ;;  %7421 = vpow2.f32 %v5825_v53  ;;  %v5819_v39 = vmul.f32 1.442695, %v5743_v8  ;;  %v5484_v31 = vpop.xlane.xlu1 %5483 }
 0x532   : > { %v7400_v14 = vpop.eup %7399  ;;  %6118 = vst.msk [vmem:[%s11272_s26 + $0x10] sm:$0xff] %vm6115_vm2, %v7398_v13  ;;  %7423 = vrcp.f32 %v5927_v58  ;;  %v5821_v45 = vmul.f32 1.442695, %v5744_v19  ;;  %v5749_v51 = vsub.f32 0.0, %v5685_v15  ;;  %v5686_v24 = vadd.f32 %v11196_v54, %v5484_v31  ;;  %v12154_v31 = vld [vmem:[#allocation198_spill] sm:$0xff] }
 0x533   : > { %v7402_v12 = vpop.eup %7401  ;;  %v5928_v27 = vadd.f32 1.0, %v7400_v14  ;;  %7425 = vpow2.f32 %v5819_v39  ;;  %v5472_v16 = vpop.xlane.xlu0 %5471 }
 0x534   : > { %v7404_v17 = vpop.eup %7403  ;;  %6116 = vst.msk [vmem:[%s11272_s26] sm:$0xff] %vm6115_vm2, %v7402_v12  ;;  %7427 = vpow2.f32 %v5821_v45  ;;  %v5831_v49 = vmul.f32 1.442695, %v5749_v51  ;;  %v5750_v62 = vsub.f32 0.0, %v5686_v24  ;;  %v5683_v6 = vadd.f32 %v11196_v54, %v5472_v16 }
 0x535   : > { %v7406_v37 = vpop.eup %7405  ;;  %7429 = vrcp.f32 %v5928_v27  ;;  %v5933_v2 = vadd.f32 1.0, %v7404_v17  ;;  %v5476_v41 = vpop.xlane.xlu1 %5475 }
 0x536   : > { %v7408_v42 = vpop.eup %7407  ;;  %6119 = vst.msk [vmem:[%s11272_s26 + $0x18] sm:$0xff] %vm6115_vm2, %v7406_v37  ;;  %7431 = vpow2.f32 %v5831_v49  ;;  %v5833_v46 = vmul.f32 1.442695, %v5750_v62  ;;  %v5747_v18 = vsub.f32 0.0, %v5683_v6  ;;  %v5684_v7 = vadd.f32 %v11196_v54, %v5476_v41 }
 0x537   : > { %v7410_v47 = vpop.eup %7409  ;;  %7433 = vrcp.f32 %v5933_v2  ;;  %v5934_v1 = vadd.f32 1.0, %v7408_v42  ;;  %v5496_v26 = vpop.xlane.xlu0 %5495 }
 0x538   : > { %v7412_v33 = vpop.eup %7411  ;;  %v5931_v38 = vadd.f32 1.0, %v7410_v47  ;;  %7435 = vpow2.f32 %v5833_v46  ;;  %v5827_v3 = vmul.f32 1.442695, %v5747_v18  ;;  %v5748_v23 = vsub.f32 0.0, %v5684_v7  ;;  %v4675_v43 = vpop.f32.mrf.mxu0  ;;  %v12155_v46 = vld [vmem:[#allocation184_spill] sm:$0xff]  ;;  %v12156_v7 = vld [vmem:[#allocation199_spill] sm:$0xff] }
 0x539   : > { %v7414_v0 = vpop.eup %7413  ;;  %6117 = vst.msk [vmem:[%s11272_s26 + $0x8] sm:$0xff] %vm6115_vm2, %v7412_v33  ;;  %7437 = vrcp.f32 %v5934_v1  ;;  %v5689_v57 = vadd.f32 %v11196_v54, %v5496_v26  ;;  %v4676_v59 = vadd.f32 %v4675_v43, %v10599_v34  ;;  %v7077_v60 = vpop.f32.mrf.mxu1 }
 0x53a   : > { %v5500_v28 = vpop.xlane.xlu1 %5499  ;;  %7439 = vrcp.f32 %v5931_v38  ;;  %v5932_v29 = vadd.f32 1.0, %v7414_v0  ;;  %v5829_v5 = vmul.f32 1.442695, %v5748_v23  ;;  %v4981_v22 = vadd.f32 %v7077_v60, %v10630_v52  ;;  %v4677_v61 = vpop.f32.mrf.mxu0 }
 0x53b   : > { %v7416_v35 = vpop.eup %7415  ;;  %7441 = vpow2.f32 %v5827_v3  ;;  %v5753_v56 = vsub.f32 0.0, %v5689_v57  ;;  %v5171_v40 = vadd.f32 %v4676_v59, %v10312_v20  ;;  %v5690_v25 = vadd.f32 %v11196_v54, %v5500_v28  ;;  %v4972_v36 = vpop.f32.mrf.mxu1 }
 0x53c   : > { %v5488_v63 = vpop.xlane.xlu0 %5487  ;;  %v7418_v21 = vpop.eup %7417  ;;  %6122 = vst.msk [vmem:[%s11272_s26 + $0x30] sm:$0xff] %vm6115_vm2, %v7416_v35  ;;  %7443 = vrcp.f32 %v5932_v29  ;;  %v11294_v11 = vadd.f32 %v4981_v22, %v10434_v9  ;;  %v4678_v53 = vadd.f32 %v4677_v61, %v10596_v44  ;;  %v4973_v32 = vadd.f32 %v4972_v36, %v10630_v52 }
 0x53d   : > { %v4679_v4 = vpop.f32.mrf.mxu0  ;;  %v7420_v8 = vpop.eup %7419  ;;  %v5937_v10 = vadd.f32 1.0, %v7418_v21  ;;  %7445 = vpow2.f32 %v5829_v5  ;;  %v5839_v20 = vmul.f32 1.442695, %v5753_v56  ;;  %v11299_v58 = vmul.f32 %v10618_v50, %v5171_v40  ;;  %v12157_v56 = vld [vmem:[#allocation183_spill] sm:$0xff] }
 0x53e   : > { %v7078_v19 = vpop.f32.mrf.mxu1  ;;  %v5492_v15 = vpop.xlane.xlu1 %5491  ;;  %6123 = vst.msk [vmem:[%s11272_s26 + $0x38] sm:$0xff] %vm6115_vm2, %v7420_v8  ;;  %v5754_v9 = vsub.f32 0.0, %v5690_v25  ;;  %v5172_v39 = vadd.f32 %v4678_v53, %v10283_v30  ;;  %v11305_v14 = vadd.f32 %v4973_v32, %v12154_v31  ;;  %v5687_v45 = vadd.f32 %v11196_v54, %v5488_v63  ;;  %v12158_v25 = vld [vmem:[#allocation196_spill] sm:$0xff] }
 0x53f   : > { %v7422_v13 = vpop.eup %7421  ;;  %v4681_v51 = vpop.f32.mrf.mxu0  ;;  %7447 = vrcp.f32 %v5937_v10  ;;  %v4680_v27 = vadd.f32 %v4679_v4, %v10599_v34  ;;  %v4984_v16 = vadd.f32 %v7078_v19, %v10630_v52  ;;  %v5688_v3 = vadd.f32 %v11196_v54, %v5492_v15 }
 0x540   : > { %v7424_v24 = vpop.eup %7423  ;;  %v5938_v12 = vadd.f32 1.0, %v7422_v13  ;;  %v4975_v17 = vpop.f32.mrf.mxu1  ;;  %7449 = vpow2.f32 %v5839_v20  ;;  %v5841_v62 = vmul.f32 1.442695, %v5754_v9  ;;  %v11313_v30 = vmul.f32 %v10614_v55, %v5172_v39  ;;  %v12159_v13 = vld [vmem:[#allocation189_spill] sm:$0xff] }
 0x541   : > { %v7426_v49 = vpop.eup %7425  ;;  %6120 = vst.msk [vmem:[%s11272_s26 + $0x20] sm:$0xff] %vm6115_vm2, %v7424_v24  ;;  %v5751_v6 = vsub.f32 0.0, %v5687_v45  ;;  %v5512_v37 = vpop.xlane.xlu0 %5511  ;;  %v5174_v18 = vadd.f32 %v4680_v27, %v12155_v46  ;;  %v11317_v47 = vadd.f32 %v4984_v16, %v12156_v7  ;;  %v4682_v57 = vadd.f32 %v4681_v51, %v10596_v44  ;;  %v12161_v46 = vld [vmem:[#allocation186_spill] sm:$0xff]  ;;  %v12162_v7 = vld [vmem:[#allocation201_spill] sm:$0xff] }
 0x542   : > { %v4685_v2 = vpop.f32.mrf.mxu0  ;;  %v7428_v41 = vpop.eup %7427  ;;  %7451 = vrcp.f32 %v5938_v12  ;;  %v5935_v42 = vadd.f32 1.0, %v7426_v49  ;;  %v4976_v59 = vadd.f32 %v4975_v17, %v10630_v52  ;;  %v5752_v5 = vsub.f32 0.0, %v5688_v3 }
 0x543   : > { %v7081_v1 = vpop.f32.mrf.mxu1  ;;  %v7430_v26 = vpop.eup %7429  ;;  %v5936_v33 = vadd.f32 1.0, %v7428_v41  ;;  %7453 = vpow2.f32 %v5841_v62  ;;  %v5835_v38 = vmul.f32 1.442695, %v5751_v6  ;;  %v11323_v0 = vmul.f32 %v10618_v50, %v5174_v18  ;;  %v12160_v62 = vld [vmem:[#allocation203_spill] sm:$0xff] }
 0x544   : > { %v4687_v23 = vpop.f32.mrf.mxu0  ;;  %v7432_v43 = vpop.eup %7431  ;;  %6121 = vst.msk [vmem:[%s11272_s26 + $0x28] sm:$0xff] %vm6115_vm2, %v7430_v26  ;;  %7455 = vrcp.f32 %v5935_v42  ;;  %v5693_v22 = vadd.f32 %v11196_v54, %v5512_v37  ;;  %v5175_v40 = vadd.f32 %v4682_v57, %v12157_v56  ;;  %v11332_v36 = vadd.f32 %v4976_v59, %v12158_v25 }
 0x545   : > { %v5516_v60 = vpop.xlane.xlu1 %5515  ;;  %v7434_v28 = vpop.eup %7433  ;;  %7457 = vrcp.f32 %v5936_v33  ;;  %v5941_v29 = vadd.f32 1.0, %v7432_v43  ;;  %v4686_v63 = vadd.f32 %v4685_v2, %v10599_v34  ;;  %v5837_v4 = vmul.f32 1.442695, %v5752_v5 }
 0x546   : > { %v4689_v61 = vpop.f32.mrf.mxu0  ;;  %v7436_v35 = vpop.eup %7435  ;;  %6126 = vst.msk [vmem:[%s11272_s26 + $0x50] sm:$0xff] %vm6115_vm2, %v7434_v28  ;;  %7459 = vpow2.f32 %v5835_v38  ;;  %v5757_v8 = vsub.f32 0.0, %v5693_v22  ;;  %v11338_v15 = vmul.f32 %v10614_v55, %v5175_v40  ;;  %v4997_v39 = vadd.f32 %v7081_v1, %v10630_v52 }
 0x547   : > { %v4988_v21 = vpop.f32.mrf.mxu1  ;;  %v7438_v53 = vpop.eup %7437  ;;  %7461 = vrcp.f32 %v5941_v29  ;;  %v5942_v32 = vadd.f32 1.0, %v7436_v35  ;;  %v5177_v9 = vadd.f32 %v4686_v63, %v12159_v13  ;;  %v5694_v31 = vadd.f32 %v11196_v54, %v5516_v60  ;;  %v12163_v35 = vld [vmem:[#allocation187_spill] sm:$0xff] }
 0x548   : > { %v5504_v10 = vpop.xlane.xlu0 %5503  ;;  %v4691_v20 = vpop.f32.mrf.mxu0  ;;  %6127 = vst.msk [vmem:[%s11272_s26 + $0x58] sm:$0xff] %vm6115_vm2, %v7438_v53  ;;  %v5847_v51 = vmul.f32 1.442695, %v5757_v8  ;;  %v4688_v24 = vadd.f32 %v4687_v23, %v10596_v44  ;;  %v4989_v12 = vadd.f32 %v4988_v21, %v10630_v52  ;;  %v11351_v6 = vadd.f32 %v4997_v39, %v12160_v62  ;;  %v12164_v21 = vld [vmem:[#allocation202_spill] sm:$0xff] }
 0x549   : > { %v7440_v19 = vpop.eup %7439  ;;  %7463 = vrcp.f32 %v5942_v32  ;;  %v11348_v49 = vmul.f32 %v10618_v50, %v5177_v9  ;;  %v7082_v37 = vpop.f32.mrf.mxu1  ;;  %v5758_v42 = vsub.f32 0.0, %v5694_v31  ;;  %v5691_v38 = vadd.f32 %v11196_v54, %v5504_v10 }
 0x54a   : > { %v7442_v45 = vpop.eup %7441  ;;  %6124 = vst.msk [vmem:[%s11272_s26 + $0x40] sm:$0xff] %vm6115_vm2, %v7440_v19  ;;  %v4695_v27 = vpop.f32.mrf.mxu0  ;;  %7465 = vpow2.f32 %v5837_v4  ;;  %v5178_v18 = vadd.f32 %v4688_v24, %v12161_v46  ;;  %v11357_v1 = vadd.f32 %v4989_v12, %v12162_v7  ;;  %v4690_v3 = vadd.f32 %v4689_v61, %v10599_v34  ;;  %v12165_v12 = vld [vmem:[#allocation185_spill] sm:$0xff] }
 0x54b   : > { %v7444_v16 = vpop.eup %7443  ;;  %v5939_v17 = vadd.f32 1.0, %v7442_v45  ;;  %v5508_v2 = vpop.xlane.xlu1 %5507  ;;  %7467 = vpow2.f32 %v5847_v51  ;;  %v5849_v43 = vmul.f32 1.442695, %v5758_v42  ;;  %v5000_v59 = vadd.f32 %v7082_v37, %v10630_v52 }
 0x54c   : > { %v7446_v41 = vpop.eup %7445  ;;  %6125 = vst.msk [vmem:[%s11272_s26 + $0x48] sm:$0xff] %vm6115_vm2, %v7444_v16  ;;  %v4697_v26 = vpop.f32.mrf.mxu0  ;;  %v11362_v57 = vmul.f32 %v10614_v55, %v5178_v18  ;;  %v5692_v60 = vadd.f32 %v11196_v54, %v5508_v2  ;;  %v5755_v22 = vsub.f32 0.0, %v5691_v38  ;;  %v5180_v56 = vadd.f32 %v4690_v3, %v12163_v35  ;;  %v12168_v35 = vld [vmem:[#allocation190_spill] sm:$0xff] }
 0x54d   : > { %7469 = vrcp.f32 %v5939_v17  ;;  %v5940_v33 = vadd.f32 1.0, %v7446_v41  ;;  %v7448_v23 = vpop.eup %7447  ;;  %v5520_v28 = vpop.xlane.xlu0 %5519  ;;  %v5383_v61 = vmul.f32 %v10637_v48, %v11305_v14  ;;  %v11372_v53 = vadd.f32 %v5000_v59, %v12164_v21 }
 0x54e   : > { %v4699_v29 = vpop.f32.mrf.mxu0  ;;  %v7450_v5 = vpop.eup %7449  ;;  %6130 = vst.msk [vmem:[%s11272_s26 + $0x70] sm:$0xff] %vm6115_vm2, %v7448_v23  ;;  %v5756_v32 = vsub.f32 0.0, %v5692_v60  ;;  %v5843_v10 = vmul.f32 1.442695, %v5755_v22  ;;  %v11379_v19 = vmul.f32 %v10618_v50, %v5180_v56  ;;  %v5629_v14 = vadd.f32 %v11313_v30, %v11299_v58  ;;  %v12166_v30 = vld [vmem:[#allocation200_spill] sm:$0xff] }
 0x54f   : > { %7471 = vrcp.f32 %v5940_v33  ;;  %v4991_v40 = vpop.f32.mrf.mxu1  ;;  %v7452_v25 = vpop.eup %7451  ;;  %v5945_v63 = vadd.f32 1.0, %v7450_v5  ;;  %v4692_v13 = vadd.f32 %v4691_v20, %v10596_v44  ;;  %v5695_v17 = vadd.f32 %v11196_v54, %v5520_v28  ;;  %v12167_v33 = vld [vmem:[#allocation193_spill] sm:$0xff] }
 0x550   : > { %7473 = vpow2.f32 %v5849_v43  ;;  %v11374_v4 = vpop.f32.mrf.mxu0  ;;  %v7454_v8 = vpop.eup %7453  ;;  %6131 = vst.msk [vmem:[%s11272_s26 + $0x78] sm:$0xff] %vm6115_vm2, %v7452_v25  ;;  %v5845_v31 = vmul.f32 1.442695, %v5756_v32  ;;  %v4992_v45 = vadd.f32 %v4991_v40, %v10630_v52  ;;  %v5630_v24 = vadd.f32 %v5629_v14, %v5383_v61  ;;  %v12169_v25 = vld [vmem:[#allocation191_spill] sm:$0xff] }
 0x551   : > { %v7456_v9 = vpop.eup %7455  ;;  %7475 = vrcp.f32 %v5945_v63  ;;  %v5946_v39 = vadd.f32 1.0, %v7454_v8  ;;  %v5181_v16 = vadd.f32 %v4692_v13, %v12165_v12  ;;  %v5524_v62 = vpop.xlane.xlu1 %5523  ;;  %v4696_v52 = vadd.f32 %v4695_v27, %v10599_v34 }
 0x552   : > { %v7458_v51 = vpop.eup %7457  ;;  %6128 = vst.msk [vmem:[%s11272_s26 + $0x60] sm:$0xff] %vm6115_vm2, %v7456_v9  ;;  %7477 = vpow2.f32 %v5843_v10  ;;  %v11392_v20 = vadd.f32 %v4992_v45, %v12166_v30  ;;  %v5386_v37 = vmul.f32 %v10637_v48, %v11332_v36  ;;  %v5528_v2 = vpop.xlane.xlu0 %5527  ;;  %5631 = vadd.xlane.f32.xlu0 %v5630_v24  ;;  %v5759_v7 = vsub.f32 0.0, %v5695_v17 }
 0x553   : > { %v7460_v58 = vpop.eup %7459  ;;  %6129 = vst.msk [vmem:[%s11272_s26 + $0x68] sm:$0xff] %vm6115_vm2, %v7458_v51  ;;  %7479 = vrcp.f32 %v5946_v39  ;;  %v4705_v41 = vpop.f32.mrf.mxu0  ;;  %v5391_v18 = vmul.f32 %v10614_v55, %v5181_v16  ;;  %v5183_v38 = vadd.f32 %v4696_v52, %v12167_v33  ;;  %v5633_v27 = vadd.f32 %v11338_v15, %v11323_v0 }
 0x554   : > { %v7462_v42 = vpop.eup %7461  ;;  %v5943_v46 = vadd.f32 1.0, %v7460_v58  ;;  %7481 = vpow2.f32 %v5845_v31  ;;  %v4698_v3 = vadd.f32 %v4697_v26, %v10596_v44  ;;  %v5696_v36 = vadd.f32 %v11196_v54, %v5524_v62 }
 0x555   : > { %6134 = vst.msk [vmem:[%s11272_s26 + $0x90] sm:$0xff] %vm6115_vm2, %v7462_v42  ;;  %v5851_v43 = vmul.f32 1.442695, %v5759_v7  ;;  %v5697_v59 = vadd.f32 %v11196_v54, %v5528_v2  ;;  %v4700_v60 = vadd.f32 %v4699_v29, %v10599_v34  ;;  %v11410_v5 = vmul.f32 %v10618_v50, %v5183_v38  ;;  %v4707_v26 = vpop.f32.mrf.mxu0  ;;  %v5532_v21 = vpop.xlane.xlu1 %5531  ;;  %v12171_v2 = vld [vmem:[#allocation197_spill] sm:$0xff] }
 0x556   : > { %v7464_v23 = vpop.eup %7463  ;;  %7483 = vrcp.f32 %v5943_v46  ;;  %v5634_v22 = vadd.f32 %v5633_v27, %v5386_v37  ;;  %v5184_v0 = vadd.f32 %v4698_v3, %v12168_v35  ;;  %v5760_v15 = vsub.f32 0.0, %v5696_v36  ;;  %v12172_v36 = vld [vmem:[#allocation194_spill] sm:$0xff] }
 0x557   : > { %v7466_v28 = vpop.eup %7465  ;;  %6135 = vst.msk [vmem:[%s11272_s26 + $0x98] sm:$0xff] %vm6115_vm2, %v7464_v23  ;;  %7485 = vpow2.f32 %v5851_v43  ;;  %v5761_v40 = vsub.f32 0.0, %v5697_v59  ;;  %v5186_v63 = vadd.f32 %v4700_v60, %v12169_v25  ;;  %v5389_v14 = vmul.f32 %v10637_v48, %v11294_v11  ;;  %v4709_v12 = vpop.f32.mrf.mxu0  ;;  %v12173_v43 = vld [vmem:[#allocation195_spill] sm:$0xff] }
 0x558   : > { %v7468_v56 = vpop.eup %7467  ;;  %v5944_v61 = vadd.f32 1.0, %v7466_v28  ;;  %5635 = vadd.xlane.f32.xlu1 %v5634_v22  ;;  %v5394_v8 = vmul.f32 %v10614_v55, %v5184_v0  ;;  %v5853_v10 = vmul.f32 1.442695, %v5760_v15  ;;  %v5637_v39 = vadd.f32 %v11362_v57, %v11348_v49  ;;  %v5536_v11 = vpop.xlane.xlu0 %5535 }
 0x559   : > { %v5949_v32 = vadd.f32 1.0, %v7468_v56  ;;  %v5855_v13 = vmul.f32 1.442695, %v5761_v40  ;;  %v5396_v9 = vmul.f32 %v10618_v50, %v5186_v63  ;;  %v4702_v45 = vadd.f32 %v11374_v4, %v10596_v44  ;;  %v5540_v62 = vpop.xlane.xlu1 %5539  ;;  %v12170_v4 = vld [vmem:[#allocation188_spill] sm:$0xff]  ;;  %v4711_v60 = vpop.f32.mrf.mxu0 }
 0x55a   : > { %v7470_v29 = vpop.eup %7469  ;;  %7487 = vrcp.f32 %v5944_v61  ;;  %v5698_v51 = vadd.f32 %v11196_v54, %v5532_v21  ;;  %v4706_v24 = vadd.f32 %v4705_v41, %v10599_v34  ;;  %v5638_v17 = vadd.f32 %v5637_v39, %v5389_v14 }
 0x55b   : > { %6132 = vst.msk [vmem:[%s11272_s26 + $0x80] sm:$0xff] %vm6115_vm2, %v7470_v29  ;;  %7489 = vrcp.f32 %v5949_v32  ;;  %v5392_v49 = vmul.f32 %v10637_v48, %v11317_v47  ;;  %v5641_v57 = vadd.f32 %v5391_v18, %v11379_v19  ;;  %v5187_v30 = vadd.f32 %v4702_v45, %v12170_v4 }
 0x55c   : > { %v7472_v31 = vpop.eup %7471  ;;  %7491 = vpow2.f32 %v5853_v10  ;;  %v5762_v52 = vsub.f32 0.0, %v5698_v51  ;;  %5639 = vadd.xlane.f32.xlu0 %v5638_v17  ;;  %v5189_v41 = vadd.f32 %v4706_v24, %v12171_v2  ;;  %v4708_v46 = vadd.f32 %v4707_v26, %v10596_v44  ;;  %v5544_v0 = vpop.xlane.xlu0 %5543 }
 0x55d   : > { %v7474_v16 = vpop.eup %7473  ;;  %6133 = vst.msk [vmem:[%s11272_s26 + $0x88] sm:$0xff] %vm6115_vm2, %v7472_v31  ;;  %7493 = vpow2.f32 %v5855_v13  ;;  %v5642_v42 = vadd.f32 %v5641_v57, %v5392_v49  ;;  %v4710_v7 = vadd.f32 %v4709_v12, %v10599_v34  ;;  %v5397_v47 = vmul.f32 %v10614_v55, %v5187_v30  ;;  %v5548_v61 = vpop.xlane.xlu1 %5547 }
 0x55e   : > { %v5950_v58 = vadd.f32 1.0, %v7474_v16  ;;  %v7476_v37 = vpop.eup %7475  ;;  %v5857_v19 = vmul.f32 1.442695, %v5762_v52  ;;  %v5699_v18 = vadd.f32 %v11196_v54, %v5536_v11  ;;  %v5399_v3 = vmul.f32 %v10618_v50, %v5189_v41 }
 0x55f   : > { %v7478_v33 = vpop.eup %7477  ;;  %6138 = vst.msk [vmem:[%s11272_s26 + $0xb0] sm:$0xff] %vm6115_vm2, %v7476_v37  ;;  %5643 = vadd.xlane.f32.xlu1 %v5642_v42  ;;  %v5190_v23 = vadd.f32 %v4708_v46, %v12172_v36  ;;  %v5192_v59 = vadd.f32 %v4710_v7, %v12173_v43  ;;  %v5395_v22 = vmul.f32 %v10637_v48, %v11357_v1 }
 0x560   : > { %7495 = vrcp.f32 %v5950_v58  ;;  %v7480_v38 = vpop.eup %7479  ;;  %v5947_v27 = vadd.f32 1.0, %v7478_v33  ;;  %v5763_v28 = vsub.f32 0.0, %v5699_v18  ;;  %v5645_v35 = vadd.f32 %v5394_v8, %v11410_v5 }
 0x561   : > { %v7482_v34 = vpop.eup %7481  ;;  %6139 = vst.msk [vmem:[%s11272_s26 + $0xb8] sm:$0xff] %vm6115_vm2, %v7480_v38  ;;  %7497 = vpow2.f32 %v5857_v19  ;;  %v5400_v26 = vmul.f32 %v10614_v55, %v5190_v23  ;;  %v5402_v56 = vmul.f32 %v10618_v50, %v5192_v59  ;;  %v4712_v21 = vadd.f32 %v4711_v60, %v10596_v44  ;;  %v12174_v50 = vld [vmem:[#allocation192_spill] sm:$0xff] }
 0x562   : > { %7499 = vrcp.f32 %v5947_v27  ;;  %v5948_v15 = vadd.f32 1.0, %v7482_v34  ;;  %v5859_v25 = vmul.f32 1.442695, %v5763_v28  ;;  %v5646_v63 = vadd.f32 %v5645_v35, %v5395_v22 }
 0x563   : > { %v7484_v40 = vpop.eup %7483  ;;  %v5700_v29 = vadd.f32 %v11196_v54, %v5540_v62  ;;  %v5701_v1 = vadd.f32 %v11196_v54, %v5544_v0  ;;  %v5398_v5 = vmul.f32 %v10637_v48, %v11392_v20  ;;  %v5649_v32 = vadd.f32 %v5397_v47, %v5396_v9 }
 0x564   : > { %6136 = vst.msk [vmem:[%s11272_s26 + $0xa0] sm:$0xff] %vm6115_vm2, %v7484_v40  ;;  %7501 = vrcp.f32 %v5948_v15  ;;  %v7486_v8 = vpop.eup %7485  ;;  %5647 = vadd.xlane.f32.xlu0 %v5646_v63  ;;  %v5193_v10 = vadd.f32 %v4712_v21, %v12174_v50  ;;  %v5702_v44 = vadd.f32 %v11196_v54, %v5548_v61  ;;  %v5401_v45 = vmul.f32 %v10637_v48, %v11351_v6 }
 0x565   : > { %7503 = vpow2.f32 %v5859_v25  ;;  %v5764_v14 = vsub.f32 0.0, %v5700_v29  ;;  %v5951_v13 = vadd.f32 1.0, %v7486_v8  ;;  %v5765_v39 = vsub.f32 0.0, %v5701_v1  ;;  %v5552_v51 = vpop.xlane.xlu0 %5551 }
 0x566   : > { %v5650_v31 = vadd.f32 %v5649_v32, %v5398_v5  ;;  %v5403_v20 = vmul.f32 %v10614_v55, %v5193_v10  ;;  %v5766_v12 = vsub.f32 0.0, %v5702_v44  ;;  %v5653_v11 = vadd.f32 %v5400_v26, %v5399_v3 }
 0x567   : > { %v7488_v24 = vpop.eup %7487  ;;  %v5861_v9 = vmul.f32 1.442695, %v5764_v14  ;;  %7505 = vrcp.f32 %v5951_v13  ;;  %v5863_v17 = vmul.f32 1.442695, %v5765_v39  ;;  %v5404_v49 = vmul.f32 %v10637_v48, %v11372_v53  ;;  %v11468_v53 = vld [vmem:[#allocation2] ss:$0 sm:$0xff] }
 0x568   : > { %v7490_v16 = vpop.eup %7489  ;;  %6137 = vst.msk [vmem:[%s11272_s26 + $0xa8] sm:$0xff] %vm6115_vm2, %v7488_v24  ;;  %5651 = vadd.xlane.f32.xlu1 %v5650_v31  ;;  %v5703_v57 = vadd.f32 %v11196_v54, %v5552_v51  ;;  %v5865_v6 = vmul.f32 1.442695, %v5766_v12  ;;  %v5654_v55 = vadd.f32 %v5653_v11, %v5401_v45  ;;  %v5657_v58 = vadd.f32 %v5403_v20, %v5402_v56  ;;  %v5556_v37 = vpop.xlane.xlu1 %5555 }
 0x569   : > { %v7492_v62 = vpop.eup %7491  ;;  %6142 = vst.msk [vmem:[%s11272_s26 + $0xd0] sm:$0xff] %vm6115_vm2, %v7490_v16  ;;  %7507 = vpow2.f32 %v5861_v9  ;;  %v5560_v2 = vpop.xlane.xlu0 %5559  ;;  %v5704_v54 = vadd.f32 %v11468_v53, %v5556_v37 }
 0x56a   : > { %v7494_v4 = vpop.eup %7493  ;;  %v5952_v30 = vadd.f32 1.0, %v7492_v62  ;;  %7509 = vpow2.f32 %v5863_v17  ;;  %v5767_v52 = vsub.f32 0.0, %v5703_v57  ;;  %5655 = vadd.xlane.f32.xlu0 %v5654_v55  ;;  %v5658_v48 = vadd.f32 %v5657_v58, %v5404_v49 }
 0x56b   : > { %v5953_v41 = vadd.f32 1.0, %v7494_v4  ;;  %7511 = vpow2.f32 %v5865_v6  ;;  %v5705_v7 = vadd.f32 %v11468_v53, %v5560_v2  ;;  %v5768_v33 = vsub.f32 0.0, %v5704_v54 }
 0x56c   : > { %7513 = vrcp.f32 %v5952_v30  ;;  %v5867_v46 = vmul.f32 1.442695, %v5767_v52  ;;  %5659 = vadd.xlane.f32.xlu1 %v5658_v48  ;;  %v5564_v18 = vpop.xlane.xlu1 %5563 }
 0x56d   : > { %v7496_v42 = vpop.eup %7495  ;;  %7515 = vrcp.f32 %v5953_v41  ;;  %v5769_v19 = vsub.f32 0.0, %v5705_v7  ;;  %v5869_v3 = vmul.f32 1.442695, %v5768_v33  ;;  %v5706_v36 = vadd.f32 %v11468_v53, %v5564_v18 }
 0x56e   : > { %6143 = vst.msk [vmem:[%s11272_s26 + $0xd8] sm:$0xff] %vm6115_vm2, %v7496_v42  ;;  %v7498_v47 = vpop.eup %7497  ;;  %7517 = vpow2.f32 %v5867_v46 }
 0x56f   : > { %v7500_v38 = vpop.eup %7499  ;;  %v5954_v27 = vadd.f32 1.0, %v7498_v47  ;;  %v5871_v23 = vmul.f32 1.442695, %v5769_v19  ;;  %v5770_v59 = vsub.f32 0.0, %v5706_v36 }
 0x570   : > { %6140 = vst.msk [vmem:[%s11272_s26 + $0xc0] sm:$0xff] %vm6115_vm2, %v7500_v38 }
 0x571   : > { %v7502_v43 = vpop.eup %7501  ;;  %7519 = vrcp.f32 %v5954_v27  ;;  %v5873_v28 = vmul.f32 1.442695, %v5770_v59 }
 0x572   : > { %v7504_v60 = vpop.eup %7503  ;;  %6141 = vst.msk [vmem:[%s11272_s26 + $0xc8] sm:$0xff] %vm6115_vm2, %v7502_v43  ;;  %7521 = vpow2.f32 %v5869_v3 }
 0x573   : > { %v5955_v34 = vadd.f32 1.0, %v7504_v60  ;;  %7523 = vpow2.f32 %v5871_v23 }
 0x574   : > { %v7506_v22 = vpop.eup %7505 }
 0x575   : > { %7525 = vrcp.f32 %v5955_v34  ;;  %6144 = vst.msk [vmem:[%s11272_s26 + $0xe0] sm:$0xff] %vm6115_vm2, %v7506_v22  ;;  %v5568_v0 = vpop.xlane.xlu0 %5567 }
 0x576   : > { %v7508_v35 = vpop.eup %7507  ;;  %7527 = vpow2.f32 %v5873_v28  ;;  %v5707_v56 = vadd.f32 %v11468_v53, %v5568_v0 }
 0x577   : > { %v7510_v15 = vpop.eup %7509  ;;  %v5956_v26 = vadd.f32 1.0, %v7508_v35 }
 0x578   : > { %v7512_v61 = vpop.eup %7511  ;;  %v5957_v40 = vadd.f32 1.0, %v7510_v15  ;;  %v5771_v21 = vsub.f32 0.0, %v5707_v56  ;;  %v5572_v1 = vpop.xlane.xlu1 %5571 }
 0x579   : > { %v7514_v25 = vpop.eup %7513  ;;  %7529 = vrcp.f32 %v5956_v26  ;;  %v5958_v63 = vadd.f32 1.0, %v7512_v61  ;;  %v5576_v5 = vpop.xlane.xlu0 %5575  ;;  %v5708_v50 = vadd.f32 %v11468_v53, %v5572_v1 }
 0x57a   : > { %v7516_v29 = vpop.eup %7515  ;;  %6145 = vst.msk [vmem:[%s11272_s26 + $0xe8] sm:$0xff] %vm6115_vm2, %v7514_v25  ;;  %7531 = vrcp.f32 %v5957_v40  ;;  %v5875_v8 = vmul.f32 1.442695, %v5771_v21  ;;  %v5709_v10 = vadd.f32 %v11468_v53, %v5576_v5 }
 0x57b   : > { %v7518_v32 = vpop.eup %7517  ;;  %6146 = vst.msk [vmem:[%s11272_s26 + $0xf0] sm:$0xff] %vm6115_vm2, %v7516_v29  ;;  %7533 = vrcp.f32 %v5958_v63  ;;  %v5772_v44 = vsub.f32 0.0, %v5708_v50 }
 0x57c   : > { %v5959_v14 = vadd.f32 1.0, %v7518_v32  ;;  %7535 = vpow2.f32 %v5875_v8  ;;  %v5773_v13 = vsub.f32 0.0, %v5709_v10  ;;  %v5580_v31 = vpop.xlane.xlu1 %5579 }
 0x57d   : > { %v5877_v51 = vmul.f32 1.442695, %v5772_v44  ;;  %v5710_v24 = vadd.f32 %v11468_v53, %v5580_v31 }
 0x57e   : > { %v7520_v39 = vpop.eup %7519  ;;  %7537 = vrcp.f32 %v5959_v14  ;;  %v5879_v12 = vmul.f32 1.442695, %v5773_v13 }
 0x57f   : > { %v7522_v45 = vpop.eup %7521  ;;  %6147 = vst.msk [vmem:[%s11272_s26 + $0xf8] sm:$0xff] %vm6115_vm2, %v7520_v39  ;;  %7539 = vpow2.f32 %v5877_v51  ;;  %v5774_v16 = vsub.f32 0.0, %v5710_v24 }
 0x580   : > { %v7524_v20 = vpop.eup %7523  ;;  %v5960_v9 = vadd.f32 1.0, %v7522_v45 }
 0x581   : > { %v5961_v11 = vadd.f32 1.0, %v7524_v20  ;;  %v5881_v57 = vmul.f32 1.442695, %v5774_v16 }
 0x582   : > { %v7526_v17 = vpop.eup %7525  ;;  %7541 = vrcp.f32 %v5960_v9 }
 0x583   : > { %v7528_v49 = vpop.eup %7527  ;;  %6148 = vst.msk [vmem:[%s11272_s26 + $0x100] sm:$0xff] %vm6115_vm2, %v7526_v17  ;;  %7543 = vrcp.f32 %v5961_v11 }
 0x584   : > { %v5962_v62 = vadd.f32 1.0, %v7528_v49  ;;  %7545 = vpow2.f32 %v5879_v12 }
 0x585   : > { %7547 = vpow2.f32 %v5881_v57  ;;  %v5584_v55 = vpop.xlane.xlu0 %5583 }
 0x586   : > { %v7530_v6 = vpop.eup %7529  ;;  %7549 = vrcp.f32 %v5962_v62  ;;  %v5711_v4 = vadd.f32 %v11468_v53, %v5584_v55 }
 0x587   : > { %v7532_v58 = vpop.eup %7531  ;;  %6149 = vst.msk [vmem:[%s11272_s26 + $0x108] sm:$0xff] %vm6115_vm2, %v7530_v6 }
 0x588   : > { %v7534_v30 = vpop.eup %7533  ;;  %6150 = vst.msk [vmem:[%s11272_s26 + $0x110] sm:$0xff] %vm6115_vm2, %v7532_v58  ;;  %v5775_v52 = vsub.f32 0.0, %v5711_v4  ;;  %v5588_v2 = vpop.xlane.xlu1 %5587 }
 0x589   : > { %6151 = vst.msk [vmem:[%s11272_s26 + $0x118] sm:$0xff] %vm6115_vm2, %v7534_v30  ;;  %v7536_v37 = vpop.eup %7535  ;;  %v5592_v41 = vpop.xlane.xlu0 %5591  ;;  %v5712_v46 = vadd.f32 %v11468_v53, %v5588_v2 }
 0x58a   : > { %v5963_v54 = vadd.f32 1.0, %v7536_v37  ;;  %v5883_v42 = vmul.f32 1.442695, %v5775_v52  ;;  %v5713_v7 = vadd.f32 %v11468_v53, %v5592_v41 }
 0x58b   : > { %v7538_v48 = vpop.eup %7537  ;;  %v5776_v33 = vsub.f32 0.0, %v5712_v46 }
 0x58c   : > { %6152 = vst.msk [vmem:[%s11272_s26 + $0x120] sm:$0xff] %vm6115_vm2, %v7538_v48  ;;  %7551 = vrcp.f32 %v5963_v54  ;;  %v5777_v47 = vsub.f32 0.0, %v5713_v7  ;;  %v7540_v19 = vpop.eup %7539  ;;  %v5596_v18 = vpop.xlane.xlu1 %5595 }
 0x58d   : > { %7553 = vpow2.f32 %v5883_v42  ;;  %v5964_v27 = vadd.f32 1.0, %v7540_v19  ;;  %v5885_v3 = vmul.f32 1.442695, %v5776_v33  ;;  %v5714_v23 = vadd.f32 %v11468_v53, %v5596_v18 }
 0x58e   : > { %v5887_v36 = vmul.f32 1.442695, %v5777_v47 }
 0x58f   : > { %v7542_v38 = vpop.eup %7541  ;;  %7555 = vrcp.f32 %v5964_v27  ;;  %v5778_v60 = vsub.f32 0.0, %v5714_v23 }
 0x590   : > { %v7544_v43 = vpop.eup %7543  ;;  %6153 = vst.msk [vmem:[%s11272_s26 + $0x128] sm:$0xff] %vm6115_vm2, %v7542_v38  ;;  %7557 = vpow2.f32 %v5885_v3 }
 0x591   : > { %v7546_v59 = vpop.eup %7545  ;;  %6154 = vst.msk [vmem:[%s11272_s26 + $0x130] sm:$0xff] %vm6115_vm2, %v7544_v43  ;;  %7559 = vpow2.f32 %v5887_v36  ;;  %v5889_v0 = vmul.f32 1.442695, %v5778_v60 }
 0x592   : > { %v7548_v34 = vpop.eup %7547  ;;  %v5965_v28 = vadd.f32 1.0, %v7546_v59 }
 0x593   : > { %v7550_v22 = vpop.eup %7549  ;;  %v5966_v35 = vadd.f32 1.0, %v7548_v34 }
 0x594   : > { %6155 = vst.msk [vmem:[%s11272_s26 + $0x138] sm:$0xff] %vm6115_vm2, %v7550_v22  ;;  %7561 = vrcp.f32 %v5965_v28 }
 0x595   : > { %7563 = vrcp.f32 %v5966_v35  ;;  %v5600_v15 = vpop.xlane.xlu0 %5599 }
 0x596   : > { %7565 = vpow2.f32 %v5889_v0  ;;  %v5715_v26 = vadd.f32 %v11468_v53, %v5600_v15 }
 0x598   : > { %v5779_v56 = vsub.f32 0.0, %v5715_v26 }
 0x599   : > { %v7552_v61 = vpop.eup %7551  ;;  %v5604_v40 = vpop.xlane.xlu1 %5603 }
 0x59a   : > { %v5608_v25 = vpop.xlane.xlu0 %5607  ;;  %v7554_v63 = vpop.eup %7553  ;;  %6156 = vst.msk [vmem:[%s11272_s26 + $0x140] sm:$0xff] %vm6115_vm2, %v7552_v61  ;;  %v5891_v21 = vmul.f32 1.442695, %v5779_v56  ;;  %v5716_v29 = vadd.f32 %v11468_v53, %v5604_v40 }
 0x59b   : > { %v5717_v1 = vadd.f32 %v11468_v53, %v5608_v25  ;;  %v5967_v5 = vadd.f32 1.0, %v7554_v63 }
 0x59c   : > { %7567 = vpow2.f32 %v5891_v21  ;;  %v5780_v32 = vsub.f32 0.0, %v5716_v29  ;;  %v7556_v50 = vpop.eup %7555 }
 0x59d   : > { %v5781_v8 = vsub.f32 0.0, %v5717_v1  ;;  %7569 = vrcp.f32 %v5967_v5  ;;  %v5612_v10 = vpop.xlane.xlu1 %5611  ;;  %v7558_v14 = vpop.eup %7557  ;;  %6157 = vst.msk [vmem:[%s11272_s26 + $0x148] sm:$0xff] %vm6115_vm2, %v7556_v50 }
 0x59e   : > { %v5893_v44 = vmul.f32 1.442695, %v5780_v32  ;;  %v5718_v13 = vadd.f32 %v11468_v53, %v5612_v10  ;;  %v7560_v39 = vpop.eup %7559  ;;  %v5968_v31 = vadd.f32 1.0, %v7558_v14 }
 0x59f   : > { %v5895_v45 = vmul.f32 1.442695, %v5781_v8  ;;  %v5969_v24 = vadd.f32 1.0, %v7560_v39 }
 0x5a0   : > { %7571 = vpow2.f32 %v5893_v44  ;;  %v5782_v20 = vsub.f32 0.0, %v5718_v13 }
 0x5a1   : > { %v7562_v51 = vpop.eup %7561  ;;  %7573 = vrcp.f32 %v5968_v31 }
 0x5a2   : > { %v7564_v9 = vpop.eup %7563  ;;  %6158 = vst.msk [vmem:[%s11272_s26 + $0x150] sm:$0xff] %vm6115_vm2, %v7562_v51  ;;  %7575 = vrcp.f32 %v5969_v24  ;;  %v5897_v11 = vmul.f32 1.442695, %v5782_v20 }
 0x5a3   : > { %v7566_v12 = vpop.eup %7565  ;;  %6159 = vst.msk [vmem:[%s11272_s26 + $0x158] sm:$0xff] %vm6115_vm2, %v7564_v9  ;;  %7577 = vpow2.f32 %v5895_v45 }
 0x5a4   : > { %v5970_v16 = vadd.f32 1.0, %v7566_v12  ;;  %7579 = vpow2.f32 %v5897_v11 }
 0x5a6   : > { %7581 = vrcp.f32 %v5970_v16 }
 0x5a8   : > { %v5616_v17 = vpop.xlane.xlu0 %5615 }
 0x5a9   : > { %v7568_v49 = vpop.eup %7567  ;;  %v5719_v57 = vadd.f32 %v11468_v53, %v5616_v17 }
 0x5aa   : > { %v7570_v62 = vpop.eup %7569  ;;  %v5971_v6 = vadd.f32 1.0, %v7568_v49  ;;  %v5620_v55 = vpop.xlane.xlu1 %5619 }
 0x5ab   : > { %6160 = vst.msk [vmem:[%s11272_s26 + $0x160] sm:$0xff] %vm6115_vm2, %v7570_v62  ;;  %v5783_v58 = vsub.f32 0.0, %v5719_v57  ;;  %v5720_v4 = vadd.f32 %v11468_v53, %v5620_v55 }
 0x5ac   : > { %7583 = vrcp.f32 %v5971_v6  ;;  %v5624_v30 = vpop.xlane.xlu0 %5623 }
 0x5ad   : > { %v7572_v52 = vpop.eup %7571  ;;  %v5899_v37 = vmul.f32 1.442695, %v5783_v58  ;;  %v5784_v2 = vsub.f32 0.0, %v5720_v4  ;;  %v5721_v41 = vadd.f32 %v11468_v53, %v5624_v30 }
 0x5ae   : > { %v7574_v48 = vpop.eup %7573  ;;  %v5972_v54 = vadd.f32 1.0, %v7572_v52  ;;  %v5628_v42 = vpop.xlane.xlu1 %5627 }
 0x5af   : > { %v7576_v46 = vpop.eup %7575  ;;  %6161 = vst.msk [vmem:[%s11272_s26 + $0x168] sm:$0xff] %vm6115_vm2, %v7574_v48  ;;  %7585 = vpow2.f32 %v5899_v37  ;;  %v5901_v7 = vmul.f32 1.442695, %v5784_v2  ;;  %v5785_v33 = vsub.f32 0.0, %v5721_v41  ;;  %v5722_v47 = vadd.f32 %v11468_v53, %v5628_v42 }
 0x5b0   : > { %v7578_v19 = vpop.eup %7577  ;;  %6162 = vst.msk [vmem:[%s11272_s26 + $0x170] sm:$0xff] %vm6115_vm2, %v7576_v46  ;;  %7587 = vrcp.f32 %v5972_v54 }
 0x5b1   : > { %v7580_v18 = vpop.eup %7579  ;;  %v5973_v38 = vadd.f32 1.0, %v7578_v19  ;;  %7589 = vpow2.f32 %v5901_v7  ;;  %v5903_v27 = vmul.f32 1.442695, %v5785_v33  ;;  %v5786_v3 = vsub.f32 0.0, %v5722_v47 }
 0x5b2   : > { %v5974_v23 = vadd.f32 1.0, %v7580_v18 }
 0x5b3   : > { %v7582_v36 = vpop.eup %7581  ;;  %7591 = vrcp.f32 %v5973_v38  ;;  %v5905_v43 = vmul.f32 1.442695, %v5786_v3 }
 0x5b4   : > { %6163 = vst.msk [vmem:[%s11272_s26 + $0x178] sm:$0xff] %vm6115_vm2, %v7582_v36  ;;  %7593 = vrcp.f32 %v5974_v23 }
 0x5b5   : > { %7595 = vpow2.f32 %v5903_v27 }
 0x5b6   : > { %7597 = vpow2.f32 %v5905_v43 }
 0x5b9   : > { %v7584_v59 = vpop.eup %7583 }
 0x5ba   : > { %6164 = vst.msk [vmem:[%s11272_s26 + $0x180] sm:$0xff] %vm6115_vm2, %v7584_v59 }
 0x5bc   : > { %v7586_v60 = vpop.eup %7585 }
 0x5bd   : > { %v7588_v34 = vpop.eup %7587  ;;  %v5975_v28 = vadd.f32 1.0, %v7586_v60 }
 0x5be   : > { %v7590_v22 = vpop.eup %7589  ;;  %6165 = vst.msk [vmem:[%s11272_s26 + $0x188] sm:$0xff] %vm6115_vm2, %v7588_v34 }
 0x5bf   : > { %7599 = vrcp.f32 %v5975_v28  ;;  %v5976_v35 = vadd.f32 1.0, %v7590_v22 }
 0x5c0   : > { %v7592_v0 = vpop.eup %7591 }
 0x5c1   : > { %v7594_v15 = vpop.eup %7593  ;;  %6166 = vst.msk [vmem:[%s11272_s26 + $0x190] sm:$0xff] %vm6115_vm2, %v7592_v0  ;;  %7601 = vrcp.f32 %v5976_v35 }
 0x5c2   : > { %v7596_v26 = vpop.eup %7595  ;;  %6167 = vst.msk [vmem:[%s11272_s26 + $0x198] sm:$0xff] %vm6115_vm2, %v7594_v15 }
 0x5c3   : > { %v7598_v56 = vpop.eup %7597  ;;  %v5977_v61 = vadd.f32 1.0, %v7596_v26 }
 0x5c4   : > { %v5978_v40 = vadd.f32 1.0, %v7598_v56 }
 0x5c5   : > { %7603 = vrcp.f32 %v5977_v61 }
 0x5c6   : > { %7605 = vrcp.f32 %v5978_v40 }
 0x5cc   : > { %v7600_v25 = vpop.eup %7599 }
 0x5cd   : > { %6168 = vst.msk [vmem:[%s11272_s26 + $0x1a0] sm:$0xff] %vm6115_vm2, %v7600_v25 }
 0x5ce   : > { %v7602_v63 = vpop.eup %7601 }
 0x5cf   : > { %6169 = vst.msk [vmem:[%s11272_s26 + $0x1a8] sm:$0xff] %vm6115_vm2, %v7602_v63 }
 0x5d2   : > { %v7604_v21 = vpop.eup %7603 }
 0x5d3   : > { %v7606_v29 = vpop.eup %7605  ;;  %6170 = vst.msk [vmem:[%s11272_s26 + $0x1b0] sm:$0xff] %vm6115_vm2, %v7604_v21 }
 0x5d4   : > { %6171 = vst.msk [vmem:[%s11272_s26 + $0x1b8] sm:$0xff] %vm6115_vm2, %v7606_v29 }
 0x5db   : > { %v5632_v1 = vpop.xlane.xlu0 %5631 }
 0x5dc   : > { %v5723_v5 = vadd.f32 %v11468_v53, %v5632_v1 }
 0x5de   : > { %v5787_v32 = vsub.f32 0.0, %v5723_v5 }
 0x5e0   : > { %v5907_v8 = vmul.f32 1.442695, %v5787_v32 }
 0x5e1   : > { %v5636_v50 = vpop.xlane.xlu1 %5635 }
 0x5e2   : > { %v5724_v10 = vadd.f32 %v11468_v53, %v5636_v50  ;;  %7607 = vpow2.f32 %v5907_v8 }
 0x5e4   : > { %v5788_v14 = vsub.f32 0.0, %v5724_v10 }
 0x5e5   : > { %v5640_v13 = vpop.xlane.xlu0 %5639 }
 0x5e6   : > { %v5909_v44 = vmul.f32 1.442695, %v5788_v14  ;;  %v5725_v39 = vadd.f32 %v11468_v53, %v5640_v13 }
 0x5e8   : > { %7609 = vpow2.f32 %v5909_v44  ;;  %v5644_v31 = vpop.xlane.xlu1 %5643  ;;  %v5789_v45 = vsub.f32 0.0, %v5725_v39 }
 0x5e9   : > { %v5726_v51 = vadd.f32 %v11468_v53, %v5644_v31 }
 0x5ea   : > { %v5911_v24 = vmul.f32 1.442695, %v5789_v45 }
 0x5eb   : > { %v5790_v20 = vsub.f32 0.0, %v5726_v51 }
 0x5ec   : > { %7611 = vpow2.f32 %v5911_v24 }
 0x5ed   : > { %v5913_v9 = vmul.f32 1.442695, %v5790_v20  ;;  %v5648_v12 = vpop.xlane.xlu0 %5647 }
 0x5ee   : > { %v5727_v11 = vadd.f32 %v11468_v53, %v5648_v12 }
 0x5ef   : > { %7613 = vpow2.f32 %v5913_v9  ;;  %v7608_v16 = vpop.eup %7607 }
 0x5f0   : > { %v5791_v17 = vsub.f32 0.0, %v5727_v11  ;;  %v5979_v57 = vadd.f32 1.0, %v7608_v16 }
 0x5f1   : > { %v5652_v49 = vpop.xlane.xlu1 %5651 }
 0x5f2   : > { %v5728_v62 = vadd.f32 %v11468_v53, %v5652_v49  ;;  %v5915_v6 = vmul.f32 1.442695, %v5791_v17  ;;  %7615 = vrcp.f32 %v5979_v57 }
 0x5f3   : > { %v5656_v58 = vpop.xlane.xlu0 %5655 }
 0x5f4   : > { %v5792_v55 = vsub.f32 0.0, %v5728_v62  ;;  %7617 = vpow2.f32 %v5915_v6  ;;  %v5729_v4 = vadd.f32 %v11468_v53, %v5656_v58 }
 0x5f5   : > { %v7610_v30 = vpop.eup %7609  ;;  %v5660_v37 = vpop.xlane.xlu1 %5659 }
 0x5f6   : > { %v5917_v52 = vmul.f32 1.442695, %v5792_v55  ;;  %v5980_v2 = vadd.f32 1.0, %v7610_v30  ;;  %v5793_v41 = vsub.f32 0.0, %v5729_v4  ;;  %v5730_v48 = vadd.f32 %v11468_v53, %v5660_v37 }
 0x5f8   : > { %7619 = vpow2.f32 %v5917_v52  ;;  %v5919_v54 = vmul.f32 1.442695, %v5793_v41  ;;  %v5794_v42 = vsub.f32 0.0, %v5730_v48 }
 0x5f9   : > { %7621 = vrcp.f32 %v5980_v2  ;;  %v7612_v46 = vpop.eup %7611 }
 0x5fa   : > { %7623 = vpow2.f32 %v5919_v54  ;;  %v5921_v7 = vmul.f32 1.442695, %v5794_v42  ;;  %v5981_v33 = vadd.f32 1.0, %v7612_v46 }
 0x5fc   : > { %v7614_v47 = vpop.eup %7613  ;;  %7625 = vpow2.f32 %v5921_v7 }
 0x5fd   : > { %7627 = vrcp.f32 %v5981_v33  ;;  %v5982_v19 = vadd.f32 1.0, %v7614_v47 }
 0x5ff   : > { %7629 = vrcp.f32 %v5982_v19  ;;  %v7616_v18 = vpop.eup %7615 }
 0x600   : > { %6172 = vst.msk [vmem:[%s11272_s26 + $0x1c0] sm:$0xff] %vm6115_vm2, %v7616_v18 }
 0x601   : > { %v7618_v38 = vpop.eup %7617 }
 0x602   : > { %v5983_v53 = vadd.f32 1.0, %v7618_v38 }
 0x604   : > { %7631 = vrcp.f32 %v5983_v53 }
 0x605   : > { %v7620_v27 = vpop.eup %7619 }
 0x606   : > { %v7622_v3 = vpop.eup %7621  ;;  %v5984_v36 = vadd.f32 1.0, %v7620_v27 }
 0x607   : > { %6173 = vst.msk [vmem:[%s11272_s26 + $0x1c8] sm:$0xff] %vm6115_vm2, %v7622_v3  ;;  %v7624_v23 = vpop.eup %7623 }
 0x608   : > { %7633 = vrcp.f32 %v5984_v36  ;;  %v5985_v43 = vadd.f32 1.0, %v7624_v23 }
 0x609   : > { %v7626_v59 = vpop.eup %7625 }
 0x60a   : > { %v7628_v60 = vpop.eup %7627  ;;  %7635 = vrcp.f32 %v5985_v43  ;;  %v5986_v34 = vadd.f32 1.0, %v7626_v59 }
 0x60b   : > { %6174 = vst.msk [vmem:[%s11272_s26 + $0x1d0] sm:$0xff] %vm6115_vm2, %v7628_v60 }
 0x60c   : > { %v7630_v28 = vpop.eup %7629  ;;  %7637 = vrcp.f32 %v5986_v34 }
 0x60d   : > { %6175 = vst.msk [vmem:[%s11272_s26 + $0x1d8] sm:$0xff] %vm6115_vm2, %v7630_v28 }
 0x611   : > { %v7632_v22 = vpop.eup %7631 }
 0x612   : > { %6176 = vst.msk [vmem:[%s11272_s26 + $0x1e0] sm:$0xff] %vm6115_vm2, %v7632_v22 }
 0x615   : > { %v7634_v35 = vpop.eup %7633 }
 0x616   : > { %6177 = vst.msk [vmem:[%s11272_s26 + $0x1e8] sm:$0xff] %vm6115_vm2, %v7634_v35 }
 0x617   : > { %v7636_v0 = vpop.eup %7635 }
 0x618   : > { %6178 = vst.msk [vmem:[%s11272_s26 + $0x1f0] sm:$0xff] %vm6115_vm2, %v7636_v0 }
 0x619   : > { %v7638_v15 = vpop.eup %7637 }
 0x61a   : > { %6179 = vst.msk [vmem:[%s11272_s26 + $0x1f8] sm:$0xff] %vm6115_vm2, %v7638_v15 }
 0x61b PF: > { %p27_p7 = scmp.ge.s32.totalorder %s8219_s13, 5   ;;  %s12175_s19 = smov %s8025_s20 }
 0x61c   : > { %s12176_s20 = smov %s8029_s21  ;;  %s12177_s21 = smov %s8230_s12 }
 0x61d   : > { %s12178_s22 = smov %s8219_s13  ;;  %29 = sbr.rel (!%p27_p7) target bundleno = 10 (0xa), region = 132 }
 0x622   :  { %6202 = vsyncpa [#allocation4], 1 }
 0x623   :  { %6204 = vsyncpa [#allocation4 + $0x1], 1 }
 0x624   :  { %6205 = vsyncpa [#allocation6], 1 }
 0x625   :  { %6206 = vsyncpa [#allocation9], 1 }
 0x626   :  { %6207 = vsyncpa [#allocation12], 1 }
 0x627   :  { %6208 = vsyncpa [#allocation15], 1 }

</bundles_post_ra>
